<compile_context>
chip_gen: v6e
topology: v6e:2x2x1
jax: 0.10.0
libtpu: 0.0.40
codegen_flags: <defaults>
</compile_context>

<pallas_src>
import functools

import jax
import jax.numpy as jnp
from jax.experimental import pallas as pl
from jax.experimental.pallas import tpu as pltpu


def _round_up(x, m):
    return (x + m - 1) // m * m


def _ggnn_kernel(x_ref, a_ref, w_ref, wrz_ref, win_ref, whn_ref, b_ref, o_ref,
                 *, num_layers, hidden_pad, unroll):
    """All layers in one grid-less invocation; h carried as an f32 value."""
    Hp = hidden_pad

    def layer_body(l, h):
        hb = h.astype(jnp.bfloat16)
        # Per-layer linear transform (MXU).
        m = jnp.dot(hb, w_ref[l], preferred_element_type=jnp.float32)
        # Message passing: scatter-add over incoming edges == A @ m (MXU).
        agg = jnp.dot(a_ref[...], m.astype(jnp.bfloat16),
                      preferred_element_type=jnp.float32)
        ab = agg.astype(jnp.bfloat16)

        # r/z gates: single fused matmul over K = 2*Hp on [agg | h]; the
        # input+hidden accumulation happens inside the MXU, not on the VPU.
        cat = jnp.concatenate([ab, hb], axis=1)              # (Np, 2Hp) bf16
        g_rz = jnp.dot(cat, wrz_ref[...],
                       preferred_element_type=jnp.float32) + b_ref[:, :2 * Hp]
        r = jax.nn.sigmoid(g_rz[:, :Hp])
        z = jax.nn.sigmoid(g_rz[:, Hp:])

        # n gate: input/hidden products stay separate (r gates only the hidden
        # part after its matmul), so they cannot join the fused dot above.
        gi_n = jnp.dot(ab, win_ref[...], preferred_element_type=jnp.float32)
        gh_n = jnp.dot(hb, whn_ref[...], preferred_element_type=jnp.float32)
        n = jnp.tanh(gi_n + b_ref[:, 2 * Hp:3 * Hp]
                     + r * (gh_n + b_ref[:, 3 * Hp:4 * Hp]))

        # (1-z)*n + z*h == n + z*(h - n): one fewer VALU op per element.
        return n + z * (h - n)

    h = jax.lax.fori_loop(0, num_layers, layer_body, x_ref[...], unroll=unroll)
    o_ref[...] = h.astype(o_ref.dtype)


def _pack_params(params, hidden_dim, hidden_pad):
    """Zero-pad + concatenate GRU weights into lane-dense bf16 slabs."""
    H, Hp = hidden_dim, hidden_pad
    pad_w = lambda w: jnp.pad(w, ((0, Hp - H), (0, Hp - H)))
    pad_b = lambda b: jnp.pad(b, ((0, 0), (0, Hp - H)))

    w = jnp.pad(params["w"],
                ((0, 0), (0, Hp - H), (0, Hp - H))).astype(jnp.bfloat16)
    # Fused r/z weight: [agg | h] @ [[Wir, Wiz], [Whr, Whz]]  -> (2Hp, 2Hp).
    wrz = jnp.concatenate(
        [jnp.concatenate([pad_w(params["wir"]), pad_w(params["wiz"])], axis=1),
         jnp.concatenate([pad_w(params["whr"]), pad_w(params["whz"])], axis=1)],
        axis=0).astype(jnp.bfloat16)
    win = pad_w(params["win"]).astype(jnp.bfloat16)
    whn = pad_w(params["whn"]).astype(jnp.bfloat16)
    # Single f32 bias slab: [bir+bhr | biz+bhz | bin | bhn]  -> (1, 4Hp).
    b = jnp.concatenate(
        [pad_b(params["bir"] + params["bhr"]),
         pad_b(params["biz"] + params["bhz"]),
         pad_b(params["bin"]),
         pad_b(params["bhn"])], axis=1).astype(jnp.float32)
    return w, wrz, win, whn, b


def _build_dense_adjacency(edge_index, n_nodes, n_pad):
    """Dense A[dst, src] multiplicities, built directly in bf16.

    NOTE: bf16 is only integer-exact for per-edge multiplicities <= 256; fine
    for simple graphs. Hoist + cache this when the graph is static across calls.
    """
    ones = jnp.ones((edge_index.shape[1],), jnp.bfloat16)
    return jnp.zeros((n_pad, n_pad), jnp.bfloat16).at[
        edge_index[1], edge_index[0]].add(ones)


@functools.partial(jax.jit, static_argnames=("num_layers", "hidden_dim"))
def ggnn_node_forward(x, edge_index, params, *, num_layers, hidden_dim):
    n_nodes, in_dim = x.shape
    assert in_dim <= hidden_dim, "in_channels must be <= hidden_dim"

    Hp = _round_up(hidden_dim, 128)   # lane padding (multiple of 128)
    Np = _round_up(n_nodes, 16)       # sublane padding (bf16 M-dim packing)

    # Glue: zero-pad features, dense adjacency A[dst, src] in bf16.
    # (Padded node rows stay harmless: A's padded columns are zero and the
    #  padded rows are sliced off at the end; must be masked if node tiling /
    #  CSR scatter is ever added.)
    x_pad = jnp.zeros((Np, Hp), jnp.float32).at[
        :n_nodes, :in_dim].set(x.astype(jnp.float32))
    a = _build_dense_adjacency(edge_index, n_nodes, Np)

    w, wrz, win, whn, b = _pack_params(params, hidden_dim, Hp)

    kernel = functools.partial(
        _ggnn_kernel,
        num_layers=num_layers,
        hidden_pad=Hp,
        unroll=(num_layers <= 8))     # full unroll only while it stays cheap

    # Resident VMEM footprint (everything lives in VMEM, single-buffered).
    resident = (Np * Hp * 4                      # x_pad
                + Np * Np * 2                    # adjacency (bf16)
                + num_layers * Hp * Hp * 2       # per-layer W stack
                + (2 * Hp) * (2 * Hp) * 2        # fused r/z weights
                + 2 * Hp * Hp * 2                # win, whn
                + 4 * Hp * 4                     # bias slab
                + Np * Hp * 4)                   # output
    vmem_limit = int(min(100 << 20, max(2 * resident + (4 << 20), 16 << 20)))

    vmem_spec = pl.BlockSpec(memory_space=pltpu.MemorySpace.VMEM)

    out = pl.pallas_call(
        kernel,
        out_shape=jax.ShapeDtypeStruct((Np, Hp), jnp.float32),
        in_specs=[vmem_spec] * 7,
        out_specs=vmem_spec,
        compiler_params=pltpu.CompilerParams(vmem_limit_bytes=vmem_limit),
    )(x_pad, a, w, wrz, win, whn, b)

    return out[:n_nodes, :hidden_dim]


def ggnn_node_reference(x, edge_index, params, *, num_layers, hidden_dim):
    """Pure-JAX f32 reference mirroring torch_geometric GatedGraphConv + GRUCell."""
    n_nodes, in_dim = x.shape
    h = jnp.pad(x.astype(jnp.float32), ((0, 0), (0, hidden_dim - in_dim)))
    a = jnp.zeros((n_nodes, n_nodes), jnp.float32).at[
        edge_index[1], edge_index[0]].add(1.0)
    for l in range(num_layers):
        m = h @ params["w"][l]
        agg = a @ m
        r = jax.nn.sigmoid(agg @ params["wir"] + params["bir"]
                           + h @ params["whr"] + params["bhr"])
        z = jax.nn.sigmoid(agg @ params["wiz"] + params["biz"]
                           + h @ params["whz"] + params["bhz"])
        n = jnp.tanh(agg @ params["win"] + params["bin"]
                     + r * (h @ params["whn"] + params["bhn"]))
        h = (1.0 - z) * n + z * h
    return h


def init_params(key, num_layers, hidden_dim):
    """Deterministic synthetic init (uniform +-1/sqrt(H), like torch defaults)."""
    bound = 1.0 / jnp.sqrt(jnp.float32(hidden_dim))
    keys = jax.random.split(key, 13)
    u = lambda k, shape: jax.random.uniform(
        k, shape, jnp.float32, minval=-bound, maxval=bound)
    return {
        "w":   u(keys[0], (num_layers, hidden_dim, hidden_dim)),
        # GRU input / hidden weights, stored already transposed: (H_in, H_out).
        "wir": u(keys[1], (hidden_dim, hidden_dim)),
        "wiz": u(keys[2], (hidden_dim, hidden_dim)),
        "win": u(keys[3], (hidden_dim, hidden_dim)),
        "whr": u(keys[4], (hidden_dim, hidden_dim)),
        "whz": u(keys[5], (hidden_dim, hidden_dim)),
        "whn": u(keys[6], (hidden_dim, hidden_dim)),
        # Biases kept 2D (1, H) for TPU-friendly layout.
        "bir": u(keys[7],  (1, hidden_dim)),
        "biz": u(keys[8],  (1, hidden_dim)),
        "bin": u(keys[9],  (1, hidden_dim)),
        "bhr": u(keys[10], (1, hidden_dim)),
        "bhz": u(keys[11], (1, hidden_dim)),
        "bhn": u(keys[12], (1, hidden_dim)),
    }


if __name__ == "__main__":
    NUM_LAYERS = 5      # module defaults
    HIDDEN_DIM = 150    # pads to 256 lanes inside the wrapper
    N_NODES = 64
    IN_CHANNELS = 32
    N_EDGES = 256

    root = jax.random.PRNGKey(0)
    k_x, k_e, k_p = jax.random.split(root, 3)

    x = jax.random.normal(k_x, (N_NODES, IN_CHANNELS), jnp.float32)
    edge_index = jax.random.randint(k_e, (2, N_EDGES), 0, N_NODES, jnp.int32)
    params = init_params(k_p, NUM_LAYERS, HIDDEN_DIM)

    out = ggnn_node_forward(x, edge_index, params,
                            num_layers=NUM_LAYERS, hidden_dim=HIDDEN_DIM)
    out = jax.block_until_ready(out)

    ref = ggnn_node_reference(x, edge_index, params,
                              num_layers=NUM_LAYERS, hidden_dim=HIDDEN_DIM)
    assert out.shape == (N_NODES, HIDDEN_DIM)
    # bf16 matmul inputs (f32 accumulation) -> relaxed tolerance vs f32 reference.
    assert jnp.allclose(out, ref, atol=5e-2, rtol=5e-2), "kernel mismatch vs reference"

    print("KERNEL_OK")
</pallas_src>

<mosaic_0001>
module attributes {stable_mosaic.version = 11 : i64} {
  func.func @_ggnn_kernel(%arg0: memref<64x256xf32, #tpu.memory_space<vmem>>, %arg1: memref<64x64xbf16, #tpu.memory_space<vmem>>, %arg2: memref<5x256x256xbf16, #tpu.memory_space<vmem>>, %arg3: memref<512x512xbf16, #tpu.memory_space<vmem>>, %arg4: memref<256x256xbf16, #tpu.memory_space<vmem>>, %arg5: memref<256x256xbf16, #tpu.memory_space<vmem>>, %arg6: memref<1x1024xf32, #tpu.memory_space<vmem>>, %arg7: memref<64x256xf32, #tpu.memory_space<vmem>>) attributes {dimension_semantics = [], scalar_prefetch = 0 : i64, scratch_operands = 0 : i64, tpu.core_type = #tpu.core_type<tc>} {
    %c0 = arith.constant 0 : index
    %c0_0 = arith.constant 0 : index
    %0 = vector.load %arg0[%c0, %c0_0] : memref<64x256xf32, #tpu.memory_space<vmem>>, vector<64x256xf32>
    %c0_i32 = arith.constant 0 : i32
    %1 = arith.truncf %0 : vector<64x256xf32> to vector<64x256xbf16>
    %2 = arith.index_cast %c0_i32 : i32 to index
    %c0_1 = arith.constant 0 : index
    %c0_2 = arith.constant 0 : index
    %3 = vector.load %arg2[%2, %c0_1, %c0_2] : memref<5x256x256xbf16, #tpu.memory_space<vmem>>, vector<1x256x256xbf16>
    %4 = vector.shape_cast %3 : vector<1x256x256xbf16> to vector<256x256xbf16>
    %cst = arith.constant dense<0.000000e+00> : vector<64x256xf32>
    %5 = tpu.matmul %1, %4, %cst {dimension_numbers = #tpu.dot_dimension_numbers<[1], [0], [0], [1], [0, 0, 1, 1], [], []>} : vector<64x256xbf16>, vector<256x256xbf16>, vector<64x256xf32> -> vector<64x256xf32>
    %c0_3 = arith.constant 0 : index
    %c0_4 = arith.constant 0 : index
    %6 = vector.load %arg1[%c0_3, %c0_4] : memref<64x64xbf16, #tpu.memory_space<vmem>>, vector<64x64xbf16>
    %7 = arith.truncf %5 : vector<64x256xf32> to vector<64x256xbf16>
    %cst_5 = arith.constant dense<0.000000e+00> : vector<64x256xf32>
    %8 = tpu.matmul %6, %7, %cst_5 {dimension_numbers = #tpu.dot_dimension_numbers<[1], [0], [0], [1], [0, 0, 1, 1], [], []>} : vector<64x64xbf16>, vector<64x256xbf16>, vector<64x256xf32> -> vector<64x256xf32>
    %9 = arith.truncf %8 : vector<64x256xf32> to vector<64x256xbf16>
    %10 = tpu.concatenate %9, %1 in 1 : vector<64x256xbf16>, vector<64x256xbf16> -> vector<64x512xbf16>
    %c0_6 = arith.constant 0 : index
    %c0_7 = arith.constant 0 : index
    %11 = vector.load %arg3[%c0_6, %c0_7] : memref<512x512xbf16, #tpu.memory_space<vmem>>, vector<512x512xbf16>
    %cst_8 = arith.constant dense<0.000000e+00> : vector<64x512xf32>
    %12 = tpu.matmul %10, %11, %cst_8 {dimension_numbers = #tpu.dot_dimension_numbers<[1], [0], [0], [1], [0, 0, 1, 1], [], []>} : vector<64x512xbf16>, vector<512x512xbf16>, vector<64x512xf32> -> vector<64x512xf32>
    %c0_9 = arith.constant 0 : index
    %c0_10 = arith.constant 0 : index
    %13 = vector.load %arg6[%c0_9, %c0_10] : memref<1x1024xf32, #tpu.memory_space<vmem>>, vector<1x512xf32>
    %14 = vector.broadcast %13 : vector<1x512xf32> to vector<64x512xf32>
    %15 = arith.addf %12, %14 : vector<64x512xf32>
    %16 = vector.extract_strided_slice %15 {offsets = [0, 0], sizes = [64, 256], strides = [1, 1]} : vector<64x512xf32> to vector<64x256xf32>
    %17 = arith.negf %16 : vector<64x256xf32>
    %18 = math.exp %17 : vector<64x256xf32>
    %cst_11 = arith.constant 1.000000e+00 : f32
    %19 = vector.broadcast %cst_11 : f32 to vector<64x256xf32>
    %20 = arith.addf %19, %18 : vector<64x256xf32>
    %21 = arith.divf %19, %20 : vector<64x256xf32>
    %22 = vector.extract_strided_slice %15 {offsets = [0, 256], sizes = [64, 256], strides = [1, 1]} : vector<64x512xf32> to vector<64x256xf32>
    %23 = arith.negf %22 : vector<64x256xf32>
    %24 = math.exp %23 : vector<64x256xf32>
    %cst_12 = arith.constant 1.000000e+00 : f32
    %25 = vector.broadcast %cst_12 : f32 to vector<64x256xf32>
    %26 = arith.addf %25, %24 : vector<64x256xf32>
    %27 = arith.divf %25, %26 : vector<64x256xf32>
    %c0_13 = arith.constant 0 : index
    %c0_14 = arith.constant 0 : index
    %28 = vector.load %arg4[%c0_13, %c0_14] : memref<256x256xbf16, #tpu.memory_space<vmem>>, vector<256x256xbf16>
    %cst_15 = arith.constant dense<0.000000e+00> : vector<64x256xf32>
    %29 = tpu.matmul %9, %28, %cst_15 {dimension_numbers = #tpu.dot_dimension_numbers<[1], [0], [0], [1], [0, 0, 1, 1], [], []>} : vector<64x256xbf16>, vector<256x256xbf16>, vector<64x256xf32> -> vector<64x256xf32>
    %c0_16 = arith.constant 0 : index
    %c0_17 = arith.constant 0 : index
    %30 = vector.load %arg5[%c0_16, %c0_17] : memref<256x256xbf16, #tpu.memory_space<vmem>>, vector<256x256xbf16>
    %cst_18 = arith.constant dense<0.000000e+00> : vector<64x256xf32>
    %31 = tpu.matmul %1, %30, %cst_18 {dimension_numbers = #tpu.dot_dimension_numbers<[1], [0], [0], [1], [0, 0, 1, 1], [], []>} : vector<64x256xbf16>, vector<256x256xbf16>, vector<64x256xf32> -> vector<64x256xf32>
    %c0_19 = arith.constant 0 : index
    %c512 = arith.constant 512 : index
    %32 = vector.load %arg6[%c0_19, %c512] : memref<1x1024xf32, #tpu.memory_space<vmem>>, vector<1x256xf32>
    %33 = vector.broadcast %32 : vector<1x256xf32> to vector<64x256xf32>
    %34 = arith.addf %29, %33 : vector<64x256xf32>
    %c0_20 = arith.constant 0 : index
    %c768 = arith.constant 768 : index
    %35 = vector.load %arg6[%c0_20, %c768] : memref<1x1024xf32, #tpu.memory_space<vmem>>, vector<1x256xf32>
    %36 = vector.broadcast %35 : vector<1x256xf32> to vector<64x256xf32>
    %37 = arith.addf %31, %36 : vector<64x256xf32>
    %38 = arith.mulf %21, %37 : vector<64x256xf32>
    %39 = arith.addf %34, %38 : vector<64x256xf32>
    %40 = math.tanh %39 : vector<64x256xf32>
    %41 = arith.subf %0, %40 : vector<64x256xf32>
    %42 = arith.mulf %27, %41 : vector<64x256xf32>
    %43 = arith.addf %40, %42 : vector<64x256xf32>
    %c1_i32 = arith.constant 1 : i32
    %44 = arith.truncf %43 : vector<64x256xf32> to vector<64x256xbf16>
    %45 = arith.index_cast %c1_i32 : i32 to index
    %c0_21 = arith.constant 0 : index
    %c0_22 = arith.constant 0 : index
    %46 = vector.load %arg2[%45, %c0_21, %c0_22] : memref<5x256x256xbf16, #tpu.memory_space<vmem>>, vector<1x256x256xbf16>
    %47 = vector.shape_cast %46 : vector<1x256x256xbf16> to vector<256x256xbf16>
    %cst_23 = arith.constant dense<0.000000e+00> : vector<64x256xf32>
    %48 = tpu.matmul %44, %47, %cst_23 {dimension_numbers = #tpu.dot_dimension_numbers<[1], [0], [0], [1], [0, 0, 1, 1], [], []>} : vector<64x256xbf16>, vector<256x256xbf16>, vector<64x256xf32> -> vector<64x256xf32>
    %c0_24 = arith.constant 0 : index
    %c0_25 = arith.constant 0 : index
    %49 = vector.load %arg1[%c0_24, %c0_25] : memref<64x64xbf16, #tpu.memory_space<vmem>>, vector<64x64xbf16>
    %50 = arith.truncf %48 : vector<64x256xf32> to vector<64x256xbf16>
    %cst_26 = arith.constant dense<0.000000e+00> : vector<64x256xf32>
    %51 = tpu.matmul %49, %50, %cst_26 {dimension_numbers = #tpu.dot_dimension_numbers<[1], [0], [0], [1], [0, 0, 1, 1], [], []>} : vector<64x64xbf16>, vector<64x256xbf16>, vector<64x256xf32> -> vector<64x256xf32>
    %52 = arith.truncf %51 : vector<64x256xf32> to vector<64x256xbf16>
    %53 = tpu.concatenate %52, %44 in 1 : vector<64x256xbf16>, vector<64x256xbf16> -> vector<64x512xbf16>
    %c0_27 = arith.constant 0 : index
    %c0_28 = arith.constant 0 : index
    %54 = vector.load %arg3[%c0_27, %c0_28] : memref<512x512xbf16, #tpu.memory_space<vmem>>, vector<512x512xbf16>
    %cst_29 = arith.constant dense<0.000000e+00> : vector<64x512xf32>
    %55 = tpu.matmul %53, %54, %cst_29 {dimension_numbers = #tpu.dot_dimension_numbers<[1], [0], [0], [1], [0, 0, 1, 1], [], []>} : vector<64x512xbf16>, vector<512x512xbf16>, vector<64x512xf32> -> vector<64x512xf32>
    %c0_30 = arith.constant 0 : index
    %c0_31 = arith.constant 0 : index
    %56 = vector.load %arg6[%c0_30, %c0_31] : memref<1x1024xf32, #tpu.memory_space<vmem>>, vector<1x512xf32>
    %57 = vector.broadcast %56 : vector<1x512xf32> to vector<64x512xf32>
    %58 = arith.addf %55, %57 : vector<64x512xf32>
    %59 = vector.extract_strided_slice %58 {offsets = [0, 0], sizes = [64, 256], strides = [1, 1]} : vector<64x512xf32> to vector<64x256xf32>
    %60 = arith.negf %59 : vector<64x256xf32>
    %61 = math.exp %60 : vector<64x256xf32>
    %cst_32 = arith.constant 1.000000e+00 : f32
    %62 = vector.broadcast %cst_32 : f32 to vector<64x256xf32>
    %63 = arith.addf %62, %61 : vector<64x256xf32>
    %64 = arith.divf %62, %63 : vector<64x256xf32>
    %65 = vector.extract_strided_slice %58 {offsets = [0, 256], sizes = [64, 256], strides = [1, 1]} : vector<64x512xf32> to vector<64x256xf32>
    %66 = arith.negf %65 : vector<64x256xf32>
    %67 = math.exp %66 : vector<64x256xf32>
    %cst_33 = arith.constant 1.000000e+00 : f32
    %68 = vector.broadcast %cst_33 : f32 to vector<64x256xf32>
    %69 = arith.addf %68, %67 : vector<64x256xf32>
    %70 = arith.divf %68, %69 : vector<64x256xf32>
    %c0_34 = arith.constant 0 : index
    %c0_35 = arith.constant 0 : index
    %71 = vector.load %arg4[%c0_34, %c0_35] : memref<256x256xbf16, #tpu.memory_space<vmem>>, vector<256x256xbf16>
    %cst_36 = arith.constant dense<0.000000e+00> : vector<64x256xf32>
    %72 = tpu.matmul %52, %71, %cst_36 {dimension_numbers = #tpu.dot_dimension_numbers<[1], [0], [0], [1], [0, 0, 1, 1], [], []>} : vector<64x256xbf16>, vector<256x256xbf16>, vector<64x256xf32> -> vector<64x256xf32>
    %c0_37 = arith.constant 0 : index
    %c0_38 = arith.constant 0 : index
    %73 = vector.load %arg5[%c0_37, %c0_38] : memref<256x256xbf16, #tpu.memory_space<vmem>>, vector<256x256xbf16>
    %cst_39 = arith.constant dense<0.000000e+00> : vector<64x256xf32>
    %74 = tpu.matmul %44, %73, %cst_39 {dimension_numbers = #tpu.dot_dimension_numbers<[1], [0], [0], [1], [0, 0, 1, 1], [], []>} : vector<64x256xbf16>, vector<256x256xbf16>, vector<64x256xf32> -> vector<64x256xf32>
    %c0_40 = arith.constant 0 : index
    %c512_41 = arith.constant 512 : index
    %75 = vector.load %arg6[%c0_40, %c512_41] : memref<1x1024xf32, #tpu.memory_space<vmem>>, vector<1x256xf32>
    %76 = vector.broadcast %75 : vector<1x256xf32> to vector<64x256xf32>
    %77 = arith.addf %72, %76 : vector<64x256xf32>
    %c0_42 = arith.constant 0 : index
    %c768_43 = arith.constant 768 : index
    %78 = vector.load %arg6[%c0_42, %c768_43] : memref<1x1024xf32, #tpu.memory_space<vmem>>, vector<1x256xf32>
    %79 = vector.broadcast %78 : vector<1x256xf32> to vector<64x256xf32>
    %80 = arith.addf %74, %79 : vector<64x256xf32>
    %81 = arith.mulf %64, %80 : vector<64x256xf32>
    %82 = arith.addf %77, %81 : vector<64x256xf32>
    %83 = math.tanh %82 : vector<64x256xf32>
    %84 = arith.subf %43, %83 : vector<64x256xf32>
    %85 = arith.mulf %70, %84 : vector<64x256xf32>
    %86 = arith.addf %83, %85 : vector<64x256xf32>
    %c2_i32 = arith.constant 2 : i32
    %87 = arith.truncf %86 : vector<64x256xf32> to vector<64x256xbf16>
    %88 = arith.index_cast %c2_i32 : i32 to index
    %c0_44 = arith.constant 0 : index
    %c0_45 = arith.constant 0 : index
    %89 = vector.load %arg2[%88, %c0_44, %c0_45] : memref<5x256x256xbf16, #tpu.memory_space<vmem>>, vector<1x256x256xbf16>
    %90 = vector.shape_cast %89 : vector<1x256x256xbf16> to vector<256x256xbf16>
    %cst_46 = arith.constant dense<0.000000e+00> : vector<64x256xf32>
    %91 = tpu.matmul %87, %90, %cst_46 {dimension_numbers = #tpu.dot_dimension_numbers<[1], [0], [0], [1], [0, 0, 1, 1], [], []>} : vector<64x256xbf16>, vector<256x256xbf16>, vector<64x256xf32> -> vector<64x256xf32>
    %c0_47 = arith.constant 0 : index
    %c0_48 = arith.constant 0 : index
    %92 = vector.load %arg1[%c0_47, %c0_48] : memref<64x64xbf16, #tpu.memory_space<vmem>>, vector<64x64xbf16>
    %93 = arith.truncf %91 : vector<64x256xf32> to vector<64x256xbf16>
    %cst_49 = arith.constant dense<0.000000e+00> : vector<64x256xf32>
    %94 = tpu.matmul %92, %93, %cst_49 {dimension_numbers = #tpu.dot_dimension_numbers<[1], [0], [0], [1], [0, 0, 1, 1], [], []>} : vector<64x64xbf16>, vector<64x256xbf16>, vector<64x256xf32> -> vector<64x256xf32>
    %95 = arith.truncf %94 : vector<64x256xf32> to vector<64x256xbf16>
    %96 = tpu.concatenate %95, %87 in 1 : vector<64x256xbf16>, vector<64x256xbf16> -> vector<64x512xbf16>
    %c0_50 = arith.constant 0 : index
    %c0_51 = arith.constant 0 : index
    %97 = vector.load %arg3[%c0_50, %c0_51] : memref<512x512xbf16, #tpu.memory_space<vmem>>, vector<512x512xbf16>
    %cst_52 = arith.constant dense<0.000000e+00> : vector<64x512xf32>
    %98 = tpu.matmul %96, %97, %cst_52 {dimension_numbers = #tpu.dot_dimension_numbers<[1], [0], [0], [1], [0, 0, 1, 1], [], []>} : vector<64x512xbf16>, vector<512x512xbf16>, vector<64x512xf32> -> vector<64x512xf32>
    %c0_53 = arith.constant 0 : index
    %c0_54 = arith.constant 0 : index
    %99 = vector.load %arg6[%c0_53, %c0_54] : memref<1x1024xf32, #tpu.memory_space<vmem>>, vector<1x512xf32>
    %100 = vector.broadcast %99 : vector<1x512xf32> to vector<64x512xf32>
    %101 = arith.addf %98, %100 : vector<64x512xf32>
    %102 = vector.extract_strided_slice %101 {offsets = [0, 0], sizes = [64, 256], strides = [1, 1]} : vector<64x512xf32> to vector<64x256xf32>
    %103 = arith.negf %102 : vector<64x256xf32>
    %104 = math.exp %103 : vector<64x256xf32>
    %cst_55 = arith.constant 1.000000e+00 : f32
    %105 = vector.broadcast %cst_55 : f32 to vector<64x256xf32>
    %106 = arith.addf %105, %104 : vector<64x256xf32>
    %107 = arith.divf %105, %106 : vector<64x256xf32>
    %108 = vector.extract_strided_slice %101 {offsets = [0, 256], sizes = [64, 256], strides = [1, 1]} : vector<64x512xf32> to vector<64x256xf32>
    %109 = arith.negf %108 : vector<64x256xf32>
    %110 = math.exp %109 : vector<64x256xf32>
    %cst_56 = arith.constant 1.000000e+00 : f32
    %111 = vector.broadcast %cst_56 : f32 to vector<64x256xf32>
    %112 = arith.addf %111, %110 : vector<64x256xf32>
    %113 = arith.divf %111, %112 : vector<64x256xf32>
    %c0_57 = arith.constant 0 : index
    %c0_58 = arith.constant 0 : index
    %114 = vector.load %arg4[%c0_57, %c0_58] : memref<256x256xbf16, #tpu.memory_space<vmem>>, vector<256x256xbf16>
    %cst_59 = arith.constant dense<0.000000e+00> : vector<64x256xf32>
    %115 = tpu.matmul %95, %114, %cst_59 {dimension_numbers = #tpu.dot_dimension_numbers<[1], [0], [0], [1], [0, 0, 1, 1], [], []>} : vector<64x256xbf16>, vector<256x256xbf16>, vector<64x256xf32> -> vector<64x256xf32>
    %c0_60 = arith.constant 0 : index
    %c0_61 = arith.constant 0 : index
    %116 = vector.load %arg5[%c0_60, %c0_61] : memref<256x256xbf16, #tpu.memory_space<vmem>>, vector<256x256xbf16>
    %cst_62 = arith.constant dense<0.000000e+00> : vector<64x256xf32>
    %117 = tpu.matmul %87, %116, %cst_62 {dimension_numbers = #tpu.dot_dimension_numbers<[1], [0], [0], [1], [0, 0, 1, 1], [], []>} : vector<64x256xbf16>, vector<256x256xbf16>, vector<64x256xf32> -> vector<64x256xf32>
    %c0_63 = arith.constant 0 : index
    %c512_64 = arith.constant 512 : index
    %118 = vector.load %arg6[%c0_63, %c512_64] : memref<1x1024xf32, #tpu.memory_space<vmem>>, vector<1x256xf32>
    %119 = vector.broadcast %118 : vector<1x256xf32> to vector<64x256xf32>
    %120 = arith.addf %115, %119 : vector<64x256xf32>
    %c0_65 = arith.constant 0 : index
    %c768_66 = arith.constant 768 : index
    %121 = vector.load %arg6[%c0_65, %c768_66] : memref<1x1024xf32, #tpu.memory_space<vmem>>, vector<1x256xf32>
    %122 = vector.broadcast %121 : vector<1x256xf32> to vector<64x256xf32>
    %123 = arith.addf %117, %122 : vector<64x256xf32>
    %124 = arith.mulf %107, %123 : vector<64x256xf32>
    %125 = arith.addf %120, %124 : vector<64x256xf32>
    %126 = math.tanh %125 : vector<64x256xf32>
    %127 = arith.subf %86, %126 : vector<64x256xf32>
    %128 = arith.mulf %113, %127 : vector<64x256xf32>
    %129 = arith.addf %126, %128 : vector<64x256xf32>
    %c3_i32 = arith.constant 3 : i32
    %130 = arith.truncf %129 : vector<64x256xf32> to vector<64x256xbf16>
    %131 = arith.index_cast %c3_i32 : i32 to index
    %c0_67 = arith.constant 0 : index
    %c0_68 = arith.constant 0 : index
    %132 = vector.load %arg2[%131, %c0_67, %c0_68] : memref<5x256x256xbf16, #tpu.memory_space<vmem>>, vector<1x256x256xbf16>
    %133 = vector.shape_cast %132 : vector<1x256x256xbf16> to vector<256x256xbf16>
    %cst_69 = arith.constant dense<0.000000e+00> : vector<64x256xf32>
    %134 = tpu.matmul %130, %133, %cst_69 {dimension_numbers = #tpu.dot_dimension_numbers<[1], [0], [0], [1], [0, 0, 1, 1], [], []>} : vector<64x256xbf16>, vector<256x256xbf16>, vector<64x256xf32> -> vector<64x256xf32>
    %c0_70 = arith.constant 0 : index
    %c0_71 = arith.constant 0 : index
    %135 = vector.load %arg1[%c0_70, %c0_71] : memref<64x64xbf16, #tpu.memory_space<vmem>>, vector<64x64xbf16>
    %136 = arith.truncf %134 : vector<64x256xf32> to vector<64x256xbf16>
    %cst_72 = arith.constant dense<0.000000e+00> : vector<64x256xf32>
    %137 = tpu.matmul %135, %136, %cst_72 {dimension_numbers = #tpu.dot_dimension_numbers<[1], [0], [0], [1], [0, 0, 1, 1], [], []>} : vector<64x64xbf16>, vector<64x256xbf16>, vector<64x256xf32> -> vector<64x256xf32>
    %138 = arith.truncf %137 : vector<64x256xf32> to vector<64x256xbf16>
    %139 = tpu.concatenate %138, %130 in 1 : vector<64x256xbf16>, vector<64x256xbf16> -> vector<64x512xbf16>
    %c0_73 = arith.constant 0 : index
    %c0_74 = arith.constant 0 : index
    %140 = vector.load %arg3[%c0_73, %c0_74] : memref<512x512xbf16, #tpu.memory_space<vmem>>, vector<512x512xbf16>
    %cst_75 = arith.constant dense<0.000000e+00> : vector<64x512xf32>
    %141 = tpu.matmul %139, %140, %cst_75 {dimension_numbers = #tpu.dot_dimension_numbers<[1], [0], [0], [1], [0, 0, 1, 1], [], []>} : vector<64x512xbf16>, vector<512x512xbf16>, vector<64x512xf32> -> vector<64x512xf32>
    %c0_76 = arith.constant 0 : index
    %c0_77 = arith.constant 0 : index
    %142 = vector.load %arg6[%c0_76, %c0_77] : memref<1x1024xf32, #tpu.memory_space<vmem>>, vector<1x512xf32>
    %143 = vector.broadcast %142 : vector<1x512xf32> to vector<64x512xf32>
    %144 = arith.addf %141, %143 : vector<64x512xf32>
    %145 = vector.extract_strided_slice %144 {offsets = [0, 0], sizes = [64, 256], strides = [1, 1]} : vector<64x512xf32> to vector<64x256xf32>
    %146 = arith.negf %145 : vector<64x256xf32>
    %147 = math.exp %146 : vector<64x256xf32>
    %cst_78 = arith.constant 1.000000e+00 : f32
    %148 = vector.broadcast %cst_78 : f32 to vector<64x256xf32>
    %149 = arith.addf %148, %147 : vector<64x256xf32>
    %150 = arith.divf %148, %149 : vector<64x256xf32>
    %151 = vector.extract_strided_slice %144 {offsets = [0, 256], sizes = [64, 256], strides = [1, 1]} : vector<64x512xf32> to vector<64x256xf32>
    %152 = arith.negf %151 : vector<64x256xf32>
    %153 = math.exp %152 : vector<64x256xf32>
    %cst_79 = arith.constant 1.000000e+00 : f32
    %154 = vector.broadcast %cst_79 : f32 to vector<64x256xf32>
    %155 = arith.addf %154, %153 : vector<64x256xf32>
    %156 = arith.divf %154, %155 : vector<64x256xf32>
    %c0_80 = arith.constant 0 : index
    %c0_81 = arith.constant 0 : index
    %157 = vector.load %arg4[%c0_80, %c0_81] : memref<256x256xbf16, #tpu.memory_space<vmem>>, vector<256x256xbf16>
    %cst_82 = arith.constant dense<0.000000e+00> : vector<64x256xf32>
    %158 = tpu.matmul %138, %157, %cst_82 {dimension_numbers = #tpu.dot_dimension_numbers<[1], [0], [0], [1], [0, 0, 1, 1], [], []>} : vector<64x256xbf16>, vector<256x256xbf16>, vector<64x256xf32> -> vector<64x256xf32>
    %c0_83 = arith.constant 0 : index
    %c0_84 = arith.constant 0 : index
    %159 = vector.load %arg5[%c0_83, %c0_84] : memref<256x256xbf16, #tpu.memory_space<vmem>>, vector<256x256xbf16>
    %cst_85 = arith.constant dense<0.000000e+00> : vector<64x256xf32>
    %160 = tpu.matmul %130, %159, %cst_85 {dimension_numbers = #tpu.dot_dimension_numbers<[1], [0], [0], [1], [0, 0, 1, 1], [], []>} : vector<64x256xbf16>, vector<256x256xbf16>, vector<64x256xf32> -> vector<64x256xf32>
    %c0_86 = arith.constant 0 : index
    %c512_87 = arith.constant 512 : index
    %161 = vector.load %arg6[%c0_86, %c512_87] : memref<1x1024xf32, #tpu.memory_space<vmem>>, vector<1x256xf32>
    %162 = vector.broadcast %161 : vector<1x256xf32> to vector<64x256xf32>
    %163 = arith.addf %158, %162 : vector<64x256xf32>
    %c0_88 = arith.constant 0 : index
    %c768_89 = arith.constant 768 : index
    %164 = vector.load %arg6[%c0_88, %c768_89] : memref<1x1024xf32, #tpu.memory_space<vmem>>, vector<1x256xf32>
    %165 = vector.broadcast %164 : vector<1x256xf32> to vector<64x256xf32>
    %166 = arith.addf %160, %165 : vector<64x256xf32>
    %167 = arith.mulf %150, %166 : vector<64x256xf32>
    %168 = arith.addf %163, %167 : vector<64x256xf32>
    %169 = math.tanh %168 : vector<64x256xf32>
    %170 = arith.subf %129, %169 : vector<64x256xf32>
    %171 = arith.mulf %156, %170 : vector<64x256xf32>
    %172 = arith.addf %169, %171 : vector<64x256xf32>
    %c4_i32 = arith.constant 4 : i32
    %173 = arith.truncf %172 : vector<64x256xf32> to vector<64x256xbf16>
    %174 = arith.index_cast %c4_i32 : i32 to index
    %c0_90 = arith.constant 0 : index
    %c0_91 = arith.constant 0 : index
    %175 = vector.load %arg2[%174, %c0_90, %c0_91] : memref<5x256x256xbf16, #tpu.memory_space<vmem>>, vector<1x256x256xbf16>
    %176 = vector.shape_cast %175 : vector<1x256x256xbf16> to vector<256x256xbf16>
    %cst_92 = arith.constant dense<0.000000e+00> : vector<64x256xf32>
    %177 = tpu.matmul %173, %176, %cst_92 {dimension_numbers = #tpu.dot_dimension_numbers<[1], [0], [0], [1], [0, 0, 1, 1], [], []>} : vector<64x256xbf16>, vector<256x256xbf16>, vector<64x256xf32> -> vector<64x256xf32>
    %c0_93 = arith.constant 0 : index
    %c0_94 = arith.constant 0 : index
    %178 = vector.load %arg1[%c0_93, %c0_94] : memref<64x64xbf16, #tpu.memory_space<vmem>>, vector<64x64xbf16>
    %179 = arith.truncf %177 : vector<64x256xf32> to vector<64x256xbf16>
    %cst_95 = arith.constant dense<0.000000e+00> : vector<64x256xf32>
    %180 = tpu.matmul %178, %179, %cst_95 {dimension_numbers = #tpu.dot_dimension_numbers<[1], [0], [0], [1], [0, 0, 1, 1], [], []>} : vector<64x64xbf16>, vector<64x256xbf16>, vector<64x256xf32> -> vector<64x256xf32>
    %181 = arith.truncf %180 : vector<64x256xf32> to vector<64x256xbf16>
    %182 = tpu.concatenate %181, %173 in 1 : vector<64x256xbf16>, vector<64x256xbf16> -> vector<64x512xbf16>
    %c0_96 = arith.constant 0 : index
    %c0_97 = arith.constant 0 : index
    %183 = vector.load %arg3[%c0_96, %c0_97] : memref<512x512xbf16, #tpu.memory_space<vmem>>, vector<512x512xbf16>
    %cst_98 = arith.constant dense<0.000000e+00> : vector<64x512xf32>
    %184 = tpu.matmul %182, %183, %cst_98 {dimension_numbers = #tpu.dot_dimension_numbers<[1], [0], [0], [1], [0, 0, 1, 1], [], []>} : vector<64x512xbf16>, vector<512x512xbf16>, vector<64x512xf32> -> vector<64x512xf32>
    %c0_99 = arith.constant 0 : index
    %c0_100 = arith.constant 0 : index
    %185 = vector.load %arg6[%c0_99, %c0_100] : memref<1x1024xf32, #tpu.memory_space<vmem>>, vector<1x512xf32>
    %186 = vector.broadcast %185 : vector<1x512xf32> to vector<64x512xf32>
    %187 = arith.addf %184, %186 : vector<64x512xf32>
    %188 = vector.extract_strided_slice %187 {offsets = [0, 0], sizes = [64, 256], strides = [1, 1]} : vector<64x512xf32> to vector<64x256xf32>
    %189 = arith.negf %188 : vector<64x256xf32>
    %190 = math.exp %189 : vector<64x256xf32>
    %cst_101 = arith.constant 1.000000e+00 : f32
    %191 = vector.broadcast %cst_101 : f32 to vector<64x256xf32>
    %192 = arith.addf %191, %190 : vector<64x256xf32>
    %193 = arith.divf %191, %192 : vector<64x256xf32>
    %194 = vector.extract_strided_slice %187 {offsets = [0, 256], sizes = [64, 256], strides = [1, 1]} : vector<64x512xf32> to vector<64x256xf32>
    %195 = arith.negf %194 : vector<64x256xf32>
    %196 = math.exp %195 : vector<64x256xf32>
    %cst_102 = arith.constant 1.000000e+00 : f32
    %197 = vector.broadcast %cst_102 : f32 to vector<64x256xf32>
    %198 = arith.addf %197, %196 : vector<64x256xf32>
    %199 = arith.divf %197, %198 : vector<64x256xf32>
    %c0_103 = arith.constant 0 : index
    %c0_104 = arith.constant 0 : index
    %200 = vector.load %arg4[%c0_103, %c0_104] : memref<256x256xbf16, #tpu.memory_space<vmem>>, vector<256x256xbf16>
    %cst_105 = arith.constant dense<0.000000e+00> : vector<64x256xf32>
    %201 = tpu.matmul %181, %200, %cst_105 {dimension_numbers = #tpu.dot_dimension_numbers<[1], [0], [0], [1], [0, 0, 1, 1], [], []>} : vector<64x256xbf16>, vector<256x256xbf16>, vector<64x256xf32> -> vector<64x256xf32>
    %c0_106 = arith.constant 0 : index
    %c0_107 = arith.constant 0 : index
    %202 = vector.load %arg5[%c0_106, %c0_107] : memref<256x256xbf16, #tpu.memory_space<vmem>>, vector<256x256xbf16>
    %cst_108 = arith.constant dense<0.000000e+00> : vector<64x256xf32>
    %203 = tpu.matmul %173, %202, %cst_108 {dimension_numbers = #tpu.dot_dimension_numbers<[1], [0], [0], [1], [0, 0, 1, 1], [], []>} : vector<64x256xbf16>, vector<256x256xbf16>, vector<64x256xf32> -> vector<64x256xf32>
    %c0_109 = arith.constant 0 : index
    %c512_110 = arith.constant 512 : index
    %204 = vector.load %arg6[%c0_109, %c512_110] : memref<1x1024xf32, #tpu.memory_space<vmem>>, vector<1x256xf32>
    %205 = vector.broadcast %204 : vector<1x256xf32> to vector<64x256xf32>
    %206 = arith.addf %201, %205 : vector<64x256xf32>
    %c0_111 = arith.constant 0 : index
    %c768_112 = arith.constant 768 : index
    %207 = vector.load %arg6[%c0_111, %c768_112] : memref<1x1024xf32, #tpu.memory_space<vmem>>, vector<1x256xf32>
    %208 = vector.broadcast %207 : vector<1x256xf32> to vector<64x256xf32>
    %209 = arith.addf %203, %208 : vector<64x256xf32>
    %210 = arith.mulf %193, %209 : vector<64x256xf32>
    %211 = arith.addf %206, %210 : vector<64x256xf32>
    %212 = math.tanh %211 : vector<64x256xf32>
    %213 = arith.subf %172, %212 : vector<64x256xf32>
    %214 = arith.mulf %199, %213 : vector<64x256xf32>
    %215 = arith.addf %212, %214 : vector<64x256xf32>
    %c5_i32 = arith.constant 5 : i32
    %c0_113 = arith.constant 0 : index
    %c0_114 = arith.constant 0 : index
    %216 = vector.load %arg7[%c0_113, %c0_114] : memref<64x256xf32, #tpu.memory_space<vmem>>, vector<64x256xf32>
    tpu.vector_store %arg7[%c0_113, %c0_114], %215 {strides = array<i32>} : memref<64x256xf32, #tpu.memory_space<vmem>>, vector<64x256xf32>,
    return
  }
}

</mosaic_0001>

<bundles_post_ra>
// kernel: ggnn_node_forward.1
= control target key start
LH: loop header
LB: loop body
LE: loop exit
PB: predicated region body
PF: predicated region fallthrough
CT: control target
= control target key end

     0   :  { %s15362_s0 = inlined_call_operand.vmem [shape: f32[64,256], index: 0, kind: input, shape index: {}]   ;;  %s15363_s1 = inlined_call_operand.vmem [shape: bf16[64,64], index: 1, kind: input, shape index: {}]   ;;  %s15364_s2 = inlined_call_operand.vmem [shape: bf16[5,256,256], index: 2, kind: input, shape index: {}]   ;;  %s15365_s3 = inlined_call_operand.vmem [shape: bf16[512,512], index: 3, kind: input, shape index: {}]   ;;  %s15366_s4 = inlined_call_operand.vmem [shape: bf16[256,256], index: 4, kind: input, shape index: {}]   ;;  %s15367_s5 = inlined_call_operand.vmem [shape: bf16[256,256], index: 5, kind: input, shape index: {}]   ;;  %s15368_s6 = inlined_call_operand.vmem [shape: f32[1,1024], index: 6, kind: input, shape index: {}]   ;;  %s15369_s7 = inlined_call_operand.hbm [shape: f32[64,256], index: 7, kind: output, shape index: {}]  }
   0x1   :  { %v7427_v0 = vld [vmem:[%s15364_s2 + $0x74] ss:$8 sps:$4 sm:$0xff]   ;;  %v7429_v1 = vld [vmem:[%s15364_s2 + $0x70] ss:$8 sps:$4 sm:$0xff]   ;;  %v7430_v2 = vld [vmem:[%s15364_s2 + $0x64] ss:$8 sps:$4 sm:$0xff]  }
   0x2   :  { %244 = vmatprep.subr.bf16.mxu0 %v7427_v0  ;;  %v7432_v3 = vld [vmem:[%s15364_s2 + $0x60] ss:$8 sps:$4 sm:$0xff]   ;;  %v7433_v4 = vld [vmem:[%s15364_s2 + $0x54] ss:$8 sps:$4 sm:$0xff]   ;;  %v7435_v5 = vld [vmem:[%s15364_s2 + $0x50] ss:$8 sps:$4 sm:$0xff]  }
   0x3   :  { %245 = vmatpush1.bf16.msra.mxu0 %v7429_v1  ;;  %v7436_v6 = vld [vmem:[%s15364_s2 + $0x44] ss:$8 sps:$4 sm:$0xff]   ;;  %v7438_v7 = vld [vmem:[%s15364_s2 + $0x40] ss:$8 sps:$4 sm:$0xff]   ;;  %v7439_v8 = vld [vmem:[%s15364_s2 + $0x34] ss:$8 sps:$4 sm:$0xff]  }
   0x4   :  { %246 = vmatprep.subr.bf16.mxu0 %v7430_v2  ;;  %v7441_v9 = vld [vmem:[%s15364_s2 + $0x30] ss:$8 sps:$4 sm:$0xff]   ;;  %v7442_v10 = vld [vmem:[%s15364_s2 + $0x24] ss:$8 sps:$4 sm:$0xff]   ;;  %v7444_v11 = vld [vmem:[%s15364_s2 + $0x20] ss:$8 sps:$4 sm:$0xff]  }
   0x5   :  { %v7445_v12 = vld [vmem:[%s15364_s2 + $0x14] ss:$8 sps:$4 sm:$0xff]   ;;  %v29_v13 = vld [vmem:[%s15362_s0 + $0x8] sm:$0xff]  ;;  %v7447_v16 = vld [vmem:[%s15364_s2 + $0x10] ss:$8 sps:$4 sm:$0xff]  }
   0x6   :  { %v31_v14 = vld [vmem:[%s15362_s0 + $0x18] sm:$0xff]  ;;  %v7448_v17 = vld [vmem:[%s15364_s2 + $0x4] ss:$8 sps:$4 sm:$0xff]   ;;  %v7450_v18 = vld [vmem:[%s15364_s2] ss:$8 sps:$4 sm:$0xff]  }
   0x7   :  { %247 = vmatpush1.bf16.msra.mxu0 %v7432_v3  ;;  %v9668_v15 = vpack.c.bf16 %v31_v14, %v29_v13  ;;  %v7451_v19 = vld [vmem:[%s15364_s2 + $0xf4] ss:$8 sps:$4 sm:$0xff]   ;;  %v7453_v20 = vld [vmem:[%s15364_s2 + $0xf0] ss:$8 sps:$4 sm:$0xff]   ;;  %v7454_v21 = vld [vmem:[%s15364_s2 + $0xe4] ss:$8 sps:$4 sm:$0xff]  }
   0x8   :  { %248 = vmatprep.subr.bf16.mxu0 %v7433_v4  ;;  %v7456_v22 = vld [vmem:[%s15364_s2 + $0xe0] ss:$8 sps:$4 sm:$0xff]   ;;  %v7457_v23 = vld [vmem:[%s15364_s2 + $0xd4] ss:$8 sps:$4 sm:$0xff]   ;;  %v7459_v24 = vld [vmem:[%s15364_s2 + $0xd0] ss:$8 sps:$4 sm:$0xff]  }
   0x9   :  { %276 = vmatprep.mubr.bf16.mxu0 %v9668_v15  ;;  %v7460_v25 = vld [vmem:[%s15364_s2 + $0xc4] ss:$8 sps:$4 sm:$0xff]   ;;  %v7462_v26 = vld [vmem:[%s15364_s2 + $0xc0] ss:$8 sps:$4 sm:$0xff]   ;;  %v7463_v27 = vld [vmem:[%s15364_s2 + $0xb4] ss:$8 sps:$4 sm:$0xff]  }
   0xa   :  { %v7465_v28 = vld [vmem:[%s15364_s2 + $0xb0] ss:$8 sps:$4 sm:$0xff]   ;;  %v7466_v29 = vld [vmem:[%s15364_s2 + $0xa4] ss:$8 sps:$4 sm:$0xff]   ;;  %v7468_v30 = vld [vmem:[%s15364_s2 + $0xa0] ss:$8 sps:$4 sm:$0xff]  }
   0xb   :  { %249 = vmatpush1.bf16.msra.mxu0 %v7435_v5  ;;  %v7469_v31 = vld [vmem:[%s15364_s2 + $0x94] ss:$8 sps:$4 sm:$0xff]   ;;  %v7471_v32 = vld [vmem:[%s15364_s2 + $0x90] ss:$8 sps:$4 sm:$0xff]   ;;  %v7472_v33 = vld [vmem:[%s15364_s2 + $0x84] ss:$8 sps:$4 sm:$0xff]  }
   0xc   :  { %250 = vmatprep.subr.bf16.mxu0 %v7436_v6  ;;  %v7474_v34 = vld [vmem:[%s15364_s2 + $0x80] ss:$8 sps:$4 sm:$0xff]   ;;  %v30_v36 = vld [vmem:[%s15362_s0 + $0x10] sm:$0xff]  ;;  %v35_v38 = vld [vmem:[%s15362_s0 + $0x38] sm:$0xff] }
   0xd   :  { %v28_v35 = vld [vmem:[%s15362_s0] sm:$0xff]  ;;  %v33_v37 = vld [vmem:[%s15362_s0 + $0x28] sm:$0xff]  ;;  %v34_v42 = vld [vmem:[%s15362_s0 + $0x30] sm:$0xff] }
   0xe   :  { %v9740_v39 = vpack.c.bf16 %v30_v36, %v28_v35  ;;  %v9742_v40 = vpack.c.bf16 %v35_v38, %v33_v37  ;;  %v32_v41 = vld [vmem:[%s15362_s0 + $0x20] sm:$0xff]  ;;  %v37_v43 = vld [vmem:[%s15362_s0 + $0x48] sm:$0xff]  ;;  %v39_v44 = vld [vmem:[%s15362_s0 + $0x58] sm:$0xff] }
   0xf   :  { %251 = vmatpush1.bf16.msra.mxu0 %v7438_v7  ;;  %v9758_v45 = vpack.c.bf16 %v34_v42, %v32_v41  ;;  %v9760_v46 = vpack.c.bf16 %v39_v44, %v37_v43  ;;  %v36_v47 = vld [vmem:[%s15362_s0 + $0x40] sm:$0xff]  ;;  %v38_v48 = vld [vmem:[%s15362_s0 + $0x50] sm:$0xff]  ;;  %v41_v49 = vld [vmem:[%s15362_s0 + $0x68] sm:$0xff] }
  0x10   :  { %252 = vmatprep.subr.bf16.mxu0 %v7439_v8  ;;  %v43_v50 = vld [vmem:[%s15362_s0 + $0x78] sm:$0xff]  ;;  %v9776_v51 = vpack.c.bf16 %v38_v48, %v36_v47  ;;  %v40_v53 = vld [vmem:[%s15362_s0 + $0x60] sm:$0xff]  ;;  %v42_v54 = vld [vmem:[%s15362_s0 + $0x70] sm:$0xff] }
  0x11   :  { %v9778_v52 = vpack.c.bf16 %v43_v50, %v41_v49  ;;  %v9788_v55 = vpack.c.bf16 %v42_v54, %v40_v53 }
  0x13   :  { %253 = vmatpush1.bf16.msra.mxu0 %v7441_v9 }
  0x14   :  { %254 = vmatprep.subr.bf16.mxu0 %v7442_v10 }
  0x17   :  { %255 = vmatpush1.bf16.msra.mxu0 %v7444_v11 }
  0x18   :  { %256 = vmatprep.subr.bf16.mxu0 %v7445_v12 }
  0x1b   :  { %257 = vmatpush1.bf16.msra.mxu0 %v7447_v16 }
  0x1c   :  { %258 = vmatprep.subr.bf16.mxu0 %v7448_v17 }
  0x1f   :  { %259 = vmatpush1.bf16.msra.mxu0 %v7450_v18 }
  0x20   :  { %260 = vmatprep.subr.bf16.mxu0 %v7451_v19 }
  0x23   :  { %261 = vmatpush2.bf16.msra.mxu0 %v7453_v20 }
  0x24   :  { %262 = vmatprep.subr.bf16.mxu0 %v7454_v21 }
  0x27   :  { %263 = vmatpush2.bf16.msra.mxu0 %v7456_v22 }
  0x28   :  { %264 = vmatprep.subr.bf16.mxu0 %v7457_v23 }
  0x2b   :  { %265 = vmatpush2.bf16.msra.mxu0 %v7459_v24 }
  0x2c   :  { %266 = vmatprep.subr.bf16.mxu0 %v7460_v25 }
  0x2f   :  { %267 = vmatpush2.bf16.msra.mxu0 %v7462_v26 }
  0x30   :  { %268 = vmatprep.subr.bf16.mxu0 %v7463_v27 }
  0x33   :  { %269 = vmatpush2.bf16.msra.mxu0 %v7465_v28 }
  0x34   :  { %270 = vmatprep.subr.bf16.mxu0 %v7466_v29 }
  0x37   :  { %271 = vmatpush2.bf16.msra.mxu0 %v7468_v30 }
  0x38   :  { %272 = vmatprep.subr.bf16.mxu0 %v7469_v31 }
  0x3b   :  { %273 = vmatpush2.bf16.msra.mxu0 %v7471_v32 }
  0x3c   :  { %274 = vmatprep.subr.bf16.mxu0 %v7472_v33 }
  0x3f   :  { %275 = vmatpush2.bf16.msra.mxu0 %v7474_v34 }
  0x42   :  { %277 = vmatmul.mubr.bf16.vlgmr.msra.gmra.mxu0 %v9740_v39 }
  0x43   :  { %286 = vmatprep.mubr.bf16.mxu0 %v9742_v40 }
  0x4a   :  { %287 = vmatmul.mubr.bf16.gmra.mxu0 %v9758_v45 }
  0x4b   :  { %296 = vmatprep.mubr.bf16.mxu0 %v9760_v46 }
  0x52   :  { %297 = vmatmul.mubr.bf16.gmra.mxu0 %v9776_v51 }
  0x53   :  { %306 = vmatprep.mubr.bf16.mxu0 %v9778_v52 }
  0x5a   :  { %307 = vmatmul.mubr.bf16.gmra.mxu0 %v9788_v55 }
  0x5b   :  { %1342 = vmatprep.mubr.bf16.mxu0 %v9668_v15 }
  0x5c   :  { %12 = vsyncpa [#allocation3], 0  ;;  %v15370_v56 = vmov 0   ;;  %v7479_v57 = vld [vmem:[%s15365_s3 + $0x2e4] ss:$16 sps:$4 sm:$0xff]   ;;  %vm353_vm0 = vcmask 523264  }
  0x5d   :  { %398 = vmatprep.mubr.bf16.mxu1 %v15370_v56  ;;  %v7481_v58 = vld [vmem:[%s15365_s3 + $0x2e0] ss:$16 sps:$4 sm:$0xff]   ;;  %v7482_v59 = vld [vmem:[%s15365_s3 + $0x2c4] ss:$16 sps:$4 sm:$0xff]   ;;  %1310 = vmatprep.subr.bf16.mxu0 %v7479_v57  ;;  %v7527_v29 = vld [vmem:[%s15365_s3 + $0x2ec] ss:$16 sps:$4 sm:$0xff]  }
  0x5e   :  { %1311 = vmatpush1.bf16.msra.mxu0 %v7481_v58  ;;  %v7484_v60 = vld [vmem:[%s15365_s3 + $0x2c0] ss:$16 sps:$4 sm:$0xff]   ;;  %v7485_v61 = vld [vmem:[%s15365_s3 + $0x2a4] ss:$16 sps:$4 sm:$0xff]   ;;  %v7529_v32 = vld [vmem:[%s15365_s3 + $0x2e8] ss:$16 sps:$4 sm:$0xff]  }
  0x5f   :  { %1312 = vmatprep.subr.bf16.mxu0 %v7482_v59  ;;  %v7487_v62 = vld [vmem:[%s15365_s3 + $0x2a0] ss:$16 sps:$4 sm:$0xff]   ;;  %v7488_v63 = vld [vmem:[%s15365_s3 + $0x284] ss:$16 sps:$4 sm:$0xff]   ;;  %v7530_v33 = vld [vmem:[%s15365_s3 + $0x2cc] ss:$16 sps:$4 sm:$0xff]  }
  0x60   :  { %v7490_v0 = vld [vmem:[%s15365_s3 + $0x280] ss:$16 sps:$4 sm:$0xff]   ;;  %v7491_v1 = vld [vmem:[%s15365_s3 + $0x264] ss:$16 sps:$4 sm:$0xff]   ;;  %v7532_v36 = vld [vmem:[%s15365_s3 + $0x2c8] ss:$16 sps:$4 sm:$0xff]  }
  0x61   :  { %v7493_v2 = vld [vmem:[%s15365_s3 + $0x260] ss:$16 sps:$4 sm:$0xff]   ;;  %v7494_v3 = vld [vmem:[%s15365_s3 + $0x244] ss:$16 sps:$4 sm:$0xff]   ;;  %v7533_v37 = vld [vmem:[%s15365_s3 + $0x2ac] ss:$16 sps:$4 sm:$0xff]  }
  0x62   :  { %1313 = vmatpush1.bf16.msra.mxu0 %v7484_v60  ;;  %v7496_v4 = vld [vmem:[%s15365_s3 + $0x240] ss:$16 sps:$4 sm:$0xff]   ;;  %v7497_v5 = vld [vmem:[%s15365_s3 + $0x224] ss:$16 sps:$4 sm:$0xff]   ;;  %v7535_v42 = vld [vmem:[%s15365_s3 + $0x2a8] ss:$16 sps:$4 sm:$0xff]  }
  0x63   :  { %1314 = vmatprep.subr.bf16.mxu0 %v7485_v61  ;;  %v7499_v6 = vld [vmem:[%s15365_s3 + $0x220] ss:$16 sps:$4 sm:$0xff]   ;;  %v7500_v7 = vld [vmem:[%s15365_s3 + $0x204] ss:$16 sps:$4 sm:$0xff]   ;;  %v7536_v43 = vld [vmem:[%s15365_s3 + $0x28c] ss:$16 sps:$4 sm:$0xff]  }
  0x64   :  { %v7502_v8 = vld [vmem:[%s15365_s3 + $0x200] ss:$16 sps:$4 sm:$0xff]   ;;  %v7503_v9 = vld [vmem:[%s15365_s3 + $0x3e4] ss:$16 sps:$4 sm:$0xff]   ;;  %v7538_v48 = vld [vmem:[%s15365_s3 + $0x288] ss:$16 sps:$4 sm:$0xff]  }
  0x65   :  { %v7505_v10 = vld [vmem:[%s15365_s3 + $0x3e0] ss:$16 sps:$4 sm:$0xff]   ;;  %v7506_v11 = vld [vmem:[%s15365_s3 + $0x3c4] ss:$16 sps:$4 sm:$0xff]   ;;  %v7539_v49 = vld [vmem:[%s15365_s3 + $0x26c] ss:$16 sps:$4 sm:$0xff]  }
  0x66   :  { %1315 = vmatpush1.bf16.msra.mxu0 %v7487_v62  ;;  %v7508_v12 = vld [vmem:[%s15365_s3 + $0x3c0] ss:$16 sps:$4 sm:$0xff]   ;;  %v7509_v13 = vld [vmem:[%s15365_s3 + $0x3a4] ss:$16 sps:$4 sm:$0xff]   ;;  %v7541_v54 = vld [vmem:[%s15365_s3 + $0x268] ss:$16 sps:$4 sm:$0xff]  }
  0x67   :  { %1316 = vmatprep.subr.bf16.mxu0 %v7488_v63  ;;  %v7511_v14 = vld [vmem:[%s15365_s3 + $0x3a0] ss:$16 sps:$4 sm:$0xff]   ;;  %v7512_v16 = vld [vmem:[%s15365_s3 + $0x384] ss:$16 sps:$4 sm:$0xff]   ;;  %v7542_v57 = vld [vmem:[%s15365_s3 + $0x24c] ss:$16 sps:$4 sm:$0xff]  }
  0x68   :  { %v7514_v17 = vld [vmem:[%s15365_s3 + $0x380] ss:$16 sps:$4 sm:$0xff]   ;;  %v7515_v18 = vld [vmem:[%s15365_s3 + $0x364] ss:$16 sps:$4 sm:$0xff]   ;;  %v7544_v60 = vld [vmem:[%s15365_s3 + $0x248] ss:$16 sps:$4 sm:$0xff]  }
  0x69   :  { %v7517_v19 = vld [vmem:[%s15365_s3 + $0x360] ss:$16 sps:$4 sm:$0xff]   ;;  %v7518_v20 = vld [vmem:[%s15365_s3 + $0x344] ss:$16 sps:$4 sm:$0xff]   ;;  %v7545_v61 = vld [vmem:[%s15365_s3 + $0x22c] ss:$16 sps:$4 sm:$0xff]  }
  0x6a   :  { %1317 = vmatpush1.bf16.msra.mxu0 %v7490_v0  ;;  %v7520_v21 = vld [vmem:[%s15365_s3 + $0x340] ss:$16 sps:$4 sm:$0xff]   ;;  %v7521_v22 = vld [vmem:[%s15365_s3 + $0x324] ss:$16 sps:$4 sm:$0xff]  }
  0x6b   :  { %1318 = vmatprep.subr.bf16.mxu0 %v7491_v1  ;;  %v7523_v24 = vld [vmem:[%s15365_s3 + $0x320] ss:$16 sps:$4 sm:$0xff]   ;;  %v7524_v25 = vld [vmem:[%s15365_s3 + $0x304] ss:$16 sps:$4 sm:$0xff]   ;;  %v7547_v1 = vld [vmem:[%s15365_s3 + $0x228] ss:$16 sps:$4 sm:$0xff]  }
  0x6c   :  { %v7526_v28 = vld [vmem:[%s15365_s3 + $0x300] ss:$16 sps:$4 sm:$0xff]  }
  0x6e   :  { %1319 = vmatpush1.bf16.msra.mxu0 %v7493_v2 }
  0x6f   :  { %1320 = vmatprep.subr.bf16.mxu0 %v7494_v3  ;;  %v7548_v3 = vld [vmem:[%s15365_s3 + $0x20c] ss:$16 sps:$4 sm:$0xff]  }
  0x72   :  { %1321 = vmatpush1.bf16.msra.mxu0 %v7496_v4 }
  0x73   :  { %1322 = vmatprep.subr.bf16.mxu0 %v7497_v5  ;;  %v7552_v5 = vld [vmem:[%s15365_s3 + $0x208] ss:$16 sps:$4 sm:$0xff]  }
  0x76   :  { %1323 = vmatpush1.bf16.msra.mxu0 %v7499_v6 }
  0x77   :  { %1324 = vmatprep.subr.bf16.mxu0 %v7500_v7  ;;  %v7554_v7 = vld [vmem:[%s15365_s3 + $0x3ec] ss:$16 sps:$4 sm:$0xff]  }
  0x7a   :  { %1325 = vmatpush1.bf16.msra.mxu0 %v7502_v8 }
  0x7b   :  { %1326 = vmatprep.subr.bf16.mxu0 %v7503_v9  ;;  %v7558_v9 = vld [vmem:[%s15365_s3 + $0x3e8] ss:$16 sps:$4 sm:$0xff]  }
  0x7e   :  { %1327 = vmatpush2.bf16.msra.mxu0 %v7505_v10 }
  0x7f   :  { %1328 = vmatprep.subr.bf16.mxu0 %v7506_v11  ;;  %v7560_v11 = vld [vmem:[%s15365_s3 + $0x3cc] ss:$16 sps:$4 sm:$0xff]  }
  0x82   :  { %1329 = vmatpush2.bf16.msra.mxu0 %v7508_v12  ;;  %v9970_v12 = vld [vmem:[%s15365_s3 + $0xe4] ss:$16 sps:$4 sm:$0xff]  }
  0x83   :  { %1330 = vmatprep.subr.bf16.mxu0 %v7509_v13 }
  0x86   :  { %1331 = vmatpush2.bf16.msra.mxu0 %v7511_v14  ;;  %v7564_v14 = vld [vmem:[%s15365_s3 + $0x3c8] ss:$16 sps:$4 sm:$0xff]  }
  0x87   :  { %1332 = vmatprep.subr.bf16.mxu0 %v7512_v16  ;;  %v7475_v16 = vld [vmem:[%s15363_s1] sm:$0xff]  }
  0x8a   :  { %1333 = vmatpush2.bf16.msra.mxu0 %v7514_v17  ;;  %v7566_v17 = vld [vmem:[%s15365_s3 + $0x3ac] ss:$16 sps:$4 sm:$0xff]  }
  0x8b   :  { %1334 = vmatprep.subr.bf16.mxu0 %v7515_v18  ;;  %v7553_v18 = vld [vmem:[%s15365_s3 + $0xe0] ss:$16 sps:$4 sm:$0xff]  }
  0x8e   :  { %1335 = vmatpush2.bf16.msra.mxu0 %v7517_v19  ;;  %v7556_v19 = vld [vmem:[%s15365_s3 + $0xc4] ss:$16 sps:$4 sm:$0xff]  }
  0x8f   :  { %1336 = vmatprep.subr.bf16.mxu0 %v7518_v20  ;;  %v7570_v20 = vld [vmem:[%s15365_s3 + $0x3a8] ss:$16 sps:$4 sm:$0xff]  }
  0x92   :  { %1337 = vmatpush2.bf16.msra.mxu0 %v7520_v21  ;;  %v7572_v21 = vld [vmem:[%s15365_s3 + $0x38c] ss:$16 sps:$4 sm:$0xff]  }
  0x93   :  { %1338 = vmatprep.subr.bf16.mxu0 %v7521_v22  ;;  %v7559_v22 = vld [vmem:[%s15365_s3 + $0xc0] ss:$16 sps:$4 sm:$0xff]  }
  0x96   :  { %1339 = vmatpush2.bf16.msra.mxu0 %v7523_v24  ;;  %v7576_v24 = vld [vmem:[%s15365_s3 + $0x388] ss:$16 sps:$4 sm:$0xff]  }
  0x97   :  { %1340 = vmatprep.subr.bf16.mxu0 %v7524_v25  ;;  %v7476_v25 = vld [vmem:[%s15363_s1 + $0x8] sm:$0xff]  }
  0x9a   :  { %1341 = vmatpush2.bf16.msra.mxu0 %v7526_v28  ;;  %v7568_v28 = vld [vmem:[%s15365_s3 + $0x84] ss:$16 sps:$4 sm:$0xff]  }
  0x9b   :  { %1456 = vmatprep.subr.bf16.mxu0 %v7527_v29  ;;  %v7582_v29 = vld [vmem:[%s15365_s3 + $0x368] ss:$16 sps:$4 sm:$0xff]  }
  0x9d   :  { %1343 = vmatmul.mubr.bf16.vlgmr.msra.gmra.mxu0 %v9740_v39 }
  0x9e   :  { %1457 = vmatpush1.bf16.msra.mxu0 %v7529_v32  ;;  %1352 = vmatprep.mubr.bf16.mxu0 %v9742_v40  ;;  %v7574_v32 = vld [vmem:[%s15365_s3 + $0x64] ss:$16 sps:$4 sm:$0xff]  }
  0x9f   :  { %1458 = vmatprep.subr.bf16.mxu0 %v7530_v33  ;;  %v7588_v33 = vld [vmem:[%s15365_s3 + $0x348] ss:$16 sps:$4 sm:$0xff]  }
  0xa2   :  { %1459 = vmatpush1.bf16.msra.mxu0 %v7532_v36  ;;  %v7577_v36 = vld [vmem:[%s15365_s3 + $0x60] ss:$16 sps:$4 sm:$0xff]  }
  0xa3   :  { %1460 = vmatprep.subr.bf16.mxu0 %v7533_v37  ;;  %v7580_v37 = vld [vmem:[%s15365_s3 + $0x44] ss:$16 sps:$4 sm:$0xff]  }
  0xa5   :  { %1353 = vmatmul.mubr.bf16.gmra.mxu0 %v9758_v45 }
  0xa6   :  { %1461 = vmatpush1.bf16.msra.mxu0 %v7535_v42  ;;  %1362 = vmatprep.mubr.bf16.mxu0 %v9760_v46  ;;  %v7583_v42 = vld [vmem:[%s15365_s3 + $0x40] ss:$16 sps:$4 sm:$0xff]  }
  0xa7   :  { %1462 = vmatprep.subr.bf16.mxu0 %v7536_v43  ;;  %v7586_v43 = vld [vmem:[%s15365_s3 + $0x24] ss:$16 sps:$4 sm:$0xff]  }
  0xaa   :  { %1463 = vmatpush1.bf16.msra.mxu0 %v7538_v48  ;;  %v7602_v48 = vld [vmem:[%s15367_s5 + $0x74] ss:$8 sps:$4 sm:$0xff]  }
  0xab   :  { %1464 = vmatprep.subr.bf16.mxu0 %v7539_v49  ;;  %v7589_v49 = vld [vmem:[%s15365_s3 + $0x20] ss:$16 sps:$4 sm:$0xff]  }
  0xad   :  { %1363 = vmatmul.mubr.bf16.gmra.mxu0 %v9776_v51 }
  0xae   :  { %1465 = vmatpush1.bf16.msra.mxu0 %v7541_v54  ;;  %1372 = vmatprep.mubr.bf16.mxu0 %v9778_v52  ;;  %v7608_v54 = vld [vmem:[%s15367_s5 + $0x64] ss:$8 sps:$4 sm:$0xff]  }
  0xaf   :  { %1466 = vmatprep.subr.bf16.mxu0 %v7542_v57  ;;  %v7595_v57 = vld [vmem:[%s15365_s3] ss:$16 sps:$4 sm:$0xff]  }
  0xb2   :  { %1467 = vmatpush1.bf16.msra.mxu0 %v7544_v60  ;;  %v7614_v60 = vld [vmem:[%s15367_s5 + $0x54] ss:$8 sps:$4 sm:$0xff]  }
  0xb3   :  { %1468 = vmatprep.subr.bf16.mxu0 %v7545_v61  ;;  %v7601_v61 = vld [vmem:[%s15365_s3 + $0x1e0] ss:$16 sps:$4 sm:$0xff]  }
  0xb5   :  { %1373 = vmatmul.mubr.bf16.gmra.mxu0 %v9788_v55 }
  0xb6   :  { %1469 = vmatpush1.bf16.msra.mxu0 %v7547_v1  ;;  %1488 = vmatprep.mubr.bf16.mxu0 %v9668_v15  ;;  %v7607_v1 = vld [vmem:[%s15365_s3 + $0x1c0] ss:$16 sps:$4 sm:$0xff]  }
  0xb7   :  { %1470 = vmatprep.subr.bf16.mxu0 %v7548_v3  ;;  %v7624_v3 = vld [vmem:[%s15367_s5 + $0x40] ss:$8 sps:$4 sm:$0xff]  }
  0xba   :  { %1471 = vmatpush1.bf16.msra.mxu0 %v7552_v5  ;;  %v7613_v5 = vld [vmem:[%s15365_s3 + $0x1a0] ss:$16 sps:$4 sm:$0xff]  }
  0xbb   :  { %1472 = vmatprep.subr.bf16.mxu0 %v7554_v7  ;;  %v7630_v7 = vld [vmem:[%s15367_s5 + $0x30] ss:$8 sps:$4 sm:$0xff]  }
  0xbe   :  { %1473 = vmatpush2.bf16.msra.mxu0 %v7558_v9  ;;  %v7622_v9 = vld [vmem:[%s15365_s3 + $0x164] ss:$16 sps:$4 sm:$0xff]  }
  0xbf   :  { %1474 = vmatprep.subr.bf16.mxu0 %v7560_v11  ;;  %v7628_v11 = vld [vmem:[%s15365_s3 + $0x144] ss:$16 sps:$4 sm:$0xff]  }
  0xc2   :  { %1475 = vmatpush2.bf16.msra.mxu0 %v7564_v14  ;;  %v7632_v14 = vld [vmem:[%s15367_s5 + $0x24] ss:$8 sps:$4 sm:$0xff]  }
  0xc3   :  { %1476 = vmatprep.subr.bf16.mxu0 %v7566_v17  ;;  %v7636_v17 = vld [vmem:[%s15367_s5 + $0x20] ss:$8 sps:$4 sm:$0xff]  }
  0xc6   :  { %1477 = vmatpush2.bf16.msra.mxu0 %v7570_v20  ;;  %v7642_v20 = vld [vmem:[%s15367_s5 + $0x10] ss:$8 sps:$4 sm:$0xff]  }
  0xc7   :  { %1478 = vmatprep.subr.bf16.mxu0 %v7572_v21  ;;  %v7643_v21 = vld [vmem:[%s15365_s3 + $0x100] ss:$16 sps:$4 sm:$0xff]  }
  0xca   :  { %1479 = vmatpush2.bf16.msra.mxu0 %v7576_v24  ;;  %v7648_v24 = vld [vmem:[%s15367_s5] ss:$8 sps:$4 sm:$0xff]  }
 0x102   :  { %v9880_v23 = vpop.f32.mrf.mxu0 }
 0x104   :  { %v9888_v26 = vpop.f32.mrf.mxu0 }
 0x106   :  { %v9890_v27 = vpop.f32.mrf.mxu0 }
 0x107   :  { %v325_v13 = vpack.c.bf16 %v9890_v27, %v9880_v23  ;;  %v7562_v23 = vld [vmem:[%s15365_s3 + $0xa4] ss:$16 sps:$4 sm:$0xff]   ;;  %v7565_v27 = vld [vmem:[%s15365_s3 + $0xa0] ss:$16 sps:$4 sm:$0xff]  }
 0x108   :  { %v9898_v30 = vpop.f32.mrf.mxu0 }
 0x109   :  { %v326_v10 = vpack.c.bf16 %v9898_v30, %v9888_v26  ;;  %v7578_v26 = vld [vmem:[%s15365_s3 + $0x36c] ss:$16 sps:$4 sm:$0xff]  }
 0x10a   :  { %v9900_v31 = vpop.f32.mrf.mxu0  ;;  %1480 = vmatprep.subr.bf16.mxu0 %v7578_v26  ;;  %v7584_v30 = vld [vmem:[%s15365_s3 + $0x34c] ss:$16 sps:$4 sm:$0xff]   ;;  %v7654_v26 = vld [vmem:[%s15367_s5 + $0xf0] ss:$8 sps:$4 sm:$0xff]  }
 0x10b   :  { %1481 = vmatpush2.bf16.msra.mxu0 %v7582_v29  ;;  %v7662_v29 = vld [vmem:[%s15367_s5 + $0xd4] ss:$8 sps:$4 sm:$0xff]  }
 0x10c   :  { %v290_v34 = vpop.f32.mrf.mxu0  ;;  %1482 = vmatprep.subr.bf16.mxu0 %v7584_v30  ;;  %v7666_v30 = vld [vmem:[%s15367_s5 + $0xd0] ss:$8 sps:$4 sm:$0xff]  }
 0x10e   :  { %v292_v35 = vpop.f32.mrf.mxu0 }
 0x10f   :  { %v327_v8 = vpack.c.bf16 %v292_v35, %v9900_v31  ;;  %v7571_v31 = vld [vmem:[%s15365_s3 + $0x80] ss:$16 sps:$4 sm:$0xff]   ;;  %v7590_v35 = vld [vmem:[%s15365_s3 + $0x32c] ss:$16 sps:$4 sm:$0xff]   ;;  %1483 = vmatpush2.bf16.msra.mxu0 %v7588_v33 }
 0x110   :  { %v294_v38 = vpop.f32.mrf.mxu0  ;;  %1484 = vmatprep.subr.bf16.mxu0 %v7590_v35  ;;  %v7674_v33 = vld [vmem:[%s15367_s5 + $0xb4] ss:$8 sps:$4 sm:$0xff]   ;;  %v7680_v35 = vld [vmem:[%s15367_s5 + $0xa4] ss:$8 sps:$4 sm:$0xff]  }
 0x111   :  { %v328_v6 = vpack.c.bf16 %v294_v38, %v290_v34  ;;  %v7477_v34 = vld [vmem:[%s15363_s1 + $0x10] sm:$0xff]   ;;  %v7594_v38 = vld [vmem:[%s15365_s3 + $0x328] ss:$16 sps:$4 sm:$0xff]  }
 0x112   :  { %v298_v41 = vpop.f32.mrf.mxu0 }
 0x113   :  { %1485 = vmatpush2.bf16.msra.mxu0 %v7594_v38  ;;  %v7690_v38 = vld [vmem:[%s15367_s5 + $0x90] ss:$8 sps:$4 sm:$0xff]  }
 0x114   :  { %v300_v44 = vpop.f32.mrf.mxu0 }
 0x116   :  { %v302_v47 = vpop.f32.mrf.mxu0 }
 0x117   :  { %v329_v4 = vpack.c.bf16 %v302_v47, %v298_v41  ;;  %v7596_v41 = vld [vmem:[%s15365_s3 + $0x30c] ss:$16 sps:$4 sm:$0xff]  }
 0x118   :  { %v304_v50 = vpop.f32.mrf.mxu0  ;;  %v7478_v47 = vld [vmem:[%s15363_s1 + $0x18] sm:$0xff]   ;;  %1486 = vmatprep.subr.bf16.mxu0 %v7596_v41  ;;  %v7692_v41 = vld [vmem:[%s15367_s5 + $0x84] ss:$8 sps:$4 sm:$0xff]  }
 0x119   :  { %v330_v2 = vpack.c.bf16 %v304_v50, %v300_v44  ;;  %v7600_v44 = vld [vmem:[%s15365_s3 + $0x308] ss:$16 sps:$4 sm:$0xff]   ;;  %v7592_v50 = vld [vmem:[%s15365_s3 + $0x4] ss:$16 sps:$4 sm:$0xff]  }
 0x11a   :  { %v308_v53 = vpop.f32.mrf.mxu0  ;;  %1487 = vmatpush2.bf16.msra.mxu0 %v7600_v44 }
 0x11b   :  { %2202 = vmatprep.subr.bf16.mxu0 %v7602_v48 }
 0x11c   :  { %v310_v58 = vpop.f32.mrf.mxu0 }
 0x11d   :  { %1489 = vmatmul.mubr.bf16.vlgmr.msra.gmra.mxu0 %v9740_v39 }
 0x11e   :  { %v312_v59 = vpop.f32.mrf.mxu0  ;;  %1498 = vmatprep.mubr.bf16.mxu0 %v9742_v40 }
 0x11f   :  { %v331_v0 = vpack.c.bf16 %v312_v59, %v308_v53  ;;  %v7606_v53 = vld [vmem:[%s15367_s5 + $0x70] ss:$8 sps:$4 sm:$0xff]   ;;  %v7612_v59 = vld [vmem:[%s15367_s5 + $0x60] ss:$8 sps:$4 sm:$0xff]  }
 0x120   :  { %v314_v62 = vpop.f32.mrf.mxu0  ;;  %2203 = vmatpush1.bf16.msra.mxu0 %v7606_v53 }
 0x121   :  { %v332_v63 = vpack.c.bf16 %v314_v62, %v310_v58  ;;  %v7598_v58 = vld [vmem:[%s15365_s3 + $0x1e4] ss:$16 sps:$4 sm:$0xff]   ;;  %2204 = vmatprep.subr.bf16.mxu0 %v7608_v54 }
 0x122   :  { %v7604_v62 = vld [vmem:[%s15365_s3 + $0x1c4] ss:$16 sps:$4 sm:$0xff]  }
 0x123   :  { %374 = vmatprep.subr.bf16.mxu1 %v332_v63  ;;  %v7618_v63 = vld [vmem:[%s15367_s5 + $0x50] ss:$8 sps:$4 sm:$0xff]  }
 0x124   :  { %375 = vmatpush1.bf16.msra.mxu1 %v331_v0  ;;  %2205 = vmatpush1.bf16.msra.mxu0 %v7612_v59  ;;  %v7620_v0 = vld [vmem:[%s15367_s5 + $0x44] ss:$8 sps:$4 sm:$0xff]  }
 0x125   :  { %376 = vmatprep.subr.bf16.mxu1 %v330_v2  ;;  %2206 = vmatprep.subr.bf16.mxu0 %v7614_v60  ;;  %v7610_v2 = vld [vmem:[%s15365_s3 + $0x1a4] ss:$16 sps:$4 sm:$0xff]   ;;  %v7664_v60 = vld [vmem:[%s15365_s3 + $0x8c] ss:$16 sps:$4 sm:$0xff]  }
 0x126   :  { %1499 = vmatmul.mubr.bf16.gmra.mxu0 %v9758_v45 }
 0x127   :  { %1508 = vmatprep.mubr.bf16.mxu0 %v9760_v46 }
 0x128   :  { %377 = vmatpush1.bf16.msra.mxu1 %v329_v4  ;;  %2207 = vmatpush1.bf16.msra.mxu0 %v7618_v63  ;;  %v7626_v4 = vld [vmem:[%s15367_s5 + $0x34] ss:$8 sps:$4 sm:$0xff]  }
 0x129   :  { %378 = vmatprep.subr.bf16.mxu1 %v328_v6  ;;  %2208 = vmatprep.subr.bf16.mxu0 %v7620_v0  ;;  %v7616_v6 = vld [vmem:[%s15365_s3 + $0x184] ss:$16 sps:$4 sm:$0xff]   ;;  %v7670_v0 = vld [vmem:[%s15365_s3 + $0x6c] ss:$16 sps:$4 sm:$0xff]  }
 0x12c   :  { %379 = vmatpush1.bf16.msra.mxu1 %v327_v8  ;;  %2209 = vmatpush1.bf16.msra.mxu0 %v7624_v3  ;;  %v7619_v8 = vld [vmem:[%s15365_s3 + $0x180] ss:$16 sps:$4 sm:$0xff]  }
 0x12d   :  { %380 = vmatprep.subr.bf16.mxu1 %v326_v10  ;;  %2210 = vmatprep.subr.bf16.mxu0 %v7626_v4  ;;  %v7625_v10 = vld [vmem:[%s15365_s3 + $0x160] ss:$16 sps:$4 sm:$0xff]   ;;  %v7673_v4 = vld [vmem:[%s15365_s3 + $0x68] ss:$16 sps:$4 sm:$0xff]  }
 0x12e   :  { %1509 = vmatmul.mubr.bf16.gmra.mxu0 %v9776_v51 }
 0x12f   :  { %1518 = vmatprep.mubr.bf16.mxu0 %v9778_v52 }
 0x130   :  { %381 = vmatpush1.bf16.msra.mxu1 %v325_v13  ;;  %2211 = vmatpush1.bf16.msra.mxu0 %v7630_v7  ;;  %v7631_v13 = vld [vmem:[%s15365_s3 + $0x140] ss:$16 sps:$4 sm:$0xff]  }
 0x131   :  { %1237 = vmatprep.subr.bf16.mxu1 %v9970_v12  ;;  %2212 = vmatprep.subr.bf16.mxu0 %v7632_v14 }
 0x133   :  { %6795 = vmatmul.mubr.msk.bf16.vlgmr.msra.gmra.mxu1 %vm353_vm0, %v7475_v16  ;;  %v7634_v16 = vld [vmem:[%s15365_s3 + $0x124] ss:$16 sps:$4 sm:$0xff]  }
 0x134   :  { %408 = vmatprep.mubr.bf16.mxu1 %v15370_v56  ;;  %1238 = vmatpush1.bf16.msra.mxu1 %v7553_v18  ;;  %v7637_v18 = vld [vmem:[%s15365_s3 + $0x120] ss:$16 sps:$4 sm:$0xff]  }
 0x135   :  { %1239 = vmatprep.subr.bf16.mxu1 %v7556_v19  ;;  %2213 = vmatpush1.bf16.msra.mxu0 %v7636_v17  ;;  %v7640_v19 = vld [vmem:[%s15365_s3 + $0x104] ss:$16 sps:$4 sm:$0xff]   ;;  %v7688_v17 = vld [vmem:[%s15365_s3 + $0xc] ss:$16 sps:$4 sm:$0xff]  }
 0x136   :  { %1519 = vmatmul.mubr.bf16.gmra.mxu0 %v9788_v55 }
 0x137   :  { %2234 = vmatprep.mubr.bf16.mxu0 %v9668_v15  ;;  %v7638_v15 = vld [vmem:[%s15367_s5 + $0x14] ss:$8 sps:$4 sm:$0xff]  }
 0x138   :  { %1240 = vmatpush1.bf16.msra.mxu1 %v7559_v22  ;;  %2214 = vmatprep.subr.bf16.mxu0 %v7638_v15  ;;  %v7644_v22 = vld [vmem:[%s15367_s5 + $0x4] ss:$8 sps:$4 sm:$0xff]  }
 0x139   :  { %1241 = vmatprep.subr.bf16.mxu1 %v7562_v23  ;;  %2215 = vmatpush1.bf16.msra.mxu0 %v7642_v20  ;;  %v7646_v23 = vld [vmem:[%s15365_s3 + $0xec] ss:$16 sps:$4 sm:$0xff]  }
 0x13a   :  { %2216 = vmatprep.subr.bf16.mxu0 %v7644_v22  ;;  %v7694_v15 = vld [vmem:[%s15365_s3 + $0x1ec] ss:$16 sps:$4 sm:$0xff]  }
 0x13b   :  { %6796 = vmatmul.mubr.msk.bf16.gmra.mxu1 %vm353_vm0, %v7476_v25  ;;  %v7650_v25 = vld [vmem:[%s15367_s5 + $0xf4] ss:$8 sps:$4 sm:$0xff]  }
 0x13c   :  { %418 = vmatprep.mubr.bf16.mxu1 %v15370_v56  ;;  %1242 = vmatpush1.bf16.msra.mxu1 %v7565_v27  ;;  %v7656_v27 = vld [vmem:[%s15367_s5 + $0xe4] ss:$8 sps:$4 sm:$0xff]  }
 0x13d   :  { %1243 = vmatprep.subr.bf16.mxu1 %v7568_v28  ;;  %2217 = vmatpush1.bf16.msra.mxu0 %v7648_v24  ;;  %v7660_v28 = vld [vmem:[%s15367_s5 + $0xe0] ss:$8 sps:$4 sm:$0xff]   ;;  %v7698_v20 = vld [vmem:[%s15365_s3 + $0x1cc] ss:$16 sps:$4 sm:$0xff]  }
 0x13e   :  { %2218 = vmatprep.subr.bf16.mxu0 %v7650_v25  ;;  %v7701_v22 = vld [vmem:[%s15365_s3 + $0x1ac] ss:$16 sps:$4 sm:$0xff]   ;;  %v7706_v25 = vld [vmem:[%s15365_s3 + $0x188] ss:$16 sps:$4 sm:$0xff]  }
 0x13f   :  { %v7704_v24 = vld [vmem:[%s15365_s3 + $0x18c] ss:$16 sps:$4 sm:$0xff]  }
 0x140   :  { %1244 = vmatpush1.bf16.msra.mxu1 %v7571_v31  ;;  %v7668_v31 = vld [vmem:[%s15367_s5 + $0xc4] ss:$8 sps:$4 sm:$0xff]  }
 0x141   :  { %1245 = vmatprep.subr.bf16.mxu1 %v7574_v32  ;;  %2219 = vmatpush2.bf16.msra.mxu0 %v7654_v26  ;;  %v7672_v32 = vld [vmem:[%s15367_s5 + $0xc0] ss:$8 sps:$4 sm:$0xff]   ;;  %v7707_v26 = vld [vmem:[%s15365_s3 + $0x16c] ss:$16 sps:$4 sm:$0xff]  }
 0x142   :  { %2220 = vmatprep.subr.bf16.mxu0 %v7656_v27  ;;  %v7709_v27 = vld [vmem:[%s15365_s3 + $0x168] ss:$16 sps:$4 sm:$0xff]  }
 0x143   :  { %6797 = vmatmul.mubr.msk.bf16.gmra.mxu1 %vm353_vm0, %v7477_v34  ;;  %v7678_v34 = vld [vmem:[%s15367_s5 + $0xb0] ss:$8 sps:$4 sm:$0xff]  }
 0x144   :  { %428 = vmatprep.mubr.bf16.mxu1 %v15370_v56  ;;  %1246 = vmatpush1.bf16.msra.mxu1 %v7577_v36  ;;  %v7684_v36 = vld [vmem:[%s15367_s5 + $0xa0] ss:$8 sps:$4 sm:$0xff]  }
 0x145   :  { %1247 = vmatprep.subr.bf16.mxu1 %v7580_v37  ;;  %2221 = vmatpush2.bf16.msra.mxu0 %v7660_v28  ;;  %v7686_v37 = vld [vmem:[%s15367_s5 + $0x94] ss:$8 sps:$4 sm:$0xff]  }
 0x146   :  { %2222 = vmatprep.subr.bf16.mxu0 %v7662_v29  ;;  %v7710_v28 = vld [vmem:[%s15365_s3 + $0x14c] ss:$16 sps:$4 sm:$0xff]   ;;  %v7712_v29 = vld [vmem:[%s15365_s3 + $0x148] ss:$16 sps:$4 sm:$0xff]  }
 0x148   :  { %1248 = vmatpush1.bf16.msra.mxu1 %v7583_v42  ;;  %v7696_v42 = vld [vmem:[%s15367_s5 + $0x80] ss:$8 sps:$4 sm:$0xff]  }
 0x149   :  { %1249 = vmatprep.subr.bf16.mxu1 %v7586_v43  ;;  %2223 = vmatpush2.bf16.msra.mxu0 %v7666_v30  ;;  %v7713_v30 = vld [vmem:[%s15365_s3 + $0x12c] ss:$16 sps:$4 sm:$0xff]  }
 0x14a   :  { %2224 = vmatprep.subr.bf16.mxu0 %v7668_v31  ;;  %v7715_v31 = vld [vmem:[%s15365_s3 + $0x128] ss:$16 sps:$4 sm:$0xff]  }
 0x14b   :  { %6798 = vmatmul.mubr.msk.bf16.gmra.mxu1 %vm353_vm0, %v7478_v47 }
 0x14c   :  { %1250 = vmatpush1.bf16.msra.mxu1 %v7589_v49 }
 0x14d   :  { %1251 = vmatprep.subr.bf16.mxu1 %v7592_v50  ;;  %2225 = vmatpush2.bf16.msra.mxu0 %v7672_v32  ;;  %v7658_v50 = vld [vmem:[%s15365_s3 + $0xac] ss:$16 sps:$4 sm:$0xff]  }
 0x14e   :  { %2226 = vmatprep.subr.bf16.mxu0 %v7674_v33  ;;  %v7716_v32 = vld [vmem:[%s15365_s3 + $0x10c] ss:$16 sps:$4 sm:$0xff]   ;;  %v7718_v33 = vld [vmem:[%s15365_s3 + $0x108] ss:$16 sps:$4 sm:$0xff]  }
 0x150   :  { %1252 = vmatpush1.bf16.msra.mxu1 %v7595_v57 }
 0x151   :  { %1253 = vmatprep.subr.bf16.mxu1 %v7598_v58  ;;  %2227 = vmatpush2.bf16.msra.mxu0 %v7678_v34  ;;  %v7661_v58 = vld [vmem:[%s15365_s3 + $0xa8] ss:$16 sps:$4 sm:$0xff]   ;;  %v7719_v34 = vld [vmem:[%s15366_s4 + $0x74] ss:$8 sps:$4 sm:$0xff]  }
 0x152   :  { %2228 = vmatprep.subr.bf16.mxu0 %v7680_v35  ;;  %v7721_v35 = vld [vmem:[%s15366_s4 + $0x70] ss:$8 sps:$4 sm:$0xff]  }
 0x154   :  { %1254 = vmatpush2.bf16.msra.mxu1 %v7601_v61 }
 0x155   :  { %1255 = vmatprep.subr.bf16.mxu1 %v7604_v62  ;;  %2229 = vmatpush2.bf16.msra.mxu0 %v7684_v36  ;;  %v7667_v62 = vld [vmem:[%s15365_s3 + $0x88] ss:$16 sps:$4 sm:$0xff]   ;;  %v7722_v36 = vld [vmem:[%s15366_s4 + $0x64] ss:$8 sps:$4 sm:$0xff]  }
 0x156   :  { %2230 = vmatprep.subr.bf16.mxu0 %v7686_v37  ;;  %v7724_v37 = vld [vmem:[%s15366_s4 + $0x60] ss:$8 sps:$4 sm:$0xff]  }
 0x158   :  { %1256 = vmatpush2.bf16.msra.mxu1 %v7607_v1 }
 0x159   :  { %1257 = vmatprep.subr.bf16.mxu1 %v7610_v2  ;;  %2231 = vmatpush2.bf16.msra.mxu0 %v7690_v38  ;;  %v7725_v38 = vld [vmem:[%s15366_s4 + $0x54] ss:$8 sps:$4 sm:$0xff]  }
 0x15a   :  { %2232 = vmatprep.subr.bf16.mxu0 %v7692_v41  ;;  %v7727_v41 = vld [vmem:[%s15366_s4 + $0x50] ss:$8 sps:$4 sm:$0xff]  }
 0x15c   :  { %1258 = vmatpush2.bf16.msra.mxu1 %v7613_v5 }
 0x15d   :  { %1259 = vmatprep.subr.bf16.mxu1 %v7616_v6  ;;  %2233 = vmatpush2.bf16.msra.mxu0 %v7696_v42  ;;  %v7676_v6 = vld [vmem:[%s15365_s3 + $0x4c] ss:$16 sps:$4 sm:$0xff]  }
 0x15e   :  { %v7728_v42 = vld [vmem:[%s15366_s4 + $0x44] ss:$8 sps:$4 sm:$0xff]  }
 0x160   :  { %1260 = vmatpush2.bf16.msra.mxu1 %v7619_v8  ;;  %2235 = vmatmul.mubr.bf16.vlgmr.msra.gmra.mxu0 %v9740_v39  ;;  %v7649_v39 = vld [vmem:[%s15365_s3 + $0xe8] ss:$16 sps:$4 sm:$0xff]  }
 0x161   :  { %1261 = vmatprep.subr.bf16.mxu1 %v7622_v9  ;;  %2244 = vmatprep.mubr.bf16.mxu0 %v9742_v40  ;;  %v7679_v8 = vld [vmem:[%s15365_s3 + $0x48] ss:$16 sps:$4 sm:$0xff]  }
 0x164   :  { %1262 = vmatpush2.bf16.msra.mxu1 %v7625_v10  ;;  %v7682_v10 = vld [vmem:[%s15365_s3 + $0x2c] ss:$16 sps:$4 sm:$0xff]  }
 0x165   :  { %1263 = vmatprep.subr.bf16.mxu1 %v7628_v11 }
 0x168   :  { %1264 = vmatpush2.bf16.msra.mxu1 %v7631_v13  ;;  %2245 = vmatmul.mubr.bf16.gmra.mxu0 %v9758_v45 }
 0x169   :  { %1265 = vmatprep.subr.bf16.mxu1 %v7634_v16  ;;  %2254 = vmatprep.mubr.bf16.mxu0 %v9760_v46  ;;  %v7652_v46 = vld [vmem:[%s15365_s3 + $0xcc] ss:$16 sps:$4 sm:$0xff]   ;;  %v7685_v16 = vld [vmem:[%s15365_s3 + $0x28] ss:$16 sps:$4 sm:$0xff]  }
 0x16c   :  { %1266 = vmatpush2.bf16.msra.mxu1 %v7637_v18  ;;  %v7691_v18 = vld [vmem:[%s15365_s3 + $0x8] ss:$16 sps:$4 sm:$0xff]  }
 0x16d   :  { %1267 = vmatprep.subr.bf16.mxu1 %v7640_v19  ;;  %v7697_v19 = vld [vmem:[%s15365_s3 + $0x1e8] ss:$16 sps:$4 sm:$0xff]  }
 0x170   :  { %1268 = vmatpush2.bf16.msra.mxu1 %v7643_v21  ;;  %2255 = vmatmul.mubr.bf16.gmra.mxu0 %v9776_v51  ;;  %v7700_v21 = vld [vmem:[%s15365_s3 + $0x1c8] ss:$16 sps:$4 sm:$0xff]  }
 0x171   :  { %1383 = vmatprep.subr.bf16.mxu1 %v7646_v23  ;;  %2264 = vmatprep.mubr.bf16.mxu0 %v9778_v52  ;;  %v7655_v52 = vld [vmem:[%s15365_s3 + $0xc8] ss:$16 sps:$4 sm:$0xff]  }
 0x172   :  { %v7703_v23 = vld [vmem:[%s15365_s3 + $0x1a8] ss:$16 sps:$4 sm:$0xff]  }
 0x178   :  { %2265 = vmatmul.mubr.bf16.gmra.mxu0 %v9788_v55 }
 0x179   :  { %2685 = vmatprep.mubr.bf16.mxu0 %v15370_v56 }
 0x1f3   :  { %v400_v43 = vpop.f32.mrf.mxu1 }
 0x1f5   :  { %v402_v44 = vpop.f32.mrf.mxu1 }
 0x1f7   :  { %v404_v47 = vpop.f32.mrf.mxu1 }
 0x1f8   :  { %v10246_v40 = vpack.c.bf16 %v404_v47, %v400_v43  ;;  %v7730_v43 = vld [vmem:[%s15366_s4 + $0x40] ss:$8 sps:$4 sm:$0xff]   ;;  %v7733_v47 = vld [vmem:[%s15366_s4 + $0x30] ss:$8 sps:$4 sm:$0xff]  }
 0x1f9   :  { %v406_v48 = vpop.f32.mrf.mxu1 }
 0x1fa   :  { %v10241_v49 = vpack.c.bf16 %v406_v48, %v402_v44  ;;  %v7731_v44 = vld [vmem:[%s15366_s4 + $0x34] ss:$8 sps:$4 sm:$0xff]   ;;  %v7734_v48 = vld [vmem:[%s15366_s4 + $0x24] ss:$8 sps:$4 sm:$0xff]  }
 0x1fb   :  { %v410_v45 = vpop.f32.mrf.mxu1 }
 0x1fc   :  { %1269 = vmatprep.mubr.bf16.mxu1 %v10241_v49 }
 0x1fd   :  { %v412_v51 = vpop.f32.mrf.mxu1  ;;  %1270 = vmatmul.mubr.bf16.vlgmr.msra.gmra.mxu1 %v10246_v40 }
 0x1fe   :  { %1384 = vmatpush1.bf16.msra.mxu1 %v7649_v39  ;;  %v7736_v39 = vld [vmem:[%s15366_s4 + $0x20] ss:$8 sps:$4 sm:$0xff]  }
 0x1ff   :  { %v414_v55 = vpop.f32.mrf.mxu1  ;;  %1385 = vmatprep.subr.bf16.mxu1 %v7652_v46  ;;  %v7739_v46 = vld [vmem:[%s15366_s4 + $0x10] ss:$8 sps:$4 sm:$0xff]  }
 0x200   :  { %v10259_v53 = vpack.c.bf16 %v414_v55, %v410_v45  ;;  %v7737_v45 = vld [vmem:[%s15366_s4 + $0x14] ss:$8 sps:$4 sm:$0xff]  }
 0x201   :  { %v416_v54 = vpop.f32.mrf.mxu1  ;;  %v7743_v55 = vld [vmem:[%s15366_s4 + $0xf4] ss:$8 sps:$4 sm:$0xff]  }
 0x202   :  { %v10261_v57 = vpack.c.bf16 %v416_v54, %v412_v51  ;;  %1386 = vmatpush1.bf16.msra.mxu1 %v7655_v52  ;;  %v7740_v51 = vld [vmem:[%s15366_s4 + $0x4] ss:$8 sps:$4 sm:$0xff]   ;;  %v7742_v52 = vld [vmem:[%s15366_s4] ss:$8 sps:$4 sm:$0xff]  }
 0x203   :  { %v420_v59 = vpop.f32.mrf.mxu1  ;;  %1387 = vmatprep.subr.bf16.mxu1 %v7658_v50  ;;  %v7745_v50 = vld [vmem:[%s15366_s4 + $0xf0] ss:$8 sps:$4 sm:$0xff]   ;;  %v7746_v54 = vld [vmem:[%s15366_s4 + $0xe4] ss:$8 sps:$4 sm:$0xff]  }
 0x204   :  { %1279 = vmatprep.mubr.bf16.mxu1 %v10261_v57 }
 0x205   :  { %v422_v61 = vpop.f32.mrf.mxu1  ;;  %1280 = vmatmul.mubr.bf16.gmra.mxu1 %v10259_v53 }
 0x206   :  { %1388 = vmatpush1.bf16.msra.mxu1 %v7661_v58  ;;  %v7749_v58 = vld [vmem:[%s15366_s4 + $0xd4] ss:$8 sps:$4 sm:$0xff]  }
 0x207   :  { %v424_v63 = vpop.f32.mrf.mxu1  ;;  %1389 = vmatprep.subr.bf16.mxu1 %v7664_v60  ;;  %v7752_v60 = vld [vmem:[%s15366_s4 + $0xc4] ss:$8 sps:$4 sm:$0xff]  }
 0x208   :  { %v10277_v1 = vpack.c.bf16 %v424_v63, %v420_v59  ;;  %v7751_v59 = vld [vmem:[%s15366_s4 + $0xd0] ss:$8 sps:$4 sm:$0xff]  }
 0x209   :  { %v426_v2 = vpop.f32.mrf.mxu1  ;;  %v7757_v63 = vld [vmem:[%s15366_s4 + $0xb0] ss:$8 sps:$4 sm:$0xff]  }
 0x20a   :  { %v10279_v3 = vpack.c.bf16 %v426_v2, %v422_v61  ;;  %1390 = vmatpush1.bf16.msra.mxu1 %v7667_v62  ;;  %v7754_v61 = vld [vmem:[%s15366_s4 + $0xc0] ss:$8 sps:$4 sm:$0xff]   ;;  %v7755_v62 = vld [vmem:[%s15366_s4 + $0xb4] ss:$8 sps:$4 sm:$0xff]  }
 0x20b   :  { %v430_v5 = vpop.f32.mrf.mxu1  ;;  %1391 = vmatprep.subr.bf16.mxu1 %v7670_v0  ;;  %v7758_v0 = vld [vmem:[%s15366_s4 + $0xa4] ss:$8 sps:$4 sm:$0xff]   ;;  %v7760_v2 = vld [vmem:[%s15366_s4 + $0xa0] ss:$8 sps:$4 sm:$0xff]  }
 0x20c   :  { %1289 = vmatprep.mubr.bf16.mxu1 %v10279_v3 }
 0x20d   :  { %v432_v7 = vpop.f32.mrf.mxu1  ;;  %1290 = vmatmul.mubr.bf16.gmra.mxu1 %v10277_v1 }
 0x20e   :  { %1392 = vmatpush1.bf16.msra.mxu1 %v7673_v4  ;;  %v7761_v4 = vld [vmem:[%s15366_s4 + $0x94] ss:$8 sps:$4 sm:$0xff]  }
 0x20f   :  { %v434_v9 = vpop.f32.mrf.mxu1  ;;  %1393 = vmatprep.subr.bf16.mxu1 %v7676_v6  ;;  %v7764_v6 = vld [vmem:[%s15366_s4 + $0x84] ss:$8 sps:$4 sm:$0xff]  }
 0x210   :  { %v10295_v11 = vpack.c.bf16 %v434_v9, %v430_v5  ;;  %v7763_v5 = vld [vmem:[%s15366_s4 + $0x90] ss:$8 sps:$4 sm:$0xff]  }
 0x211   :  { %v436_v13 = vpop.f32.mrf.mxu1 }
 0x212   :  { %v10297_v14 = vpack.c.bf16 %v436_v13, %v432_v7  ;;  %1394 = vmatpush1.bf16.msra.mxu1 %v7679_v8  ;;  %v7766_v7 = vld [vmem:[%s15366_s4 + $0x80] ss:$8 sps:$4 sm:$0xff]   ;;  %v10469_v8 = vpop.f32.mrf.mxu0 }
 0x213   :  { %1395 = vmatprep.subr.bf16.mxu1 %v7682_v10 }
 0x214   :  { %1299 = vmatprep.mubr.bf16.mxu1 %v10297_v14  ;;  %v10472_v9 = vpop.f32.mrf.mxu0 }
 0x215   :  { %1300 = vmatmul.mubr.bf16.gmra.mxu1 %v10295_v11 }
 0x216   :  { %1396 = vmatpush1.bf16.msra.mxu1 %v7685_v16  ;;  %1415 = vmatprep.mubr.bf16.mxu1 %v10241_v49  ;;  %v10474_v10 = vpop.f32.mrf.mxu0  ;;  %v7773_v16 = vld [vmem:[%s15364_s2 + $0x150] ss:$8 sps:$4 sm:$0xff]  }
 0x217   :  { %1397 = vmatprep.subr.bf16.mxu1 %v7688_v17 }
 0x218   :  { %v10476_v13 = vpop.f32.mrf.mxu0 }
 0x21a   :  { %1398 = vmatpush1.bf16.msra.mxu1 %v7691_v18  ;;  %v7778_v18 = vld [vmem:[%s15364_s2 + $0x144] ss:$8 sps:$4 sm:$0xff]  }
 0x21b   :  { %1399 = vmatprep.subr.bf16.mxu1 %v7694_v15  ;;  %v7776_v15 = vld [vmem:[%s15364_s2 + $0x140] ss:$8 sps:$4 sm:$0xff]  }
 0x21e   :  { %1400 = vmatpush2.bf16.msra.mxu1 %v7697_v19 }
 0x21f   :  { %1401 = vmatprep.subr.bf16.mxu1 %v7698_v20  ;;  %v7781_v20 = vld [vmem:[%s15364_s2 + $0x134] ss:$8 sps:$4 sm:$0xff]  }
 0x222   :  { %1402 = vmatpush2.bf16.msra.mxu1 %v7700_v21  ;;  %v7779_v21 = vld [vmem:[%s15364_s2 + $0x130] ss:$8 sps:$4 sm:$0xff]  }
 0x223   :  { %1403 = vmatprep.subr.bf16.mxu1 %v7701_v22 }
 0x226   :  { %1404 = vmatpush2.bf16.msra.mxu1 %v7703_v23  ;;  %v7784_v23 = vld [vmem:[%s15364_s2 + $0x124] ss:$8 sps:$4 sm:$0xff]  }
 0x227   :  { %1405 = vmatprep.subr.bf16.mxu1 %v7704_v24  ;;  %v7782_v24 = vld [vmem:[%s15364_s2 + $0x120] ss:$8 sps:$4 sm:$0xff]  }
 0x22a   :  { %1406 = vmatpush2.bf16.msra.mxu1 %v7706_v25  ;;  %v7787_v25 = vld [vmem:[%s15364_s2 + $0x114] ss:$8 sps:$4 sm:$0xff]  }
 0x22b   :  { %1407 = vmatprep.subr.bf16.mxu1 %v7707_v26  ;;  %v7785_v26 = vld [vmem:[%s15364_s2 + $0x110] ss:$8 sps:$4 sm:$0xff]  }
 0x22e   :  { %1408 = vmatpush2.bf16.msra.mxu1 %v7709_v27 }
 0x22f   :  { %1409 = vmatprep.subr.bf16.mxu1 %v7710_v28  ;;  %v7790_v28 = vld [vmem:[%s15364_s2 + $0x104] ss:$8 sps:$4 sm:$0xff]  }
 0x232   :  { %1410 = vmatpush2.bf16.msra.mxu1 %v7712_v29  ;;  %v7788_v29 = vld [vmem:[%s15364_s2 + $0x100] ss:$8 sps:$4 sm:$0xff]  }
 0x233   :  { %1411 = vmatprep.subr.bf16.mxu1 %v7713_v30 }
 0x236   :  { %1412 = vmatpush2.bf16.msra.mxu1 %v7715_v31 }
 0x237   :  { %1413 = vmatprep.subr.bf16.mxu1 %v7716_v32  ;;  %v7793_v32 = vld [vmem:[%s15364_s2 + $0x1f4] ss:$8 sps:$4 sm:$0xff]  }
 0x23a   :  { %1414 = vmatpush2.bf16.msra.mxu1 %v7718_v33  ;;  %v7791_v33 = vld [vmem:[%s15364_s2 + $0x1f0] ss:$8 sps:$4 sm:$0xff]  }
 0x23b   :  { %1957 = vmatprep.subr.bf16.mxu1 %v7719_v34 }
 0x23d   :  { %1416 = vmatmul.mubr.bf16.vlgmr.msra.gmra.mxu1 %v10246_v40 }
 0x23e   :  { %1425 = vmatprep.mubr.bf16.mxu1 %v10261_v57  ;;  %1958 = vmatpush1.bf16.msra.mxu1 %v7721_v35  ;;  %v7796_v35 = vld [vmem:[%s15364_s2 + $0x1e4] ss:$8 sps:$4 sm:$0xff]  }
 0x23f   :  { %1959 = vmatprep.subr.bf16.mxu1 %v7722_v36 }
 0x242   :  { %1960 = vmatpush1.bf16.msra.mxu1 %v7724_v37  ;;  %v7794_v37 = vld [vmem:[%s15364_s2 + $0x1e0] ss:$8 sps:$4 sm:$0xff]  }
 0x243   :  { %1961 = vmatprep.subr.bf16.mxu1 %v7725_v38 }
 0x245   :  { %1426 = vmatmul.mubr.bf16.gmra.mxu1 %v10259_v53 }
 0x246   :  { %1435 = vmatprep.mubr.bf16.mxu1 %v10279_v3  ;;  %1962 = vmatpush1.bf16.msra.mxu1 %v7727_v41  ;;  %v7799_v41 = vld [vmem:[%s15364_s2 + $0x1d4] ss:$8 sps:$4 sm:$0xff]  }
 0x247   :  { %1963 = vmatprep.subr.bf16.mxu1 %v7728_v42 }
 0x24a   :  { %1964 = vmatpush1.bf16.msra.mxu1 %v7730_v43  ;;  %v7797_v43 = vld [vmem:[%s15364_s2 + $0x1d0] ss:$8 sps:$4 sm:$0xff]  }
 0x24b   :  { %1965 = vmatprep.subr.bf16.mxu1 %v7731_v44 }
 0x24d   :  { %1436 = vmatmul.mubr.bf16.gmra.mxu1 %v10277_v1 }
 0x24e   :  { %1445 = vmatprep.mubr.bf16.mxu1 %v10297_v14  ;;  %1966 = vmatpush1.bf16.msra.mxu1 %v7733_v47  ;;  %v7802_v47 = vld [vmem:[%s15364_s2 + $0x1c4] ss:$8 sps:$4 sm:$0xff]  }
 0x24f   :  { %1967 = vmatprep.subr.bf16.mxu1 %v7734_v48 }
 0x252   :  { %1968 = vmatpush1.bf16.msra.mxu1 %v7736_v39  ;;  %v7800_v39 = vld [vmem:[%s15364_s2 + $0x1c0] ss:$8 sps:$4 sm:$0xff]  }
 0x253   :  { %1969 = vmatprep.subr.bf16.mxu1 %v7737_v45 }
 0x255   :  { %1446 = vmatmul.mubr.bf16.gmra.mxu1 %v10295_v11 }
 0x256   :  { %1970 = vmatpush1.bf16.msra.mxu1 %v7739_v46  ;;  %1989 = vmatprep.mubr.bf16.mxu1 %v10241_v49  ;;  %v7748_v49 = vld [vmem:[%s15366_s4 + $0xe0] ss:$8 sps:$4 sm:$0xff]   ;;  %v7805_v46 = vld [vmem:[%s15364_s2 + $0x1b4] ss:$8 sps:$4 sm:$0xff]  }
 0x257   :  { %1971 = vmatprep.subr.bf16.mxu1 %v7740_v51 }
 0x25a   :  { %1972 = vmatpush1.bf16.msra.mxu1 %v7742_v52  ;;  %v7803_v52 = vld [vmem:[%s15364_s2 + $0x1b0] ss:$8 sps:$4 sm:$0xff]  }
 0x25b   :  { %1973 = vmatprep.subr.bf16.mxu1 %v7743_v55 }
 0x25e   :  { %1974 = vmatpush2.bf16.msra.mxu1 %v7745_v50 }
 0x25f   :  { %1975 = vmatprep.subr.bf16.mxu1 %v7746_v54  ;;  %v7808_v54 = vld [vmem:[%s15364_s2 + $0x1a4] ss:$8 sps:$4 sm:$0xff]  }
 0x262   :  { %1976 = vmatpush2.bf16.msra.mxu1 %v7748_v49  ;;  %v7806_v49 = vld [vmem:[%s15364_s2 + $0x1a0] ss:$8 sps:$4 sm:$0xff]  }
 0x263   :  { %1977 = vmatprep.subr.bf16.mxu1 %v7749_v58 }
 0x266   :  { %1978 = vmatpush2.bf16.msra.mxu1 %v7751_v59 }
 0x267   :  { %1979 = vmatprep.subr.bf16.mxu1 %v7752_v60  ;;  %v7811_v60 = vld [vmem:[%s15364_s2 + $0x194] ss:$8 sps:$4 sm:$0xff]  }
 0x26a   :  { %1980 = vmatpush2.bf16.msra.mxu1 %v7754_v61  ;;  %v7809_v61 = vld [vmem:[%s15364_s2 + $0x190] ss:$8 sps:$4 sm:$0xff]  }
 0x26b   :  { %1981 = vmatprep.subr.bf16.mxu1 %v7755_v62 }
 0x26e   :  { %1982 = vmatpush2.bf16.msra.mxu1 %v7757_v63 }
 0x26f   :  { %1983 = vmatprep.subr.bf16.mxu1 %v7758_v0  ;;  %v7814_v0 = vld [vmem:[%s15364_s2 + $0x184] ss:$8 sps:$4 sm:$0xff]  }
 0x272   :  { %1984 = vmatpush2.bf16.msra.mxu1 %v7760_v2  ;;  %v7812_v2 = vld [vmem:[%s15364_s2 + $0x180] ss:$8 sps:$4 sm:$0xff]  }
 0x273   :  { %1985 = vmatprep.subr.bf16.mxu1 %v7761_v4 }
 0x276   :  { %1986 = vmatpush2.bf16.msra.mxu1 %v7763_v5 }
 0x277   :  { %1987 = vmatprep.subr.bf16.mxu1 %v7764_v6 }
 0x27a   :  { %1988 = vmatpush2.bf16.msra.mxu1 %v7766_v7 }
 0x27d   :  { %1990 = vmatmul.mubr.bf16.vlgmr.msra.gmra.mxu1 %v10246_v40  ;;  %v7769_v40 = vld [vmem:[%s15364_s2 + $0x174] ss:$8 sps:$4 sm:$0xff]  }
 0x27e   :  { %1999 = vmatprep.mubr.bf16.mxu1 %v10261_v57  ;;  %2572 = vmatprep.subr.bf16.mxu1 %v7769_v40  ;;  %v10484_v57 = vpop.f32.mrf.mxu0 }
 0x285   :  { %2000 = vmatmul.mubr.bf16.gmra.mxu1 %v10259_v53  ;;  %v7767_v53 = vld [vmem:[%s15364_s2 + $0x170] ss:$8 sps:$4 sm:$0xff]  }
 0x286   :  { %2009 = vmatprep.mubr.bf16.mxu1 %v10279_v3  ;;  %2573 = vmatpush1.bf16.msra.mxu1 %v7767_v53  ;;  %v7770_v3 = vld [vmem:[%s15364_s2 + $0x160] ss:$8 sps:$4 sm:$0xff]  }
 0x28d   :  { %2010 = vmatmul.mubr.bf16.gmra.mxu1 %v10277_v1  ;;  %v7772_v1 = vld [vmem:[%s15364_s2 + $0x164] ss:$8 sps:$4 sm:$0xff]  }
 0x28e   :  { %2019 = vmatprep.mubr.bf16.mxu1 %v10297_v14  ;;  %2574 = vmatprep.subr.bf16.mxu1 %v7772_v1  ;;  %v7775_v14 = vld [vmem:[%s15364_s2 + $0x154] ss:$8 sps:$4 sm:$0xff]   ;;  %v577_v1 = vlaneseq }
 0x28f   :  { %2575 = vmatpush1.bf16.msra.mxu1 %v7770_v3 }
 0x290   :  { %2576 = vmatprep.subr.bf16.mxu1 %v7775_v14 }
 0x293   :  { %2577 = vmatpush1.bf16.msra.mxu1 %v7773_v16  ;;  %v10613_v16 = vshrl.u32 %v577_v1, 7 }
 0x294   :  { %2578 = vmatprep.subr.bf16.mxu1 %v7778_v18 }
 0x295   :  { %2020 = vmatmul.mubr.bf16.gmra.mxu1 %v10295_v11  ;;  %v10492_v11 = vpop.f32.mrf.mxu0 }
 0x297   :  { %v10500_v17 = vpop.f32.mrf.mxu0  ;;  %2579 = vmatpush1.bf16.msra.mxu1 %v7776_v15 }
 0x298   :  { %2580 = vmatprep.subr.bf16.mxu1 %v7781_v20  ;;  %v10618_v20 = vsub.s32 0, %v10613_v16 }
 0x299   :  { %v10508_v19 = vpop.f32.mrf.mxu0 }
 0x29b   :  { %2581 = vmatpush1.bf16.msra.mxu1 %v7779_v21  ;;  %v10516_v22 = vpop.f32.mrf.mxu0 }
 0x29c   :  { %2582 = vmatprep.subr.bf16.mxu1 %v7784_v23 }
 0x29d   :  { %v10530_v27 = vpop.f32.mrf.mxu0 }
 0x29f   :  { %2583 = vmatpush1.bf16.msra.mxu1 %v7782_v24  ;;  %v10538_v30 = vpop.f32.mrf.mxu0 }
 0x2a0   :  { %2584 = vmatprep.subr.bf16.mxu1 %v7787_v25  ;;  %v10632_v25 = vsub.s32 1, %v10613_v16 }
 0x2a1   :  { %v10540_v31 = vpop.f32.mrf.mxu0 }
 0x2a3   :  { %2585 = vmatpush1.bf16.msra.mxu1 %v7785_v26  ;;  %v10548_v34 = vpop.f32.mrf.mxu0 }
 0x2a4   :  { %2586 = vmatprep.subr.bf16.mxu1 %v7790_v28 }
 0x2a5   :  { %v10556_v38 = vpop.f32.mrf.mxu0 }
 0x2a7   :  { %2587 = vmatpush1.bf16.msra.mxu1 %v7788_v29  ;;  %v10564_v44 = vpop.f32.mrf.mxu0 }
 0x2a8   :  { %2588 = vmatprep.subr.bf16.mxu1 %v7793_v32 }
 0x2a9   :  { %v10572_v45 = vpop.f32.mrf.mxu0 }
 0x2ab   :  { %2589 = vmatpush2.bf16.msra.mxu1 %v7791_v33  ;;  %v10580_v50 = vpop.f32.mrf.mxu0 }
 0x2ac   :  { %2590 = vmatprep.subr.bf16.mxu1 %v7796_v35 }
 0x2ad   :  { %v10588_v59 = vpop.f32.mrf.mxu0 }
 0x2af   :  { %2591 = vmatpush2.bf16.msra.mxu1 %v7794_v37  ;;  %v10596_v63 = vpop.f32.mrf.mxu0 }
 0x2b0   :  { %2592 = vmatprep.subr.bf16.mxu1 %v7799_v41 }
 0x2b1   :  { %v10604_v5 = vpop.f32.mrf.mxu0 }
 0x2b3   :  { %2593 = vmatpush2.bf16.msra.mxu1 %v7797_v43  ;;  %v10607_v7 = vpop.f32.mrf.mxu0 }
 0x2b4   :  { %2594 = vmatprep.subr.bf16.mxu1 %v7802_v47 }
 0x2b5   :  { %v10609_v53 = vpop.f32.mrf.mxu0 }
 0x2b7   :  { %2595 = vmatpush2.bf16.msra.mxu1 %v7800_v39  ;;  %v10611_v14 = vpop.f32.mrf.mxu0 }
 0x2b8   :  { %2596 = vmatprep.subr.bf16.mxu1 %v7805_v46 }
 0x2b9   :  { %v10615_v15 = vpop.f32.mrf.mxu0 }
 0x2bb   :  { %2597 = vmatpush2.bf16.msra.mxu1 %v7803_v52  ;;  %v10625_v23 = vpop.f32.mrf.mxu0 }
 0x2bc   :  { %2598 = vmatprep.subr.bf16.mxu1 %v7808_v54 }
 0x2bd   :  { %v1271_v36 = vpop.f32.mrf.mxu1  ;;  %v10634_v28 = vpop.f32.mrf.mxu0 }
 0x2bf   :  { %v1273_v42 = vpop.f32.mrf.mxu1  ;;  %2599 = vmatpush2.bf16.msra.mxu1 %v7806_v49  ;;  %v10641_v35 = vpop.f32.mrf.mxu0 }
 0x2c0   :  { %2600 = vmatprep.subr.bf16.mxu1 %v7811_v60 }
 0x2c1   :  { %v1275_v48 = vpop.f32.mrf.mxu1  ;;  %v10645_v47 = vpop.f32.mrf.mxu0 }
 0x2c3   :  { %v1277_v51 = vpop.f32.mrf.mxu1  ;;  %2601 = vmatpush2.bf16.msra.mxu1 %v7809_v61  ;;  %v10651_v54 = vpop.f32.mrf.mxu0 }
 0x2c4   :  { %2602 = vmatprep.subr.bf16.mxu1 %v7814_v0 }
 0x2c5   :  { %v1281_v55 = vpop.f32.mrf.mxu1  ;;  %v10658_v0 = vpop.f32.mrf.mxu0 }
 0x2c7   :  { %v1283_v58 = vpop.f32.mrf.mxu1  ;;  %2603 = vmatpush2.bf16.msra.mxu1 %v7812_v2 }
 0x2c8   :  { %2734 = vmatprep.subr.bf16.mxu1 %v9970_v12  ;;  %v10623_v12 = vld [vmem:[%s15368_s6] sm:$0xf] }
 0x2c9   :  { %v1285_v62 = vpop.f32.mrf.mxu1  ;;  %v10629_v24 = vrot.slane %v10623_v12, %v10618_v20  ;;  %v10639_v32 = vrot.slane %v10623_v12, %v10632_v25 }
 0x2cb   :  { %v1287_v4 = vpop.f32.mrf.mxu1  ;;  %v1272_v29 = vadd.f32 %v1271_v36, %v10629_v24  ;;  %v1274_v41 = vadd.f32 %v1273_v42, %v10639_v32  ;;  %v1276_v36 = vadd.f32 %v1275_v48, %v10629_v24  ;;  %v1278_v60 = vadd.f32 %v1277_v51, %v10639_v32 }
 0x2cc   :  { %v1282_v61 = vadd.f32 %v1281_v55, %v10629_v24  ;;  %v1284_v48 = vadd.f32 %v1283_v58, %v10639_v32  ;;  %v1286_v51 = vadd.f32 %v1285_v62, %v10629_v24 }
 0x2cd   :  { %v1291_v6 = vpop.f32.mrf.mxu1  ;;  %v1345_v37 = vadd.f32 %v10469_v8, %v1272_v29  ;;  %v1347_v52 = vadd.f32 %v10472_v9, %v1274_v41  ;;  %v1349_v42 = vadd.f32 %v10474_v10, %v1276_v36  ;;  %v1351_v9 = vadd.f32 %v10476_v13, %v1278_v60 }
 0x2ce   :  { %v1355_v29 = vadd.f32 %v10484_v57, %v1282_v61  ;;  %v1357_v55 = vadd.f32 %v10492_v11, %v1284_v48  ;;  %v1359_v13 = vadd.f32 %v10500_v17, %v1286_v51  ;;  %v1292_v36 = vadd.f32 %v1291_v6, %v10629_v24 }
 0x2cf   :  { %v1293_v40 = vpop.f32.mrf.mxu1  ;;  %v6927_v46 = vmul.f32 -1.442695, %v1345_v37  ;;  %v6928_v8 = vmul.f32 -1.442695, %v1347_v52  ;;  %v6929_v1 = vmul.f32 -1.442695, %v1349_v42  ;;  %v10665_v37 = vpop.f32.mrf.mxu0 }
 0x2d0   :  { %v6930_v10 = vmul.f32 -1.442695, %v1351_v9  ;;  %v6931_v52 = vmul.f32 -1.442695, %v1355_v29  ;;  %v1294_v57 = vadd.f32 %v1293_v40, %v10639_v32  ;;  %v6932_v62 = vmul.f32 -1.442695, %v1357_v55 }
 0x2d1   :  { %v1295_v3 = vpop.f32.mrf.mxu1  ;;  %7959 = vpow2.f32 %v6927_v46  ;;  %v1288_v46 = vadd.f32 %v1287_v4, %v10639_v32  ;;  %v10673_v58 = vpop.f32.mrf.mxu0  ;;  %v587_v4 = vsub.s32 2, %v10613_v16  ;;  %v6933_v61 = vmul.f32 -1.442695, %v1359_v13 }
 0x2d2   :  { %7961 = vpow2.f32 %v6928_v8  ;;  %v1296_v11 = vadd.f32 %v1295_v3, %v10629_v24  ;;  %v1365_v9 = vadd.f32 %v10516_v22, %v1292_v36  ;;  %v1367_v40 = vadd.f32 %v10530_v27, %v1294_v57 }
 0x2d3   :  { %v1297_v18 = vpop.f32.mrf.mxu1  ;;  %7963 = vpow2.f32 %v6929_v1  ;;  %v1361_v8 = vadd.f32 %v10508_v19, %v1288_v46  ;;  %v10682_v17 = vpop.f32.mrf.mxu0  ;;  %v591_v1 = vsub.s32 3, %v10613_v16  ;;  %v10695_v22 = vrot.slane %v10623_v12, %v587_v4 }
 0x2d4   :  { %7965 = vpow2.f32 %v6930_v10  ;;  %v1298_v6 = vadd.f32 %v1297_v18, %v10639_v32  ;;  %v1369_v29 = vadd.f32 %v10538_v30, %v1296_v11  ;;  %v6935_v27 = vmul.f32 -1.442695, %v1365_v9 }
 0x2d5   :  { %v1301_v21 = vpop.f32.mrf.mxu1  ;;  %7967 = vpow2.f32 %v6931_v52  ;;  %v6934_v3 = vmul.f32 -1.442695, %v1361_v8  ;;  %v6936_v46 = vmul.f32 -1.442695, %v1367_v40 }
 0x2d6   :  { %v1302_v48 = vadd.f32 %v1301_v21, %v10629_v24  ;;  %7969 = vpow2.f32 %v6932_v62  ;;  %v10697_v21 = vpop.f32.mrf.mxu0  ;;  %v1371_v16 = vadd.f32 %v10540_v31, %v1298_v6 }
 0x2d7   :  { %v1303_v26 = vpop.f32.mrf.mxu1  ;;  %7971 = vpow2.f32 %v6933_v61 }
 0x2d8   :  { %v1304_v51 = vadd.f32 %v1303_v26, %v10639_v32  ;;  %v1375_v52 = vadd.f32 %v10548_v34, %v1302_v48  ;;  %v10703_v26 = vrot.slane %v10623_v12, %v591_v1  ;;  %7973 = vpow2.f32 %v6934_v3  ;;  %v10711_v34 = vpop.f32.mrf.mxu0 }
 0x2d9   :  { %v1305_v33 = vpop.f32.mrf.mxu1 }
 0x2da   :  { %v1306_v55 = vadd.f32 %v1305_v33, %v10629_v24  ;;  %v6937_v33 = vmul.f32 -1.442695, %v1369_v29  ;;  %v1377_v36 = vadd.f32 %v10556_v38, %v1304_v51  ;;  %v6939_v12 = vmul.f32 -1.442695, %v1375_v52  ;;  %v10721_v40 = vpop.f32.mrf.mxu0 }
 0x2db   :  { %v1307_v43 = vpop.f32.mrf.mxu1 }
 0x2dc   :  { %v1308_v30 = vadd.f32 %v1307_v43, %v10639_v32  ;;  %v1379_v62 = vadd.f32 %v10564_v44, %v1306_v55  ;;  %v6938_v43 = vmul.f32 -1.442695, %v1371_v16  ;;  %v10726_v51 = vpop.f32.mrf.mxu0 }
 0x2de   :  { %v7960_v42 = vpop.eup %7959  ;;  %v1381_v11 = vadd.f32 %v10572_v45, %v1308_v30  ;;  %v6941_v61 = vmul.f32 -1.442695, %v1379_v62  ;;  %v10732_v52 = vpop.f32.mrf.mxu0 }
 0x2df   :  { %v1577_v10 = vadd.f32 1.0, %v7960_v42  ;;  %v7962_v18 = vpop.eup %7961  ;;  %v6940_v42 = vmul.f32 -1.442695, %v1377_v36 }
 0x2e0   :  { %v1578_v57 = vadd.f32 1.0, %v7962_v18  ;;  %v7964_v8 = vpop.eup %7963  ;;  %v6942_v48 = vmul.f32 -1.442695, %v1381_v11 }
 0x2e1   :  { %7975 = vrcp.f32 %v1577_v10  ;;  %v7966_v44 = vpop.eup %7965  ;;  %v1579_v6 = vadd.f32 1.0, %v7964_v8 }
 0x2e2   :  { %7977 = vpow2.f32 %v6935_v27  ;;  %v7968_v45 = vpop.eup %7967  ;;  %v1580_v29 = vadd.f32 1.0, %v7966_v44 }
 0x2e3   :  { %7979 = vpow2.f32 %v6936_v46  ;;  %v1581_v18 = vadd.f32 1.0, %v7968_v45 }
 0x2e4   :  { %7981 = vpow2.f32 %v6937_v33 }
 0x2e5   :  { %7983 = vrcp.f32 %v1578_v57 }
 0x2e6   :  { %7985 = vpow2.f32 %v6938_v43 }
 0x2e7   :  { %7987 = vpow2.f32 %v6939_v12  ;;  %v10739_v12 = vpop.f32.mrf.mxu0 }
 0x2e8   :  { %7989 = vpow2.f32 %v6940_v42 }
 0x2e9   :  { %7991 = vpow2.f32 %v6941_v61 }
 0x2ea   :  { %7993 = vrcp.f32 %v1579_v6 }
 0x2eb   :  { %7995 = vpow2.f32 %v6942_v48  ;;  %v10746_v48 = vpop.f32.mrf.mxu0 }
 0x2ec   :  { %7997 = vrcp.f32 %v1580_v29 }
 0x2fd   :  { %v10647_v39 = vpop.f32.mrf.mxu1 }
 0x2fe   :  { %v1418_v31 = vadd.f32 %v10647_v39, %v10695_v22 }
 0x2ff   :  { %v10653_v49 = vpop.f32.mrf.mxu1 }
 0x300   :  { %v1420_v4 = vadd.f32 %v10653_v49, %v10703_v26  ;;  %v1491_v39 = vadd.f32 %v10580_v50, %v1418_v31  ;;  %v7970_v50 = vpop.eup %7969 }
 0x301   :  { %v10660_v2 = vpop.f32.mrf.mxu1  ;;  %v7972_v27 = vpop.eup %7971  ;;  %v1582_v46 = vadd.f32 1.0, %v7970_v50 }
 0x302   :  { %v1422_v9 = vadd.f32 %v10660_v2, %v10695_v22  ;;  %v1493_v49 = vadd.f32 %v10588_v59, %v1420_v4  ;;  %v6943_v2 = vmul.f32 -1.442695, %v1491_v39  ;;  %v7974_v30 = vpop.eup %7973  ;;  %v1583_v57 = vadd.f32 1.0, %v7972_v27 }
 0x303   :  { %v10668_v41 = vpop.f32.mrf.mxu1  ;;  %v10737_v36 = vpop.eup %7975  ;;  %v1584_v8 = vadd.f32 1.0, %v7974_v30 }
 0x304   :  { %v1424_v1 = vadd.f32 %v10668_v41, %v10703_v26  ;;  %v1495_v10 = vadd.f32 %v10596_v63, %v1422_v9  ;;  %v6944_v59 = vmul.f32 -1.442695, %v1493_v49  ;;  %7999 = vpow2.f32 %v6943_v2  ;;  %v7978_v62 = vpop.eup %7977 }
 0x305   :  { %v10677_v60 = vpop.f32.mrf.mxu1  ;;  %8001 = vrcp.f32 %v1581_v18  ;;  %v7980_v43 = vpop.eup %7979 }
 0x306   :  { %v1428_v55 = vadd.f32 %v10677_v60, %v10695_v22  ;;  %v1497_v41 = vadd.f32 %v10604_v5, %v1424_v1  ;;  %v6945_v33 = vmul.f32 -1.442695, %v1495_v10  ;;  %8003 = vpow2.f32 %v6944_v59  ;;  %v7982_v11 = vpop.eup %7981 }
 0x307   :  { %v10689_v19 = vpop.f32.mrf.mxu1  ;;  %8005 = vrcp.f32 %v1582_v46  ;;  %v10742_v42 = vpop.eup %7983  ;;  %v1586_v39 = vadd.f32 1.0, %v7980_v43  ;;  %v1587_v45 = vadd.f32 1.0, %v7982_v11 }
 0x308   :  { %v1501_v63 = vadd.f32 %v10607_v7, %v1428_v55  ;;  %v1430_v60 = vadd.f32 %v10689_v19, %v10703_v26  ;;  %v6946_v5 = vmul.f32 -1.442695, %v1497_v41  ;;  %8007 = vpow2.f32 %v6945_v33  ;;  %v7986_v61 = vpop.eup %7985  ;;  %v10754_v41 = vpop.f32.mrf.mxu0 }
 0x309   :  { %v10705_v13 = vpop.f32.mrf.mxu1  ;;  %8009 = vrcp.f32 %v1583_v57  ;;  %v1585_v19 = vadd.f32 1.0, %v7978_v62  ;;  %v7988_v6 = vpop.eup %7987  ;;  %v1588_v50 = vadd.f32 1.0, %v7986_v61 }
 0x30a   :  { %v6947_v4 = vmul.f32 -1.442695, %v1501_v63  ;;  %v1503_v7 = vadd.f32 %v10609_v53, %v1430_v60  ;;  %v1432_v44 = vadd.f32 %v10705_v13, %v10695_v22  ;;  %8011 = vpow2.f32 %v6946_v5  ;;  %v7990_v53 = vpop.eup %7989  ;;  %v10767_v43 = vpop.f32.mrf.mxu0 }
 0x30b   :  { %v10716_v38 = vpop.f32.mrf.mxu1  ;;  %8013 = vrcp.f32 %v1584_v8  ;;  %v7992_v29 = vpop.eup %7991  ;;  %v1589_v55 = vadd.f32 1.0, %v7988_v6  ;;  %v1590_v59 = vadd.f32 1.0, %v7990_v53 }
 0x30c   :  { %v1434_v49 = vadd.f32 %v10716_v38, %v10703_v26  ;;  %8015 = vpow2.f32 %v6947_v4  ;;  %v6948_v1 = vmul.f32 -1.442695, %v1503_v7  ;;  %v1505_v13 = vadd.f32 %v10611_v14, %v1432_v44  ;;  %v10752_v10 = vpop.eup %7993 }
 0x30d   :  { %v1437_v3 = vpop.f32.mrf.mxu1  ;;  %8017 = vrcp.f32 %v1585_v19  ;;  %v7996_v27 = vpop.eup %7995  ;;  %v1591_v33 = vadd.f32 1.0, %v7992_v29 }
 0x30e   :  { %v1438_v2 = vadd.f32 %v1437_v3, %v10695_v22  ;;  %8019 = vrcp.f32 %v1586_v39  ;;  %v1507_v38 = vadd.f32 %v10615_v15, %v1434_v49  ;;  %v10758_v30 = vpop.eup %7997  ;;  %v2030_v3 = vld [vmem:[%s15368_s6 + $0x6] sm:$0x3]  ;;  %v6949_v63 = vmul.f32 -1.442695, %v1505_v13 }
 0x30f   :  { %v1439_v16 = vpop.f32.mrf.mxu1  ;;  %8021 = vrcp.f32 %v1587_v45  ;;  %v1592_v15 = vadd.f32 1.0, %v7996_v27  ;;  %v10784_v53 = vrot.slane %v2030_v3, %v10632_v25 }
 0x310   :  { %v1440_v46 = vadd.f32 %v1439_v16, %v10703_v26  ;;  %8023 = vpow2.f32 %v6948_v1  ;;  %v1511_v60 = vadd.f32 %v10625_v23, %v1438_v2  ;;  %v6950_v8 = vmul.f32 -1.442695, %v1507_v38  ;;  %v10786_v1 = vpop.f32.mrf.mxu0 }
 0x311   :  { %v1441_v31 = vpop.f32.mrf.mxu1  ;;  %v8000_v14 = vpop.eup %7999  ;;  %8025 = vrcp.f32 %v1588_v50  ;;  %v10774_v23 = vrot.slane %v2030_v3, %v10618_v20 }
 0x312   :  { %v1442_v57 = vadd.f32 %v1441_v31, %v10695_v22  ;;  %v10765_v62 = vpop.eup %8001  ;;  %8027 = vrcp.f32 %v1589_v55  ;;  %v1513_v11 = vadd.f32 %v10634_v28, %v1440_v46  ;;  %v1673_v31 = vadd.f32 1.0, %v8000_v14  ;;  %v10804_v3 = vpop.f32.mrf.mxu0 }
 0x313   :  { %v1443_v9 = vpop.f32.mrf.mxu1  ;;  %v8004_v5 = vpop.eup %8003  ;;  %8029 = vrcp.f32 %v1590_v59  ;;  %v6951_v44 = vmul.f32 -1.442695, %v1511_v60  ;;  %v2237_v13 = vadd.f32 %v10682_v17, %v10774_v23  ;;  %v2239_v17 = vadd.f32 %v10697_v21, %v10784_v53 }
 0x314   :  { %v1444_v4 = vadd.f32 %v1443_v9, %v10703_v26  ;;  %v10771_v7 = vpop.eup %8005  ;;  %8031 = vrcp.f32 %v1591_v33  ;;  %v1515_v61 = vadd.f32 %v10641_v35, %v1442_v57  ;;  %v1674_v28 = vadd.f32 1.0, %v8004_v5  ;;  %v1785_v9 = vld [vmem:[%s15368_s6 + $0x4] sm:$0x3] }
 0x315   :  { %v1447_v18 = vpop.f32.mrf.mxu1  ;;  %v8008_v19 = vpop.eup %8007  ;;  %8033 = vpow2.f32 %v6949_v63  ;;  %v6952_v29 = vmul.f32 -1.442695, %v1513_v11  ;;  %v10795_v59 = vrot.slane %v1785_v9, %v10618_v20  ;;  %v2241_v60 = vadd.f32 %v10711_v34, %v10774_v23 }
 0x316   :  { %v1448_v39 = vadd.f32 %v1447_v18, %v10695_v22  ;;  %v10778_v6 = vpop.eup %8009  ;;  %8035 = vrcp.f32 %v1592_v15  ;;  %v1517_v35 = vadd.f32 %v10645_v47, %v1444_v4  ;;  %v1675_v2 = vadd.f32 1.0, %v8008_v19 }
 0x317   :  { %v1449_v16 = vpop.f32.mrf.mxu1  ;;  %v8012_v49 = vpop.eup %8011  ;;  %8037 = vpow2.f32 %v6950_v8  ;;  %v6953_v18 = vmul.f32 -1.442695, %v1515_v61  ;;  %v2275_v21 = vmul.f32 %v10737_v36, %v2237_v13  ;;  %v2247_v34 = vadd.f32 %v10726_v51, %v10774_v23 }
 0x318   :  { %v10789_v50 = vpop.eup %8013  ;;  %8039 = vrcp.f32 %v1673_v31  ;;  %v1521_v27 = vadd.f32 %v10651_v54, %v1448_v39  ;;  %v1676_v46 = vadd.f32 1.0, %v8012_v49  ;;  %v1450_v47 = vadd.f32 %v1449_v16, %v10703_v26  ;;  %v10826_v61 = vpop.f32.mrf.mxu0 }
 0x319   :  { %v1451_v45 = vpop.f32.mrf.mxu1  ;;  %v8016_v55 = vpop.eup %8015  ;;  %8041 = vpow2.f32 %v6951_v44  ;;  %v6954_v63 = vmul.f32 -1.442695, %v1517_v35  ;;  %v10807_v54 = vrot.slane %v1785_v9, %v10632_v25  ;;  %v2243_v25 = vadd.f32 %v10721_v40, %v10784_v53 }
 0x31a   :  { %v10797_v38 = vpop.eup %8017  ;;  %8043 = vrcp.f32 %v1674_v28  ;;  %v1677_v57 = vadd.f32 1.0, %v8016_v55  ;;  %v1452_v15 = vadd.f32 %v1451_v45, %v10695_v22  ;;  %v6955_v8 = vmul.f32 -1.442695, %v1521_v27 }
 0x31b   :  { %v1453_v33 = vpop.f32.mrf.mxu1  ;;  %v10800_v14 = vpop.eup %8019  ;;  %8045 = vpow2.f32 %v6952_v29  ;;  %v1523_v31 = vadd.f32 %v10658_v0, %v1450_v47  ;;  %v2276_v36 = vmul.f32 %v10742_v42, %v2239_v17  ;;  %v2277_v29 = vmul.f32 %v10752_v10, %v2241_v60 }
 0x31c   :  { %v10809_v20 = vpop.eup %8021  ;;  %8047 = vrcp.f32 %v1675_v2  ;;  %v1525_v51 = vadd.f32 %v10665_v37, %v1452_v15  ;;  %v1454_v9 = vadd.f32 %v1453_v33, %v10703_v26  ;;  %v2249_v2 = vadd.f32 %v10732_v52, %v10784_v53  ;;  %v2268_v47 = vpop.f32.mrf.mxu0 }
 0x31d   :  { %v8024_v5 = vpop.eup %8023  ;;  %8049 = vpow2.f32 %v6953_v18  ;;  %v2251_v55 = vadd.f32 %v10739_v12, %v10774_v23  ;;  %v6956_v18 = vmul.f32 -1.442695, %v1523_v31 }
 0x31e   :  { %v10816_v4 = vpop.eup %8025  ;;  %8051 = vrcp.f32 %v1676_v46  ;;  %v1678_v40 = vadd.f32 1.0, %v8024_v5  ;;  %v2278_v46 = vmul.f32 %v10758_v30, %v2243_v25  ;;  %v6957_v52 = vmul.f32 -1.442695, %v1525_v51  ;;  %v2270_v25 = vpop.f32.mrf.mxu0 }
 0x31f   :  { %v10823_v44 = vpop.eup %8027  ;;  %8053 = vpow2.f32 %v6954_v63  ;;  %v2279_v63 = vmul.f32 %v10765_v62, %v2247_v34  ;;  %v1527_v60 = vadd.f32 %v10673_v58, %v1454_v9  ;;  %v2280_v62 = vmul.f32 %v10771_v7, %v2249_v2 }
 0x320   :  { %v10829_v45 = vpop.eup %8029  ;;  %8055 = vrcp.f32 %v1677_v57 }
 0x321   :  { %v10833_v49 = vpop.eup %8031  ;;  %8057 = vpow2.f32 %v6955_v8 }
 0x322   :  { %v8034_v13 = vpop.eup %8033 }
 0x323   :  { %v10841_v27 = vpop.eup %8035  ;;  %v1679_v15 = vadd.f32 1.0, %v8034_v13  ;;  %v2272_v13 = vpop.f32.mrf.mxu0 }
 0x324   :  { %v8038_v17 = vpop.eup %8037 }
 0x325   :  { %v10847_v57 = vpop.eup %8039 }
 0x326   :  { %v8042_v5 = vpop.eup %8041 }
 0x33d   :  { %v1991_v16 = vpop.f32.mrf.mxu1 }
 0x33e   :  { %v1992_v11 = vadd.f32 %v1991_v16, %v10795_v59 }
 0x33f   :  { %v1993_v19 = vpop.f32.mrf.mxu1 }
 0x340   :  { %v2291_v39 = vadd.f32 %v2275_v21, %v1992_v11  ;;  %v1994_v28 = vadd.f32 %v1993_v19, %v10807_v54  ;;  %v2253_v21 = vadd.f32 %v10746_v48, %v10784_v53  ;;  %v10852_v11 = vpop.eup %8043  ;;  %v2257_v19 = vadd.f32 %v10754_v41, %v10774_v23 }
 0x341   :  { %v1995_v0 = vpop.f32.mrf.mxu1  ;;  %v8046_v31 = vpop.eup %8045  ;;  %v6958_v48 = vmul.f32 -1.442695, %v1527_v60  ;;  %v2263_v41 = vadd.f32 %v10804_v3, %v10784_v53 }
 0x342   :  { %v2292_v42 = vadd.f32 %v2276_v36, %v1994_v28  ;;  %v1996_v35 = vadd.f32 %v1995_v0, %v10795_v59  ;;  %8059 = vtanh.f32 %v2291_v39  ;;  %v2259_v36 = vadd.f32 %v10767_v43, %v10784_v53  ;;  %v10860_v28 = vpop.eup %8047 }
 0x343   :  { %v1997_v37 = vpop.f32.mrf.mxu1  ;;  %v8050_v9 = vpop.eup %8049  ;;  %v2261_v0 = vadd.f32 %v10786_v1, %v10774_v23  ;;  %v2267_v1 = vadd.f32 %v10826_v61, %v10774_v23 }
 0x344   :  { %8061 = vtanh.f32 %v2292_v42  ;;  %v2293_v10 = vadd.f32 %v2277_v29, %v1996_v35  ;;  %v1998_v33 = vadd.f32 %v1997_v37, %v10807_v54  ;;  %v1680_v29 = vadd.f32 1.0, %v8038_v17  ;;  %v10868_v42 = vpop.eup %8051 }
 0x345   :  { %8063 = vrcp.f32 %v1678_v40  ;;  %v2001_v12 = vpop.f32.mrf.mxu1  ;;  %v2281_v40 = vmul.f32 %v10778_v6, %v2251_v55  ;;  %v2282_v35 = vmul.f32 %v10789_v50, %v2253_v21  ;;  %v8054_v55 = vpop.eup %8053  ;;  %v1681_v37 = vadd.f32 1.0, %v8042_v5 }
 0x346   :  { %8065 = vtanh.f32 %v2293_v10  ;;  %v2294_v16 = vadd.f32 %v2278_v46, %v1998_v33  ;;  %v2002_v30 = vadd.f32 %v2001_v12, %v10795_v59  ;;  %v10875_v46 = vpop.eup %8055  ;;  %v1682_v10 = vadd.f32 1.0, %v8046_v31 }
 0x347   :  { %8067 = vpow2.f32 %v6956_v18  ;;  %v2003_v8 = vpop.f32.mrf.mxu1  ;;  %v2283_v18 = vmul.f32 %v10797_v38, %v2257_v19  ;;  %v8058_v17 = vpop.eup %8057  ;;  %v2273_v38 = vadd.f32 %v2272_v13, %v10784_v53  ;;  %v2284_v12 = vmul.f32 %v10800_v14, %v2259_v36  ;;  %v8759_v14 = vld [vmem:[%s15362_s0 + $0x8] sm:$0xff] }
 0x348   :  { %8069 = vtanh.f32 %v2294_v16  ;;  %v2295_v58 = vadd.f32 %v2279_v63, %v2002_v30  ;;  %v2004_v34 = vadd.f32 %v2003_v8, %v10807_v54  ;;  %v2269_v63 = vadd.f32 %v2268_v47, %v10784_v53 }
 0x349   :  { %8071 = vpow2.f32 %v6957_v52  ;;  %v2005_v39 = vpop.f32.mrf.mxu1  ;;  %v2271_v52 = vadd.f32 %v2270_v25, %v10774_v23  ;;  %v2285_v5 = vmul.f32 %v10809_v20, %v2261_v0  ;;  %v2286_v21 = vmul.f32 %v10816_v4, %v2263_v41  ;;  %v8760_v4 = vld [vmem:[%s15362_s0] sm:$0xff] }
 0x34a   :  { %8073 = vrcp.f32 %v1679_v15  ;;  %v2296_v7 = vadd.f32 %v2280_v62, %v2004_v34  ;;  %v2006_v51 = vadd.f32 %v2005_v39, %v10795_v59  ;;  %v1683_v47 = vadd.f32 1.0, %v8050_v9 }
 0x34b   :  { %8075 = vtanh.f32 %v2295_v58  ;;  %v2007_v43 = vpop.f32.mrf.mxu1  ;;  %v2287_v19 = vmul.f32 %v10823_v44, %v2267_v1  ;;  %v1684_v20 = vadd.f32 1.0, %v8054_v55  ;;  %v2288_v0 = vmul.f32 %v10829_v45, %v2269_v63 }
 0x34c   :  { %8077 = vtanh.f32 %v2296_v7  ;;  %v2297_v6 = vadd.f32 %v2281_v40, %v2006_v51  ;;  %v2008_v2 = vadd.f32 %v2007_v43, %v10807_v54  ;;  %v8761_v40 = vld [vmem:[%s15362_s0 + $0x10] sm:$0xff]  ;;  %v2289_v41 = vmul.f32 %v10833_v49, %v2271_v52 }
 0x34d   :  { %8079 = vpow2.f32 %v6958_v48  ;;  %v2011_v3 = vpop.f32.mrf.mxu1  ;;  %v2290_v1 = vmul.f32 %v10841_v27, %v2273_v38  ;;  %v1685_v63 = vadd.f32 1.0, %v8058_v17  ;;  %v8763_v17 = vld [vmem:[%s15362_s0 + $0x28] sm:$0xff] }
 0x34e   :  { %8081 = vtanh.f32 %v2297_v6  ;;  %v2298_v33 = vadd.f32 %v2282_v35, %v2008_v2  ;;  %v2012_v50 = vadd.f32 %v2011_v3, %v10795_v59  ;;  %v8762_v2 = vld [vmem:[%s15362_s0 + $0x18] sm:$0xff] }
 0x34f   :  { %8083 = vrcp.f32 %v1680_v29  ;;  %v2013_v60 = vpop.f32.mrf.mxu1  ;;  %v10881_v61 = vpop.eup %8059 }
 0x350   :  { %8085 = vtanh.f32 %v2298_v33  ;;  %v2299_v15 = vadd.f32 %v2283_v18, %v2012_v50  ;;  %v2014_v16 = vadd.f32 %v2013_v60, %v10807_v54  ;;  %v2323_v36 = vsub.f32 %v8760_v4, %v10881_v61 }
 0x351   :  { %v8062_v30 = vpop.eup %8061  ;;  %8087 = vrcp.f32 %v1681_v37  ;;  %v2015_v8 = vpop.f32.mrf.mxu1 }
 0x352   :  { %v10887_v62 = vpop.eup %8063  ;;  %8089 = vrcp.f32 %v1682_v10  ;;  %v2300_v25 = vadd.f32 %v2284_v12, %v2014_v16  ;;  %v2016_v58 = vadd.f32 %v2015_v8, %v10795_v59  ;;  %v2324_v34 = vsub.f32 %v8759_v14, %v8062_v30  ;;  %v8764_v8 = vld [vmem:[%s15362_s0 + $0x20] sm:$0xff] }
 0x353   :  { %v8066_v31 = vpop.eup %8065  ;;  %8091 = vtanh.f32 %v2299_v15  ;;  %v2017_v48 = vpop.f32.mrf.mxu1  ;;  %v2339_v49 = vmul.f32 %v10847_v57, %v2323_v36 }
 0x354   :  { %v8068_v39 = vpop.eup %8067  ;;  %v2325_v7 = vsub.f32 %v8761_v40, %v8066_v31  ;;  %8093 = vtanh.f32 %v2300_v25  ;;  %v2301_v51 = vadd.f32 %v2285_v5, %v2016_v58  ;;  %v2018_v9 = vadd.f32 %v2017_v48, %v10807_v54 }
 0x355   :  { %v8070_v44 = vpop.eup %8069  ;;  %8095 = vrcp.f32 %v1683_v47  ;;  %v2021_v29 = vpop.f32.mrf.mxu1  ;;  %v2340_v43 = vmul.f32 %v10852_v11, %v2324_v34  ;;  %v1686_v52 = vadd.f32 1.0, %v8068_v39  ;;  %v8766_v39 = vld [vmem:[%s15362_s0 + $0x38] sm:$0xff] }
 0x356   :  { %v8072_v35 = vpop.eup %8071  ;;  %8097 = vtanh.f32 %v2301_v51  ;;  %v2302_v13 = vadd.f32 %v2286_v21, %v2018_v9  ;;  %v2022_v6 = vadd.f32 %v2021_v29, %v10795_v59  ;;  %v2326_v55 = vsub.f32 %v8762_v2, %v8070_v44  ;;  %v8767_v29 = vld [vmem:[%s15365_s3 + $0xe0] ss:$16 sps:$4 sm:$0xff]   ;;  %v8769_v2 = vld [vmem:[%s15362_s0 + $0x48] sm:$0xff] }
 0x357   :  { %v8074_v18 = vpop.eup %8073  ;;  %8099 = vrcp.f32 %v1684_v20  ;;  %v2023_v45 = vpop.f32.mrf.mxu1  ;;  %v2341_v37 = vmul.f32 %v10860_v28, %v2325_v7  ;;  %v1687_v60 = vadd.f32 1.0, %v8072_v35  ;;  %v10919_v28 = vadd.f32 %v8062_v30, %v2340_v43  ;;  %v8765_v20 = vld [vmem:[%s15362_s0 + $0x30] sm:$0xff] }
 0x358   :  { %v10912_v11 = vpop.eup %8075  ;;  %8101 = vtanh.f32 %v2302_v13  ;;  %v2303_v3 = vadd.f32 %v2287_v19, %v2022_v6  ;;  %v2024_v10 = vadd.f32 %v2023_v45, %v10807_v54  ;;  %v2342_v33 = vmul.f32 %v10868_v42, %v2326_v55  ;;  %v8770_v45 = vld [vmem:[%s15362_s0 + $0x40] sm:$0xff] }
 0x359   :  { %v8078_v50 = vpop.eup %8077  ;;  %v2025_v12 = vpop.f32.mrf.mxu1  ;;  %v10916_v27 = vadd.f32 %v8066_v31, %v2341_v37  ;;  %15437 = vst [vmem:[#allocation6_spill] sm:$0xff] %v10919_v28  ;;  %v10924_v42 = vadd.f32 %v10881_v61, %v2339_v49  ;;  %v2327_v30 = vsub.f32 %v8764_v8, %v10912_v11 }
 0x35a   :  { %v8080_v38 = vpop.eup %8079  ;;  %v2304_v15 = vadd.f32 %v2288_v0, %v2024_v10  ;;  %v2026_v57 = vadd.f32 %v2025_v12, %v10795_v59  ;;  %v10921_v16 = vadd.f32 %v8070_v44, %v2342_v33  ;;  %8103 = vtanh.f32 %v2303_v3  ;;  %v8771_v10 = vld [vmem:[%s15362_s0 + $0x50] sm:$0xff] }
 0x35b   :  { %15436 = vst [vmem:[#allocation5_spill] sm:$0xff] %v10916_v27  ;;  %v8082_v5 = vpop.eup %8081  ;;  %v2027_v21 = vpop.f32.mrf.mxu1  ;;  %15439 = vst [vmem:[#allocation8_spill] sm:$0xff] %v10924_v42  ;;  %v2328_v47 = vsub.f32 %v8763_v17, %v8078_v50  ;;  %v1688_v31 = vadd.f32 1.0, %v8080_v38  ;;  %v10940_v19 = vpack.c.bf16 %v10916_v27, %v10924_v42  ;;  %v2343_v9 = vmul.f32 %v10875_v46, %v2327_v30  ;;  %v8775_v17 = vld [vmem:[%s15365_s3 + $0xa0] ss:$16 sps:$4 sm:$0xff]  }
 0x35c   :  { %15438 = vst [vmem:[#allocation7_spill] sm:$0xff] %v10921_v16  ;;  %v8084_v25 = vpop.eup %8083  ;;  %8105 = vtanh.f32 %v2304_v15  ;;  %v2305_v58 = vadd.f32 %v2289_v41, %v2026_v57  ;;  %v2028_v14 = vadd.f32 %v2027_v21, %v10807_v54  ;;  %v10936_v61 = vpack.c.bf16 %v10921_v16, %v10919_v28  ;;  %v8776_v30 = vld [vmem:[%s15365_s3 + $0x84] ss:$16 sps:$4 sm:$0xff]  }
 0x35d   :  { %v8086_v34 = vpop.eup %8085  ;;  %8107 = vrcp.f32 %v1686_v52  ;;  %v2329_v4 = vsub.f32 %v8765_v20, %v8082_v5  ;;  %v2344_v7 = vmul.f32 %v10887_v62, %v2328_v47  ;;  %v8768_v62 = vld [vmem:[%s15365_s3 + $0xc4] ss:$16 sps:$4 sm:$0xff]  }
 0x35e   :  { %v8088_v36 = vpop.eup %8087  ;;  %8109 = vtanh.f32 %v2305_v58  ;;  %v2306_v48 = vadd.f32 %v2290_v1, %v2028_v14  ;;  %2604 = vmatprep.mubr.bf16.mxu1 %v10936_v61  ;;  %v2330_v40 = vsub.f32 %v8766_v39, %v8086_v34  ;;  %v10968_v1 = vadd.f32 %v10912_v11, %v2343_v9  ;;  %v8772_v11 = vld [vmem:[%s15365_s3 + $0xc0] ss:$16 sps:$4 sm:$0xff]   ;;  %v8773_v52 = vld [vmem:[%s15365_s3 + $0xa4] ss:$16 sps:$4 sm:$0xff]  }
 0x35f   :  { %v8090_v51 = vpop.eup %8089  ;;  %8111 = vrcp.f32 %v1687_v60  ;;  %2605 = vmatmul.mubr.bf16.vlgmr.msra.gmra.mxu1 %v10940_v19  ;;  %v2345_v44 = vmul.f32 %v8074_v18, %v2329_v4  ;;  %v10960_v46 = vadd.f32 %v8078_v50, %v2344_v7  ;;  %v8774_v60 = vld [vmem:[%s15362_s0 + $0x58] sm:$0xff]  ;;  %v8779_v7 = vld [vmem:[%s15362_s0 + $0x70] sm:$0xff] }
 0x360   :  { %v8092_v0 = vpop.eup %8091  ;;  %8113 = vtanh.f32 %v2306_v48  ;;  %v2346_v41 = vmul.f32 %v8084_v25, %v2330_v40  ;;  %2735 = vmatpush1.bf16.msra.mxu1 %v8767_v29  ;;  %15443 = vst [vmem:[#allocation12_spill] sm:$0xff] %v10968_v1  ;;  %v8780_v9 = vld [vmem:[%s15365_s3 + $0x80] ss:$16 sps:$4 sm:$0xff]  }
 0x361   :  { %v8094_v43 = vpop.eup %8093  ;;  %8115 = vrcp.f32 %v1685_v63  ;;  %v10955_v35 = vadd.f32 %v8082_v5, %v2345_v44  ;;  %2736 = vmatprep.subr.bf16.mxu1 %v8768_v62  ;;  %15441 = vst [vmem:[#allocation10_spill] sm:$0xff] %v10960_v46  ;;  %v2331_v49 = vsub.f32 %v8770_v45, %v8092_v0 }
 0x362   :  { %v8096_v13 = vpop.eup %8095  ;;  %8117 = vrcp.f32 %v1688_v31  ;;  %v10962_v6 = vadd.f32 %v8086_v34, %v2346_v41  ;;  %v2332_v55 = vsub.f32 %v8769_v2, %v8094_v43  ;;  %v8777_v34 = vld [vmem:[%s15362_s0 + $0x68] sm:$0xff]  ;;  %v8781_v41 = vld [vmem:[%s15365_s3 + $0x64] ss:$16 sps:$4 sm:$0xff]  }
 0x363   :  { %15440 = vst [vmem:[#allocation9_spill] sm:$0xff] %v10955_v35  ;;  %v8098_v18 = vpop.eup %8097  ;;  %v10985_v63 = vpack.c.bf16 %v10955_v35, %v10968_v1  ;;  %v2347_v57 = vmul.f32 %v8088_v36, %v2331_v49  ;;  %v8778_v36 = vld [vmem:[%s15362_s0 + $0x60] sm:$0xff] }
 0x364   :  { %15442 = vst [vmem:[#allocation11_spill] sm:$0xff] %v10962_v6  ;;  %v8100_v37 = vpop.eup %8099  ;;  %v10975_v3 = vpack.c.bf16 %v10962_v6, %v10960_v46  ;;  %v2333_v33 = vsub.f32 %v8771_v10, %v8098_v18  ;;  %2737 = vmatpush1.bf16.msra.mxu1 %v8772_v11  ;;  %v2348_v38 = vmul.f32 %v8090_v51, %v2332_v55  ;;  %v8783_v49 = vld [vmem:[%s15365_s3 + $0x60] ss:$16 sps:$4 sm:$0xff]   ;;  %v8784_v10 = vld [vmem:[%s15365_s3 + $0x44] ss:$16 sps:$4 sm:$0xff]  }
 0x365   :  { %v8102_v50 = vpop.eup %8101  ;;  %2738 = vmatprep.subr.bf16.mxu1 %v8773_v52  ;;  %v11010_v4 = vadd.f32 %v8092_v0, %v2347_v57  ;;  %v8788_v57 = vld [vmem:[%s15365_s3 + $0x4] ss:$16 sps:$4 sm:$0xff]  }
 0x366   :  { %2614 = vmatprep.mubr.bf16.mxu1 %v10975_v3  ;;  %v2334_v12 = vsub.f32 %v8774_v60, %v8102_v50  ;;  %v2349_v15 = vmul.f32 %v8096_v13, %v2333_v33  ;;  %v11003_v58 = vadd.f32 %v8094_v43, %v2348_v38  ;;  %v8782_v43 = vld [vmem:[%s15362_s0 + $0x78] sm:$0xff]  ;;  %v8785_v60 = vld [vmem:[%s15365_s3 + $0x40] ss:$16 sps:$4 sm:$0xff]   ;;  %v8786_v38 = vld [vmem:[%s15365_s3 + $0x24] ss:$16 sps:$4 sm:$0xff]  }
 0x367   :  { %2615 = vmatmul.mubr.bf16.gmra.mxu1 %v10985_v63  ;;  %v8104_v5 = vpop.eup %8103  ;;  %15447 = vst [vmem:[#allocation16_spill] sm:$0xff] %v11010_v4 }
 0x368   :  { %v2350_v21 = vmul.f32 %v8100_v37, %v2334_v12  ;;  %2739 = vmatpush1.bf16.msra.mxu1 %v8775_v17  ;;  %v10998_v8 = vadd.f32 %v8098_v18, %v2349_v15  ;;  %15445 = vst [vmem:[#allocation14_spill] sm:$0xff] %v11003_v58  ;;  %v2335_v48 = vsub.f32 %v8778_v36, %v8104_v5  ;;  %v8787_v15 = vld [vmem:[%s15365_s3 + $0x20] ss:$16 sps:$4 sm:$0xff]   ;;  %v8798_v36 = vld [vmem:[%s15365_s3 + $0x164] ss:$16 sps:$4 sm:$0xff]  }
 0x369   :  { %v8106_v47 = vpop.eup %8105  ;;  %2740 = vmatprep.subr.bf16.mxu1 %v8776_v30  ;;  %v8791_v17 = vld [vmem:[%s15365_s3 + $0x1e0] ss:$16 sps:$4 sm:$0xff]  }
 0x36a   :  { %15444 = vst [vmem:[#allocation13_spill] sm:$0xff] %v10998_v8  ;;  %v8108_v25 = vpop.eup %8107  ;;  %v11005_v14 = vadd.f32 %v8102_v50, %v2350_v21  ;;  %v2336_v31 = vsub.f32 %v8777_v34, %v8106_v47  ;;  %v11027_v0 = vpack.c.bf16 %v10998_v8, %v11010_v4  ;;  %v8790_v21 = vld [vmem:[%s15365_s3 + $0x1e4] ss:$16 sps:$4 sm:$0xff]   ;;  %v8793_v30 = vld [vmem:[%s15365_s3 + $0x1c0] ss:$16 sps:$4 sm:$0xff]  }
 0x36b   :  { %v8110_v20 = vpop.eup %8109  ;;  %v8795_v34 = vld [vmem:[%s15365_s3 + $0x1a0] ss:$16 sps:$4 sm:$0xff]  }
 0x36c   :  { %15446 = vst [vmem:[#allocation15_spill] sm:$0xff] %v11005_v14  ;;  %v8112_v39 = vpop.eup %8111  ;;  %v11017_v40 = vpack.c.bf16 %v11005_v14, %v11003_v58  ;;  %v2337_v51 = vsub.f32 %v8779_v7, %v8110_v20  ;;  %2741 = vmatpush1.bf16.msra.mxu1 %v8780_v9  ;;  %v2352_v13 = vmul.f32 %v8108_v25, %v2336_v31  ;;  %v8794_v25 = vld [vmem:[%s15365_s3 + $0x1a4] ss:$16 sps:$4 sm:$0xff]   ;;  %v8801_v7 = vld [vmem:[%s15365_s3 + $0x140] ss:$16 sps:$4 sm:$0xff]  }
 0x36d   :  { %v8114_v44 = vpop.eup %8113  ;;  %2742 = vmatprep.subr.bf16.mxu1 %v8781_v41  ;;  %v8796_v31 = vld [vmem:[%s15365_s3 + $0x184] ss:$16 sps:$4 sm:$0xff]   ;;  %v8803_v9 = vld [vmem:[%s15365_s3 + $0x120] ss:$16 sps:$4 sm:$0xff]  }
 0x36e   :  { %v8116_v29 = vpop.eup %8115  ;;  %2624 = vmatprep.mubr.bf16.mxu1 %v11017_v40  ;;  %v2338_v62 = vsub.f32 %v8782_v43, %v8114_v44  ;;  %v2353_v2 = vmul.f32 %v8112_v39, %v2337_v51  ;;  %v11045_v33 = vadd.f32 %v8106_v47, %v2352_v13  ;;  %v8792_v47 = vld [vmem:[%s15365_s3 + $0x1c4] ss:$16 sps:$4 sm:$0xff]   ;;  %v8805_v41 = vld [vmem:[%s15365_s3 + $0x100] ss:$16 sps:$4 sm:$0xff]  }
 0x36f   :  { %v8118_v55 = vpop.eup %8117  ;;  %2625 = vmatmul.mubr.bf16.gmra.mxu1 %v11027_v0  ;;  %v2351_v18 = vmul.f32 %v8116_v29, %v2335_v48  ;;  %v8799_v48 = vld [vmem:[%s15365_s3 + $0x160] ss:$16 sps:$4 sm:$0xff]   ;;  %v8800_v39 = vld [vmem:[%s15365_s3 + $0x144] ss:$16 sps:$4 sm:$0xff]   ;;  %v8806_v29 = vld [vmem:[%s15365_s3 + $0xec] ss:$16 sps:$4 sm:$0xff]  }
 0x370   :  { %v2354_v45 = vmul.f32 %v8118_v55, %v2338_v62  ;;  %2743 = vmatpush1.bf16.msra.mxu1 %v8783_v49  ;;  %v11040_v37 = vadd.f32 %v8110_v20, %v2353_v2  ;;  %15449 = vst [vmem:[#allocation18_spill] sm:$0xff] %v11045_v33  ;;  %v8797_v20 = vld [vmem:[%s15365_s3 + $0x180] ss:$16 sps:$4 sm:$0xff]   ;;  %v8802_v51 = vld [vmem:[%s15365_s3 + $0x124] ss:$16 sps:$4 sm:$0xff]  }
 0x371   :  { %2744 = vmatprep.subr.bf16.mxu1 %v8784_v10  ;;  %v11049_v50 = vadd.f32 %v8104_v5, %v2351_v18  ;;  %v8789_v5 = vld [vmem:[%s15365_s3] ss:$16 sps:$4 sm:$0xff]  }
 0x372   :  { %15448 = vst [vmem:[#allocation17_spill] sm:$0xff] %v11040_v37  ;;  %v11047_v11 = vadd.f32 %v8114_v44, %v2354_v45  ;;  %v8804_v44 = vld [vmem:[%s15365_s3 + $0x104] ss:$16 sps:$4 sm:$0xff]  }
 0x373   :  { %15451 = vst [vmem:[#allocation20_spill] sm:$0xff] %v11049_v50  ;;  %v11060_v12 = vpack.c.bf16 %v11040_v37, %v11049_v50 }
 0x374   :  { %15450 = vst [vmem:[#allocation19_spill] sm:$0xff] %v11047_v11  ;;  %v11053_v52 = vpack.c.bf16 %v11047_v11, %v11045_v33  ;;  %2745 = vmatpush1.bf16.msra.mxu1 %v8785_v60 }
 0x375   :  { %2746 = vmatprep.subr.bf16.mxu1 %v8786_v38 }
 0x376   :  { %2634 = vmatprep.mubr.bf16.mxu1 %v11053_v52 }
 0x377   :  { %2635 = vmatmul.mubr.bf16.gmra.mxu1 %v11060_v12 }
 0x378   :  { %2747 = vmatpush1.bf16.msra.mxu1 %v8787_v15 }
 0x379   :  { %2748 = vmatprep.subr.bf16.mxu1 %v8788_v57 }
 0x37c   :  { %2749 = vmatpush1.bf16.msra.mxu1 %v8789_v5 }
 0x37d   :  { %2750 = vmatprep.subr.bf16.mxu1 %v8790_v21 }
 0x380   :  { %2751 = vmatpush2.bf16.msra.mxu1 %v8791_v17 }
 0x381   :  { %2752 = vmatprep.subr.bf16.mxu1 %v8792_v47 }
 0x384   :  { %2753 = vmatpush2.bf16.msra.mxu1 %v8793_v30 }
 0x385   :  { %2754 = vmatprep.subr.bf16.mxu1 %v8794_v25 }
 0x388   :  { %2755 = vmatpush2.bf16.msra.mxu1 %v8795_v34 }
 0x389   :  { %2756 = vmatprep.subr.bf16.mxu1 %v8796_v31 }
 0x38c   :  { %2757 = vmatpush2.bf16.msra.mxu1 %v8797_v20 }
 0x38d   :  { %2758 = vmatprep.subr.bf16.mxu1 %v8798_v36 }
 0x390   :  { %2759 = vmatpush2.bf16.msra.mxu1 %v8799_v48 }
 0x391   :  { %2760 = vmatprep.subr.bf16.mxu1 %v8800_v39  ;;  %v11130_v39 = vld [vmem:[%s15365_s3 + $0x2e4] ss:$16 sps:$4 sm:$0xff]  }
 0x394   :  { %2761 = vmatpush2.bf16.msra.mxu1 %v8801_v7  ;;  %v8808_v7 = vld [vmem:[%s15363_s1] sm:$0xff]  }
 0x395   :  { %2762 = vmatprep.subr.bf16.mxu1 %v8802_v51  ;;  %v8809_v51 = vld [vmem:[%s15365_s3 + $0x2e0] ss:$16 sps:$4 sm:$0xff]  }
 0x398   :  { %2763 = vmatpush2.bf16.msra.mxu1 %v8803_v9  ;;  %v8810_v9 = vld [vmem:[%s15365_s3 + $0x2c4] ss:$16 sps:$4 sm:$0xff]  }
 0x399   :  { %2764 = vmatprep.subr.bf16.mxu1 %v8804_v44  ;;  %v8811_v44 = vld [vmem:[%s15365_s3 + $0x2c0] ss:$16 sps:$4 sm:$0xff]  }
 0x39c   :  { %2765 = vmatpush2.bf16.msra.mxu1 %v8805_v41  ;;  %v8812_v41 = vld [vmem:[%s15365_s3 + $0x2a4] ss:$16 sps:$4 sm:$0xff]  }
 0x39d   :  { %2880 = vmatprep.subr.bf16.mxu1 %v8806_v29  ;;  %v8813_v29 = vld [vmem:[%s15363_s1 + $0x8] sm:$0xff]  }
 0x41f   :  { %v2606_v43 = vpop.f32.mrf.mxu1 }
 0x421   :  { %v2608_v62 = vpop.f32.mrf.mxu1 }
 0x423   :  { %v2610_v13 = vpop.f32.mrf.mxu1 }
 0x424   :  { %v2645_v48 = vpack.c.bf16 %v2610_v13, %v2606_v43  ;;  %v8814_v43 = vld [vmem:[%s15365_s3 + $0x2a0] ss:$16 sps:$4 sm:$0xff]  }
 0x425   :  { %v2612_v2 = vpop.f32.mrf.mxu1  ;;  %v8816_v13 = vld [vmem:[%s15365_s3 + $0x280] ss:$16 sps:$4 sm:$0xff]  }
 0x426   :  { %v2646_v36 = vpack.c.bf16 %v2612_v2, %v2608_v62  ;;  %v8815_v62 = vld [vmem:[%s15365_s3 + $0x284] ss:$16 sps:$4 sm:$0xff]  }
 0x427   :  { %v2616_v55 = vpop.f32.mrf.mxu1  ;;  %v8817_v2 = vld [vmem:[%s15365_s3 + $0x264] ss:$16 sps:$4 sm:$0xff]  }
 0x429   :  { %v2618_v18 = vpop.f32.mrf.mxu1 }
 0x42b   :  { %v2620_v45 = vpop.f32.mrf.mxu1 }
 0x42c   :  { %v2647_v20 = vpack.c.bf16 %v2620_v45, %v2616_v55  ;;  %v8818_v55 = vld [vmem:[%s15363_s1 + $0x10] sm:$0xff]  }
 0x42d   :  { %v2622_v49 = vpop.f32.mrf.mxu1  ;;  %v8820_v45 = vld [vmem:[%s15365_s3 + $0x244] ss:$16 sps:$4 sm:$0xff]  }
 0x42e   :  { %v2648_v31 = vpack.c.bf16 %v2622_v49, %v2618_v18  ;;  %v8819_v18 = vld [vmem:[%s15365_s3 + $0x260] ss:$16 sps:$4 sm:$0xff]  }
 0x42f   :  { %v2626_v10 = vpop.f32.mrf.mxu1  ;;  %v8821_v49 = vld [vmem:[%s15365_s3 + $0x240] ss:$16 sps:$4 sm:$0xff]  }
 0x431   :  { %v2628_v60 = vpop.f32.mrf.mxu1 }
 0x433   :  { %v2630_v38 = vpop.f32.mrf.mxu1 }
 0x434   :  { %v2649_v34 = vpack.c.bf16 %v2630_v38, %v2626_v10  ;;  %v8822_v10 = vld [vmem:[%s15365_s3 + $0x224] ss:$16 sps:$4 sm:$0xff]   ;;  %v8824_v38 = vld [vmem:[%s15365_s3 + $0x220] ss:$16 sps:$4 sm:$0xff]  }
 0x435   :  { %v2632_v15 = vpop.f32.mrf.mxu1 }
 0x436   :  { %v2650_v25 = vpack.c.bf16 %v2632_v15, %v2628_v60  ;;  %v8823_v60 = vld [vmem:[%s15363_s1 + $0x18] sm:$0xff]   ;;  %v8825_v15 = vld [vmem:[%s15365_s3 + $0x204] ss:$16 sps:$4 sm:$0xff]  }
 0x437   :  { %v2636_v57 = vpop.f32.mrf.mxu1 }
 0x439   :  { %v2638_v5 = vpop.f32.mrf.mxu1 }
 0x43b   :  { %v2640_v21 = vpop.f32.mrf.mxu1 }
 0x43c   :  { %v2651_v30 = vpack.c.bf16 %v2640_v21, %v2636_v57  ;;  %v8826_v57 = vld [vmem:[%s15365_s3 + $0x200] ss:$16 sps:$4 sm:$0xff]  }
 0x43d   :  { %v2642_v17 = vpop.f32.mrf.mxu1  ;;  %v8828_v21 = vld [vmem:[%s15365_s3 + $0x3e0] ss:$16 sps:$4 sm:$0xff]  }
 0x43e   :  { %v2652_v47 = vpack.c.bf16 %v2642_v17, %v2638_v5  ;;  %v8827_v5 = vld [vmem:[%s15365_s3 + $0x3e4] ss:$16 sps:$4 sm:$0xff]  }
 0x43f   :  { %v8829_v17 = vld [vmem:[%s15365_s3 + $0x3c4] ss:$16 sps:$4 sm:$0xff]  }
 0x440   :  { %2661 = vmatprep.subr.bf16.mxu0 %v2652_v47  ;;  %v8830_v47 = vld [vmem:[%s15365_s3 + $0x3c0] ss:$16 sps:$4 sm:$0xff]  }
 0x441   :  { %2662 = vmatpush1.bf16.msra.mxu0 %v2651_v30  ;;  %v8831_v30 = vld [vmem:[%s15365_s3 + $0x3a4] ss:$16 sps:$4 sm:$0xff]  }
 0x442   :  { %2663 = vmatprep.subr.bf16.mxu0 %v2650_v25  ;;  %v8832_v25 = vld [vmem:[%s15365_s3 + $0x3a0] ss:$16 sps:$4 sm:$0xff]  }
 0x445   :  { %2664 = vmatpush1.bf16.msra.mxu0 %v2649_v34  ;;  %v8833_v34 = vld [vmem:[%s15365_s3 + $0x384] ss:$16 sps:$4 sm:$0xff]  }
 0x446   :  { %2665 = vmatprep.subr.bf16.mxu0 %v2648_v31  ;;  %v8834_v31 = vld [vmem:[%s15365_s3 + $0x380] ss:$16 sps:$4 sm:$0xff]  }
 0x449   :  { %2666 = vmatpush1.bf16.msra.mxu0 %v2647_v20  ;;  %v8835_v20 = vld [vmem:[%s15365_s3 + $0x364] ss:$16 sps:$4 sm:$0xff]  }
 0x44a   :  { %2667 = vmatprep.subr.bf16.mxu0 %v2646_v36  ;;  %v8836_v36 = vld [vmem:[%s15365_s3 + $0x360] ss:$16 sps:$4 sm:$0xff]  }
 0x44d   :  { %2668 = vmatpush1.bf16.msra.mxu0 %v2645_v48  ;;  %v8837_v48 = vld [vmem:[%s15365_s3 + $0x344] ss:$16 sps:$4 sm:$0xff]  }
 0x44e   :  { %2807 = vmatprep.subr.bf16.mxu0 %v11130_v39 }
 0x450   :  { %7087 = vmatmul.mubr.msk.bf16.vlgmr.msra.gmra.mxu0 %vm353_vm0, %v8808_v7  ;;  %v8838_v7 = vld [vmem:[%s15365_s3 + $0x340] ss:$16 sps:$4 sm:$0xff]  }
 0x451   :  { %2808 = vmatpush1.bf16.msra.mxu0 %v8809_v51  ;;  %2695 = vmatprep.mubr.bf16.mxu0 %v15370_v56  ;;  %v8839_v51 = vld [vmem:[%s15365_s3 + $0x324] ss:$16 sps:$4 sm:$0xff]  }
 0x452   :  { %2809 = vmatprep.subr.bf16.mxu0 %v8810_v9  ;;  %v8840_v9 = vld [vmem:[%s15365_s3 + $0x320] ss:$16 sps:$4 sm:$0xff]  }
 0x455   :  { %2810 = vmatpush1.bf16.msra.mxu0 %v8811_v44  ;;  %v8841_v44 = vld [vmem:[%s15365_s3 + $0x304] ss:$16 sps:$4 sm:$0xff]  }
 0x456   :  { %2811 = vmatprep.subr.bf16.mxu0 %v8812_v41  ;;  %v8842_v41 = vld [vmem:[%s15365_s3 + $0x300] ss:$16 sps:$4 sm:$0xff]  }
 0x458   :  { %7088 = vmatmul.mubr.msk.bf16.gmra.mxu0 %vm353_vm0, %v8813_v29  ;;  %v8843_v29 = vld [vmem:[%s15365_s3 + $0x2ec] ss:$16 sps:$4 sm:$0xff]  }
 0x459   :  { %2812 = vmatpush1.bf16.msra.mxu0 %v8814_v43  ;;  %2705 = vmatprep.mubr.bf16.mxu0 %v15370_v56  ;;  %v8844_v43 = vld [vmem:[%s15365_s3 + $0x2e8] ss:$16 sps:$4 sm:$0xff]  }
 0x45a   :  { %2813 = vmatprep.subr.bf16.mxu0 %v8815_v62  ;;  %v8845_v62 = vld [vmem:[%s15365_s3 + $0x2cc] ss:$16 sps:$4 sm:$0xff]  }
 0x45d   :  { %2814 = vmatpush1.bf16.msra.mxu0 %v8816_v13  ;;  %v8846_v13 = vld [vmem:[%s15365_s3 + $0x2c8] ss:$16 sps:$4 sm:$0xff]  }
 0x45e   :  { %2815 = vmatprep.subr.bf16.mxu0 %v8817_v2  ;;  %v8847_v2 = vld [vmem:[%s15365_s3 + $0x2ac] ss:$16 sps:$4 sm:$0xff]  }
 0x460   :  { %7089 = vmatmul.mubr.msk.bf16.gmra.mxu0 %vm353_vm0, %v8818_v55  ;;  %v8848_v55 = vld [vmem:[%s15365_s3 + $0x2a8] ss:$16 sps:$4 sm:$0xff]  }
 0x461   :  { %2816 = vmatpush1.bf16.msra.mxu0 %v8819_v18  ;;  %2715 = vmatprep.mubr.bf16.mxu0 %v15370_v56  ;;  %v8849_v18 = vld [vmem:[%s15365_s3 + $0x28c] ss:$16 sps:$4 sm:$0xff]  }
 0x462   :  { %2817 = vmatprep.subr.bf16.mxu0 %v8820_v45  ;;  %v8850_v45 = vld [vmem:[%s15365_s3 + $0x288] ss:$16 sps:$4 sm:$0xff]  }
 0x465   :  { %2818 = vmatpush1.bf16.msra.mxu0 %v8821_v49  ;;  %v8851_v49 = vld [vmem:[%s15365_s3 + $0x26c] ss:$16 sps:$4 sm:$0xff]  }
 0x466   :  { %2819 = vmatprep.subr.bf16.mxu0 %v8822_v10  ;;  %v8852_v10 = vld [vmem:[%s15365_s3 + $0x268] ss:$16 sps:$4 sm:$0xff]  }
 0x468   :  { %7090 = vmatmul.mubr.msk.bf16.gmra.mxu0 %vm353_vm0, %v8823_v60  ;;  %v8853_v60 = vld [vmem:[%s15365_s3 + $0x24c] ss:$16 sps:$4 sm:$0xff]  }
 0x469   :  { %2820 = vmatpush1.bf16.msra.mxu0 %v8824_v38  ;;  %2839 = vmatprep.mubr.bf16.mxu0 %v10936_v61  ;;  %v8854_v38 = vld [vmem:[%s15365_s3 + $0x248] ss:$16 sps:$4 sm:$0xff]  }
 0x46a   :  { %2821 = vmatprep.subr.bf16.mxu0 %v8825_v15  ;;  %v8855_v15 = vld [vmem:[%s15365_s3 + $0x22c] ss:$16 sps:$4 sm:$0xff]  }
 0x46d   :  { %2822 = vmatpush1.bf16.msra.mxu0 %v8826_v57  ;;  %v8856_v57 = vld [vmem:[%s15365_s3 + $0x228] ss:$16 sps:$4 sm:$0xff]  }
 0x46e   :  { %2823 = vmatprep.subr.bf16.mxu0 %v8827_v5  ;;  %v8857_v5 = vld [vmem:[%s15365_s3 + $0x20c] ss:$16 sps:$4 sm:$0xff]  }
 0x471   :  { %2824 = vmatpush2.bf16.msra.mxu0 %v8828_v21  ;;  %v8858_v21 = vld [vmem:[%s15365_s3 + $0x208] ss:$16 sps:$4 sm:$0xff]  }
 0x472   :  { %2825 = vmatprep.subr.bf16.mxu0 %v8829_v17  ;;  %v8859_v17 = vld [vmem:[%s15365_s3 + $0x3ec] ss:$16 sps:$4 sm:$0xff]  }
 0x475   :  { %2826 = vmatpush2.bf16.msra.mxu0 %v8830_v47  ;;  %v8860_v47 = vld [vmem:[%s15365_s3 + $0x3e8] ss:$16 sps:$4 sm:$0xff]  }
 0x476   :  { %2827 = vmatprep.subr.bf16.mxu0 %v8831_v30  ;;  %v8861_v30 = vld [vmem:[%s15365_s3 + $0x3cc] ss:$16 sps:$4 sm:$0xff]  }
 0x479   :  { %2828 = vmatpush2.bf16.msra.mxu0 %v8832_v25  ;;  %v8862_v25 = vld [vmem:[%s15365_s3 + $0x3c8] ss:$16 sps:$4 sm:$0xff]  }
 0x47a   :  { %2829 = vmatprep.subr.bf16.mxu0 %v8833_v34  ;;  %v8863_v34 = vld [vmem:[%s15365_s3 + $0x3ac] ss:$16 sps:$4 sm:$0xff]  }
 0x47d   :  { %2830 = vmatpush2.bf16.msra.mxu0 %v8834_v31  ;;  %v8864_v31 = vld [vmem:[%s15365_s3 + $0x3a8] ss:$16 sps:$4 sm:$0xff]  }
 0x47e   :  { %2831 = vmatprep.subr.bf16.mxu0 %v8835_v20  ;;  %v8865_v20 = vld [vmem:[%s15365_s3 + $0x38c] ss:$16 sps:$4 sm:$0xff]  }
 0x481   :  { %2832 = vmatpush2.bf16.msra.mxu0 %v8836_v36  ;;  %v8866_v36 = vld [vmem:[%s15365_s3 + $0x388] ss:$16 sps:$4 sm:$0xff]  }
 0x482   :  { %2833 = vmatprep.subr.bf16.mxu0 %v8837_v48  ;;  %v8867_v48 = vld [vmem:[%s15365_s3 + $0x36c] ss:$16 sps:$4 sm:$0xff]  }
 0x485   :  { %2834 = vmatpush2.bf16.msra.mxu0 %v8838_v7  ;;  %v8868_v7 = vld [vmem:[%s15365_s3 + $0x368] ss:$16 sps:$4 sm:$0xff]  }
 0x486   :  { %2835 = vmatprep.subr.bf16.mxu0 %v8839_v51  ;;  %v8869_v51 = vld [vmem:[%s15365_s3 + $0x34c] ss:$16 sps:$4 sm:$0xff]  }
 0x489   :  { %2836 = vmatpush2.bf16.msra.mxu0 %v8840_v9  ;;  %v8870_v9 = vld [vmem:[%s15365_s3 + $0x348] ss:$16 sps:$4 sm:$0xff]  }
 0x48a   :  { %2837 = vmatprep.subr.bf16.mxu0 %v8841_v44  ;;  %v8871_v44 = vld [vmem:[%s15365_s3 + $0x32c] ss:$16 sps:$4 sm:$0xff]  }
 0x48d   :  { %2838 = vmatpush2.bf16.msra.mxu0 %v8842_v41  ;;  %v8872_v41 = vld [vmem:[%s15365_s3 + $0x328] ss:$16 sps:$4 sm:$0xff]  }
 0x48e   :  { %2953 = vmatprep.subr.bf16.mxu0 %v8843_v29  ;;  %v8873_v29 = vld [vmem:[%s15365_s3 + $0x30c] ss:$16 sps:$4 sm:$0xff]  }
 0x490   :  { %2840 = vmatmul.mubr.bf16.vlgmr.msra.gmra.mxu0 %v10940_v19 }
 0x491   :  { %2849 = vmatprep.mubr.bf16.mxu0 %v10975_v3  ;;  %2954 = vmatpush1.bf16.msra.mxu0 %v8844_v43  ;;  %v8874_v43 = vld [vmem:[%s15365_s3 + $0x308] ss:$16 sps:$4 sm:$0xff]  }
 0x492   :  { %2955 = vmatprep.subr.bf16.mxu0 %v8845_v62  ;;  %v8875_v62 = vld [vmem:[%s15367_s5 + $0x74] ss:$8 sps:$4 sm:$0xff]  }
 0x495   :  { %2956 = vmatpush1.bf16.msra.mxu0 %v8846_v13  ;;  %v8876_v13 = vld [vmem:[%s15367_s5 + $0x70] ss:$8 sps:$4 sm:$0xff]  }
 0x496   :  { %2957 = vmatprep.subr.bf16.mxu0 %v8847_v2  ;;  %v8877_v2 = vld [vmem:[%s15367_s5 + $0x64] ss:$8 sps:$4 sm:$0xff]  }
 0x498   :  { %2850 = vmatmul.mubr.bf16.gmra.mxu0 %v10985_v63 }
 0x499   :  { %2859 = vmatprep.mubr.bf16.mxu0 %v11017_v40  ;;  %2958 = vmatpush1.bf16.msra.mxu0 %v8848_v55  ;;  %v8878_v55 = vld [vmem:[%s15367_s5 + $0x60] ss:$8 sps:$4 sm:$0xff]  }
 0x49a   :  { %2959 = vmatprep.subr.bf16.mxu0 %v8849_v18  ;;  %v8879_v18 = vld [vmem:[%s15367_s5 + $0x54] ss:$8 sps:$4 sm:$0xff]  }
 0x49d   :  { %2960 = vmatpush1.bf16.msra.mxu0 %v8850_v45  ;;  %v8880_v45 = vld [vmem:[%s15367_s5 + $0x50] ss:$8 sps:$4 sm:$0xff]  }
 0x49e   :  { %2961 = vmatprep.subr.bf16.mxu0 %v8851_v49  ;;  %v8881_v49 = vld [vmem:[%s15367_s5 + $0x44] ss:$8 sps:$4 sm:$0xff]  }
 0x4a0   :  { %2860 = vmatmul.mubr.bf16.gmra.mxu0 %v11027_v0 }
 0x4a1   :  { %2869 = vmatprep.mubr.bf16.mxu0 %v11053_v52  ;;  %2962 = vmatpush1.bf16.msra.mxu0 %v8852_v10  ;;  %v8882_v10 = vld [vmem:[%s15367_s5 + $0x40] ss:$8 sps:$4 sm:$0xff]  }
 0x4a2   :  { %2963 = vmatprep.subr.bf16.mxu0 %v8853_v60  ;;  %v8883_v60 = vld [vmem:[%s15367_s5 + $0x34] ss:$8 sps:$4 sm:$0xff]  }
 0x4a5   :  { %2964 = vmatpush1.bf16.msra.mxu0 %v8854_v38  ;;  %v8884_v38 = vld [vmem:[%s15367_s5 + $0x30] ss:$8 sps:$4 sm:$0xff]  }
 0x4a6   :  { %2965 = vmatprep.subr.bf16.mxu0 %v8855_v15  ;;  %v8885_v15 = vld [vmem:[%s15367_s5 + $0x24] ss:$8 sps:$4 sm:$0xff]  }
 0x4a8   :  { %2870 = vmatmul.mubr.bf16.gmra.mxu0 %v11060_v12 }
 0x4a9   :  { %2966 = vmatpush1.bf16.msra.mxu0 %v8856_v57  ;;  %2985 = vmatprep.mubr.bf16.mxu0 %v10936_v61  ;;  %v8886_v57 = vld [vmem:[%s15367_s5 + $0x20] ss:$8 sps:$4 sm:$0xff]  }
 0x4aa   :  { %2967 = vmatprep.subr.bf16.mxu0 %v8857_v5  ;;  %v8887_v5 = vld [vmem:[%s15367_s5 + $0x14] ss:$8 sps:$4 sm:$0xff]  }
 0x4ad   :  { %2968 = vmatpush1.bf16.msra.mxu0 %v8858_v21  ;;  %v8888_v21 = vld [vmem:[%s15367_s5 + $0x10] ss:$8 sps:$4 sm:$0xff]  }
 0x4ae   :  { %2969 = vmatprep.subr.bf16.mxu0 %v8859_v17  ;;  %v8889_v17 = vld [vmem:[%s15367_s5 + $0x4] ss:$8 sps:$4 sm:$0xff]  }
 0x4b1   :  { %2970 = vmatpush2.bf16.msra.mxu0 %v8860_v47  ;;  %v8890_v47 = vld [vmem:[%s15367_s5] ss:$8 sps:$4 sm:$0xff]  }
 0x4b2   :  { %2971 = vmatprep.subr.bf16.mxu0 %v8861_v30  ;;  %v8891_v30 = vld [vmem:[%s15367_s5 + $0xf4] ss:$8 sps:$4 sm:$0xff]  }
 0x4b5   :  { %2972 = vmatpush2.bf16.msra.mxu0 %v8862_v25  ;;  %v8892_v25 = vld [vmem:[%s15367_s5 + $0xf0] ss:$8 sps:$4 sm:$0xff]  }
 0x4b6   :  { %2973 = vmatprep.subr.bf16.mxu0 %v8863_v34  ;;  %v8894_v34 = vld [vmem:[%s15367_s5 + $0xe0] ss:$8 sps:$4 sm:$0xff]  }
 0x4b9   :  { %2974 = vmatpush2.bf16.msra.mxu0 %v8864_v31  ;;  %v8895_v31 = vld [vmem:[%s15367_s5 + $0xd4] ss:$8 sps:$4 sm:$0xff]  }
 0x4ba   :  { %2975 = vmatprep.subr.bf16.mxu0 %v8865_v20  ;;  %v8896_v20 = vld [vmem:[%s15367_s5 + $0xd0] ss:$8 sps:$4 sm:$0xff]  }
 0x4bd   :  { %2976 = vmatpush2.bf16.msra.mxu0 %v8866_v36  ;;  %v8897_v36 = vld [vmem:[%s15367_s5 + $0xc4] ss:$8 sps:$4 sm:$0xff]  }
 0x4be   :  { %2977 = vmatprep.subr.bf16.mxu0 %v8867_v48  ;;  %v8898_v48 = vld [vmem:[%s15367_s5 + $0xc0] ss:$8 sps:$4 sm:$0xff]  }
 0x4c1   :  { %2978 = vmatpush2.bf16.msra.mxu0 %v8868_v7  ;;  %v8899_v7 = vld [vmem:[%s15367_s5 + $0xb4] ss:$8 sps:$4 sm:$0xff]  }
 0x4c2   :  { %2979 = vmatprep.subr.bf16.mxu0 %v8869_v51  ;;  %v8900_v51 = vld [vmem:[%s15367_s5 + $0xb0] ss:$8 sps:$4 sm:$0xff]  }
 0x4c5   :  { %2980 = vmatpush2.bf16.msra.mxu0 %v8870_v9  ;;  %v8901_v9 = vld [vmem:[%s15367_s5 + $0xa4] ss:$8 sps:$4 sm:$0xff]  }
 0x4c6   :  { %2981 = vmatprep.subr.bf16.mxu0 %v8871_v44  ;;  %v8902_v44 = vld [vmem:[%s15367_s5 + $0xa0] ss:$8 sps:$4 sm:$0xff]  }
 0x4c9   :  { %2982 = vmatpush2.bf16.msra.mxu0 %v8872_v41  ;;  %v8903_v41 = vld [vmem:[%s15367_s5 + $0x94] ss:$8 sps:$4 sm:$0xff]  }
 0x4ca   :  { %2983 = vmatprep.subr.bf16.mxu0 %v8873_v29  ;;  %v8904_v29 = vld [vmem:[%s15367_s5 + $0x90] ss:$8 sps:$4 sm:$0xff]  }
 0x4cd   :  { %2984 = vmatpush2.bf16.msra.mxu0 %v8874_v43  ;;  %v8905_v43 = vld [vmem:[%s15367_s5 + $0x84] ss:$8 sps:$4 sm:$0xff]  }
 0x4ce   :  { %3291 = vmatprep.subr.bf16.mxu0 %v8875_v62  ;;  %v8906_v62 = vld [vmem:[%s15367_s5 + $0x80] ss:$8 sps:$4 sm:$0xff]  }
 0x4d0   :  { %2986 = vmatmul.mubr.bf16.vlgmr.msra.gmra.mxu0 %v10940_v19 }
 0x4d1   :  { %2995 = vmatprep.mubr.bf16.mxu0 %v10975_v3  ;;  %3292 = vmatpush1.bf16.msra.mxu0 %v8876_v13 }
 0x4d2   :  { %3293 = vmatprep.subr.bf16.mxu0 %v8877_v2 }
 0x4d5   :  { %3294 = vmatpush1.bf16.msra.mxu0 %v8878_v55 }
 0x4d6   :  { %3295 = vmatprep.subr.bf16.mxu0 %v8879_v18 }
 0x4d8   :  { %2996 = vmatmul.mubr.bf16.gmra.mxu0 %v10985_v63 }
 0x4d9   :  { %3005 = vmatprep.mubr.bf16.mxu0 %v11017_v40  ;;  %3296 = vmatpush1.bf16.msra.mxu0 %v8880_v45 }
 0x4da   :  { %3297 = vmatprep.subr.bf16.mxu0 %v8881_v49 }
 0x4dd   :  { %3298 = vmatpush1.bf16.msra.mxu0 %v8882_v10 }
 0x4de   :  { %3299 = vmatprep.subr.bf16.mxu0 %v8883_v60 }
 0x4e0   :  { %3006 = vmatmul.mubr.bf16.gmra.mxu0 %v11027_v0 }
 0x4e1   :  { %3015 = vmatprep.mubr.bf16.mxu0 %v11053_v52  ;;  %3300 = vmatpush1.bf16.msra.mxu0 %v8884_v38  ;;  %v8908_v38 = vld [vmem:[%s15365_s3 + $0xcc] ss:$16 sps:$4 sm:$0xff]  }
 0x4e2   :  { %3301 = vmatprep.subr.bf16.mxu0 %v8885_v15 }
 0x4e5   :  { %3302 = vmatpush1.bf16.msra.mxu0 %v8886_v57 }
 0x4e6   :  { %3303 = vmatprep.subr.bf16.mxu0 %v8887_v5 }
 0x4e8   :  { %3016 = vmatmul.mubr.bf16.gmra.mxu0 %v11060_v12 }
 0x4e9   :  { %3304 = vmatpush1.bf16.msra.mxu0 %v8888_v21  ;;  %3323 = vmatprep.mubr.bf16.mxu0 %v10936_v61  ;;  %v8893_v61 = vld [vmem:[%s15367_s5 + $0xe4] ss:$8 sps:$4 sm:$0xff]  }
 0x4ea   :  { %3305 = vmatprep.subr.bf16.mxu0 %v8889_v17  ;;  %v8910_v21 = vld [vmem:[%s15365_s3 + $0xac] ss:$16 sps:$4 sm:$0xff]  }
 0x4ed   :  { %3306 = vmatpush1.bf16.msra.mxu0 %v8890_v47  ;;  %v8911_v47 = vld [vmem:[%s15365_s3 + $0xa8] ss:$16 sps:$4 sm:$0xff]  }
 0x4ee   :  { %3307 = vmatprep.subr.bf16.mxu0 %v8891_v30 }
 0x4f1   :  { %3308 = vmatpush2.bf16.msra.mxu0 %v8892_v25 }
 0x4f2   :  { %3309 = vmatprep.subr.bf16.mxu0 %v8893_v61 }
 0x4f5   :  { %3310 = vmatpush2.bf16.msra.mxu0 %v8894_v34 }
 0x4f6   :  { %3311 = vmatprep.subr.bf16.mxu0 %v8895_v31 }
 0x4f9   :  { %3312 = vmatpush2.bf16.msra.mxu0 %v8896_v20  ;;  %v8914_v20 = vld [vmem:[%s15365_s3 + $0x6c] ss:$16 sps:$4 sm:$0xff]  }
 0x4fa   :  { %3313 = vmatprep.subr.bf16.mxu0 %v8897_v36 }
 0x4fd   :  { %3314 = vmatpush2.bf16.msra.mxu0 %v8898_v48  ;;  %v8915_v48 = vld [vmem:[%s15365_s3 + $0x68] ss:$16 sps:$4 sm:$0xff]  }
 0x4fe   :  { %3315 = vmatprep.subr.bf16.mxu0 %v8899_v7 }
 0x501   :  { %3316 = vmatpush2.bf16.msra.mxu0 %v8900_v51 }
 0x502   :  { %3317 = vmatprep.subr.bf16.mxu0 %v8901_v9 }
 0x505   :  { %3318 = vmatpush2.bf16.msra.mxu0 %v8902_v44 }
 0x506   :  { %3319 = vmatprep.subr.bf16.mxu0 %v8903_v41  ;;  %v8917_v41 = vld [vmem:[%s15365_s3 + $0x48] ss:$16 sps:$4 sm:$0xff]  }
 0x509   :  { %3320 = vmatpush2.bf16.msra.mxu0 %v8904_v29  ;;  %v8918_v29 = vld [vmem:[%s15365_s3 + $0x2c] ss:$16 sps:$4 sm:$0xff]  }
 0x50a   :  { %3321 = vmatprep.subr.bf16.mxu0 %v8905_v43  ;;  %v8919_v43 = vld [vmem:[%s15365_s3 + $0x28] ss:$16 sps:$4 sm:$0xff]  }
 0x50d   :  { %3322 = vmatpush2.bf16.msra.mxu0 %v8906_v62  ;;  %v8920_v62 = vld [vmem:[%s15365_s3 + $0xc] ss:$16 sps:$4 sm:$0xff]  }
 0x510   :  { %v2687_v13 = vpop.f32.mrf.mxu0  ;;  %3324 = vmatmul.mubr.bf16.vlgmr.msra.gmra.mxu0 %v10940_v19  ;;  %v8907_v19 = vld [vmem:[%s15365_s3 + $0xe8] ss:$16 sps:$4 sm:$0xff]  }
 0x511   :  { %3333 = vmatprep.mubr.bf16.mxu0 %v10975_v3 }
 0x512   :  { %v2689_v2 = vpop.f32.mrf.mxu0 }
 0x514   :  { %v2691_v55 = vpop.f32.mrf.mxu0 }
 0x515   :  { %v11458_v49 = vpack.c.bf16 %v2691_v55, %v2687_v13  ;;  %v8921_v13 = vld [vmem:[%s15365_s3 + $0x8] ss:$16 sps:$4 sm:$0xff]  }
 0x516   :  { %v2693_v18 = vpop.f32.mrf.mxu0  ;;  %v8923_v55 = vld [vmem:[%s15365_s3 + $0x1e8] ss:$16 sps:$4 sm:$0xff]  }
 0x517   :  { %v11456_v45 = vpack.c.bf16 %v2693_v18, %v2689_v2  ;;  %v8922_v2 = vld [vmem:[%s15365_s3 + $0x1ec] ss:$16 sps:$4 sm:$0xff]  }
 0x518   :  { %v2697_v10 = vpop.f32.mrf.mxu0  ;;  %3334 = vmatmul.mubr.bf16.gmra.mxu0 %v10985_v63  ;;  %v8924_v18 = vld [vmem:[%s15365_s3 + $0x1cc] ss:$16 sps:$4 sm:$0xff]  }
 0x519   :  { %2766 = vmatprep.mubr.bf16.mxu1 %v11456_v45  ;;  %3343 = vmatprep.mubr.bf16.mxu0 %v11017_v40  ;;  %v8909_v40 = vld [vmem:[%s15365_s3 + $0xc8] ss:$16 sps:$4 sm:$0xff]  }
 0x51a   :  { %v2699_v60 = vpop.f32.mrf.mxu0  ;;  %2767 = vmatmul.mubr.bf16.vlgmr.msra.gmra.mxu1 %v11458_v49 }
 0x51b   :  { %2881 = vmatpush1.bf16.msra.mxu1 %v8907_v19  ;;  %v8927_v19 = vld [vmem:[%s15365_s3 + $0x1a8] ss:$16 sps:$4 sm:$0xff]  }
 0x51c   :  { %v2701_v3 = vpop.f32.mrf.mxu0  ;;  %2882 = vmatprep.subr.bf16.mxu1 %v8908_v38  ;;  %v8929_v38 = vld [vmem:[%s15365_s3 + $0x188] ss:$16 sps:$4 sm:$0xff]  }
 0x51d   :  { %v11470_v15 = vpack.c.bf16 %v2701_v3, %v2697_v10  ;;  %v8925_v10 = vld [vmem:[%s15365_s3 + $0x1c8] ss:$16 sps:$4 sm:$0xff]   ;;  %v8928_v3 = vld [vmem:[%s15365_s3 + $0x18c] ss:$16 sps:$4 sm:$0xff]  }
 0x51e   :  { %v2703_v63 = vpop.f32.mrf.mxu0 }
 0x51f   :  { %v11472_v57 = vpack.c.bf16 %v2703_v63, %v2699_v60  ;;  %2883 = vmatpush1.bf16.msra.mxu1 %v8909_v40  ;;  %v8926_v60 = vld [vmem:[%s15365_s3 + $0x1ac] ss:$16 sps:$4 sm:$0xff]   ;;  %v8931_v40 = vld [vmem:[%s15365_s3 + $0x168] ss:$16 sps:$4 sm:$0xff]  }
 0x520   :  { %v2707_v5 = vpop.f32.mrf.mxu0  ;;  %3344 = vmatmul.mubr.bf16.gmra.mxu0 %v11027_v0  ;;  %2884 = vmatprep.subr.bf16.mxu1 %v8910_v21  ;;  %v8912_v0 = vld [vmem:[%s15365_s3 + $0x8c] ss:$16 sps:$4 sm:$0xff]   ;;  %v8933_v21 = vld [vmem:[%s15365_s3 + $0x148] ss:$16 sps:$4 sm:$0xff]  }
 0x521   :  { %2776 = vmatprep.mubr.bf16.mxu1 %v11472_v57  ;;  %3353 = vmatprep.mubr.bf16.mxu0 %v11053_v52  ;;  %v8913_v52 = vld [vmem:[%s15365_s3 + $0x88] ss:$16 sps:$4 sm:$0xff]   ;;  %v8930_v63 = vld [vmem:[%s15365_s3 + $0x16c] ss:$16 sps:$4 sm:$0xff]  }
 0x522   :  { %v2709_v17 = vpop.f32.mrf.mxu0  ;;  %2777 = vmatmul.mubr.bf16.gmra.mxu1 %v11470_v15 }
 0x523   :  { %2885 = vmatpush1.bf16.msra.mxu1 %v8911_v47  ;;  %v8935_v47 = vld [vmem:[%s15365_s3 + $0x128] ss:$16 sps:$4 sm:$0xff]  }
 0x524   :  { %v2711_v30 = vpop.f32.mrf.mxu0  ;;  %2886 = vmatprep.subr.bf16.mxu1 %v8912_v0  ;;  %v8937_v0 = vld [vmem:[%s15365_s3 + $0x108] ss:$16 sps:$4 sm:$0xff]  }
 0x525   :  { %v11490_v25 = vpack.c.bf16 %v2711_v30, %v2707_v5  ;;  %v8932_v5 = vld [vmem:[%s15365_s3 + $0x14c] ss:$16 sps:$4 sm:$0xff]  }
 0x526   :  { %v2713_v61 = vpop.f32.mrf.mxu0  ;;  %v8936_v30 = vld [vmem:[%s15365_s3 + $0x10c] ss:$16 sps:$4 sm:$0xff]  }
 0x527   :  { %v11492_v34 = vpack.c.bf16 %v2713_v61, %v2709_v17  ;;  %2887 = vmatpush1.bf16.msra.mxu1 %v8913_v52  ;;  %v8934_v17 = vld [vmem:[%s15365_s3 + $0x12c] ss:$16 sps:$4 sm:$0xff]   ;;  %v8939_v52 = vld [vmem:[%s15366_s4 + $0x70] ss:$8 sps:$4 sm:$0xff]  }
 0x528   :  { %v2717_v31 = vpop.f32.mrf.mxu0  ;;  %3354 = vmatmul.mubr.bf16.gmra.mxu0 %v11060_v12  ;;  %2888 = vmatprep.subr.bf16.mxu1 %v8914_v20  ;;  %v8916_v12 = vld [vmem:[%s15365_s3 + $0x4c] ss:$16 sps:$4 sm:$0xff]   ;;  %v8941_v20 = vld [vmem:[%s15366_s4 + $0x60] ss:$8 sps:$4 sm:$0xff]  }
 0x529   :  { %2786 = vmatprep.mubr.bf16.mxu1 %v11492_v34  ;;  %3774 = vmatprep.mubr.bf16.mxu0 %v15370_v56  ;;  %v8938_v61 = vld [vmem:[%s15366_s4 + $0x74] ss:$8 sps:$4 sm:$0xff]  }
 0x52a   :  { %v2719_v36 = vpop.f32.mrf.mxu0  ;;  %2787 = vmatmul.mubr.bf16.gmra.mxu1 %v11490_v25 }
 0x52b   :  { %2889 = vmatpush1.bf16.msra.mxu1 %v8915_v48  ;;  %v8943_v48 = vld [vmem:[%s15366_s4 + $0x50] ss:$8 sps:$4 sm:$0xff]  }
 0x52c   :  { %v2721_v7 = vpop.f32.mrf.mxu0  ;;  %2890 = vmatprep.subr.bf16.mxu1 %v8916_v12  ;;  %v8945_v12 = vld [vmem:[%s15366_s4 + $0x40] ss:$8 sps:$4 sm:$0xff]  }
 0x52d   :  { %v11510_v51 = vpack.c.bf16 %v2721_v7, %v2717_v31  ;;  %v8940_v31 = vld [vmem:[%s15366_s4 + $0x64] ss:$8 sps:$4 sm:$0xff]  }
 0x52e   :  { %v2723_v9 = vpop.f32.mrf.mxu0  ;;  %v8944_v7 = vld [vmem:[%s15366_s4 + $0x44] ss:$8 sps:$4 sm:$0xff]  }
 0x52f   :  { %v11512_v44 = vpack.c.bf16 %v2723_v9, %v2719_v36  ;;  %2891 = vmatpush1.bf16.msra.mxu1 %v8917_v41  ;;  %v8942_v36 = vld [vmem:[%s15366_s4 + $0x54] ss:$8 sps:$4 sm:$0xff]   ;;  %v8947_v41 = vld [vmem:[%s15366_s4 + $0x30] ss:$8 sps:$4 sm:$0xff]  }
 0x530   :  { %2892 = vmatprep.subr.bf16.mxu1 %v8918_v29  ;;  %v8946_v9 = vld [vmem:[%s15366_s4 + $0x34] ss:$8 sps:$4 sm:$0xff]   ;;  %v8948_v29 = vld [vmem:[%s15366_s4 + $0x24] ss:$8 sps:$4 sm:$0xff]  }
 0x531   :  { %2796 = vmatprep.mubr.bf16.mxu1 %v11512_v44 }
 0x532   :  { %2797 = vmatmul.mubr.bf16.gmra.mxu1 %v11510_v51 }
 0x533   :  { %2893 = vmatpush1.bf16.msra.mxu1 %v8919_v43  ;;  %2912 = vmatprep.mubr.bf16.mxu1 %v11456_v45  ;;  %v8949_v43 = vld [vmem:[%s15366_s4 + $0x20] ss:$8 sps:$4 sm:$0xff]  }
 0x534   :  { %2894 = vmatprep.subr.bf16.mxu1 %v8920_v62  ;;  %v8950_v62 = vld [vmem:[%s15366_s4 + $0x14] ss:$8 sps:$4 sm:$0xff]  }
 0x537   :  { %2895 = vmatpush1.bf16.msra.mxu1 %v8921_v13  ;;  %v8951_v13 = vld [vmem:[%s15366_s4 + $0x10] ss:$8 sps:$4 sm:$0xff]  }
 0x538   :  { %2896 = vmatprep.subr.bf16.mxu1 %v8922_v2  ;;  %v8952_v2 = vld [vmem:[%s15366_s4 + $0x4] ss:$8 sps:$4 sm:$0xff]  }
 0x53b   :  { %2897 = vmatpush2.bf16.msra.mxu1 %v8923_v55  ;;  %v8953_v55 = vld [vmem:[%s15366_s4] ss:$8 sps:$4 sm:$0xff]  }
 0x53c   :  { %2898 = vmatprep.subr.bf16.mxu1 %v8924_v18  ;;  %v8954_v18 = vld [vmem:[%s15366_s4 + $0xf4] ss:$8 sps:$4 sm:$0xff]  }
 0x53f   :  { %2899 = vmatpush2.bf16.msra.mxu1 %v8925_v10  ;;  %v8955_v10 = vld [vmem:[%s15366_s4 + $0xf0] ss:$8 sps:$4 sm:$0xff]  }
 0x540   :  { %2900 = vmatprep.subr.bf16.mxu1 %v8926_v60  ;;  %v8957_v60 = vld [vmem:[%s15366_s4 + $0xe0] ss:$8 sps:$4 sm:$0xff]  }
 0x543   :  { %2901 = vmatpush2.bf16.msra.mxu1 %v8927_v19  ;;  %v8958_v19 = vld [vmem:[%s15366_s4 + $0xd4] ss:$8 sps:$4 sm:$0xff]  }
 0x544   :  { %2902 = vmatprep.subr.bf16.mxu1 %v8928_v3  ;;  %v8959_v3 = vld [vmem:[%s15366_s4 + $0xd0] ss:$8 sps:$4 sm:$0xff]  }
 0x547   :  { %2903 = vmatpush2.bf16.msra.mxu1 %v8929_v38  ;;  %v8960_v38 = vld [vmem:[%s15366_s4 + $0xc4] ss:$8 sps:$4 sm:$0xff]  }
 0x548   :  { %2904 = vmatprep.subr.bf16.mxu1 %v8930_v63  ;;  %v8961_v63 = vld [vmem:[%s15366_s4 + $0xc0] ss:$8 sps:$4 sm:$0xff]  }
 0x54b   :  { %2905 = vmatpush2.bf16.msra.mxu1 %v8931_v40  ;;  %v8962_v40 = vld [vmem:[%s15366_s4 + $0xb4] ss:$8 sps:$4 sm:$0xff]  }
 0x54c   :  { %2906 = vmatprep.subr.bf16.mxu1 %v8932_v5  ;;  %v8963_v5 = vld [vmem:[%s15366_s4 + $0xb0] ss:$8 sps:$4 sm:$0xff]  }
 0x54f   :  { %2907 = vmatpush2.bf16.msra.mxu1 %v8933_v21  ;;  %v8964_v21 = vld [vmem:[%s15366_s4 + $0xa4] ss:$8 sps:$4 sm:$0xff]  }
 0x550   :  { %2908 = vmatprep.subr.bf16.mxu1 %v8934_v17  ;;  %v8965_v17 = vld [vmem:[%s15366_s4 + $0xa0] ss:$8 sps:$4 sm:$0xff]  }
 0x553   :  { %2909 = vmatpush2.bf16.msra.mxu1 %v8935_v47  ;;  %v8966_v47 = vld [vmem:[%s15366_s4 + $0x94] ss:$8 sps:$4 sm:$0xff]  }
 0x554   :  { %2910 = vmatprep.subr.bf16.mxu1 %v8936_v30  ;;  %v8967_v30 = vld [vmem:[%s15366_s4 + $0x90] ss:$8 sps:$4 sm:$0xff]  }
 0x557   :  { %2911 = vmatpush2.bf16.msra.mxu1 %v8937_v0  ;;  %v8968_v0 = vld [vmem:[%s15366_s4 + $0x84] ss:$8 sps:$4 sm:$0xff]  }
 0x558   :  { %3218 = vmatprep.subr.bf16.mxu1 %v8938_v61  ;;  %v8969_v61 = vld [vmem:[%s15366_s4 + $0x80] ss:$8 sps:$4 sm:$0xff]  }
 0x55a   :  { %2913 = vmatmul.mubr.bf16.vlgmr.msra.gmra.mxu1 %v11458_v49 }
 0x55b   :  { %2922 = vmatprep.mubr.bf16.mxu1 %v11472_v57  ;;  %3219 = vmatpush1.bf16.msra.mxu1 %v8939_v52  ;;  %v11690_v52 = vpop.f32.mrf.mxu0 }
 0x55c   :  { %3220 = vmatprep.subr.bf16.mxu1 %v8940_v31 }
 0x55d   :  { %v11693_v31 = vpop.f32.mrf.mxu0 }
 0x55f   :  { %3221 = vmatpush1.bf16.msra.mxu1 %v8941_v20  ;;  %v11695_v20 = vpop.f32.mrf.mxu0 }
 0x560   :  { %3222 = vmatprep.subr.bf16.mxu1 %v8942_v36  ;;  %v7821_v36 = vld [vmem:[%s15364_s2 + $0x250] ss:$8 sps:$4 sm:$0xff]  }
 0x562   :  { %2923 = vmatmul.mubr.bf16.gmra.mxu1 %v11470_v15 }
 0x563   :  { %2932 = vmatprep.mubr.bf16.mxu1 %v11492_v34  ;;  %3223 = vmatpush1.bf16.msra.mxu1 %v8943_v48 }
 0x564   :  { %3224 = vmatprep.subr.bf16.mxu1 %v8944_v7  ;;  %v7826_v7 = vld [vmem:[%s15364_s2 + $0x244] ss:$8 sps:$4 sm:$0xff]  }
 0x567   :  { %3225 = vmatpush1.bf16.msra.mxu1 %v8945_v12  ;;  %v7824_v12 = vld [vmem:[%s15364_s2 + $0x240] ss:$8 sps:$4 sm:$0xff]  }
 0x568   :  { %3226 = vmatprep.subr.bf16.mxu1 %v8946_v9 }
 0x56a   :  { %2933 = vmatmul.mubr.bf16.gmra.mxu1 %v11490_v25 }
 0x56b   :  { %2942 = vmatprep.mubr.bf16.mxu1 %v11512_v44  ;;  %3227 = vmatpush1.bf16.msra.mxu1 %v8947_v41  ;;  %v7829_v41 = vld [vmem:[%s15364_s2 + $0x234] ss:$8 sps:$4 sm:$0xff]  }
 0x56c   :  { %3228 = vmatprep.subr.bf16.mxu1 %v8948_v29  ;;  %v7827_v29 = vld [vmem:[%s15364_s2 + $0x230] ss:$8 sps:$4 sm:$0xff]  }
 0x56f   :  { %3229 = vmatpush1.bf16.msra.mxu1 %v8949_v43 }
 0x570   :  { %3230 = vmatprep.subr.bf16.mxu1 %v8950_v62  ;;  %v7832_v62 = vld [vmem:[%s15364_s2 + $0x224] ss:$8 sps:$4 sm:$0xff]  }
 0x572   :  { %2943 = vmatmul.mubr.bf16.gmra.mxu1 %v11510_v51 }
 0x573   :  { %3231 = vmatpush1.bf16.msra.mxu1 %v8951_v13  ;;  %3250 = vmatprep.mubr.bf16.mxu1 %v11456_v45  ;;  %v8956_v45 = vld [vmem:[%s15366_s4 + $0xe4] ss:$8 sps:$4 sm:$0xff]   ;;  %v7830_v13 = vld [vmem:[%s15364_s2 + $0x220] ss:$8 sps:$4 sm:$0xff]  }
 0x574   :  { %3232 = vmatprep.subr.bf16.mxu1 %v8952_v2  ;;  %v7835_v2 = vld [vmem:[%s15364_s2 + $0x214] ss:$8 sps:$4 sm:$0xff]  }
 0x577   :  { %3233 = vmatpush1.bf16.msra.mxu1 %v8953_v55 }
 0x578   :  { %3234 = vmatprep.subr.bf16.mxu1 %v8954_v18  ;;  %v7833_v18 = vld [vmem:[%s15364_s2 + $0x210] ss:$8 sps:$4 sm:$0xff]  }
 0x57b   :  { %3235 = vmatpush2.bf16.msra.mxu1 %v8955_v10  ;;  %v7838_v10 = vld [vmem:[%s15364_s2 + $0x204] ss:$8 sps:$4 sm:$0xff]  }
 0x57c   :  { %3236 = vmatprep.subr.bf16.mxu1 %v8956_v45 }
 0x57f   :  { %3237 = vmatpush2.bf16.msra.mxu1 %v8957_v60  ;;  %v7836_v60 = vld [vmem:[%s15364_s2 + $0x200] ss:$8 sps:$4 sm:$0xff]  }
 0x580   :  { %3238 = vmatprep.subr.bf16.mxu1 %v8958_v19 }
 0x583   :  { %3239 = vmatpush2.bf16.msra.mxu1 %v8959_v3  ;;  %v7841_v3 = vld [vmem:[%s15364_s2 + $0x2f4] ss:$8 sps:$4 sm:$0xff]  }
 0x584   :  { %3240 = vmatprep.subr.bf16.mxu1 %v8960_v38  ;;  %v7839_v38 = vld [vmem:[%s15364_s2 + $0x2f0] ss:$8 sps:$4 sm:$0xff]  }
 0x587   :  { %3241 = vmatpush2.bf16.msra.mxu1 %v8961_v63 }
 0x588   :  { %3242 = vmatprep.subr.bf16.mxu1 %v8962_v40 }
 0x58b   :  { %3243 = vmatpush2.bf16.msra.mxu1 %v8963_v5  ;;  %v7844_v5 = vld [vmem:[%s15364_s2 + $0x2e4] ss:$8 sps:$4 sm:$0xff]  }
 0x58c   :  { %3244 = vmatprep.subr.bf16.mxu1 %v8964_v21  ;;  %v7842_v21 = vld [vmem:[%s15364_s2 + $0x2e0] ss:$8 sps:$4 sm:$0xff]  }
 0x58f   :  { %3245 = vmatpush2.bf16.msra.mxu1 %v8965_v17 }
 0x590   :  { %3246 = vmatprep.subr.bf16.mxu1 %v8966_v47 }
 0x593   :  { %3247 = vmatpush2.bf16.msra.mxu1 %v8967_v30  ;;  %v7847_v30 = vld [vmem:[%s15364_s2 + $0x2d4] ss:$8 sps:$4 sm:$0xff]  }
 0x594   :  { %3248 = vmatprep.subr.bf16.mxu1 %v8968_v0  ;;  %v7845_v0 = vld [vmem:[%s15364_s2 + $0x2d0] ss:$8 sps:$4 sm:$0xff]  }
 0x597   :  { %3249 = vmatpush2.bf16.msra.mxu1 %v8969_v61 }
 0x59a   :  { %3251 = vmatmul.mubr.bf16.vlgmr.msra.gmra.mxu1 %v11458_v49  ;;  %v7817_v49 = vld [vmem:[%s15364_s2 + $0x274] ss:$8 sps:$4 sm:$0xff]  }
 0x59b   :  { %3260 = vmatprep.mubr.bf16.mxu1 %v11472_v57  ;;  %3661 = vmatprep.subr.bf16.mxu1 %v7817_v49  ;;  %v11703_v57 = vpop.f32.mrf.mxu0 }
 0x5a2   :  { %3261 = vmatmul.mubr.bf16.gmra.mxu1 %v11470_v15  ;;  %v7815_v15 = vld [vmem:[%s15364_s2 + $0x270] ss:$8 sps:$4 sm:$0xff]  }
 0x5a3   :  { %3270 = vmatprep.mubr.bf16.mxu1 %v11492_v34  ;;  %3662 = vmatpush1.bf16.msra.mxu1 %v7815_v15  ;;  %v7818_v34 = vld [vmem:[%s15364_s2 + $0x260] ss:$8 sps:$4 sm:$0xff]   ;;  %v7850_v15 = vld [vmem:[%s15364_s2 + $0x2c4] ss:$8 sps:$4 sm:$0xff]  }
 0x5aa   :  { %3271 = vmatmul.mubr.bf16.gmra.mxu1 %v11490_v25  ;;  %v7820_v25 = vld [vmem:[%s15364_s2 + $0x264] ss:$8 sps:$4 sm:$0xff]  }
 0x5ab   :  { %3280 = vmatprep.mubr.bf16.mxu1 %v11512_v44  ;;  %3663 = vmatprep.subr.bf16.mxu1 %v7820_v25  ;;  %v7823_v44 = vld [vmem:[%s15364_s2 + $0x254] ss:$8 sps:$4 sm:$0xff]   ;;  %v7848_v25 = vld [vmem:[%s15364_s2 + $0x2c0] ss:$8 sps:$4 sm:$0xff]  }
 0x5ac   :  { %3664 = vmatpush1.bf16.msra.mxu1 %v7818_v34 }
 0x5ad   :  { %3665 = vmatprep.subr.bf16.mxu1 %v7823_v44 }
 0x5b0   :  { %3666 = vmatpush1.bf16.msra.mxu1 %v7821_v36  ;;  %v7853_v36 = vld [vmem:[%s15364_s2 + $0x2b4] ss:$8 sps:$4 sm:$0xff]  }
 0x5b1   :  { %3667 = vmatprep.subr.bf16.mxu1 %v7826_v7  ;;  %v7851_v7 = vld [vmem:[%s15364_s2 + $0x2b0] ss:$8 sps:$4 sm:$0xff]  }
 0x5b2   :  { %3281 = vmatmul.mubr.bf16.gmra.mxu1 %v11510_v51  ;;  %v11711_v51 = vpop.f32.mrf.mxu0 }
 0x5b4   :  { %v11719_v48 = vpop.f32.mrf.mxu0  ;;  %3668 = vmatpush1.bf16.msra.mxu1 %v7824_v12 }
 0x5b5   :  { %3669 = vmatprep.subr.bf16.mxu1 %v7829_v41 }
 0x5b6   :  { %v11727_v9 = vpop.f32.mrf.mxu0 }
 0x5b8   :  { %v11735_v43 = vpop.f32.mrf.mxu0  ;;  %3670 = vmatpush1.bf16.msra.mxu1 %v7827_v29  ;;  %v7856_v29 = vld [vmem:[%s15364_s2 + $0x2a4] ss:$8 sps:$4 sm:$0xff]  }
 0x5b9   :  { %3671 = vmatprep.subr.bf16.mxu1 %v7832_v62 }
 0x5ba   :  { %v11746_v55 = vpop.f32.mrf.mxu0 }
 0x5bc   :  { %3672 = vmatpush1.bf16.msra.mxu1 %v7830_v13  ;;  %v11754_v45 = vpop.f32.mrf.mxu0  ;;  %v7854_v13 = vld [vmem:[%s15364_s2 + $0x2a0] ss:$8 sps:$4 sm:$0xff]  }
 0x5bd   :  { %3673 = vmatprep.subr.bf16.mxu1 %v7835_v2 }
 0x5be   :  { %v11759_v19 = vpop.f32.mrf.mxu0 }
 0x5c0   :  { %3674 = vmatpush1.bf16.msra.mxu1 %v7833_v18  ;;  %v11767_v63 = vpop.f32.mrf.mxu0  ;;  %v7859_v18 = vld [vmem:[%s15364_s2 + $0x294] ss:$8 sps:$4 sm:$0xff]  }
 0x5c1   :  { %3675 = vmatprep.subr.bf16.mxu1 %v7838_v10 }
 0x5c2   :  { %v11775_v17 = vpop.f32.mrf.mxu0 }
 0x5c4   :  { %3676 = vmatpush1.bf16.msra.mxu1 %v7836_v60  ;;  %v11783_v61 = vpop.f32.mrf.mxu0  ;;  %v7857_v60 = vld [vmem:[%s15364_s2 + $0x290] ss:$8 sps:$4 sm:$0xff]  }
 0x5c5   :  { %3677 = vmatprep.subr.bf16.mxu1 %v7841_v3 }
 0x5c6   :  { %v11791_v34 = vpop.f32.mrf.mxu0 }
 0x5c8   :  { %3678 = vmatpush2.bf16.msra.mxu1 %v7839_v38  ;;  %v11799_v12 = vpop.f32.mrf.mxu0  ;;  %v7862_v38 = vld [vmem:[%s15364_s2 + $0x284] ss:$8 sps:$4 sm:$0xff]  }
 0x5c9   :  { %3679 = vmatprep.subr.bf16.mxu1 %v7844_v5 }
 0x5ca   :  { %v11804_v62 = vpop.f32.mrf.mxu0 }
 0x5cc   :  { %3680 = vmatpush2.bf16.msra.mxu1 %v7842_v21  ;;  %v11812_v10 = vpop.f32.mrf.mxu0  ;;  %v7860_v21 = vld [vmem:[%s15364_s2 + $0x280] ss:$8 sps:$4 sm:$0xff]  }
 0x5cd   :  { %3681 = vmatprep.subr.bf16.mxu1 %v7847_v30 }
 0x5ce   :  { %v11820_v5 = vpop.f32.mrf.mxu0 }
 0x5d0   :  { %3682 = vmatpush2.bf16.msra.mxu1 %v7845_v0  ;;  %v11826_v0 = vpop.f32.mrf.mxu0 }
 0x5d1   :  { %3683 = vmatprep.subr.bf16.mxu1 %v7850_v15 }
 0x5d4   :  { %3684 = vmatpush2.bf16.msra.mxu1 %v7848_v25  ;;  %v11828_v25 = vpop.f32.mrf.mxu0 }
 0x5d5   :  { %3685 = vmatprep.subr.bf16.mxu1 %v7853_v36 }
 0x5d8   :  { %3686 = vmatpush2.bf16.msra.mxu1 %v7851_v7  ;;  %v11830_v7 = vpop.f32.mrf.mxu0 }
 0x5d9   :  { %3687 = vmatprep.subr.bf16.mxu1 %v7856_v29 }
 0x5da   :  { %v2768_v40 = vpop.f32.mrf.mxu1 }
 0x5dc   :  { %v2770_v47 = vpop.f32.mrf.mxu1  ;;  %3688 = vmatpush2.bf16.msra.mxu1 %v7854_v13  ;;  %v11832_v13 = vpop.f32.mrf.mxu0 }
 0x5dd   :  { %3689 = vmatprep.subr.bf16.mxu1 %v7859_v18  ;;  %v2771_v14 = vadd.f32 %v2770_v47, %v10639_v32 }
 0x5de   :  { %v2772_v49 = vpop.f32.mrf.mxu1 }
 0x5df   :  { %v2844_v35 = vadd.f32 %v11693_v31, %v2771_v14  ;;  %v2773_v46 = vadd.f32 %v2772_v49, %v10629_v24 }
 0x5e0   :  { %v2774_v44 = vpop.f32.mrf.mxu1  ;;  %3690 = vmatpush2.bf16.msra.mxu1 %v7857_v60  ;;  %v11834_v60 = vpop.f32.mrf.mxu0 }
 0x5e1   :  { %3691 = vmatprep.subr.bf16.mxu1 %v7862_v38  ;;  %v2775_v16 = vadd.f32 %v2774_v44, %v10639_v32  ;;  %v2846_v47 = vadd.f32 %v11695_v20, %v2773_v46 }
 0x5e2   :  { %v2778_v41 = vpop.f32.mrf.mxu1  ;;  %v11836_v38 = vpop.f32.mrf.mxu0 }
 0x5e3   :  { %v2779_v27 = vadd.f32 %v2778_v41, %v10629_v24  ;;  %v2848_v14 = vadd.f32 %v11703_v57, %v2775_v16  ;;  %v7093_v49 = vmul.f32 -1.442695, %v2846_v47 }
 0x5e4   :  { %v2780_v2 = vpop.f32.mrf.mxu1  ;;  %3692 = vmatpush2.bf16.msra.mxu1 %v7860_v21  ;;  %v11838_v11 = vpop.f32.mrf.mxu0 }
 0x5e5   :  { %3896 = vmatprep.subr.bf16.mxu1 %v11130_v39  ;;  %v2769_v39 = vadd.f32 %v2768_v40, %v10629_v24  ;;  %v2852_v44 = vadd.f32 %v11711_v51, %v2779_v27  ;;  %v7094_v42 = vmul.f32 -1.442695, %v2848_v14 }
 0x5e6   :  { %v2782_v3 = vpop.f32.mrf.mxu1  ;;  %v11841_v50 = vpop.f32.mrf.mxu0 }
 0x5e7   :  { %v2842_v33 = vadd.f32 %v11690_v52, %v2769_v39  ;;  %v7092_v52 = vmul.f32 -1.442695, %v2844_v35  ;;  %v2783_v35 = vadd.f32 %v2782_v3, %v10629_v24  ;;  %v7095_v16 = vmul.f32 -1.442695, %v2852_v44 }
 0x5e8   :  { %v2784_v30 = vpop.f32.mrf.mxu1  ;;  %v11845_v4 = vpop.f32.mrf.mxu0 }
 0x5e9   :  { %v7091_v6 = vmul.f32 -1.442695, %v2842_v33  ;;  %v2781_v33 = vadd.f32 %v2780_v2, %v10639_v32  ;;  %v2785_v20 = vadd.f32 %v2784_v30, %v10639_v32  ;;  %v2856_v57 = vadd.f32 %v11727_v9, %v2783_v35 }
 0x5ea   :  { %v2788_v15 = vpop.f32.mrf.mxu1  ;;  %v11850_v1 = vpop.f32.mrf.mxu0 }
 0x5eb   :  { %8119 = vpow2.f32 %v7091_v6  ;;  %v2854_v46 = vadd.f32 %v11719_v48, %v2781_v33  ;;  %v2789_v2 = vadd.f32 %v2788_v15, %v10629_v24  ;;  %v2858_v48 = vadd.f32 %v11735_v43, %v2785_v20 }
 0x5ec   :  { %v2790_v36 = vpop.f32.mrf.mxu1  ;;  %v11856_v39 = vpop.f32.mrf.mxu0  ;;  %8121 = vpow2.f32 %v7092_v52  ;;  %v7097_v14 = vmul.f32 -1.442695, %v2856_v57 }
 0x5ed   :  { %8123 = vpow2.f32 %v7093_v49  ;;  %v2791_v52 = vadd.f32 %v2790_v36, %v10639_v32  ;;  %v7096_v3 = vmul.f32 -1.442695, %v2854_v46  ;;  %v2862_v33 = vadd.f32 %v11746_v55, %v2789_v2 }
 0x5ee   :  { %v2792_v29 = vpop.f32.mrf.mxu1  ;;  %v11864_v31 = vpop.f32.mrf.mxu0  ;;  %8125 = vpow2.f32 %v7094_v42  ;;  %v7098_v42 = vmul.f32 -1.442695, %v2858_v48 }
 0x5ef   :  { %v2793_v30 = vadd.f32 %v2792_v29, %v10629_v24  ;;  %8127 = vpow2.f32 %v7095_v16  ;;  %v2864_v15 = vadd.f32 %v11754_v45, %v2791_v52 }
 0x5f0   :  { %v2794_v18 = vpop.f32.mrf.mxu1  ;;  %v11872_v41 = vpop.f32.mrf.mxu0  ;;  %8129 = vpow2.f32 %v7096_v3 }
 0x5f1   :  { %v2795_v9 = vadd.f32 %v2794_v18, %v10639_v32  ;;  %v2866_v43 = vadd.f32 %v11759_v19, %v2793_v30  ;;  %8131 = vpow2.f32 %v7097_v14  ;;  %v7099_v18 = vmul.f32 -1.442695, %v2862_v33 }
 0x5f2   :  { %v2798_v56 = vpop.f32.mrf.mxu1  ;;  %v11879_v51 = vpop.f32.mrf.mxu0  ;;  %v7100_v20 = vmul.f32 -1.442695, %v2864_v15  ;;  %8133 = vpow2.f32 %v7098_v42 }
 0x5f3   :  { %v2799_v36 = vadd.f32 %v2798_v56, %v10629_v24  ;;  %v2868_v45 = vadd.f32 %v11767_v63, %v2795_v9  ;;  %v7101_v19 = vmul.f32 -1.442695, %v2866_v43 }
 0x5f4   :  { %v2800_v21 = vpop.f32.mrf.mxu1  ;;  %v11889_v44 = vpop.f32.mrf.mxu0 }
 0x5f5   :  { %v2801_v29 = vadd.f32 %v2800_v21, %v10639_v32  ;;  %v2872_v56 = vadd.f32 %v11775_v17, %v2799_v36  ;;  %v7102_v3 = vmul.f32 -1.442695, %v2868_v45 }
 0x5f6   :  { %v2802_v37 = vpop.f32.mrf.mxu1  ;;  %v11899_v2 = vpop.f32.mrf.mxu0 }
 0x5f7   :  { %v2803_v46 = vadd.f32 %v2802_v37, %v10629_v24  ;;  %v2874_v21 = vadd.f32 %v11783_v61, %v2801_v29 }
 0x5f8   :  { %v2804_v8 = vpop.f32.mrf.mxu1  ;;  %v8120_v47 = vpop.eup %8119 }
 0x5f9   :  { %v3074_v35 = vadd.f32 1.0, %v8120_v47  ;;  %v8122_v55 = vpop.eup %8121  ;;  %v2805_v16 = vadd.f32 %v2804_v8, %v10639_v32  ;;  %v2876_v52 = vadd.f32 %v11791_v34, %v2803_v46  ;;  %v7103_v8 = vmul.f32 -1.442695, %v2872_v56  ;;  %v11910_v61 = vpop.f32.mrf.mxu0 }
 0x5fa   :  { %v3075_v37 = vadd.f32 1.0, %v8122_v55  ;;  %v8124_v17 = vpop.eup %8123  ;;  %v7104_v14 = vmul.f32 -1.442695, %v2874_v21 }
 0x5fb   :  { %8135 = vrcp.f32 %v3074_v35  ;;  %v2878_v48 = vadd.f32 %v11799_v12, %v2805_v16  ;;  %v8126_v34 = vpop.eup %8125  ;;  %v7105_v33 = vmul.f32 -1.442695, %v2876_v52  ;;  %v3076_v15 = vadd.f32 1.0, %v8124_v17  ;;  %v11918_v29 = vpop.f32.mrf.mxu0 }
 0x5fc   :  { %8137 = vpow2.f32 %v7099_v18  ;;  %v8128_v12 = vpop.eup %8127  ;;  %v3077_v35 = vadd.f32 1.0, %v8126_v34 }
 0x5fd   :  { %8139 = vpow2.f32 %v7100_v20  ;;  %v7106_v36 = vmul.f32 -1.442695, %v2878_v48  ;;  %v8130_v46 = vpop.eup %8129  ;;  %v3078_v18 = vadd.f32 1.0, %v8128_v12  ;;  %v11924_v56 = vpop.f32.mrf.mxu0 }
 0x5fe   :  { %8141 = vpow2.f32 %v7101_v19  ;;  %v8132_v45 = vpop.eup %8131  ;;  %v3079_v16 = vadd.f32 1.0, %v8130_v46 }
 0x5ff   :  { %8143 = vrcp.f32 %v3075_v37  ;;  %v8134_v19 = vpop.eup %8133  ;;  %v3080_v52 = vadd.f32 1.0, %v8132_v45 }
 0x600   :  { %8145 = vpow2.f32 %v7102_v3  ;;  %v3081_v48 = vadd.f32 1.0, %v8134_v19 }
 0x601   :  { %8147 = vpow2.f32 %v7103_v8  ;;  %v11931_v8 = vpop.f32.mrf.mxu0 }
 0x602   :  { %8149 = vpow2.f32 %v7104_v14 }
 0x603   :  { %8151 = vpow2.f32 %v7105_v33 }
 0x604   :  { %8153 = vrcp.f32 %v3076_v15 }
 0x605   :  { %8155 = vpow2.f32 %v7106_v36  ;;  %v11938_v36 = vpop.f32.mrf.mxu0 }
 0x606   :  { %8157 = vrcp.f32 %v3077_v35 }
 0x608   :  { %v11929_v37 = vpop.eup %8135 }
 0x61a   :  { %v11847_v58 = vpop.f32.mrf.mxu1 }
 0x61b   :  { %v2915_v63 = vadd.f32 %v11847_v58, %v10695_v22 }
 0x61c   :  { %v11853_v40 = vpop.f32.mrf.mxu1 }
 0x61d   :  { %v2917_v30 = vadd.f32 %v11853_v40, %v10703_v26  ;;  %v2988_v58 = vadd.f32 %v11804_v62, %v2915_v63  ;;  %v8138_v63 = vpop.eup %8137 }
 0x61e   :  { %v11860_v28 = vpop.f32.mrf.mxu1  ;;  %v8140_v17 = vpop.eup %8139 }
 0x61f   :  { %v2919_v9 = vadd.f32 %v11860_v28, %v10695_v22  ;;  %v2990_v40 = vadd.f32 %v11812_v10, %v2917_v30  ;;  %v7107_v62 = vmul.f32 -1.442695, %v2988_v58  ;;  %v8142_v30 = vpop.eup %8141 }
 0x620   :  { %v11868_v6 = vpop.f32.mrf.mxu1  ;;  %v11934_v34 = vpop.eup %8143 }
 0x621   :  { %v2921_v42 = vadd.f32 %v11868_v6, %v10703_v26  ;;  %v2992_v28 = vadd.f32 %v11820_v5, %v2919_v9  ;;  %v7108_v10 = vmul.f32 -1.442695, %v2990_v40  ;;  %8159 = vpow2.f32 %v7107_v62  ;;  %v8146_v58 = vpop.eup %8145 }
 0x622   :  { %v11877_v27 = vpop.f32.mrf.mxu1  ;;  %8161 = vrcp.f32 %v3078_v18  ;;  %v3083_v9 = vadd.f32 1.0, %v8140_v17  ;;  %v8148_v12 = vpop.eup %8147  ;;  %v3084_v40 = vadd.f32 1.0, %v8142_v30  ;;  %v3085_v62 = vadd.f32 1.0, %v8146_v58 }
 0x623   :  { %v2925_v55 = vadd.f32 %v11877_v27, %v10695_v22  ;;  %v2994_v6 = vadd.f32 %v11826_v0, %v2921_v42  ;;  %v7109_v21 = vmul.f32 -1.442695, %v2992_v28  ;;  %8163 = vpow2.f32 %v7108_v10 }
 0x624   :  { %v11887_v49 = vpop.f32.mrf.mxu1  ;;  %8165 = vrcp.f32 %v3079_v16  ;;  %v3086_v18 = vadd.f32 1.0, %v8148_v12 }
 0x625   :  { %v2998_v5 = vadd.f32 %v11828_v25, %v2925_v55  ;;  %v2927_v27 = vadd.f32 %v11887_v49, %v10703_v26  ;;  %v7110_v0 = vmul.f32 -1.442695, %v2994_v6  ;;  %8167 = vpow2.f32 %v7109_v21  ;;  %v11946_v6 = vpop.f32.mrf.mxu0 }
 0x626   :  { %v11897_v57 = vpop.f32.mrf.mxu1  ;;  %8169 = vrcp.f32 %v3080_v52  ;;  %v3082_v49 = vadd.f32 1.0, %v8138_v63 }
 0x627   :  { %v7111_v14 = vmul.f32 -1.442695, %v2998_v5  ;;  %v3000_v25 = vadd.f32 %v11830_v7, %v2927_v27  ;;  %v2929_v33 = vadd.f32 %v11897_v57, %v10695_v22  ;;  %8171 = vpow2.f32 %v7110_v0  ;;  %v8150_v7 = vpop.eup %8149 }
 0x628   :  { %v11908_v47 = vpop.f32.mrf.mxu1  ;;  %8173 = vrcp.f32 %v3081_v48  ;;  %v8152_v46 = vpop.eup %8151 }
 0x629   :  { %v2931_v42 = vadd.f32 %v11908_v47, %v10703_v26  ;;  %8175 = vpow2.f32 %v7111_v14  ;;  %v7112_v35 = vmul.f32 -1.442695, %v3000_v25  ;;  %v3002_v57 = vadd.f32 %v11832_v13, %v2929_v33  ;;  %v11944_v55 = vpop.eup %8153 }
 0x62a   :  { %v2934_v43 = vpop.f32.mrf.mxu1  ;;  %8177 = vrcp.f32 %v3082_v49  ;;  %v8156_v10 = vpop.eup %8155  ;;  %v3087_v47 = vadd.f32 1.0, %v8150_v7  ;;  %v3088_v5 = vadd.f32 1.0, %v8152_v46 }
 0x62b   :  { %v2935_v28 = vadd.f32 %v2934_v43, %v10695_v22  ;;  %8179 = vrcp.f32 %v3083_v9  ;;  %v3004_v16 = vadd.f32 %v11834_v60, %v2931_v42  ;;  %v11950_v21 = vpop.eup %8157  ;;  %v7113_v43 = vmul.f32 -1.442695, %v3002_v57  ;;  %v11956_v60 = vpop.f32.mrf.mxu0 }
 0x62c   :  { %v2936_v20 = vpop.f32.mrf.mxu1  ;;  %8181 = vrcp.f32 %v3084_v40  ;;  %v3089_v0 = vadd.f32 1.0, %v8156_v10 }
 0x62d   :  { %v2937_v19 = vadd.f32 %v2936_v20, %v10703_v26  ;;  %8183 = vpow2.f32 %v7112_v35  ;;  %v3008_v27 = vadd.f32 %v11836_v38, %v2935_v28  ;;  %v7114_v20 = vmul.f32 -1.442695, %v3004_v16 }
 0x62e   :  { %v2938_v3 = vpop.f32.mrf.mxu1  ;;  %v8160_v13 = vpop.eup %8159  ;;  %8185 = vrcp.f32 %v3085_v62 }
 0x62f   :  { %v2939_v52 = vadd.f32 %v2938_v3, %v10695_v22  ;;  %v11954_v63 = vpop.eup %8161  ;;  %8187 = vrcp.f32 %v3086_v18  ;;  %v3010_v30 = vadd.f32 %v11838_v11, %v2937_v19  ;;  %v3170_v38 = vadd.f32 1.0, %v8160_v13  ;;  %v11966_v11 = vpop.f32.mrf.mxu0 }
 0x630   :  { %v2940_v15 = vpop.f32.mrf.mxu1  ;;  %v8164_v48 = vpop.eup %8163  ;;  %8189 = vrcp.f32 %v3087_v47  ;;  %v7115_v3 = vmul.f32 -1.442695, %v3008_v27 }
 0x631   :  { %v2941_v14 = vadd.f32 %v2940_v15, %v10703_v26  ;;  %v11960_v25 = vpop.eup %8165  ;;  %8191 = vrcp.f32 %v3088_v5  ;;  %v3012_v33 = vadd.f32 %v11841_v50, %v2939_v52  ;;  %v3171_v12 = vadd.f32 1.0, %v8164_v48  ;;  %v11979_v16 = vpop.f32.mrf.mxu0 }
 0x632   :  { %v2944_v45 = vpop.f32.mrf.mxu1  ;;  %v8168_v49 = vpop.eup %8167  ;;  %8193 = vpow2.f32 %v7113_v43  ;;  %v7116_v15 = vmul.f32 -1.442695, %v3010_v30 }
 0x633   :  { %v2945_v58 = vadd.f32 %v2944_v45, %v10695_v22  ;;  %v11964_v9 = vpop.eup %8169  ;;  %8195 = vrcp.f32 %v3089_v0  ;;  %v3014_v7 = vadd.f32 %v11845_v4, %v2941_v14  ;;  %v3172_v46 = vadd.f32 1.0, %v8168_v49  ;;  %v11997_v49 = vpop.f32.mrf.mxu0 }
 0x634   :  { %v2946_v17 = vpop.f32.mrf.mxu1  ;;  %v8172_v42 = vpop.eup %8171  ;;  %8197 = vpow2.f32 %v7114_v20  ;;  %v7117_v50 = vmul.f32 -1.442695, %v3012_v33  ;;  %v3326_v4 = vadd.f32 %v11879_v51, %v10774_v23  ;;  %v3330_v20 = vadd.f32 %v11899_v2, %v10774_v23 }
 0x635   :  { %v11969_v35 = vpop.eup %8173  ;;  %8199 = vrcp.f32 %v3170_v38  ;;  %v3018_v57 = vadd.f32 %v11850_v1, %v2945_v58  ;;  %v3173_v18 = vadd.f32 1.0, %v8172_v42  ;;  %v2947_v45 = vadd.f32 %v2946_v17, %v10703_v26 }
 0x636   :  { %v2948_v40 = vpop.f32.mrf.mxu1  ;;  %v8176_v62 = vpop.eup %8175  ;;  %8201 = vpow2.f32 %v7115_v3  ;;  %v7118_v19 = vmul.f32 -1.442695, %v3014_v7  ;;  %v3328_v1 = vadd.f32 %v11889_v44, %v10784_v53  ;;  %v3364_v51 = vmul.f32 %v11929_v37, %v3326_v4 }
 0x637   :  { %v11972_v28 = vpop.eup %8177  ;;  %8203 = vrcp.f32 %v3171_v12  ;;  %v3174_v13 = vadd.f32 1.0, %v8176_v62  ;;  %v2949_v43 = vadd.f32 %v2948_v40, %v10695_v22  ;;  %v7119_v0 = vmul.f32 -1.442695, %v3018_v57 }
 0x638   :  { %v2950_v10 = vpop.f32.mrf.mxu1  ;;  %v11975_v47 = vpop.eup %8179  ;;  %8205 = vpow2.f32 %v7116_v15  ;;  %v3332_v44 = vadd.f32 %v11910_v61, %v10784_v53  ;;  %v3020_v30 = vadd.f32 %v11856_v39, %v2947_v45  ;;  %v3365_v33 = vmul.f32 %v11934_v34, %v3328_v1 }
 0x639   :  { %v11981_v5 = vpop.eup %8181  ;;  %8207 = vrcp.f32 %v3172_v46  ;;  %v3022_v61 = vadd.f32 %v11864_v31, %v2949_v43  ;;  %v2951_v12 = vadd.f32 %v2950_v10, %v10703_v26  ;;  %v3366_v7 = vmul.f32 %v11944_v55, %v3330_v20 }
 0x63a   :  { %v8184_v52 = vpop.eup %8183  ;;  %8209 = vpow2.f32 %v7117_v50  ;;  %v3336_v34 = vadd.f32 %v11918_v29, %v10774_v23  ;;  %v3338_v62 = vadd.f32 %v11924_v56, %v10784_v53  ;;  %v7120_v50 = vmul.f32 -1.442695, %v3020_v30 }
 0x63b   :  { %v11988_v48 = vpop.eup %8185  ;;  %8211 = vrcp.f32 %v3173_v18  ;;  %v3175_v2 = vadd.f32 1.0, %v8184_v52  ;;  %v3357_v18 = vpop.f32.mrf.mxu0  ;;  %v3367_v4 = vmul.f32 %v11950_v21, %v3332_v44  ;;  %v3024_v29 = vadd.f32 %v11872_v41, %v2951_v12 }
 0x63c   :  { %v11995_v38 = vpop.eup %8187  ;;  %8213 = vpow2.f32 %v7118_v19  ;;  %v7121_v19 = vmul.f32 -1.442695, %v3022_v61  ;;  %v3368_v56 = vmul.f32 %v11954_v63, %v3336_v34  ;;  %v3342_v21 = vadd.f32 %v11938_v36, %v10784_v53 }
 0x63d   :  { %v12001_v58 = vpop.eup %8189  ;;  %8215 = vrcp.f32 %v3174_v13  ;;  %v3359_v20 = vpop.f32.mrf.mxu0  ;;  %v3369_v30 = vmul.f32 %v11960_v25, %v3338_v62  ;;  %v7122_v36 = vmul.f32 -1.442695, %v3024_v29  ;;  %v3350_v25 = vadd.f32 %v11966_v11, %v10774_v23 }
 0x63e   :  { %v12005_v40 = vpop.eup %8191  ;;  %8217 = vpow2.f32 %v7119_v0  ;;  %v3371_v62 = vmul.f32 %v11969_v35, %v3342_v21  ;;  %v3358_v29 = vadd.f32 %v3357_v18, %v10784_v53  ;;  %v3360_v35 = vadd.f32 %v3359_v20, %v10774_v23 }
 0x63f   :  { %v8194_v46 = vpop.eup %8193  ;;  %v3374_v21 = vmul.f32 %v11981_v5, %v3350_v25  ;;  %v15454_v5 = vld [vmem:[#allocation5_spill] sm:$0xff] }
 0x640   :  { %v12013_v57 = vpop.eup %8195  ;;  %v3176_v43 = vadd.f32 1.0, %v8194_v46 }
 0x641   :  { %v8198_v55 = vpop.eup %8197 }
 0x642   :  { %v12019_v13 = vpop.eup %8199 }
 0x643   :  { %v8202_v0 = vpop.eup %8201 }
 0x644   :  { %v12026_v41 = vpop.eup %8203  ;;  %v3178_v11 = vadd.f32 1.0, %v8202_v0 }
 0x65a   :  { %v3252_v27 = vpop.f32.mrf.mxu1 }
 0x65b   :  { %v3253_v17 = vadd.f32 %v3252_v27, %v10795_v59 }
 0x65c   :  { %v3254_v14 = vpop.f32.mrf.mxu1 }
 0x65d   :  { %v3380_v3 = vadd.f32 %v3364_v51, %v3253_v17  ;;  %v3255_v37 = vadd.f32 %v3254_v14, %v10807_v54  ;;  %v3340_v17 = vadd.f32 %v11931_v8, %v10774_v23  ;;  %v8206_v14 = vpop.eup %8205  ;;  %v3348_v8 = vadd.f32 %v11956_v60, %v10784_v53 }
 0x65e   :  { %v3256_v39 = vpop.f32.mrf.mxu1 }
 0x65f   :  { %v3381_v42 = vadd.f32 %v3365_v33, %v3255_v37  ;;  %v3257_v15 = vadd.f32 %v3256_v39, %v10795_v59  ;;  %8219 = vtanh.f32 %v3380_v3  ;;  %v3346_v3 = vadd.f32 %v11946_v6, %v10774_v23  ;;  %v12034_v33 = vpop.eup %8207 }
 0x660   :  { %v3258_v31 = vpop.f32.mrf.mxu1  ;;  %v3370_v12 = vmul.f32 %v11964_v9, %v3340_v17  ;;  %v8210_v39 = vpop.eup %8209  ;;  %v3352_v6 = vadd.f32 %v11979_v16, %v10784_v53 }
 0x661   :  { %8221 = vtanh.f32 %v3381_v42  ;;  %v3382_v45 = vadd.f32 %v3366_v7, %v3257_v15  ;;  %v3259_v10 = vadd.f32 %v3258_v31, %v10807_v54  ;;  %v3177_v42 = vadd.f32 1.0, %v8198_v55  ;;  %v12042_v15 = vpop.eup %8211  ;;  %v3361_v7 = vpop.f32.mrf.mxu0 }
 0x662   :  { %8223 = vrcp.f32 %v3175_v2  ;;  %v3262_v1 = vpop.f32.mrf.mxu1  ;;  %v8214_v9 = vpop.eup %8213  ;;  %v3372_v16 = vmul.f32 %v11972_v28, %v3346_v3  ;;  %v3180_v0 = vadd.f32 1.0, %v8210_v39  ;;  %v3375_v18 = vmul.f32 %v11988_v48, %v3352_v6  ;;  %v15452_v3 = vld [vmem:[#allocation8_spill] sm:$0xff] }
 0x663   :  { %8225 = vtanh.f32 %v3382_v45  ;;  %v3383_v27 = vadd.f32 %v3367_v4, %v3259_v10  ;;  %v3263_v52 = vadd.f32 %v3262_v1, %v10795_v59  ;;  %v12049_v45 = vpop.eup %8215  ;;  %v3179_v10 = vadd.f32 1.0, %v8206_v14 }
 0x664   :  { %8227 = vpow2.f32 %v7120_v50  ;;  %v3264_v51 = vpop.f32.mrf.mxu1  ;;  %v3356_v50 = vadd.f32 %v11997_v49, %v10774_v23  ;;  %v3362_v1 = vadd.f32 %v3361_v7, %v10784_v53  ;;  %v3181_v14 = vadd.f32 1.0, %v8214_v9 }
 0x665   :  { %8229 = vtanh.f32 %v3383_v27  ;;  %v3384_v63 = vadd.f32 %v3368_v56, %v3263_v52  ;;  %v3265_v44 = vadd.f32 %v3264_v51, %v10807_v54  ;;  %v3373_v27 = vmul.f32 %v11975_v47, %v3348_v8 }
 0x666   :  { %8231 = vpow2.f32 %v7121_v19  ;;  %v3266_v37 = vpop.f32.mrf.mxu1  ;;  %v8218_v19 = vpop.eup %8217  ;;  %v3378_v6 = vmul.f32 %v12005_v40, %v3360_v35 }
 0x667   :  { %8233 = vrcp.f32 %v3176_v43  ;;  %v3385_v2 = vadd.f32 %v3369_v30, %v3265_v44  ;;  %v3267_v61 = vadd.f32 %v3266_v37, %v10795_v59  ;;  %v3376_v44 = vmul.f32 %v11995_v38, %v3356_v50 }
 0x668   :  { %8235 = vtanh.f32 %v3384_v63  ;;  %v3268_v60 = vpop.f32.mrf.mxu1  ;;  %v3182_v40 = vadd.f32 1.0, %v8218_v19 }
 0x669   :  { %8237 = vtanh.f32 %v3385_v2  ;;  %v3386_v46 = vadd.f32 %v3370_v12, %v3267_v61  ;;  %v3269_v34 = vadd.f32 %v3268_v60, %v10807_v54  ;;  %v3377_v12 = vmul.f32 %v12001_v58, %v3358_v29 }
 0x66a   :  { %8239 = vpow2.f32 %v7122_v36  ;;  %v3272_v31 = vpop.f32.mrf.mxu1  ;;  %v15453_v36 = vld [vmem:[#allocation6_spill] sm:$0xff] }
 0x66b   :  { %8241 = vtanh.f32 %v3386_v46  ;;  %v3387_v4 = vadd.f32 %v3371_v62, %v3269_v34  ;;  %v3273_v55 = vadd.f32 %v3272_v31, %v10795_v59  ;;  %v15455_v34 = vld [vmem:[#allocation7_spill] sm:$0xff]  ;;  %v3379_v31 = vmul.f32 %v12013_v57, %v3362_v1 }
 0x66c   :  { %8243 = vrcp.f32 %v3177_v42  ;;  %v3274_v49 = vpop.f32.mrf.mxu1  ;;  %v8220_v56 = vpop.eup %8219 }
 0x66d   :  { %8245 = vtanh.f32 %v3387_v4  ;;  %v3388_v43 = vadd.f32 %v3372_v16, %v3273_v55  ;;  %v3275_v28 = vadd.f32 %v3274_v49, %v10807_v54  ;;  %v3412_v47 = vsub.f32 %v15452_v3, %v8220_v56  ;;  %v15462_v3 = vld [vmem:[#allocation9_spill] sm:$0xff] }
 0x66e   :  { %v8222_v52 = vpop.eup %8221  ;;  %8247 = vrcp.f32 %v3178_v11  ;;  %v3276_v17 = vpop.f32.mrf.mxu1 }
 0x66f   :  { %v12059_v51 = vpop.eup %8223  ;;  %8249 = vrcp.f32 %v3179_v10  ;;  %v3389_v20 = vadd.f32 %v3373_v27, %v3275_v28  ;;  %v3277_v63 = vadd.f32 %v3276_v17, %v10795_v59  ;;  %v3413_v37 = vsub.f32 %v15453_v36, %v8222_v52 }
 0x670   :  { %v8226_v30 = vpop.eup %8225  ;;  %8251 = vtanh.f32 %v3388_v43  ;;  %v3278_v8 = vpop.f32.mrf.mxu1  ;;  %v3428_v58 = vmul.f32 %v12019_v13, %v3412_v47 }
 0x671   :  { %v8228_v2 = vpop.eup %8227  ;;  %v3414_v61 = vsub.f32 %v15454_v5, %v8226_v30  ;;  %8253 = vtanh.f32 %v3389_v20  ;;  %v3390_v48 = vadd.f32 %v3374_v21, %v3277_v63  ;;  %v3279_v25 = vadd.f32 %v3278_v8, %v10807_v54  ;;  %v15461_v21 = vld [vmem:[#allocation12_spill] sm:$0xff] }
 0x672   :  { %v8230_v39 = vpop.eup %8229  ;;  %8255 = vrcp.f32 %v3180_v0  ;;  %v3282_v38 = vpop.f32.mrf.mxu1  ;;  %v3429_v42 = vmul.f32 %v12026_v41, %v3413_v37  ;;  %v3183_v55 = vadd.f32 1.0, %v8228_v2  ;;  %v12084_v1 = vadd.f32 %v8220_v56, %v3428_v58  ;;  %v15460_v0 = vld [vmem:[#allocation10_spill] sm:$0xff]  ;;  %v15463_v37 = vld [vmem:[#allocation11_spill] sm:$0xff] }
 0x673   :  { %v8232_v60 = vpop.eup %8231  ;;  %v3430_v7 = vmul.f32 %v12034_v33, %v3414_v61  ;;  %8257 = vtanh.f32 %v3390_v48  ;;  %v3283_v46 = vadd.f32 %v3282_v38, %v10795_v59  ;;  %v3415_v62 = vsub.f32 %v15455_v34, %v8230_v39 }
 0x674   :  { %v8234_v9 = vpop.eup %8233  ;;  %8259 = vrcp.f32 %v3181_v14  ;;  %v3391_v50 = vadd.f32 %v3375_v18, %v3279_v25  ;;  %v3284_v11 = vpop.f32.mrf.mxu1  ;;  %v3184_v29 = vadd.f32 1.0, %v8232_v60  ;;  %v12080_v27 = vadd.f32 %v8222_v52, %v3429_v42  ;;  %15459 = vst [vmem:[#allocation7_spill] sm:$0xff] %v12084_v1  ;;  %v8970_v25 = vld [vmem:[%s15365_s3 + $0x2e0] ss:$16 sps:$4 sm:$0xff]  }
 0x675   :  { %v8236_v16 = vpop.eup %8235  ;;  %v3392_v10 = vadd.f32 %v3376_v44, %v3283_v46  ;;  %v3285_v41 = vadd.f32 %v3284_v11, %v10807_v54  ;;  %v3431_v33 = vmul.f32 %v12042_v15, %v3415_v62  ;;  %v12077_v35 = vadd.f32 %v8226_v30, %v3430_v7  ;;  %v15468_v62 = vld [vmem:[#allocation14_spill] sm:$0xff] }
 0x676   :  { %v8238_v4 = vpop.eup %8237  ;;  %8261 = vtanh.f32 %v3391_v50  ;;  %v3286_v49 = vpop.f32.mrf.mxu1  ;;  %15457 = vst [vmem:[#allocation6_spill] sm:$0xff] %v12080_v27  ;;  %v3416_v18 = vsub.f32 %v15461_v21, %v8236_v16  ;;  %v8972_v50 = vld [vmem:[%s15365_s3 + $0x2c0] ss:$16 sps:$4 sm:$0xff]  }
 0x677   :  { %15456 = vst [vmem:[#allocation8_spill] sm:$0xff] %v12077_v35  ;;  %v8240_v43 = vpop.eup %8239  ;;  %v3393_v13 = vadd.f32 %v3377_v12, %v3285_v41  ;;  %v3287_v28 = vadd.f32 %v3286_v49, %v10795_v59  ;;  %v12082_v57 = vadd.f32 %v8230_v39, %v3431_v33  ;;  %8263 = vtanh.f32 %v3392_v10  ;;  %v15470_v10 = vld [vmem:[#allocation13_spill] sm:$0xff] }
 0x678   :  { %v8242_v19 = vpop.eup %8241  ;;  %v3288_v15 = vpop.f32.mrf.mxu1  ;;  %v3417_v17 = vsub.f32 %v15460_v0, %v8238_v4  ;;  %v3185_v14 = vadd.f32 1.0, %v8240_v43  ;;  %v12095_v56 = vpack.c.bf16 %v12077_v35, %v12084_v1  ;;  %v3432_v48 = vmul.f32 %v12049_v45, %v3416_v18  ;;  %v8975_v0 = vld [vmem:[%s15365_s3 + $0x284] ss:$16 sps:$4 sm:$0xff]  }
 0x679   :  { %15458 = vst [vmem:[#allocation5_spill] sm:$0xff] %v12082_v57  ;;  %v8244_v20 = vpop.eup %8243  ;;  %8265 = vtanh.f32 %v3393_v13  ;;  %v3394_v63 = vadd.f32 %v3378_v6, %v3287_v28  ;;  %v3289_v44 = vadd.f32 %v3288_v15, %v10807_v54  ;;  %v12091_v52 = vpack.c.bf16 %v12082_v57, %v12080_v27  ;;  %v8974_v28 = vld [vmem:[%s15365_s3 + $0x2a0] ss:$16 sps:$4 sm:$0xff]  }
 0x67a   :  { %v8246_v30 = vpop.eup %8245  ;;  %8267 = vrcp.f32 %v3183_v55  ;;  %v3418_v47 = vsub.f32 %v15462_v3, %v8242_v19  ;;  %v3433_v5 = vmul.f32 %v12059_v51, %v3417_v17  ;;  %v8971_v51 = vld [vmem:[%s15365_s3 + $0x2c4] ss:$16 sps:$4 sm:$0xff]   ;;  %v12115_v34 = vadd.f32 %v8236_v16, %v3432_v48 }
 0x67b   :  { %v8248_v8 = vpop.eup %8247  ;;  %8269 = vtanh.f32 %v3394_v63  ;;  %v3395_v36 = vadd.f32 %v3379_v31, %v3289_v44  ;;  %3693 = vmatprep.mubr.bf16.mxu1 %v12091_v52  ;;  %v3419_v2 = vsub.f32 %v15463_v37, %v8246_v30  ;;  %v15469_v31 = vld [vmem:[#allocation16_spill] sm:$0xff]  ;;  %v8973_v16 = vld [vmem:[%s15365_s3 + $0x2a4] ss:$16 sps:$4 sm:$0xff]  }
 0x67c   :  { %v8250_v61 = vpop.eup %8249  ;;  %8271 = vrcp.f32 %v3184_v29  ;;  %3694 = vmatmul.mubr.bf16.vlgmr.msra.gmra.mxu1 %v12095_v56  ;;  %v3434_v12 = vmul.f32 %v8234_v9, %v3418_v47  ;;  %v12111_v45 = vadd.f32 %v8238_v4, %v3433_v5  ;;  %15467 = vst [vmem:[#allocation11_spill] sm:$0xff] %v12115_v34  ;;  %v15471_v29 = vld [vmem:[#allocation15_spill] sm:$0xff] }
 0x67d   :  { %v8252_v39 = vpop.eup %8251  ;;  %8273 = vtanh.f32 %v3395_v36  ;;  %3897 = vmatpush1.bf16.msra.mxu1 %v8970_v25  ;;  %v3435_v38 = vmul.f32 %v8244_v20, %v3419_v2  ;;  %v15473_v20 = vld [vmem:[#allocation18_spill] sm:$0xff]  ;;  %v8976_v47 = vld [vmem:[%s15365_s3 + $0x280] ss:$16 sps:$4 sm:$0xff]   ;;  %v15477_v36 = vld [vmem:[#allocation20_spill] sm:$0xff] }
 0x67e   :  { %v8254_v6 = vpop.eup %8253  ;;  %8275 = vrcp.f32 %v3182_v40  ;;  %3898 = vmatprep.subr.bf16.mxu1 %v8971_v51  ;;  %v12109_v42 = vadd.f32 %v8242_v19, %v3434_v12  ;;  %15465 = vst [vmem:[#allocation12_spill] sm:$0xff] %v12111_v45  ;;  %v3420_v40 = vsub.f32 %v15469_v31, %v8252_v39  ;;  %v15478_v2 = vld [vmem:[#allocation17_spill] sm:$0xff] }
 0x67f   :  { %v8256_v60 = vpop.eup %8255  ;;  %8277 = vrcp.f32 %v3185_v14  ;;  %v12113_v7 = vadd.f32 %v8246_v30, %v3435_v38  ;;  %v3421_v9 = vsub.f32 %v15468_v62, %v8254_v6  ;;  %v8977_v12 = vld [vmem:[%s15365_s3 + $0x264] ss:$16 sps:$4 sm:$0xff]  }
 0x680   :  { %15464 = vst [vmem:[#allocation10_spill] sm:$0xff] %v12109_v42  ;;  %v8258_v46 = vpop.eup %8257  ;;  %v12132_v33 = vpack.c.bf16 %v12109_v42, %v12115_v34  ;;  %v3436_v19 = vmul.f32 %v8248_v8, %v3420_v40 }
 0x681   :  { %15466 = vst [vmem:[#allocation9_spill] sm:$0xff] %v12113_v7  ;;  %v8260_v58 = vpop.eup %8259  ;;  %3899 = vmatpush1.bf16.msra.mxu1 %v8972_v50  ;;  %v12123_v11 = vpack.c.bf16 %v12113_v7, %v12111_v45  ;;  %v3422_v41 = vsub.f32 %v15470_v10, %v8258_v46  ;;  %v3437_v43 = vmul.f32 %v8250_v61, %v3421_v9  ;;  %v8979_v50 = vld [vmem:[%s15365_s3 + $0x244] ss:$16 sps:$4 sm:$0xff]  }
 0x682   :  { %3900 = vmatprep.subr.bf16.mxu1 %v8973_v16  ;;  %v12153_v8 = vadd.f32 %v8252_v39, %v3436_v19  ;;  %v15479_v39 = vld [vmem:[#allocation19_spill] sm:$0xff] }
 0x683   :  { %v8262_v4 = vpop.eup %8261  ;;  %3703 = vmatprep.mubr.bf16.mxu1 %v12123_v11  ;;  %v3438_v55 = vmul.f32 %v8256_v60, %v3422_v41  ;;  %v12146_v30 = vadd.f32 %v8254_v6, %v3437_v43  ;;  %v8983_v43 = vld [vmem:[%s15365_s3 + $0x204] ss:$16 sps:$4 sm:$0xff]   ;;  %v8986_v19 = vld [vmem:[%s15365_s3 + $0x3e0] ss:$16 sps:$4 sm:$0xff]  }
 0x684   :  { %3704 = vmatmul.mubr.bf16.gmra.mxu1 %v12132_v33  ;;  %v3423_v49 = vsub.f32 %v15471_v29, %v8262_v4  ;;  %v8264_v13 = vpop.eup %8263  ;;  %15476 = vst [vmem:[#allocation15_spill] sm:$0xff] %v12153_v8 }
 0x685   :  { %3901 = vmatpush1.bf16.msra.mxu1 %v8974_v28  ;;  %v12143_v18 = vadd.f32 %v8258_v46, %v3438_v55  ;;  %15474 = vst [vmem:[#allocation16_spill] sm:$0xff] %v12146_v30  ;;  %v3424_v37 = vsub.f32 %v15477_v36, %v8264_v13  ;;  %v8981_v55 = vld [vmem:[%s15365_s3 + $0x224] ss:$16 sps:$4 sm:$0xff]   ;;  %v8996_v36 = vld [vmem:[%s15365_s3 + $0x340] ss:$16 sps:$4 sm:$0xff]  }
 0x686   :  { %v8266_v15 = vpop.eup %8265  ;;  %3902 = vmatprep.subr.bf16.mxu1 %v8975_v0  ;;  %v3439_v17 = vmul.f32 %v8260_v58, %v3423_v49  ;;  %v8978_v58 = vld [vmem:[%s15365_s3 + $0x260] ss:$16 sps:$4 sm:$0xff]   ;;  %v8985_v28 = vld [vmem:[%s15365_s3 + $0x3e4] ss:$16 sps:$4 sm:$0xff]  }
 0x687   :  { %v8268_v21 = vpop.eup %8267  ;;  %15472 = vst [vmem:[#allocation14_spill] sm:$0xff] %v12143_v18  ;;  %v3425_v63 = vsub.f32 %v15473_v20, %v8266_v15  ;;  %v12166_v38 = vpack.c.bf16 %v12143_v18, %v12153_v8  ;;  %v8982_v49 = vld [vmem:[%s15365_s3 + $0x220] ss:$16 sps:$4 sm:$0xff]   ;;  %v8991_v20 = vld [vmem:[%s15365_s3 + $0x384] ss:$16 sps:$4 sm:$0xff]  }
 0x688   :  { %v8270_v44 = vpop.eup %8269  ;;  %v12148_v14 = vadd.f32 %v8262_v4, %v3439_v17  ;;  %v8980_v4 = vld [vmem:[%s15365_s3 + $0x240] ss:$16 sps:$4 sm:$0xff]   ;;  %v8989_v17 = vld [vmem:[%s15365_s3 + $0x3a4] ss:$16 sps:$4 sm:$0xff]  }
 0x689   :  { %v8272_v3 = vpop.eup %8271  ;;  %3903 = vmatpush1.bf16.msra.mxu1 %v8976_v47  ;;  %v3426_v5 = vsub.f32 %v15478_v2, %v8270_v44  ;;  %v3441_v51 = vmul.f32 %v8268_v21, %v3425_v63  ;;  %v8988_v0 = vld [vmem:[%s15365_s3 + $0x3c0] ss:$16 sps:$4 sm:$0xff]   ;;  %v8995_v47 = vld [vmem:[%s15365_s3 + $0x344] ss:$16 sps:$4 sm:$0xff]  }
 0x68a   :  { %15475 = vst [vmem:[#allocation13_spill] sm:$0xff] %v12148_v14  ;;  %v8274_v61 = vpop.eup %8273  ;;  %v12159_v48 = vpack.c.bf16 %v12148_v14, %v12146_v30  ;;  %3904 = vmatprep.subr.bf16.mxu1 %v8977_v12  ;;  %v8990_v21 = vld [vmem:[%s15365_s3 + $0x3a0] ss:$16 sps:$4 sm:$0xff]   ;;  %v9001_v12 = vld [vmem:[%s15365_s3 + $0x2ec] ss:$16 sps:$4 sm:$0xff]  }
 0x68b   :  { %v8276_v25 = vpop.eup %8275  ;;  %v3427_v6 = vsub.f32 %v15479_v39, %v8274_v61  ;;  %v3442_v60 = vmul.f32 %v8272_v3, %v3426_v5  ;;  %v12177_v31 = vadd.f32 %v8266_v15, %v3441_v51  ;;  %v8987_v15 = vld [vmem:[%s15365_s3 + $0x3c4] ss:$16 sps:$4 sm:$0xff]   ;;  %v8992_v63 = vld [vmem:[%s15365_s3 + $0x380] ss:$16 sps:$4 sm:$0xff]   ;;  %v9003_v39 = vld [vmem:[%s15365_s3 + $0x2cc] ss:$16 sps:$4 sm:$0xff]  }
 0x68c   :  { %v8278_v46 = vpop.eup %8277  ;;  %3713 = vmatprep.mubr.bf16.mxu1 %v12159_v48  ;;  %v3440_v9 = vmul.f32 %v8276_v25, %v3424_v37  ;;  %v8994_v3 = vld [vmem:[%s15365_s3 + $0x360] ss:$16 sps:$4 sm:$0xff]   ;;  %v8997_v37 = vld [vmem:[%s15365_s3 + $0x324] ss:$16 sps:$4 sm:$0xff]   ;;  %v9002_v25 = vld [vmem:[%s15365_s3 + $0x2e8] ss:$16 sps:$4 sm:$0xff]  }
 0x68d   :  { %3714 = vmatmul.mubr.bf16.gmra.mxu1 %v12166_v38  ;;  %v3443_v62 = vmul.f32 %v8278_v46, %v3427_v6  ;;  %15480 = vst [vmem:[#allocation18_spill] sm:$0xff] %v12177_v31  ;;  %v12181_v10 = vadd.f32 %v8270_v44, %v3442_v60  ;;  %v8993_v44 = vld [vmem:[%s15365_s3 + $0x364] ss:$16 sps:$4 sm:$0xff]   ;;  %v8998_v2 = vld [vmem:[%s15365_s3 + $0x320] ss:$16 sps:$4 sm:$0xff]  }
 0x68e   :  { %3905 = vmatpush1.bf16.msra.mxu1 %v8978_v58  ;;  %v12187_v16 = vadd.f32 %v8264_v13, %v3440_v9  ;;  %v8984_v13 = vld [vmem:[%s15365_s3 + $0x200] ss:$16 sps:$4 sm:$0xff]   ;;  %v8999_v5 = vld [vmem:[%s15365_s3 + $0x304] ss:$16 sps:$4 sm:$0xff]   ;;  %v9004_v6 = vld [vmem:[%s15365_s3 + $0x2c8] ss:$16 sps:$4 sm:$0xff]  }
 0x68f   :  { %3906 = vmatprep.subr.bf16.mxu1 %v8979_v50  ;;  %v12179_v40 = vadd.f32 %v8274_v61, %v3443_v62  ;;  %15482 = vst [vmem:[#allocation17_spill] sm:$0xff] %v12181_v10  ;;  %v9000_v61 = vld [vmem:[%s15365_s3 + $0x300] ss:$16 sps:$4 sm:$0xff]   ;;  %v9005_v51 = vld [vmem:[%s15365_s3 + $0x2ac] ss:$16 sps:$4 sm:$0xff]  }
 0x690   :  { %15483 = vst [vmem:[#allocation19_spill] sm:$0xff] %v12187_v16  ;;  %v12198_v29 = vpack.c.bf16 %v12181_v10, %v12187_v16  ;;  %v9006_v60 = vld [vmem:[%s15365_s3 + $0x2a8] ss:$16 sps:$4 sm:$0xff]   ;;  %v9007_v46 = vld [vmem:[%s15365_s3 + $0x28c] ss:$16 sps:$4 sm:$0xff]  }
 0x691   :  { %15481 = vst [vmem:[#allocation20_spill] sm:$0xff] %v12179_v40  ;;  %v12185_v41 = vpack.c.bf16 %v12179_v40, %v12177_v31  ;;  %v9008_v62 = vld [vmem:[%s15365_s3 + $0x288] ss:$16 sps:$4 sm:$0xff]   ;;  %v9009_v9 = vld [vmem:[%s15365_s3 + $0x26c] ss:$16 sps:$4 sm:$0xff]  }
 0x692   :  { %3907 = vmatpush1.bf16.msra.mxu1 %v8980_v4  ;;  %v9010_v58 = vld [vmem:[%s15365_s3 + $0x268] ss:$16 sps:$4 sm:$0xff]   ;;  %v9011_v50 = vld [vmem:[%s15365_s3 + $0x24c] ss:$16 sps:$4 sm:$0xff]  }
 0x693   :  { %3723 = vmatprep.mubr.bf16.mxu1 %v12185_v41  ;;  %3908 = vmatprep.subr.bf16.mxu1 %v8981_v55  ;;  %v9012_v4 = vld [vmem:[%s15365_s3 + $0x248] ss:$16 sps:$4 sm:$0xff]   ;;  %v9013_v55 = vld [vmem:[%s15365_s3 + $0x22c] ss:$16 sps:$4 sm:$0xff]  }
 0x695   :  { %3724 = vmatmul.mubr.bf16.gmra.mxu1 %v12198_v29 }
 0x696   :  { %3909 = vmatpush1.bf16.msra.mxu1 %v8982_v49  ;;  %3928 = vmatprep.mubr.bf16.mxu1 %v12091_v52  ;;  %v9014_v49 = vld [vmem:[%s15365_s3 + $0x228] ss:$16 sps:$4 sm:$0xff]  }
 0x697   :  { %3910 = vmatprep.subr.bf16.mxu1 %v8983_v43  ;;  %v9015_v43 = vld [vmem:[%s15365_s3 + $0x20c] ss:$16 sps:$4 sm:$0xff]  }
 0x69a   :  { %3911 = vmatpush1.bf16.msra.mxu1 %v8984_v13  ;;  %v9016_v13 = vld [vmem:[%s15365_s3 + $0x208] ss:$16 sps:$4 sm:$0xff]  }
 0x69b   :  { %3912 = vmatprep.subr.bf16.mxu1 %v8985_v28  ;;  %v9017_v28 = vld [vmem:[%s15365_s3 + $0x3ec] ss:$16 sps:$4 sm:$0xff]  }
 0x69e   :  { %3913 = vmatpush2.bf16.msra.mxu1 %v8986_v19  ;;  %v9018_v19 = vld [vmem:[%s15365_s3 + $0x3e8] ss:$16 sps:$4 sm:$0xff]  }
 0x69f   :  { %3914 = vmatprep.subr.bf16.mxu1 %v8987_v15  ;;  %v9019_v15 = vld [vmem:[%s15365_s3 + $0x3cc] ss:$16 sps:$4 sm:$0xff]  }
 0x6a2   :  { %3915 = vmatpush2.bf16.msra.mxu1 %v8988_v0  ;;  %v9020_v0 = vld [vmem:[%s15365_s3 + $0x3c8] ss:$16 sps:$4 sm:$0xff]  }
 0x6a3   :  { %3916 = vmatprep.subr.bf16.mxu1 %v8989_v17  ;;  %v9021_v17 = vld [vmem:[%s15365_s3 + $0x3ac] ss:$16 sps:$4 sm:$0xff]  }
 0x6a6   :  { %3917 = vmatpush2.bf16.msra.mxu1 %v8990_v21  ;;  %v9022_v21 = vld [vmem:[%s15365_s3 + $0x3a8] ss:$16 sps:$4 sm:$0xff]  }
 0x6a7   :  { %3918 = vmatprep.subr.bf16.mxu1 %v8991_v20  ;;  %v9023_v20 = vld [vmem:[%s15365_s3 + $0x38c] ss:$16 sps:$4 sm:$0xff]  }
 0x6aa   :  { %3919 = vmatpush2.bf16.msra.mxu1 %v8992_v63  ;;  %v9024_v63 = vld [vmem:[%s15365_s3 + $0x388] ss:$16 sps:$4 sm:$0xff]  }
 0x6ab   :  { %3920 = vmatprep.subr.bf16.mxu1 %v8993_v44  ;;  %v9025_v44 = vld [vmem:[%s15365_s3 + $0x36c] ss:$16 sps:$4 sm:$0xff]  }
 0x6ae   :  { %3921 = vmatpush2.bf16.msra.mxu1 %v8994_v3  ;;  %v9026_v3 = vld [vmem:[%s15365_s3 + $0x368] ss:$16 sps:$4 sm:$0xff]  }
 0x6af   :  { %3922 = vmatprep.subr.bf16.mxu1 %v8995_v47  ;;  %v9027_v47 = vld [vmem:[%s15365_s3 + $0x34c] ss:$16 sps:$4 sm:$0xff]  }
 0x6b2   :  { %3923 = vmatpush2.bf16.msra.mxu1 %v8996_v36  ;;  %v9028_v36 = vld [vmem:[%s15365_s3 + $0x348] ss:$16 sps:$4 sm:$0xff]  }
 0x6b3   :  { %3924 = vmatprep.subr.bf16.mxu1 %v8997_v37  ;;  %v9029_v37 = vld [vmem:[%s15365_s3 + $0x32c] ss:$16 sps:$4 sm:$0xff]  }
 0x6b6   :  { %3925 = vmatpush2.bf16.msra.mxu1 %v8998_v2  ;;  %v9030_v2 = vld [vmem:[%s15365_s3 + $0x328] ss:$16 sps:$4 sm:$0xff]  }
 0x6b7   :  { %3926 = vmatprep.subr.bf16.mxu1 %v8999_v5  ;;  %v9031_v5 = vld [vmem:[%s15365_s3 + $0x30c] ss:$16 sps:$4 sm:$0xff]  }
 0x6ba   :  { %3927 = vmatpush2.bf16.msra.mxu1 %v9000_v61  ;;  %v9032_v61 = vld [vmem:[%s15365_s3 + $0x308] ss:$16 sps:$4 sm:$0xff]  }
 0x6bb   :  { %4042 = vmatprep.subr.bf16.mxu1 %v9001_v12  ;;  %v9033_v12 = vld [vmem:[%s15367_s5 + $0x74] ss:$8 sps:$4 sm:$0xff]  }
 0x6bd   :  { %3929 = vmatmul.mubr.bf16.vlgmr.msra.gmra.mxu1 %v12095_v56 }
 0x6be   :  { %3938 = vmatprep.mubr.bf16.mxu1 %v12123_v11  ;;  %4043 = vmatpush1.bf16.msra.mxu1 %v9002_v25  ;;  %v9034_v25 = vld [vmem:[%s15367_s5 + $0x70] ss:$8 sps:$4 sm:$0xff]  }
 0x6bf   :  { %4044 = vmatprep.subr.bf16.mxu1 %v9003_v39  ;;  %v9035_v39 = vld [vmem:[%s15367_s5 + $0x64] ss:$8 sps:$4 sm:$0xff]  }
 0x6c2   :  { %4045 = vmatpush1.bf16.msra.mxu1 %v9004_v6  ;;  %v9036_v6 = vld [vmem:[%s15367_s5 + $0x60] ss:$8 sps:$4 sm:$0xff]  }
 0x6c3   :  { %4046 = vmatprep.subr.bf16.mxu1 %v9005_v51  ;;  %v9037_v51 = vld [vmem:[%s15367_s5 + $0x54] ss:$8 sps:$4 sm:$0xff]  }
 0x6c5   :  { %3939 = vmatmul.mubr.bf16.gmra.mxu1 %v12132_v33 }
 0x6c6   :  { %3948 = vmatprep.mubr.bf16.mxu1 %v12159_v48  ;;  %4047 = vmatpush1.bf16.msra.mxu1 %v9006_v60  ;;  %v9038_v60 = vld [vmem:[%s15367_s5 + $0x50] ss:$8 sps:$4 sm:$0xff]  }
 0x6c7   :  { %4048 = vmatprep.subr.bf16.mxu1 %v9007_v46  ;;  %v9039_v46 = vld [vmem:[%s15367_s5 + $0x44] ss:$8 sps:$4 sm:$0xff]  }
 0x6ca   :  { %4049 = vmatpush1.bf16.msra.mxu1 %v9008_v62  ;;  %v9040_v62 = vld [vmem:[%s15367_s5 + $0x40] ss:$8 sps:$4 sm:$0xff]  }
 0x6cb   :  { %4050 = vmatprep.subr.bf16.mxu1 %v9009_v9  ;;  %v9041_v9 = vld [vmem:[%s15367_s5 + $0x34] ss:$8 sps:$4 sm:$0xff]  }
 0x6cd   :  { %3949 = vmatmul.mubr.bf16.gmra.mxu1 %v12166_v38 }
 0x6ce   :  { %3958 = vmatprep.mubr.bf16.mxu1 %v12185_v41  ;;  %4051 = vmatpush1.bf16.msra.mxu1 %v9010_v58  ;;  %v9042_v58 = vld [vmem:[%s15367_s5 + $0x30] ss:$8 sps:$4 sm:$0xff]  }
 0x6cf   :  { %4052 = vmatprep.subr.bf16.mxu1 %v9011_v50  ;;  %v9043_v50 = vld [vmem:[%s15367_s5 + $0x24] ss:$8 sps:$4 sm:$0xff]  }
 0x6d2   :  { %4053 = vmatpush1.bf16.msra.mxu1 %v9012_v4  ;;  %v9044_v4 = vld [vmem:[%s15367_s5 + $0x20] ss:$8 sps:$4 sm:$0xff]  }
 0x6d3   :  { %4054 = vmatprep.subr.bf16.mxu1 %v9013_v55  ;;  %v9045_v55 = vld [vmem:[%s15367_s5 + $0x14] ss:$8 sps:$4 sm:$0xff]  }
 0x6d5   :  { %3959 = vmatmul.mubr.bf16.gmra.mxu1 %v12198_v29 }
 0x6d6   :  { %4055 = vmatpush1.bf16.msra.mxu1 %v9014_v49  ;;  %4074 = vmatprep.mubr.bf16.mxu1 %v12091_v52  ;;  %v9046_v49 = vld [vmem:[%s15367_s5 + $0x10] ss:$8 sps:$4 sm:$0xff]  }
 0x6d7   :  { %4056 = vmatprep.subr.bf16.mxu1 %v9015_v43  ;;  %v9047_v43 = vld [vmem:[%s15367_s5 + $0x4] ss:$8 sps:$4 sm:$0xff]  }
 0x6da   :  { %4057 = vmatpush1.bf16.msra.mxu1 %v9016_v13  ;;  %v9048_v13 = vld [vmem:[%s15367_s5] ss:$8 sps:$4 sm:$0xff]  }
 0x6db   :  { %4058 = vmatprep.subr.bf16.mxu1 %v9017_v28  ;;  %v9049_v28 = vld [vmem:[%s15367_s5 + $0xf4] ss:$8 sps:$4 sm:$0xff]  }
 0x6de   :  { %4059 = vmatpush2.bf16.msra.mxu1 %v9018_v19  ;;  %v9050_v19 = vld [vmem:[%s15367_s5 + $0xf0] ss:$8 sps:$4 sm:$0xff]  }
 0x6df   :  { %4060 = vmatprep.subr.bf16.mxu1 %v9019_v15  ;;  %v9052_v15 = vld [vmem:[%s15367_s5 + $0xe0] ss:$8 sps:$4 sm:$0xff]  }
 0x6e2   :  { %4061 = vmatpush2.bf16.msra.mxu1 %v9020_v0  ;;  %v9053_v0 = vld [vmem:[%s15367_s5 + $0xd4] ss:$8 sps:$4 sm:$0xff]  }
 0x6e3   :  { %4062 = vmatprep.subr.bf16.mxu1 %v9021_v17  ;;  %v9054_v17 = vld [vmem:[%s15367_s5 + $0xd0] ss:$8 sps:$4 sm:$0xff]  }
 0x6e6   :  { %4063 = vmatpush2.bf16.msra.mxu1 %v9022_v21  ;;  %v9055_v21 = vld [vmem:[%s15367_s5 + $0xc4] ss:$8 sps:$4 sm:$0xff]  }
 0x6e7   :  { %4064 = vmatprep.subr.bf16.mxu1 %v9023_v20  ;;  %v9056_v20 = vld [vmem:[%s15367_s5 + $0xc0] ss:$8 sps:$4 sm:$0xff]  }
 0x6ea   :  { %4065 = vmatpush2.bf16.msra.mxu1 %v9024_v63  ;;  %v9057_v63 = vld [vmem:[%s15367_s5 + $0xb4] ss:$8 sps:$4 sm:$0xff]  }
 0x6eb   :  { %4066 = vmatprep.subr.bf16.mxu1 %v9025_v44  ;;  %v9058_v44 = vld [vmem:[%s15367_s5 + $0xb0] ss:$8 sps:$4 sm:$0xff]  }
 0x6ee   :  { %4067 = vmatpush2.bf16.msra.mxu1 %v9026_v3  ;;  %v9059_v3 = vld [vmem:[%s15367_s5 + $0xa4] ss:$8 sps:$4 sm:$0xff]  }
 0x6ef   :  { %4068 = vmatprep.subr.bf16.mxu1 %v9027_v47  ;;  %v9060_v47 = vld [vmem:[%s15367_s5 + $0xa0] ss:$8 sps:$4 sm:$0xff]  }
 0x6f2   :  { %4069 = vmatpush2.bf16.msra.mxu1 %v9028_v36  ;;  %v9061_v36 = vld [vmem:[%s15367_s5 + $0x94] ss:$8 sps:$4 sm:$0xff]  }
 0x6f3   :  { %4070 = vmatprep.subr.bf16.mxu1 %v9029_v37  ;;  %v9062_v37 = vld [vmem:[%s15367_s5 + $0x90] ss:$8 sps:$4 sm:$0xff]  }
 0x6f6   :  { %4071 = vmatpush2.bf16.msra.mxu1 %v9030_v2  ;;  %v9063_v2 = vld [vmem:[%s15367_s5 + $0x84] ss:$8 sps:$4 sm:$0xff]  }
 0x6f7   :  { %4072 = vmatprep.subr.bf16.mxu1 %v9031_v5  ;;  %v9064_v5 = vld [vmem:[%s15367_s5 + $0x80] ss:$8 sps:$4 sm:$0xff]  }
 0x6fa   :  { %4073 = vmatpush2.bf16.msra.mxu1 %v9032_v61 }
 0x6fb   :  { %4380 = vmatprep.subr.bf16.mxu1 %v9033_v12 }
 0x6fd   :  { %4075 = vmatmul.mubr.bf16.vlgmr.msra.gmra.mxu1 %v12095_v56 }
 0x6fe   :  { %4084 = vmatprep.mubr.bf16.mxu1 %v12123_v11  ;;  %4381 = vmatpush1.bf16.msra.mxu1 %v9034_v25 }
 0x6ff   :  { %4382 = vmatprep.subr.bf16.mxu1 %v9035_v39 }
 0x702   :  { %4383 = vmatpush1.bf16.msra.mxu1 %v9036_v6 }
 0x703   :  { %4384 = vmatprep.subr.bf16.mxu1 %v9037_v51 }
 0x705   :  { %4085 = vmatmul.mubr.bf16.gmra.mxu1 %v12132_v33 }
 0x706   :  { %4094 = vmatprep.mubr.bf16.mxu1 %v12159_v48  ;;  %4385 = vmatpush1.bf16.msra.mxu1 %v9038_v60 }
 0x707   :  { %4386 = vmatprep.subr.bf16.mxu1 %v9039_v46 }
 0x70a   :  { %4387 = vmatpush1.bf16.msra.mxu1 %v9040_v62 }
 0x70b   :  { %4388 = vmatprep.subr.bf16.mxu1 %v9041_v9 }
 0x70d   :  { %4095 = vmatmul.mubr.bf16.gmra.mxu1 %v12166_v38 }
 0x70e   :  { %4104 = vmatprep.mubr.bf16.mxu1 %v12185_v41  ;;  %4389 = vmatpush1.bf16.msra.mxu1 %v9042_v58 }
 0x70f   :  { %4390 = vmatprep.subr.bf16.mxu1 %v9043_v50  ;;  %v15484_v50 = vmov 0  }
 0x712   :  { %4391 = vmatpush1.bf16.msra.mxu1 %v9044_v4 }
 0x713   :  { %4392 = vmatprep.subr.bf16.mxu1 %v9045_v55 }
 0x715   :  { %4105 = vmatmul.mubr.bf16.gmra.mxu1 %v12198_v29 }
 0x716   :  { %4393 = vmatpush1.bf16.msra.mxu1 %v9046_v49  ;;  %4412 = vmatprep.mubr.bf16.mxu1 %v12091_v52  ;;  %v9051_v52 = vld [vmem:[%s15367_s5 + $0xe4] ss:$8 sps:$4 sm:$0xff]  }
 0x717   :  { %4394 = vmatprep.subr.bf16.mxu1 %v9047_v43 }
 0x71a   :  { %4395 = vmatpush1.bf16.msra.mxu1 %v9048_v13 }
 0x71b   :  { %4396 = vmatprep.subr.bf16.mxu1 %v9049_v28 }
 0x71e   :  { %4397 = vmatpush2.bf16.msra.mxu1 %v9050_v19  ;;  %v9065_v19 = vld [vmem:[%s15365_s3 + $0xe4] ss:$16 sps:$4 sm:$0xff]  }
 0x71f   :  { %4398 = vmatprep.subr.bf16.mxu1 %v9051_v52  ;;  %v9066_v52 = vld [vmem:[%s15363_s1] sm:$0xff]  }
 0x722   :  { %4399 = vmatpush2.bf16.msra.mxu1 %v9052_v15  ;;  %v9067_v15 = vld [vmem:[%s15365_s3 + $0xe0] ss:$16 sps:$4 sm:$0xff]  }
 0x723   :  { %4400 = vmatprep.subr.bf16.mxu1 %v9053_v0  ;;  %v9068_v0 = vld [vmem:[%s15365_s3 + $0xc4] ss:$16 sps:$4 sm:$0xff]  }
 0x726   :  { %4401 = vmatpush2.bf16.msra.mxu1 %v9054_v17  ;;  %v9069_v17 = vld [vmem:[%s15365_s3 + $0xc0] ss:$16 sps:$4 sm:$0xff]  }
 0x727   :  { %4402 = vmatprep.subr.bf16.mxu1 %v9055_v21  ;;  %v9070_v21 = vld [vmem:[%s15365_s3 + $0xa4] ss:$16 sps:$4 sm:$0xff]  }
 0x72a   :  { %4403 = vmatpush2.bf16.msra.mxu1 %v9056_v20  ;;  %v9071_v20 = vld [vmem:[%s15363_s1 + $0x8] sm:$0xff]  }
 0x72b   :  { %4404 = vmatprep.subr.bf16.mxu1 %v9057_v63  ;;  %v9072_v63 = vld [vmem:[%s15365_s3 + $0xa0] ss:$16 sps:$4 sm:$0xff]  }
 0x72e   :  { %4405 = vmatpush2.bf16.msra.mxu1 %v9058_v44  ;;  %v9073_v44 = vld [vmem:[%s15365_s3 + $0x84] ss:$16 sps:$4 sm:$0xff]  }
 0x72f   :  { %4406 = vmatprep.subr.bf16.mxu1 %v9059_v3  ;;  %v9074_v3 = vld [vmem:[%s15365_s3 + $0x80] ss:$16 sps:$4 sm:$0xff]  }
 0x732   :  { %4407 = vmatpush2.bf16.msra.mxu1 %v9060_v47  ;;  %v9075_v47 = vld [vmem:[%s15365_s3 + $0x64] ss:$16 sps:$4 sm:$0xff]  }
 0x733   :  { %4408 = vmatprep.subr.bf16.mxu1 %v9061_v36  ;;  %v9076_v36 = vld [vmem:[%s15363_s1 + $0x10] sm:$0xff]  }
 0x736   :  { %4409 = vmatpush2.bf16.msra.mxu1 %v9062_v37  ;;  %v9077_v37 = vld [vmem:[%s15365_s3 + $0x60] ss:$16 sps:$4 sm:$0xff]  }
 0x737   :  { %4410 = vmatprep.subr.bf16.mxu1 %v9063_v2  ;;  %v9078_v2 = vld [vmem:[%s15365_s3 + $0x44] ss:$16 sps:$4 sm:$0xff]  }
 0x73a   :  { %4411 = vmatpush2.bf16.msra.mxu1 %v9064_v5  ;;  %v9079_v5 = vld [vmem:[%s15365_s3 + $0x40] ss:$16 sps:$4 sm:$0xff]  }
 0x73c   :  { %v3695_v61 = vpop.f32.mrf.mxu1 }
 0x73d   :  { %4413 = vmatmul.mubr.bf16.vlgmr.msra.gmra.mxu1 %v12095_v56 }
 0x73e   :  { %4422 = vmatprep.mubr.bf16.mxu1 %v12123_v11  ;;  %v3697_v12 = vpop.f32.mrf.mxu1 }
 0x740   :  { %v3699_v25 = vpop.f32.mrf.mxu1 }
 0x742   :  { %v3701_v39 = vpop.f32.mrf.mxu1 }
 0x743   :  { %v3735_v28 = vpack.c.bf16 %v3701_v39, %v3697_v12  ;;  %v9081_v12 = vld [vmem:[%s15363_s1 + $0x18] sm:$0xff]   ;;  %v9083_v39 = vld [vmem:[%s15365_s3 + $0x4] ss:$16 sps:$4 sm:$0xff]  }
 0x744   :  { %v3705_v6 = vpop.f32.mrf.mxu1 }
 0x745   :  { %4423 = vmatmul.mubr.bf16.gmra.mxu1 %v12132_v33 }
 0x746   :  { %4432 = vmatprep.mubr.bf16.mxu1 %v12159_v48  ;;  %v3707_v51 = vpop.f32.mrf.mxu1 }
 0x748   :  { %v3709_v60 = vpop.f32.mrf.mxu1 }
 0x74a   :  { %v3711_v46 = vpop.f32.mrf.mxu1 }
 0x74b   :  { %v3737_v13 = vpack.c.bf16 %v3711_v46, %v3707_v51  ;;  %v9085_v51 = vld [vmem:[%s15365_s3 + $0x1e4] ss:$16 sps:$4 sm:$0xff]  }
 0x74c   :  { %v9087_v46 = vld [vmem:[%s15365_s3 + $0x1c4] ss:$16 sps:$4 sm:$0xff]  }
 0x74d   :  { %4433 = vmatmul.mubr.bf16.gmra.mxu1 %v12166_v38  ;;  %v3715_v62 = vpop.f32.mrf.mxu1 }
 0x74e   :  { %4442 = vmatprep.mubr.bf16.mxu1 %v12185_v41  ;;  %v3736_v41 = vpack.c.bf16 %v3709_v60, %v3705_v6  ;;  %v9084_v6 = vld [vmem:[%s15365_s3] ss:$16 sps:$4 sm:$0xff]  }
 0x74f   :  { %v3717_v9 = vpop.f32.mrf.mxu1  ;;  %v9086_v60 = vld [vmem:[%s15365_s3 + $0x1e0] ss:$16 sps:$4 sm:$0xff]  }
 0x751   :  { %v3719_v56 = vpop.f32.mrf.mxu1 }
 0x752   :  { %v3738_v38 = vpack.c.bf16 %v3719_v56, %v3715_v62  ;;  %v9088_v62 = vld [vmem:[%s15365_s3 + $0x1c0] ss:$16 sps:$4 sm:$0xff]  }
 0x753   :  { %v3721_v58 = vpop.f32.mrf.mxu1  ;;  %v9090_v56 = vld [vmem:[%s15365_s3 + $0x1a0] ss:$16 sps:$4 sm:$0xff]  }
 0x754   :  { %v3739_v43 = vpack.c.bf16 %v3721_v58, %v3717_v9  ;;  %v9089_v9 = vld [vmem:[%s15365_s3 + $0x1a4] ss:$16 sps:$4 sm:$0xff]  }
 0x755   :  { %4443 = vmatmul.mubr.bf16.gmra.mxu1 %v12198_v29  ;;  %v3725_v11 = vpop.f32.mrf.mxu1  ;;  %v3734_v29 = vpack.c.bf16 %v3699_v25, %v3695_v61  ;;  %v9080_v61 = vld [vmem:[%s15365_s3 + $0x24] ss:$16 sps:$4 sm:$0xff]   ;;  %v9082_v25 = vld [vmem:[%s15365_s3 + $0x20] ss:$16 sps:$4 sm:$0xff]  }
 0x756   :  { %4863 = vmatprep.mubr.bf16.mxu1 %v15484_v50  ;;  %v9091_v58 = vld [vmem:[%s15365_s3 + $0x184] ss:$16 sps:$4 sm:$0xff]  }
 0x757   :  { %v3727_v4 = vpop.f32.mrf.mxu1 }
 0x759   :  { %v3729_v33 = vpop.f32.mrf.mxu1 }
 0x75a   :  { %v3740_v49 = vpack.c.bf16 %v3729_v33, %v3725_v11  ;;  %v9092_v11 = vld [vmem:[%s15365_s3 + $0x180] ss:$16 sps:$4 sm:$0xff]  }
 0x75b   :  { %v3731_v55 = vpop.f32.mrf.mxu1  ;;  %v9094_v33 = vld [vmem:[%s15365_s3 + $0x160] ss:$16 sps:$4 sm:$0xff]  }
 0x75c   :  { %v3741_v48 = vpack.c.bf16 %v3731_v55, %v3727_v4  ;;  %v9093_v4 = vld [vmem:[%s15365_s3 + $0x164] ss:$16 sps:$4 sm:$0xff]  }
 0x75d   :  { %v9095_v55 = vld [vmem:[%s15365_s3 + $0x144] ss:$16 sps:$4 sm:$0xff]  }
 0x75e   :  { %3750 = vmatprep.subr.bf16.mxu0 %v3741_v48  ;;  %v9096_v48 = vld [vmem:[%s15365_s3 + $0x140] ss:$16 sps:$4 sm:$0xff]  }
 0x75f   :  { %3751 = vmatpush1.bf16.msra.mxu0 %v3740_v49  ;;  %v9097_v49 = vld [vmem:[%s15365_s3 + $0x124] ss:$16 sps:$4 sm:$0xff]  }
 0x760   :  { %3752 = vmatprep.subr.bf16.mxu0 %v3739_v43  ;;  %v9098_v43 = vld [vmem:[%s15365_s3 + $0x120] ss:$16 sps:$4 sm:$0xff]  }
 0x763   :  { %3753 = vmatpush1.bf16.msra.mxu0 %v3738_v38  ;;  %v9099_v38 = vld [vmem:[%s15365_s3 + $0x104] ss:$16 sps:$4 sm:$0xff]  }
 0x764   :  { %3754 = vmatprep.subr.bf16.mxu0 %v3737_v13  ;;  %v9100_v13 = vld [vmem:[%s15365_s3 + $0x100] ss:$16 sps:$4 sm:$0xff]  }
 0x767   :  { %3755 = vmatpush1.bf16.msra.mxu0 %v3736_v41  ;;  %v9101_v41 = vld [vmem:[%s15365_s3 + $0xec] ss:$16 sps:$4 sm:$0xff]  }
 0x768   :  { %3756 = vmatprep.subr.bf16.mxu0 %v3735_v28 }
 0x76b   :  { %3757 = vmatpush1.bf16.msra.mxu0 %v3734_v29 }
 0x76c   :  { %3823 = vmatprep.subr.bf16.mxu0 %v9065_v19 }
 0x76e   :  { %7187 = vmatmul.mubr.msk.bf16.vlgmr.msra.gmra.mxu0 %vm353_vm0, %v9066_v52 }
 0x76f   :  { %3784 = vmatprep.mubr.bf16.mxu0 %v15484_v50  ;;  %3824 = vmatpush1.bf16.msra.mxu0 %v9067_v15 }
 0x770   :  { %3825 = vmatprep.subr.bf16.mxu0 %v9068_v0 }
 0x773   :  { %3826 = vmatpush1.bf16.msra.mxu0 %v9069_v17 }
 0x774   :  { %3827 = vmatprep.subr.bf16.mxu0 %v9070_v21 }
 0x776   :  { %7188 = vmatmul.mubr.msk.bf16.gmra.mxu0 %vm353_vm0, %v9071_v20  ;;  %v9102_v20 = vld [vmem:[%s15365_s3 + $0xe8] ss:$16 sps:$4 sm:$0xff]  }
 0x777   :  { %3794 = vmatprep.mubr.bf16.mxu0 %v15484_v50  ;;  %3828 = vmatpush1.bf16.msra.mxu0 %v9072_v63 }
 0x778   :  { %3829 = vmatprep.subr.bf16.mxu0 %v9073_v44  ;;  %v9103_v44 = vld [vmem:[%s15365_s3 + $0xcc] ss:$16 sps:$4 sm:$0xff]  }
 0x77b   :  { %3830 = vmatpush1.bf16.msra.mxu0 %v9074_v3 }
 0x77c   :  { %3831 = vmatprep.subr.bf16.mxu0 %v9075_v47 }
 0x77e   :  { %7189 = vmatmul.mubr.msk.bf16.gmra.mxu0 %vm353_vm0, %v9076_v36 }
 0x77f   :  { %3804 = vmatprep.mubr.bf16.mxu0 %v15484_v50  ;;  %3832 = vmatpush1.bf16.msra.mxu0 %v9077_v37  ;;  %v9104_v37 = vld [vmem:[%s15365_s3 + $0xc8] ss:$16 sps:$4 sm:$0xff]  }
 0x780   :  { %3833 = vmatprep.subr.bf16.mxu0 %v9078_v2 }
 0x783   :  { %3834 = vmatpush1.bf16.msra.mxu0 %v9079_v5  ;;  %v9105_v5 = vld [vmem:[%s15365_s3 + $0xac] ss:$16 sps:$4 sm:$0xff]  }
 0x784   :  { %3835 = vmatprep.subr.bf16.mxu0 %v9080_v61 }
 0x786   :  { %7190 = vmatmul.mubr.msk.bf16.gmra.mxu0 %vm353_vm0, %v9081_v12  ;;  %v9106_v12 = vld [vmem:[%s15365_s3 + $0xa8] ss:$16 sps:$4 sm:$0xff]  }
 0x787   :  { %3836 = vmatpush1.bf16.msra.mxu0 %v9082_v25 }
 0x788   :  { %3837 = vmatprep.subr.bf16.mxu0 %v9083_v39  ;;  %v9107_v39 = vld [vmem:[%s15365_s3 + $0x8c] ss:$16 sps:$4 sm:$0xff]  }
 0x78b   :  { %3838 = vmatpush1.bf16.msra.mxu0 %v9084_v6 }
 0x78c   :  { %3839 = vmatprep.subr.bf16.mxu0 %v9085_v51 }
 0x78f   :  { %3840 = vmatpush2.bf16.msra.mxu0 %v9086_v60 }
 0x790   :  { %3841 = vmatprep.subr.bf16.mxu0 %v9087_v46  ;;  %v9108_v46 = vld [vmem:[%s15365_s3 + $0x88] ss:$16 sps:$4 sm:$0xff]  }
 0x793   :  { %3842 = vmatpush2.bf16.msra.mxu0 %v9088_v62 }
 0x794   :  { %3843 = vmatprep.subr.bf16.mxu0 %v9089_v9  ;;  %v9109_v9 = vld [vmem:[%s15365_s3 + $0x6c] ss:$16 sps:$4 sm:$0xff]  }
 0x797   :  { %3844 = vmatpush2.bf16.msra.mxu0 %v9090_v56 }
 0x798   :  { %3845 = vmatprep.subr.bf16.mxu0 %v9091_v58  ;;  %v9110_v58 = vld [vmem:[%s15365_s3 + $0x68] ss:$16 sps:$4 sm:$0xff]  }
 0x79b   :  { %3846 = vmatpush2.bf16.msra.mxu0 %v9092_v11 }
 0x79c   :  { %3847 = vmatprep.subr.bf16.mxu0 %v9093_v4  ;;  %v9111_v4 = vld [vmem:[%s15365_s3 + $0x4c] ss:$16 sps:$4 sm:$0xff]  }
 0x79f   :  { %3848 = vmatpush2.bf16.msra.mxu0 %v9094_v33 }
 0x7a0   :  { %3849 = vmatprep.subr.bf16.mxu0 %v9095_v55 }
 0x7a3   :  { %3850 = vmatpush2.bf16.msra.mxu0 %v9096_v48 }
 0x7a4   :  { %3851 = vmatprep.subr.bf16.mxu0 %v9097_v49  ;;  %v9112_v49 = vld [vmem:[%s15365_s3 + $0x48] ss:$16 sps:$4 sm:$0xff]  }
 0x7a7   :  { %3852 = vmatpush2.bf16.msra.mxu0 %v9098_v43  ;;  %v9113_v43 = vld [vmem:[%s15365_s3 + $0x2c] ss:$16 sps:$4 sm:$0xff]  }
 0x7a8   :  { %3853 = vmatprep.subr.bf16.mxu0 %v9099_v38  ;;  %v9114_v38 = vld [vmem:[%s15365_s3 + $0x28] ss:$16 sps:$4 sm:$0xff]  }
 0x7ab   :  { %3854 = vmatpush2.bf16.msra.mxu0 %v9100_v13  ;;  %v9115_v13 = vld [vmem:[%s15365_s3 + $0xc] ss:$16 sps:$4 sm:$0xff]  }
 0x7ac   :  { %3969 = vmatprep.subr.bf16.mxu0 %v9101_v41  ;;  %v9116_v41 = vld [vmem:[%s15365_s3 + $0x8] ss:$16 sps:$4 sm:$0xff]  }
 0x82e   :  { %v3776_v28 = vpop.f32.mrf.mxu0 }
 0x830   :  { %v3778_v29 = vpop.f32.mrf.mxu0 }
 0x832   :  { %v3780_v19 = vpop.f32.mrf.mxu0 }
 0x833   :  { %v12595_v0 = vpack.c.bf16 %v3780_v19, %v3776_v28  ;;  %v9117_v28 = vld [vmem:[%s15365_s3 + $0x1ec] ss:$16 sps:$4 sm:$0xff]  }
 0x834   :  { %v3782_v52 = vpop.f32.mrf.mxu0  ;;  %v9119_v19 = vld [vmem:[%s15365_s3 + $0x1cc] ss:$16 sps:$4 sm:$0xff]  }
 0x835   :  { %v12593_v15 = vpack.c.bf16 %v3782_v52, %v3778_v29  ;;  %v9118_v29 = vld [vmem:[%s15365_s3 + $0x1e8] ss:$16 sps:$4 sm:$0xff]  }
 0x836   :  { %v3786_v17 = vpop.f32.mrf.mxu0  ;;  %v9120_v52 = vld [vmem:[%s15365_s3 + $0x1c8] ss:$16 sps:$4 sm:$0xff]  }
 0x837   :  { %3855 = vmatprep.mubr.bf16.mxu0 %v12593_v15 }
 0x838   :  { %v3788_v21 = vpop.f32.mrf.mxu0  ;;  %3856 = vmatmul.mubr.bf16.vlgmr.msra.gmra.mxu0 %v12595_v0 }
 0x839   :  { %3970 = vmatpush1.bf16.msra.mxu0 %v9102_v20  ;;  %v9123_v20 = vld [vmem:[%s15365_s3 + $0x18c] ss:$16 sps:$4 sm:$0xff]  }
 0x83a   :  { %v3790_v63 = vpop.f32.mrf.mxu0  ;;  %3971 = vmatprep.subr.bf16.mxu0 %v9103_v44  ;;  %v9125_v44 = vld [vmem:[%s15365_s3 + $0x16c] ss:$16 sps:$4 sm:$0xff]  }
 0x83b   :  { %v12605_v3 = vpack.c.bf16 %v3790_v63, %v3786_v17  ;;  %v9121_v17 = vld [vmem:[%s15365_s3 + $0x1ac] ss:$16 sps:$4 sm:$0xff]   ;;  %v9124_v63 = vld [vmem:[%s15365_s3 + $0x188] ss:$16 sps:$4 sm:$0xff]  }
 0x83c   :  { %v3792_v47 = vpop.f32.mrf.mxu0 }
 0x83d   :  { %v12607_v36 = vpack.c.bf16 %v3792_v47, %v3788_v21  ;;  %3972 = vmatpush1.bf16.msra.mxu0 %v9104_v37  ;;  %v9122_v21 = vld [vmem:[%s15365_s3 + $0x1a8] ss:$16 sps:$4 sm:$0xff]   ;;  %v9127_v37 = vld [vmem:[%s15365_s3 + $0x14c] ss:$16 sps:$4 sm:$0xff]  }
 0x83e   :  { %v3796_v2 = vpop.f32.mrf.mxu0  ;;  %3973 = vmatprep.subr.bf16.mxu0 %v9105_v5  ;;  %v9126_v47 = vld [vmem:[%s15365_s3 + $0x168] ss:$16 sps:$4 sm:$0xff]   ;;  %v9129_v5 = vld [vmem:[%s15365_s3 + $0x12c] ss:$16 sps:$4 sm:$0xff]  }
 0x83f   :  { %3865 = vmatprep.mubr.bf16.mxu0 %v12607_v36 }
 0x840   :  { %v3798_v61 = vpop.f32.mrf.mxu0  ;;  %3866 = vmatmul.mubr.bf16.gmra.mxu0 %v12605_v3 }
 0x841   :  { %3974 = vmatpush1.bf16.msra.mxu0 %v9106_v12  ;;  %v9131_v12 = vld [vmem:[%s15365_s3 + $0x10c] ss:$16 sps:$4 sm:$0xff]  }
 0x842   :  { %v3800_v25 = vpop.f32.mrf.mxu0  ;;  %3975 = vmatprep.subr.bf16.mxu0 %v9107_v39  ;;  %v9133_v39 = vld [vmem:[%s15366_s4 + $0x74] ss:$8 sps:$4 sm:$0xff]  }
 0x843   :  { %v12623_v6 = vpack.c.bf16 %v3800_v25, %v3796_v2  ;;  %v9128_v2 = vld [vmem:[%s15365_s3 + $0x148] ss:$16 sps:$4 sm:$0xff]  }
 0x844   :  { %v3802_v51 = vpop.f32.mrf.mxu0  ;;  %v9132_v25 = vld [vmem:[%s15365_s3 + $0x108] ss:$16 sps:$4 sm:$0xff]  }
 0x845   :  { %v12625_v60 = vpack.c.bf16 %v3802_v51, %v3798_v61  ;;  %3976 = vmatpush1.bf16.msra.mxu0 %v9108_v46  ;;  %v9130_v61 = vld [vmem:[%s15365_s3 + $0x128] ss:$16 sps:$4 sm:$0xff]   ;;  %v9135_v46 = vld [vmem:[%s15366_s4 + $0x64] ss:$8 sps:$4 sm:$0xff]  }
 0x846   :  { %v3806_v62 = vpop.f32.mrf.mxu0  ;;  %3977 = vmatprep.subr.bf16.mxu0 %v9109_v9  ;;  %v9134_v51 = vld [vmem:[%s15366_s4 + $0x70] ss:$8 sps:$4 sm:$0xff]   ;;  %v9137_v9 = vld [vmem:[%s15366_s4 + $0x54] ss:$8 sps:$4 sm:$0xff]  }
 0x847   :  { %3875 = vmatprep.mubr.bf16.mxu0 %v12625_v60 }
 0x848   :  { %v3808_v56 = vpop.f32.mrf.mxu0  ;;  %3876 = vmatmul.mubr.bf16.gmra.mxu0 %v12623_v6 }
 0x849   :  { %3978 = vmatpush1.bf16.msra.mxu0 %v9110_v58  ;;  %v9139_v58 = vld [vmem:[%s15366_s4 + $0x44] ss:$8 sps:$4 sm:$0xff]  }
 0x84a   :  { %v3810_v11 = vpop.f32.mrf.mxu0  ;;  %3979 = vmatprep.subr.bf16.mxu0 %v9111_v4  ;;  %v9141_v4 = vld [vmem:[%s15366_s4 + $0x34] ss:$8 sps:$4 sm:$0xff]  }
 0x84b   :  { %v12641_v33 = vpack.c.bf16 %v3810_v11, %v3806_v62  ;;  %v9136_v62 = vld [vmem:[%s15366_s4 + $0x60] ss:$8 sps:$4 sm:$0xff]  }
 0x84c   :  { %v3812_v55 = vpop.f32.mrf.mxu0  ;;  %v9140_v11 = vld [vmem:[%s15366_s4 + $0x40] ss:$8 sps:$4 sm:$0xff]  }
 0x84d   :  { %v12643_v48 = vpack.c.bf16 %v3812_v55, %v3808_v56  ;;  %3980 = vmatpush1.bf16.msra.mxu0 %v9112_v49  ;;  %v9138_v56 = vld [vmem:[%s15366_s4 + $0x50] ss:$8 sps:$4 sm:$0xff]   ;;  %v9143_v49 = vld [vmem:[%s15366_s4 + $0x24] ss:$8 sps:$4 sm:$0xff]  }
 0x84e   :  { %3981 = vmatprep.subr.bf16.mxu0 %v9113_v43  ;;  %v9142_v55 = vld [vmem:[%s15366_s4 + $0x30] ss:$8 sps:$4 sm:$0xff]   ;;  %v9144_v43 = vld [vmem:[%s15366_s4 + $0x20] ss:$8 sps:$4 sm:$0xff]  }
 0x84f   :  { %3885 = vmatprep.mubr.bf16.mxu0 %v12643_v48 }
 0x850   :  { %3886 = vmatmul.mubr.bf16.gmra.mxu0 %v12641_v33 }
 0x851   :  { %3982 = vmatpush1.bf16.msra.mxu0 %v9114_v38  ;;  %4001 = vmatprep.mubr.bf16.mxu0 %v12593_v15  ;;  %v9145_v38 = vld [vmem:[%s15366_s4 + $0x14] ss:$8 sps:$4 sm:$0xff]  }
 0x852   :  { %3983 = vmatprep.subr.bf16.mxu0 %v9115_v13  ;;  %v9146_v13 = vld [vmem:[%s15366_s4 + $0x10] ss:$8 sps:$4 sm:$0xff]  }
 0x855   :  { %3984 = vmatpush1.bf16.msra.mxu0 %v9116_v41  ;;  %v9147_v41 = vld [vmem:[%s15366_s4 + $0x4] ss:$8 sps:$4 sm:$0xff]  }
 0x856   :  { %3985 = vmatprep.subr.bf16.mxu0 %v9117_v28  ;;  %v9148_v28 = vld [vmem:[%s15366_s4] ss:$8 sps:$4 sm:$0xff]  }
 0x859   :  { %3986 = vmatpush2.bf16.msra.mxu0 %v9118_v29  ;;  %v9149_v29 = vld [vmem:[%s15366_s4 + $0xf4] ss:$8 sps:$4 sm:$0xff]  }
 0x85a   :  { %3987 = vmatprep.subr.bf16.mxu0 %v9119_v19  ;;  %v9150_v19 = vld [vmem:[%s15366_s4 + $0xf0] ss:$8 sps:$4 sm:$0xff]  }
 0x85d   :  { %3988 = vmatpush2.bf16.msra.mxu0 %v9120_v52  ;;  %v9152_v52 = vld [vmem:[%s15366_s4 + $0xe0] ss:$8 sps:$4 sm:$0xff]  }
 0x85e   :  { %3989 = vmatprep.subr.bf16.mxu0 %v9121_v17  ;;  %v9153_v17 = vld [vmem:[%s15366_s4 + $0xd4] ss:$8 sps:$4 sm:$0xff]  }
 0x861   :  { %3990 = vmatpush2.bf16.msra.mxu0 %v9122_v21  ;;  %v9154_v21 = vld [vmem:[%s15366_s4 + $0xd0] ss:$8 sps:$4 sm:$0xff]  }
 0x862   :  { %3991 = vmatprep.subr.bf16.mxu0 %v9123_v20  ;;  %v9155_v20 = vld [vmem:[%s15366_s4 + $0xc4] ss:$8 sps:$4 sm:$0xff]  }
 0x865   :  { %3992 = vmatpush2.bf16.msra.mxu0 %v9124_v63  ;;  %v9156_v63 = vld [vmem:[%s15366_s4 + $0xc0] ss:$8 sps:$4 sm:$0xff]  }
 0x866   :  { %3993 = vmatprep.subr.bf16.mxu0 %v9125_v44  ;;  %v9157_v44 = vld [vmem:[%s15366_s4 + $0xb4] ss:$8 sps:$4 sm:$0xff]  }
 0x869   :  { %3994 = vmatpush2.bf16.msra.mxu0 %v9126_v47  ;;  %v9158_v47 = vld [vmem:[%s15366_s4 + $0xb0] ss:$8 sps:$4 sm:$0xff]  }
 0x86a   :  { %3995 = vmatprep.subr.bf16.mxu0 %v9127_v37  ;;  %v9159_v37 = vld [vmem:[%s15366_s4 + $0xa4] ss:$8 sps:$4 sm:$0xff]  }
 0x86d   :  { %3996 = vmatpush2.bf16.msra.mxu0 %v9128_v2  ;;  %v9160_v2 = vld [vmem:[%s15366_s4 + $0xa0] ss:$8 sps:$4 sm:$0xff]  }
 0x86e   :  { %3997 = vmatprep.subr.bf16.mxu0 %v9129_v5  ;;  %v9161_v5 = vld [vmem:[%s15366_s4 + $0x94] ss:$8 sps:$4 sm:$0xff]  }
 0x871   :  { %3998 = vmatpush2.bf16.msra.mxu0 %v9130_v61  ;;  %v9162_v61 = vld [vmem:[%s15366_s4 + $0x90] ss:$8 sps:$4 sm:$0xff]  }
 0x872   :  { %3999 = vmatprep.subr.bf16.mxu0 %v9131_v12  ;;  %v9163_v12 = vld [vmem:[%s15366_s4 + $0x84] ss:$8 sps:$4 sm:$0xff]  }
 0x875   :  { %4000 = vmatpush2.bf16.msra.mxu0 %v9132_v25  ;;  %v9164_v25 = vld [vmem:[%s15366_s4 + $0x80] ss:$8 sps:$4 sm:$0xff]  }
 0x876   :  { %4307 = vmatprep.subr.bf16.mxu0 %v9133_v39  ;;  %v12821_v39 = vpop.f32.mrf.mxu1 }
 0x878   :  { %4002 = vmatmul.mubr.bf16.vlgmr.msra.gmra.mxu0 %v12595_v0 }
 0x879   :  { %4011 = vmatprep.mubr.bf16.mxu0 %v12607_v36  ;;  %4308 = vmatpush1.bf16.msra.mxu0 %v9134_v51  ;;  %v12824_v51 = vpop.f32.mrf.mxu1 }
 0x87a   :  { %4309 = vmatprep.subr.bf16.mxu0 %v9135_v46 }
 0x87b   :  { %v12826_v46 = vpop.f32.mrf.mxu1 }
 0x87d   :  { %4310 = vmatpush1.bf16.msra.mxu0 %v9136_v62  ;;  %v7869_v62 = vld [vmem:[%s15364_s2 + $0x350] ss:$8 sps:$4 sm:$0xff]  }
 0x87e   :  { %4311 = vmatprep.subr.bf16.mxu0 %v9137_v9 }
 0x880   :  { %4012 = vmatmul.mubr.bf16.gmra.mxu0 %v12605_v3 }
 0x881   :  { %4021 = vmatprep.mubr.bf16.mxu0 %v12625_v60  ;;  %4312 = vmatpush1.bf16.msra.mxu0 %v9138_v56  ;;  %v7874_v56 = vld [vmem:[%s15364_s2 + $0x344] ss:$8 sps:$4 sm:$0xff]  }
 0x882   :  { %4313 = vmatprep.subr.bf16.mxu0 %v9139_v58  ;;  %v7872_v58 = vld [vmem:[%s15364_s2 + $0x340] ss:$8 sps:$4 sm:$0xff]  }
 0x885   :  { %4314 = vmatpush1.bf16.msra.mxu0 %v9140_v11 }
 0x886   :  { %4315 = vmatprep.subr.bf16.mxu0 %v9141_v4  ;;  %v7877_v4 = vld [vmem:[%s15364_s2 + $0x334] ss:$8 sps:$4 sm:$0xff]  }
 0x888   :  { %4022 = vmatmul.mubr.bf16.gmra.mxu0 %v12623_v6 }
 0x889   :  { %4031 = vmatprep.mubr.bf16.mxu0 %v12643_v48  ;;  %4316 = vmatpush1.bf16.msra.mxu0 %v9142_v55  ;;  %v7875_v55 = vld [vmem:[%s15364_s2 + $0x330] ss:$8 sps:$4 sm:$0xff]  }
 0x88a   :  { %4317 = vmatprep.subr.bf16.mxu0 %v9143_v49 }
 0x88d   :  { %4318 = vmatpush1.bf16.msra.mxu0 %v9144_v43  ;;  %v7880_v43 = vld [vmem:[%s15364_s2 + $0x324] ss:$8 sps:$4 sm:$0xff]  }
 0x88e   :  { %4319 = vmatprep.subr.bf16.mxu0 %v9145_v38  ;;  %v7878_v38 = vld [vmem:[%s15364_s2 + $0x320] ss:$8 sps:$4 sm:$0xff]  }
 0x890   :  { %4032 = vmatmul.mubr.bf16.gmra.mxu0 %v12641_v33 }
 0x891   :  { %4320 = vmatpush1.bf16.msra.mxu0 %v9146_v13  ;;  %4339 = vmatprep.mubr.bf16.mxu0 %v12593_v15  ;;  %v9151_v15 = vld [vmem:[%s15366_s4 + $0xe4] ss:$8 sps:$4 sm:$0xff]   ;;  %v7883_v13 = vld [vmem:[%s15364_s2 + $0x314] ss:$8 sps:$4 sm:$0xff]  }
 0x892   :  { %4321 = vmatprep.subr.bf16.mxu0 %v9147_v41 }
 0x895   :  { %4322 = vmatpush1.bf16.msra.mxu0 %v9148_v28  ;;  %v7881_v28 = vld [vmem:[%s15364_s2 + $0x310] ss:$8 sps:$4 sm:$0xff]  }
 0x896   :  { %4323 = vmatprep.subr.bf16.mxu0 %v9149_v29  ;;  %v7886_v29 = vld [vmem:[%s15364_s2 + $0x304] ss:$8 sps:$4 sm:$0xff]  }
 0x899   :  { %4324 = vmatpush2.bf16.msra.mxu0 %v9150_v19 }
 0x89a   :  { %4325 = vmatprep.subr.bf16.mxu0 %v9151_v15  ;;  %v7884_v15 = vld [vmem:[%s15364_s2 + $0x300] ss:$8 sps:$4 sm:$0xff]  }
 0x89d   :  { %4326 = vmatpush2.bf16.msra.mxu0 %v9152_v52 }
 0x89e   :  { %4327 = vmatprep.subr.bf16.mxu0 %v9153_v17  ;;  %v7889_v17 = vld [vmem:[%s15364_s2 + $0x3f4] ss:$8 sps:$4 sm:$0xff]  }
 0x8a1   :  { %4328 = vmatpush2.bf16.msra.mxu0 %v9154_v21  ;;  %v7887_v21 = vld [vmem:[%s15364_s2 + $0x3f0] ss:$8 sps:$4 sm:$0xff]  }
 0x8a2   :  { %4329 = vmatprep.subr.bf16.mxu0 %v9155_v20 }
 0x8a5   :  { %4330 = vmatpush2.bf16.msra.mxu0 %v9156_v63 }
 0x8a6   :  { %4331 = vmatprep.subr.bf16.mxu0 %v9157_v44  ;;  %v7892_v44 = vld [vmem:[%s15364_s2 + $0x3e4] ss:$8 sps:$4 sm:$0xff]  }
 0x8a9   :  { %4332 = vmatpush2.bf16.msra.mxu0 %v9158_v47  ;;  %v7890_v47 = vld [vmem:[%s15364_s2 + $0x3e0] ss:$8 sps:$4 sm:$0xff]  }
 0x8aa   :  { %4333 = vmatprep.subr.bf16.mxu0 %v9159_v37 }
 0x8ad   :  { %4334 = vmatpush2.bf16.msra.mxu0 %v9160_v2 }
 0x8ae   :  { %4335 = vmatprep.subr.bf16.mxu0 %v9161_v5  ;;  %v7895_v5 = vld [vmem:[%s15364_s2 + $0x3d4] ss:$8 sps:$4 sm:$0xff]  }
 0x8b1   :  { %4336 = vmatpush2.bf16.msra.mxu0 %v9162_v61  ;;  %v7893_v61 = vld [vmem:[%s15364_s2 + $0x3d0] ss:$8 sps:$4 sm:$0xff]  }
 0x8b2   :  { %4337 = vmatprep.subr.bf16.mxu0 %v9163_v12 }
 0x8b5   :  { %4338 = vmatpush2.bf16.msra.mxu0 %v9164_v25 }
 0x8b8   :  { %4340 = vmatmul.mubr.bf16.vlgmr.msra.gmra.mxu0 %v12595_v0  ;;  %v7865_v0 = vld [vmem:[%s15364_s2 + $0x374] ss:$8 sps:$4 sm:$0xff]  }
 0x8b9   :  { %4349 = vmatprep.mubr.bf16.mxu0 %v12607_v36  ;;  %4750 = vmatprep.subr.bf16.mxu0 %v7865_v0  ;;  %v12834_v36 = vpop.f32.mrf.mxu1  ;;  %v7898_v0 = vld [vmem:[%s15364_s2 + $0x3c4] ss:$8 sps:$4 sm:$0xff]  }
 0x8c0   :  { %4350 = vmatmul.mubr.bf16.gmra.mxu0 %v12605_v3  ;;  %v7863_v3 = vld [vmem:[%s15364_s2 + $0x370] ss:$8 sps:$4 sm:$0xff]  }
 0x8c1   :  { %4359 = vmatprep.mubr.bf16.mxu0 %v12625_v60  ;;  %4751 = vmatpush1.bf16.msra.mxu0 %v7863_v3  ;;  %v7866_v60 = vld [vmem:[%s15364_s2 + $0x360] ss:$8 sps:$4 sm:$0xff]  }
 0x8c2   :  { %v7896_v3 = vld [vmem:[%s15364_s2 + $0x3c0] ss:$8 sps:$4 sm:$0xff]  }
 0x8c8   :  { %4360 = vmatmul.mubr.bf16.gmra.mxu0 %v12623_v6  ;;  %v7868_v6 = vld [vmem:[%s15364_s2 + $0x364] ss:$8 sps:$4 sm:$0xff]  }
 0x8c9   :  { %4369 = vmatprep.mubr.bf16.mxu0 %v12643_v48  ;;  %4752 = vmatprep.subr.bf16.mxu0 %v7868_v6  ;;  %v7871_v48 = vld [vmem:[%s15364_s2 + $0x354] ss:$8 sps:$4 sm:$0xff]  }
 0x8ca   :  { %4753 = vmatpush1.bf16.msra.mxu0 %v7866_v60 }
 0x8cb   :  { %4754 = vmatprep.subr.bf16.mxu0 %v7871_v48  ;;  %v7901_v48 = vld [vmem:[%s15364_s2 + $0x3b4] ss:$8 sps:$4 sm:$0xff]  }
 0x8ce   :  { %4755 = vmatpush1.bf16.msra.mxu0 %v7869_v62  ;;  %v7899_v62 = vld [vmem:[%s15364_s2 + $0x3b0] ss:$8 sps:$4 sm:$0xff]  }
 0x8cf   :  { %4756 = vmatprep.subr.bf16.mxu0 %v7874_v56 }
 0x8d0   :  { %4370 = vmatmul.mubr.bf16.gmra.mxu0 %v12641_v33  ;;  %v12842_v33 = vpop.f32.mrf.mxu1 }
 0x8d2   :  { %v12850_v9 = vpop.f32.mrf.mxu1  ;;  %4757 = vmatpush1.bf16.msra.mxu0 %v7872_v58 }
 0x8d3   :  { %4758 = vmatprep.subr.bf16.mxu0 %v7877_v4  ;;  %v7904_v4 = vld [vmem:[%s15364_s2 + $0x3a4] ss:$8 sps:$4 sm:$0xff]  }
 0x8d4   :  { %v12858_v11 = vpop.f32.mrf.mxu1 }
 0x8d6   :  { %v12866_v49 = vpop.f32.mrf.mxu1  ;;  %4759 = vmatpush1.bf16.msra.mxu0 %v7875_v55 }
 0x8d7   :  { %4760 = vmatprep.subr.bf16.mxu0 %v7880_v43  ;;  %v7902_v43 = vld [vmem:[%s15364_s2 + $0x3a0] ss:$8 sps:$4 sm:$0xff]  }
 0x8d8   :  { %v12877_v41 = vpop.f32.mrf.mxu1 }
 0x8da   :  { %4761 = vmatpush1.bf16.msra.mxu0 %v7878_v38  ;;  %v12885_v19 = vpop.f32.mrf.mxu1 }
 0x8db   :  { %4762 = vmatprep.subr.bf16.mxu0 %v7883_v13  ;;  %v7907_v13 = vld [vmem:[%s15364_s2 + $0x394] ss:$8 sps:$4 sm:$0xff]  }
 0x8dc   :  { %v12890_v52 = vpop.f32.mrf.mxu1 }
 0x8de   :  { %4763 = vmatpush1.bf16.msra.mxu0 %v7881_v28  ;;  %v12898_v20 = vpop.f32.mrf.mxu1 }
 0x8df   :  { %4764 = vmatprep.subr.bf16.mxu0 %v7886_v29  ;;  %v7905_v29 = vld [vmem:[%s15364_s2 + $0x390] ss:$8 sps:$4 sm:$0xff]  }
 0x8e0   :  { %v12906_v37 = vpop.f32.mrf.mxu1 }
 0x8e2   :  { %4765 = vmatpush1.bf16.msra.mxu0 %v7884_v15  ;;  %v12914_v12 = vpop.f32.mrf.mxu1 }
 0x8e3   :  { %4766 = vmatprep.subr.bf16.mxu0 %v7889_v17  ;;  %v7910_v17 = vld [vmem:[%s15364_s2 + $0x384] ss:$8 sps:$4 sm:$0xff]  }
 0x8e4   :  { %v12922_v6 = vpop.f32.mrf.mxu1 }
 0x8e6   :  { %4767 = vmatpush2.bf16.msra.mxu0 %v7887_v21  ;;  %v12930_v56 = vpop.f32.mrf.mxu1 }
 0x8e7   :  { %4768 = vmatprep.subr.bf16.mxu0 %v7892_v44  ;;  %v7908_v44 = vld [vmem:[%s15364_s2 + $0x380] ss:$8 sps:$4 sm:$0xff]  }
 0x8e8   :  { %v12935_v55 = vpop.f32.mrf.mxu1 }
 0x8ea   :  { %4769 = vmatpush2.bf16.msra.mxu0 %v7890_v47  ;;  %v12943_v28 = vpop.f32.mrf.mxu1 }
 0x8eb   :  { %4770 = vmatprep.subr.bf16.mxu0 %v7895_v5  ;;  %v9165_v5 = vld [vmem:[%s15365_s3 + $0x2e4] ss:$16 sps:$4 sm:$0xff]  }
 0x8ec   :  { %v12951_v21 = vpop.f32.mrf.mxu1 }
 0x8ee   :  { %4771 = vmatpush2.bf16.msra.mxu0 %v7893_v61  ;;  %v12959_v61 = vpop.f32.mrf.mxu1 }
 0x8ef   :  { %4772 = vmatprep.subr.bf16.mxu0 %v7898_v0 }
 0x8f2   :  { %4773 = vmatpush2.bf16.msra.mxu0 %v7896_v3  ;;  %v12961_v3 = vpop.f32.mrf.mxu1 }
 0x8f3   :  { %4774 = vmatprep.subr.bf16.mxu0 %v7901_v48 }
 0x8f6   :  { %4775 = vmatpush2.bf16.msra.mxu0 %v7899_v62  ;;  %v12963_v62 = vpop.f32.mrf.mxu1 }
 0x8f7   :  { %4776 = vmatprep.subr.bf16.mxu0 %v7904_v4 }
 0x8f8   :  { %v3857_v63 = vpop.f32.mrf.mxu0 }
 0x8fa   :  { %v3859_v2 = vpop.f32.mrf.mxu0  ;;  %4777 = vmatpush2.bf16.msra.mxu0 %v7902_v43  ;;  %v12965_v43 = vpop.f32.mrf.mxu1 }
 0x8fb   :  { %4778 = vmatprep.subr.bf16.mxu0 %v7907_v13  ;;  %v3860_v14 = vadd.f32 %v3859_v2, %v10639_v32 }
 0x8fc   :  { %v3861_v25 = vpop.f32.mrf.mxu0 }
 0x8fd   :  { %v3933_v42 = vadd.f32 %v12824_v51, %v3860_v14  ;;  %v3862_v45 = vadd.f32 %v3861_v25, %v10629_v24 }
 0x8fe   :  { %v3863_v60 = vpop.f32.mrf.mxu0  ;;  %4779 = vmatpush2.bf16.msra.mxu0 %v7905_v29  ;;  %v12967_v29 = vpop.f32.mrf.mxu1 }
 0x8ff   :  { %4780 = vmatprep.subr.bf16.mxu0 %v7910_v17  ;;  %v3864_v57 = vadd.f32 %v3863_v60, %v10639_v32  ;;  %v3935_v2 = vadd.f32 %v12826_v46, %v3862_v45 }
 0x900   :  { %v3867_v58 = vpop.f32.mrf.mxu0 }
 0x901   :  { %v3868_v35 = vadd.f32 %v3867_v58, %v10629_v24  ;;  %v3937_v14 = vadd.f32 %v12834_v36, %v3864_v57  ;;  %v7193_v25 = vmul.f32 -1.442695, %v3935_v2 }
 0x902   :  { %v3869_v38 = vpop.f32.mrf.mxu0  ;;  %4781 = vmatpush2.bf16.msra.mxu0 %v7908_v44  ;;  %v12969_v44 = vpop.f32.mrf.mxu1 }
 0x903   :  { %4985 = vmatprep.subr.bf16.mxu0 %v9165_v5  ;;  %v3858_v5 = vadd.f32 %v3857_v63, %v10629_v24  ;;  %v3941_v60 = vadd.f32 %v12842_v33, %v3868_v35  ;;  %v7194_v1 = vmul.f32 -1.442695, %v3937_v14 }
 0x904   :  { %v3871_v15 = vpop.f32.mrf.mxu0  ;;  %v12971_v40 = vpop.f32.mrf.mxu1 }
 0x905   :  { %v3931_v31 = vadd.f32 %v12821_v39, %v3858_v5  ;;  %v7192_v39 = vmul.f32 -1.442695, %v3933_v42  ;;  %v3872_v42 = vadd.f32 %v3871_v15, %v10629_v24  ;;  %v7195_v57 = vmul.f32 -1.442695, %v3941_v60 }
 0x906   :  { %v3873_v47 = vpop.f32.mrf.mxu0  ;;  %v12974_v16 = vpop.f32.mrf.mxu1 }
 0x907   :  { %v7191_v7 = vmul.f32 -1.442695, %v3931_v31  ;;  %v3870_v31 = vadd.f32 %v3869_v38, %v10639_v32  ;;  %v3874_v46 = vadd.f32 %v3873_v47, %v10639_v32  ;;  %v3945_v36 = vadd.f32 %v12858_v11, %v3872_v42 }
 0x908   :  { %v3877_v0 = vpop.f32.mrf.mxu0  ;;  %v12978_v8 = vpop.f32.mrf.mxu1 }
 0x909   :  { %8279 = vpow2.f32 %v7191_v7  ;;  %v3943_v45 = vadd.f32 %v12850_v9, %v3870_v31  ;;  %v3878_v38 = vadd.f32 %v3877_v0, %v10629_v24  ;;  %v3947_v9 = vadd.f32 %v12866_v49, %v3874_v46 }
 0x90a   :  { %v3879_v48 = vpop.f32.mrf.mxu0  ;;  %v12983_v34 = vpop.f32.mrf.mxu1  ;;  %8281 = vpow2.f32 %v7192_v39  ;;  %v7197_v14 = vmul.f32 -1.442695, %v3945_v36 }
 0x90b   :  { %8283 = vpow2.f32 %v7193_v25  ;;  %v3880_v39 = vadd.f32 %v3879_v48, %v10639_v32  ;;  %v7196_v15 = vmul.f32 -1.442695, %v3943_v45  ;;  %v3951_v31 = vadd.f32 %v12877_v41, %v3878_v38 }
 0x90c   :  { %v3881_v4 = vpop.f32.mrf.mxu0  ;;  %v12989_v5 = vpop.f32.mrf.mxu1  ;;  %8285 = vpow2.f32 %v7194_v1  ;;  %v7198_v1 = vmul.f32 -1.442695, %v3947_v9 }
 0x90d   :  { %v3882_v47 = vadd.f32 %v3881_v4, %v10629_v24  ;;  %8287 = vpow2.f32 %v7195_v57  ;;  %v3953_v0 = vadd.f32 %v12885_v19, %v3880_v39 }
 0x90e   :  { %v3883_v13 = vpop.f32.mrf.mxu0  ;;  %v12997_v51 = vpop.f32.mrf.mxu1  ;;  %8289 = vpow2.f32 %v7196_v15 }
 0x90f   :  { %v3884_v11 = vadd.f32 %v3883_v13, %v10639_v32  ;;  %v3955_v49 = vadd.f32 %v12890_v52, %v3882_v47  ;;  %8291 = vpow2.f32 %v7197_v14  ;;  %v7199_v13 = vmul.f32 -1.442695, %v3951_v31 }
 0x910   :  { %v3887_v17 = vpop.f32.mrf.mxu0  ;;  %v13005_v58 = vpop.f32.mrf.mxu1  ;;  %v7200_v46 = vmul.f32 -1.442695, %v3953_v0  ;;  %8293 = vpow2.f32 %v7198_v1 }
 0x911   :  { %v3888_v48 = vadd.f32 %v3887_v17, %v10629_v24  ;;  %v3957_v19 = vadd.f32 %v12898_v20, %v3884_v11  ;;  %v7201_v52 = vmul.f32 -1.442695, %v3955_v49 }
 0x912   :  { %v3889_v50 = vpop.f32.mrf.mxu0  ;;  %v13012_v33 = vpop.f32.mrf.mxu1 }
 0x913   :  { %v3890_v4 = vadd.f32 %v3889_v50, %v10639_v32  ;;  %v3961_v17 = vadd.f32 %v12906_v37, %v3888_v48  ;;  %v7202_v15 = vmul.f32 -1.442695, %v3957_v19 }
 0x914   :  { %v3891_v10 = vpop.f32.mrf.mxu0  ;;  %v13022_v60 = vpop.f32.mrf.mxu1 }
 0x915   :  { %v3892_v45 = vadd.f32 %v3891_v10, %v10629_v24  ;;  %v3963_v50 = vadd.f32 %v12914_v12, %v3890_v4 }
 0x916   :  { %v3893_v18 = vpop.f32.mrf.mxu0  ;;  %v8280_v2 = vpop.eup %8279 }
 0x917   :  { %v4163_v42 = vadd.f32 1.0, %v8280_v2  ;;  %v8282_v41 = vpop.eup %8281  ;;  %v3894_v57 = vadd.f32 %v3893_v18, %v10639_v32  ;;  %v13032_v38 = vpop.f32.mrf.mxu1  ;;  %v3965_v39 = vadd.f32 %v12922_v6, %v3892_v45  ;;  %v7203_v18 = vmul.f32 -1.442695, %v3961_v17 }
 0x918   :  { %v4164_v10 = vadd.f32 1.0, %v8282_v41  ;;  %v8284_v37 = vpop.eup %8283  ;;  %v7204_v14 = vmul.f32 -1.442695, %v3963_v50 }
 0x919   :  { %8295 = vrcp.f32 %v4163_v42  ;;  %v3967_v9 = vadd.f32 %v12930_v56, %v3894_v57  ;;  %v13043_v12 = vpop.f32.mrf.mxu1  ;;  %v8286_v6 = vpop.eup %8285  ;;  %v7205_v31 = vmul.f32 -1.442695, %v3965_v39  ;;  %v4165_v0 = vadd.f32 1.0, %v8284_v37 }
 0x91a   :  { %8297 = vpow2.f32 %v7199_v13  ;;  %v8288_v56 = vpop.eup %8287  ;;  %v4166_v42 = vadd.f32 1.0, %v8286_v6 }
 0x91b   :  { %8299 = vpow2.f32 %v7200_v46  ;;  %v7206_v48 = vmul.f32 -1.442695, %v3967_v9  ;;  %v13051_v4 = vpop.f32.mrf.mxu1  ;;  %v8290_v45 = vpop.eup %8289  ;;  %v4167_v13 = vadd.f32 1.0, %v8288_v56 }
 0x91c   :  { %8301 = vpow2.f32 %v7201_v52  ;;  %v8292_v19 = vpop.eup %8291  ;;  %v4168_v57 = vadd.f32 1.0, %v8290_v45 }
 0x91d   :  { %8303 = vrcp.f32 %v4164_v10  ;;  %v13057_v17 = vpop.f32.mrf.mxu1  ;;  %v8294_v52 = vpop.eup %8293  ;;  %v4169_v39 = vadd.f32 1.0, %v8292_v19 }
 0x91e   :  { %8305 = vpow2.f32 %v7202_v15  ;;  %v4170_v9 = vadd.f32 1.0, %v8294_v52 }
 0x91f   :  { %8307 = vpow2.f32 %v7203_v18  ;;  %v13064_v18 = vpop.f32.mrf.mxu1 }
 0x920   :  { %8309 = vpow2.f32 %v7204_v14 }
 0x921   :  { %8311 = vpow2.f32 %v7205_v31 }
 0x922   :  { %8313 = vrcp.f32 %v4165_v0 }
 0x923   :  { %8315 = vpow2.f32 %v7206_v48  ;;  %v13071_v48 = vpop.f32.mrf.mxu1 }
 0x924   :  { %8317 = vrcp.f32 %v4166_v42 }
 0x926   :  { %v13062_v10 = vpop.eup %8295 }
 0x938   :  { %v12980_v30 = vpop.f32.mrf.mxu0 }
 0x939   :  { %v4004_v20 = vadd.f32 %v12980_v30, %v10695_v22 }
 0x93a   :  { %v12986_v63 = vpop.f32.mrf.mxu0 }
 0x93b   :  { %v4006_v47 = vadd.f32 %v12986_v63, %v10703_v26  ;;  %v4077_v30 = vadd.f32 %v12935_v55, %v4004_v20  ;;  %v8298_v20 = vpop.eup %8297 }
 0x93c   :  { %v12993_v27 = vpop.f32.mrf.mxu0  ;;  %v8300_v37 = vpop.eup %8299 }
 0x93d   :  { %v4008_v11 = vadd.f32 %v12993_v27, %v10695_v22  ;;  %v4079_v63 = vadd.f32 %v12943_v28, %v4006_v47  ;;  %v7207_v55 = vmul.f32 -1.442695, %v4077_v30  ;;  %v8302_v47 = vpop.eup %8301 }
 0x93e   :  { %v13001_v7 = vpop.f32.mrf.mxu0  ;;  %v13067_v6 = vpop.eup %8303 }
 0x93f   :  { %v4010_v1 = vadd.f32 %v13001_v7, %v10703_v26  ;;  %v4081_v27 = vadd.f32 %v12951_v21, %v4008_v11  ;;  %v7208_v28 = vmul.f32 -1.442695, %v4079_v63  ;;  %8319 = vpow2.f32 %v7207_v55  ;;  %v8306_v30 = vpop.eup %8305 }
 0x940   :  { %v13010_v35 = vpop.f32.mrf.mxu0  ;;  %8321 = vrcp.f32 %v4167_v13  ;;  %v4172_v11 = vadd.f32 1.0, %v8300_v37  ;;  %v8308_v56 = vpop.eup %8307  ;;  %v4173_v63 = vadd.f32 1.0, %v8302_v47  ;;  %v4174_v55 = vadd.f32 1.0, %v8306_v30 }
 0x941   :  { %v4014_v41 = vadd.f32 %v13010_v35, %v10695_v22  ;;  %v4083_v7 = vadd.f32 %v12959_v61, %v4010_v1  ;;  %v7209_v50 = vmul.f32 -1.442695, %v4081_v27  ;;  %8323 = vpow2.f32 %v7208_v28 }
 0x942   :  { %v13020_v25 = vpop.f32.mrf.mxu0  ;;  %8325 = vrcp.f32 %v4168_v57  ;;  %v4175_v13 = vadd.f32 1.0, %v8308_v56 }
 0x943   :  { %v4087_v21 = vadd.f32 %v12961_v3, %v4014_v41  ;;  %v4016_v35 = vadd.f32 %v13020_v25, %v10703_v26  ;;  %v7210_v61 = vmul.f32 -1.442695, %v4083_v7  ;;  %8327 = vpow2.f32 %v7209_v50  ;;  %v13079_v7 = vpop.f32.mrf.mxu1 }
 0x944   :  { %v13030_v36 = vpop.f32.mrf.mxu0  ;;  %8329 = vrcp.f32 %v4169_v39  ;;  %v4171_v25 = vadd.f32 1.0, %v8298_v20 }
 0x945   :  { %v7211_v14 = vmul.f32 -1.442695, %v4087_v21  ;;  %v4089_v3 = vadd.f32 %v12963_v62, %v4016_v35  ;;  %v4018_v31 = vadd.f32 %v13030_v36, %v10695_v22  ;;  %8331 = vpow2.f32 %v7210_v61  ;;  %v8310_v62 = vpop.eup %8309 }
 0x946   :  { %v13041_v2 = vpop.f32.mrf.mxu0  ;;  %8333 = vrcp.f32 %v4170_v9  ;;  %v8312_v45 = vpop.eup %8311 }
 0x947   :  { %v4020_v1 = vadd.f32 %v13041_v2, %v10703_v26  ;;  %8335 = vpow2.f32 %v7211_v14  ;;  %v7212_v42 = vmul.f32 -1.442695, %v4089_v3  ;;  %v4091_v36 = vadd.f32 %v12965_v43, %v4018_v31  ;;  %v13077_v41 = vpop.eup %8313 }
 0x948   :  { %v4023_v49 = vpop.f32.mrf.mxu0  ;;  %8337 = vrcp.f32 %v4171_v25  ;;  %v8316_v28 = vpop.eup %8315  ;;  %v4176_v2 = vadd.f32 1.0, %v8310_v62  ;;  %v4177_v21 = vadd.f32 1.0, %v8312_v45 }
 0x949   :  { %v4024_v27 = vadd.f32 %v4023_v49, %v10695_v22  ;;  %8339 = vrcp.f32 %v4172_v11  ;;  %v4093_v57 = vadd.f32 %v12967_v29, %v4020_v1  ;;  %v13083_v50 = vpop.eup %8317  ;;  %v7213_v49 = vmul.f32 -1.442695, %v4091_v36  ;;  %v13089_v29 = vpop.f32.mrf.mxu1 }
 0x94a   :  { %v4025_v46 = vpop.f32.mrf.mxu0  ;;  %8341 = vrcp.f32 %v4173_v63  ;;  %v4178_v61 = vadd.f32 1.0, %v8316_v28 }
 0x94b   :  { %v4026_v52 = vadd.f32 %v4025_v46, %v10703_v26  ;;  %8343 = vpow2.f32 %v7212_v42  ;;  %v4097_v35 = vadd.f32 %v12969_v44, %v4024_v27  ;;  %v7214_v46 = vmul.f32 -1.442695, %v4093_v57 }
 0x94c   :  { %v4027_v15 = vpop.f32.mrf.mxu0  ;;  %v8320_v43 = vpop.eup %8319  ;;  %8345 = vrcp.f32 %v4174_v55 }
 0x94d   :  { %v4028_v39 = vadd.f32 %v4027_v15, %v10695_v22  ;;  %v13087_v20 = vpop.eup %8321  ;;  %8347 = vrcp.f32 %v4175_v13  ;;  %v4099_v47 = vadd.f32 %v12971_v40, %v4026_v52  ;;  %v4259_v44 = vadd.f32 1.0, %v8320_v43  ;;  %v13099_v40 = vpop.f32.mrf.mxu1 }
 0x94e   :  { %v4029_v0 = vpop.f32.mrf.mxu0  ;;  %v8324_v9 = vpop.eup %8323  ;;  %8349 = vrcp.f32 %v4176_v2  ;;  %v7215_v15 = vmul.f32 -1.442695, %v4097_v35 }
 0x94f   :  { %v4030_v14 = vadd.f32 %v4029_v0, %v10703_v26  ;;  %v13093_v3 = vpop.eup %8325  ;;  %8351 = vrcp.f32 %v4177_v21  ;;  %v4101_v31 = vadd.f32 %v12974_v16, %v4028_v39  ;;  %v4260_v56 = vadd.f32 1.0, %v8324_v9  ;;  %v13112_v57 = vpop.f32.mrf.mxu1 }
 0x950   :  { %v4033_v19 = vpop.f32.mrf.mxu0  ;;  %v8328_v25 = vpop.eup %8327  ;;  %8353 = vpow2.f32 %v7213_v49  ;;  %v7216_v0 = vmul.f32 -1.442695, %v4099_v47 }
 0x951   :  { %v4034_v30 = vadd.f32 %v4033_v19, %v10695_v22  ;;  %v13097_v11 = vpop.eup %8329  ;;  %8355 = vrcp.f32 %v4178_v61  ;;  %v4103_v62 = vadd.f32 %v12978_v8, %v4030_v14  ;;  %v4261_v45 = vadd.f32 1.0, %v8328_v25  ;;  %v13130_v25 = vpop.f32.mrf.mxu1 }
 0x952   :  { %v4035_v37 = vpop.f32.mrf.mxu0  ;;  %v8332_v1 = vpop.eup %8331  ;;  %8357 = vpow2.f32 %v7214_v46  ;;  %v7217_v16 = vmul.f32 -1.442695, %v4101_v31  ;;  %v4415_v8 = vadd.f32 %v13012_v33, %v10774_v23  ;;  %v4419_v46 = vadd.f32 %v13032_v38, %v10774_v23 }
 0x953   :  { %v13102_v42 = vpop.eup %8333  ;;  %8359 = vrcp.f32 %v4259_v44  ;;  %v4107_v36 = vadd.f32 %v12983_v34, %v4034_v30  ;;  %v4262_v13 = vadd.f32 1.0, %v8332_v1  ;;  %v4036_v19 = vadd.f32 %v4035_v37, %v10703_v26 }
 0x954   :  { %v4037_v63 = vpop.f32.mrf.mxu0  ;;  %v8336_v55 = vpop.eup %8335  ;;  %8361 = vpow2.f32 %v7215_v15  ;;  %v7218_v52 = vmul.f32 -1.442695, %v4103_v62  ;;  %v4417_v34 = vadd.f32 %v13022_v60, %v10784_v53  ;;  %v4453_v33 = vmul.f32 %v13062_v10, %v4415_v8 }
 0x955   :  { %v13105_v27 = vpop.eup %8337  ;;  %8363 = vrcp.f32 %v4260_v56  ;;  %v4263_v43 = vadd.f32 1.0, %v8336_v55  ;;  %v4038_v49 = vadd.f32 %v4037_v63, %v10695_v22  ;;  %v7219_v61 = vmul.f32 -1.442695, %v4107_v36 }
 0x956   :  { %v4039_v28 = vpop.f32.mrf.mxu0  ;;  %v13108_v2 = vpop.eup %8339  ;;  %8365 = vpow2.f32 %v7216_v0  ;;  %v4421_v60 = vadd.f32 %v13043_v12, %v10784_v53  ;;  %v4109_v47 = vadd.f32 %v12989_v5, %v4036_v19  ;;  %v4454_v31 = vmul.f32 %v13067_v6, %v4417_v34 }
 0x957   :  { %v13114_v21 = vpop.eup %8341  ;;  %8367 = vrcp.f32 %v4261_v45  ;;  %v4111_v12 = vadd.f32 %v12997_v51, %v4038_v49  ;;  %v4040_v56 = vadd.f32 %v4039_v28, %v10703_v26  ;;  %v4455_v62 = vmul.f32 %v13077_v41, %v4419_v46 }
 0x958   :  { %v8344_v39 = vpop.eup %8343  ;;  %8369 = vpow2.f32 %v7217_v16  ;;  %v4425_v6 = vadd.f32 %v13051_v4, %v10774_v23  ;;  %v4427_v55 = vadd.f32 %v13057_v17, %v10784_v53  ;;  %v7220_v16 = vmul.f32 -1.442695, %v4109_v47 }
 0x959   :  { %v13121_v9 = vpop.eup %8345  ;;  %8371 = vrcp.f32 %v4262_v13  ;;  %v4264_v38 = vadd.f32 1.0, %v8344_v39  ;;  %v4446_v13 = vpop.f32.mrf.mxu1  ;;  %v4456_v8 = vmul.f32 %v13083_v50, %v4421_v60  ;;  %v4113_v4 = vadd.f32 %v13005_v58, %v4040_v56 }
 0x95a   :  { %v13128_v44 = vpop.eup %8347  ;;  %8373 = vpow2.f32 %v7218_v52  ;;  %v7221_v52 = vmul.f32 -1.442695, %v4111_v12  ;;  %v4457_v17 = vmul.f32 %v13087_v20, %v4425_v6  ;;  %v4431_v50 = vadd.f32 %v13071_v48, %v10784_v53 }
 0x95b   :  { %v13134_v30 = vpop.eup %8349  ;;  %8375 = vrcp.f32 %v4263_v43  ;;  %v4448_v46 = vpop.f32.mrf.mxu1  ;;  %v4458_v47 = vmul.f32 %v13093_v3, %v4427_v55  ;;  %v7222_v48 = vmul.f32 -1.442695, %v4113_v4  ;;  %v4439_v3 = vadd.f32 %v13099_v40, %v10774_v23 }
 0x95c   :  { %v13138_v63 = vpop.eup %8351  ;;  %8377 = vpow2.f32 %v7219_v61  ;;  %v4460_v55 = vmul.f32 %v13102_v42, %v4431_v50  ;;  %v4447_v4 = vadd.f32 %v4446_v13, %v10784_v53  ;;  %v4449_v42 = vadd.f32 %v4448_v46, %v10774_v23 }
 0x95d   :  { %v8354_v45 = vpop.eup %8353  ;;  %v4463_v50 = vmul.f32 %v13114_v21, %v4439_v3  ;;  %v15487_v21 = vld [vmem:[#allocation8_spill] sm:$0xff] }
 0x95e   :  { %v13146_v36 = vpop.eup %8355  ;;  %v4265_v49 = vadd.f32 1.0, %v8354_v45 }
 0x95f   :  { %v8358_v41 = vpop.eup %8357 }
 0x960   :  { %v13152_v43 = vpop.eup %8359 }
 0x961   :  { %v8362_v61 = vpop.eup %8361 }
 0x962   :  { %v13159_v58 = vpop.eup %8363  ;;  %v4267_v40 = vadd.f32 1.0, %v8362_v61 }
 0x978   :  { %v4341_v35 = vpop.f32.mrf.mxu0 }
 0x979   :  { %v4342_v37 = vadd.f32 %v4341_v35, %v10795_v59 }
 0x97a   :  { %v4343_v14 = vpop.f32.mrf.mxu0 }
 0x97b   :  { %v4469_v15 = vadd.f32 %v4453_v33, %v4342_v37  ;;  %v4344_v10 = vadd.f32 %v4343_v14, %v10807_v54  ;;  %v4429_v37 = vadd.f32 %v13064_v18, %v10774_v23  ;;  %v8366_v14 = vpop.eup %8365  ;;  %v4437_v18 = vadd.f32 %v13089_v29, %v10784_v53 }
 0x97c   :  { %v4345_v5 = vpop.f32.mrf.mxu0 }
 0x97d   :  { %v4470_v1 = vadd.f32 %v4454_v31, %v4344_v10  ;;  %v4346_v0 = vadd.f32 %v4345_v5, %v10795_v59  ;;  %8379 = vtanh.f32 %v4469_v15  ;;  %v4435_v15 = vadd.f32 %v13079_v7, %v10774_v23  ;;  %v13167_v31 = vpop.eup %8367 }
 0x97e   :  { %v4347_v51 = vpop.f32.mrf.mxu0  ;;  %v4459_v56 = vmul.f32 %v13097_v11, %v4429_v37  ;;  %v8370_v5 = vpop.eup %8369  ;;  %v4441_v7 = vadd.f32 %v13112_v57, %v10784_v53 }
 0x97f   :  { %8381 = vtanh.f32 %v4470_v1  ;;  %v4471_v19 = vadd.f32 %v4455_v62, %v4346_v0  ;;  %v4348_v28 = vadd.f32 %v4347_v51, %v10807_v54  ;;  %v4266_v1 = vadd.f32 1.0, %v8358_v41  ;;  %v13175_v0 = vpop.eup %8371  ;;  %v4450_v62 = vpop.f32.mrf.mxu1 }
 0x980   :  { %8383 = vrcp.f32 %v4264_v38  ;;  %v4351_v34 = vpop.f32.mrf.mxu0  ;;  %v8374_v11 = vpop.eup %8373  ;;  %v4461_v57 = vmul.f32 %v13105_v27, %v4435_v15  ;;  %v4269_v61 = vadd.f32 1.0, %v8370_v5  ;;  %v4464_v13 = vmul.f32 %v13121_v9, %v4441_v7  ;;  %v15485_v15 = vld [vmem:[#allocation7_spill] sm:$0xff] }
 0x981   :  { %8385 = vtanh.f32 %v4471_v19  ;;  %v4472_v35 = vadd.f32 %v4456_v8, %v4348_v28  ;;  %v4352_v39 = vadd.f32 %v4351_v34, %v10795_v59  ;;  %v13182_v19 = vpop.eup %8375  ;;  %v4268_v28 = vadd.f32 1.0, %v8366_v14 }
 0x982   :  { %8387 = vpow2.f32 %v7220_v16  ;;  %v4353_v33 = vpop.f32.mrf.mxu0  ;;  %v4445_v16 = vadd.f32 %v13130_v25, %v10774_v23  ;;  %v4451_v34 = vadd.f32 %v4450_v62, %v10784_v53  ;;  %v4270_v14 = vadd.f32 1.0, %v8374_v11 }
 0x983   :  { %8389 = vtanh.f32 %v4472_v35  ;;  %v4473_v20 = vadd.f32 %v4457_v17, %v4352_v39  ;;  %v4354_v60 = vadd.f32 %v4353_v33, %v10807_v54  ;;  %v4462_v35 = vmul.f32 %v13108_v2, %v4437_v18 }
 0x984   :  { %8391 = vpow2.f32 %v7221_v52  ;;  %v4355_v10 = vpop.f32.mrf.mxu0  ;;  %v8378_v52 = vpop.eup %8377  ;;  %v4467_v7 = vmul.f32 %v13138_v63, %v4449_v42 }
 0x985   :  { %8393 = vrcp.f32 %v4265_v49  ;;  %v4474_v38 = vadd.f32 %v4458_v47, %v4354_v60  ;;  %v4356_v12 = vadd.f32 %v4355_v10, %v10795_v59  ;;  %v4465_v60 = vmul.f32 %v13128_v44, %v4445_v16 }
 0x986   :  { %8395 = vtanh.f32 %v4473_v20  ;;  %v4357_v29 = vpop.f32.mrf.mxu0  ;;  %v4271_v63 = vadd.f32 1.0, %v8378_v52 }
 0x987   :  { %8397 = vtanh.f32 %v4474_v38  ;;  %v4475_v45 = vadd.f32 %v4459_v56, %v4356_v12  ;;  %v4358_v6 = vadd.f32 %v4357_v29, %v10807_v54  ;;  %v4466_v56 = vmul.f32 %v13134_v30, %v4447_v4 }
 0x988   :  { %8399 = vpow2.f32 %v7222_v48  ;;  %v4361_v51 = vpop.f32.mrf.mxu0  ;;  %v15486_v48 = vld [vmem:[#allocation6_spill] sm:$0xff] }
 0x989   :  { %8401 = vtanh.f32 %v4475_v45  ;;  %v4476_v8 = vadd.f32 %v4460_v55, %v4358_v6  ;;  %v4362_v41 = vadd.f32 %v4361_v51, %v10795_v59  ;;  %v15488_v6 = vld [vmem:[#allocation5_spill] sm:$0xff]  ;;  %v4468_v51 = vmul.f32 %v13146_v36, %v4451_v34 }
 0x98a   :  { %8403 = vrcp.f32 %v4266_v1  ;;  %v4363_v25 = vpop.f32.mrf.mxu0  ;;  %v8380_v17 = vpop.eup %8379 }
 0x98b   :  { %8405 = vtanh.f32 %v4476_v8  ;;  %v4477_v49 = vadd.f32 %v4461_v57, %v4362_v41  ;;  %v4364_v27 = vadd.f32 %v4363_v25, %v10807_v54  ;;  %v4501_v2 = vsub.f32 %v15485_v15, %v8380_v17  ;;  %v15495_v15 = vld [vmem:[#allocation10_spill] sm:$0xff] }
 0x98c   :  { %v8382_v39 = vpop.eup %8381  ;;  %8407 = vrcp.f32 %v4267_v40  ;;  %v4365_v37 = vpop.f32.mrf.mxu0 }
 0x98d   :  { %v13192_v33 = vpop.eup %8383  ;;  %8409 = vrcp.f32 %v4268_v28  ;;  %v4478_v46 = vadd.f32 %v4462_v35, %v4364_v27  ;;  %v4366_v20 = vadd.f32 %v4365_v37, %v10795_v59  ;;  %v4502_v10 = vsub.f32 %v15486_v48, %v8382_v39 }
 0x98e   :  { %v8386_v47 = vpop.eup %8385  ;;  %8411 = vtanh.f32 %v4477_v49  ;;  %v4367_v18 = vpop.f32.mrf.mxu0  ;;  %v4517_v30 = vmul.f32 %v13152_v43, %v4501_v2 }
 0x98f   :  { %v8388_v38 = vpop.eup %8387  ;;  %v4503_v12 = vsub.f32 %v15487_v21, %v8386_v47  ;;  %8413 = vtanh.f32 %v4478_v46  ;;  %v4479_v9 = vadd.f32 %v4463_v50, %v4366_v20  ;;  %v4368_v3 = vadd.f32 %v4367_v18, %v10807_v54  ;;  %v15494_v50 = vld [vmem:[#allocation11_spill] sm:$0xff] }
 0x990   :  { %v8390_v5 = vpop.eup %8389  ;;  %8415 = vrcp.f32 %v4269_v61  ;;  %v4371_v44 = vpop.f32.mrf.mxu0  ;;  %v4518_v1 = vmul.f32 %v13159_v58, %v4502_v10  ;;  %v4272_v41 = vadd.f32 1.0, %v8388_v38  ;;  %v13217_v34 = vadd.f32 %v8380_v17, %v4517_v30  ;;  %v15493_v61 = vld [vmem:[#allocation12_spill] sm:$0xff]  ;;  %v15496_v10 = vld [vmem:[#allocation9_spill] sm:$0xff] }
 0x991   :  { %v8392_v29 = vpop.eup %8391  ;;  %v4519_v62 = vmul.f32 %v13167_v31, %v4503_v12  ;;  %8417 = vtanh.f32 %v4479_v9  ;;  %v4372_v45 = vadd.f32 %v4371_v44, %v10795_v59  ;;  %v4504_v55 = vsub.f32 %v15488_v6, %v8390_v5 }
 0x992   :  { %v8394_v11 = vpop.eup %8393  ;;  %8419 = vrcp.f32 %v4270_v14  ;;  %v4480_v16 = vadd.f32 %v4464_v13, %v4368_v3  ;;  %v4373_v40 = vpop.f32.mrf.mxu0  ;;  %v4273_v4 = vadd.f32 1.0, %v8392_v29  ;;  %v13213_v35 = vadd.f32 %v8382_v39, %v4518_v1  ;;  %15492 = vst [vmem:[#allocation5_spill] sm:$0xff] %v13217_v34  ;;  %v9166_v3 = vld [vmem:[%s15365_s3 + $0x2e0] ss:$16 sps:$4 sm:$0xff]  }
 0x993   :  { %v8396_v57 = vpop.eup %8395  ;;  %v4481_v28 = vadd.f32 %v4465_v60, %v4372_v45  ;;  %v4374_v58 = vadd.f32 %v4373_v40, %v10807_v54  ;;  %v4520_v31 = vmul.f32 %v13175_v0, %v4504_v55  ;;  %v13210_v42 = vadd.f32 %v8386_v47, %v4519_v62  ;;  %v15501_v55 = vld [vmem:[#allocation16_spill] sm:$0xff] }
 0x994   :  { %v8398_v8 = vpop.eup %8397  ;;  %8421 = vtanh.f32 %v4480_v16  ;;  %v4375_v25 = vpop.f32.mrf.mxu0  ;;  %15490 = vst [vmem:[#allocation6_spill] sm:$0xff] %v13213_v35  ;;  %v4505_v13 = vsub.f32 %v15494_v50, %v8396_v57  ;;  %v9168_v16 = vld [vmem:[%s15365_s3 + $0x2c0] ss:$16 sps:$4 sm:$0xff]  }
 0x995   :  { %15489 = vst [vmem:[#allocation7_spill] sm:$0xff] %v13210_v42  ;;  %v8400_v49 = vpop.eup %8399  ;;  %v4482_v43 = vadd.f32 %v4466_v56, %v4374_v58  ;;  %v4376_v27 = vadd.f32 %v4375_v25, %v10795_v59  ;;  %v13215_v36 = vadd.f32 %v8390_v5, %v4520_v31  ;;  %8423 = vtanh.f32 %v4481_v28  ;;  %v15503_v28 = vld [vmem:[#allocation14_spill] sm:$0xff] }
 0x996   :  { %v8402_v52 = vpop.eup %8401  ;;  %v4377_v0 = vpop.f32.mrf.mxu0  ;;  %v4506_v37 = vsub.f32 %v15493_v61, %v8398_v8  ;;  %v4274_v14 = vadd.f32 1.0, %v8400_v49  ;;  %v13228_v17 = vpack.c.bf16 %v13210_v42, %v13217_v34  ;;  %v4521_v9 = vmul.f32 %v13182_v19, %v4505_v13  ;;  %v9171_v61 = vld [vmem:[%s15365_s3 + $0x284] ss:$16 sps:$4 sm:$0xff]  }
 0x997   :  { %15491 = vst [vmem:[#allocation8_spill] sm:$0xff] %v13215_v36  ;;  %v8404_v46 = vpop.eup %8403  ;;  %8425 = vtanh.f32 %v4482_v43  ;;  %v4483_v20 = vadd.f32 %v4467_v7, %v4376_v27  ;;  %v4378_v60 = vadd.f32 %v4377_v0, %v10807_v54  ;;  %v13224_v39 = vpack.c.bf16 %v13215_v36, %v13213_v35  ;;  %v9170_v27 = vld [vmem:[%s15365_s3 + $0x2a0] ss:$16 sps:$4 sm:$0xff]  }
 0x998   :  { %v8406_v47 = vpop.eup %8405  ;;  %8427 = vrcp.f32 %v4272_v41  ;;  %v4507_v2 = vsub.f32 %v15495_v15, %v8402_v52  ;;  %v4522_v21 = vmul.f32 %v13192_v33, %v4506_v37  ;;  %v9167_v33 = vld [vmem:[%s15365_s3 + $0x2c4] ss:$16 sps:$4 sm:$0xff]   ;;  %v13248_v6 = vadd.f32 %v8396_v57, %v4521_v9 }
 0x999   :  { %v8408_v18 = vpop.eup %8407  ;;  %8429 = vtanh.f32 %v4483_v20  ;;  %v4484_v48 = vadd.f32 %v4468_v51, %v4378_v60  ;;  %4782 = vmatprep.mubr.bf16.mxu0 %v13224_v39  ;;  %v4508_v38 = vsub.f32 %v15496_v10, %v8406_v47  ;;  %v15502_v51 = vld [vmem:[#allocation15_spill] sm:$0xff] }
 0x99a   :  { %v8410_v12 = vpop.eup %8409  ;;  %8431 = vrcp.f32 %v4273_v4  ;;  %4783 = vmatmul.mubr.bf16.vlgmr.msra.gmra.mxu0 %v13228_v17  ;;  %v4523_v56 = vmul.f32 %v8394_v11, %v4507_v2  ;;  %v13244_v19 = vadd.f32 %v8398_v8, %v4522_v21  ;;  %15500 = vst [vmem:[#allocation9_spill] sm:$0xff] %v13248_v6  ;;  %v9169_v57 = vld [vmem:[%s15365_s3 + $0x2a4] ss:$16 sps:$4 sm:$0xff]   ;;  %v9172_v2 = vld [vmem:[%s15365_s3 + $0x280] ss:$16 sps:$4 sm:$0xff]  }
 0x99b   :  { %v8412_v5 = vpop.eup %8411  ;;  %8433 = vtanh.f32 %v4484_v48  ;;  %4986 = vmatpush1.bf16.msra.mxu0 %v9166_v3  ;;  %v4524_v44 = vmul.f32 %v8404_v46, %v4508_v38  ;;  %v15504_v4 = vld [vmem:[#allocation13_spill] sm:$0xff]  ;;  %v15506_v46 = vld [vmem:[#allocation18_spill] sm:$0xff]  ;;  %v15510_v48 = vld [vmem:[#allocation19_spill] sm:$0xff] }
 0x99c   :  { %v8414_v7 = vpop.eup %8413  ;;  %8435 = vrcp.f32 %v4271_v63  ;;  %4987 = vmatprep.subr.bf16.mxu0 %v9167_v33  ;;  %v13242_v1 = vadd.f32 %v8402_v52, %v4523_v56  ;;  %15498 = vst [vmem:[#allocation11_spill] sm:$0xff] %v13244_v19  ;;  %v4509_v63 = vsub.f32 %v15502_v51, %v8412_v5  ;;  %v15511_v38 = vld [vmem:[#allocation17_spill] sm:$0xff] }
 0x99d   :  { %v8416_v29 = vpop.eup %8415  ;;  %8437 = vrcp.f32 %v4274_v14  ;;  %v13246_v62 = vadd.f32 %v8406_v47, %v4524_v44  ;;  %v4510_v11 = vsub.f32 %v15501_v55, %v8414_v7  ;;  %v9173_v56 = vld [vmem:[%s15365_s3 + $0x264] ss:$16 sps:$4 sm:$0xff]  }
 0x99e   :  { %15497 = vst [vmem:[#allocation12_spill] sm:$0xff] %v13242_v1  ;;  %v8418_v45 = vpop.eup %8417  ;;  %v13265_v31 = vpack.c.bf16 %v13242_v1, %v13248_v6  ;;  %v4525_v52 = vmul.f32 %v8408_v18, %v4509_v63 }
 0x99f   :  { %15499 = vst [vmem:[#allocation10_spill] sm:$0xff] %v13246_v62  ;;  %v8420_v30 = vpop.eup %8419  ;;  %4988 = vmatpush1.bf16.msra.mxu0 %v9168_v16  ;;  %v13256_v40 = vpack.c.bf16 %v13246_v62, %v13244_v19  ;;  %v4511_v58 = vsub.f32 %v15503_v28, %v8418_v45  ;;  %v4526_v49 = vmul.f32 %v8410_v12, %v4510_v11  ;;  %v9175_v16 = vld [vmem:[%s15365_s3 + $0x244] ss:$16 sps:$4 sm:$0xff]  }
 0x9a0   :  { %4989 = vmatprep.subr.bf16.mxu0 %v9169_v57  ;;  %v13286_v18 = vadd.f32 %v8412_v5, %v4525_v52  ;;  %v15512_v5 = vld [vmem:[#allocation20_spill] sm:$0xff]  ;;  %v9182_v52 = vld [vmem:[%s15365_s3 + $0x3e0] ss:$16 sps:$4 sm:$0xff]  }
 0x9a1   :  { %v8422_v8 = vpop.eup %8421  ;;  %4792 = vmatprep.mubr.bf16.mxu0 %v13256_v40  ;;  %v4527_v41 = vmul.f32 %v8416_v29, %v4511_v58  ;;  %v13279_v47 = vadd.f32 %v8414_v7, %v4526_v49  ;;  %v9179_v49 = vld [vmem:[%s15365_s3 + $0x204] ss:$16 sps:$4 sm:$0xff]  }
 0x9a2   :  { %4793 = vmatmul.mubr.bf16.gmra.mxu0 %v13265_v31  ;;  %v4512_v25 = vsub.f32 %v15504_v4, %v8422_v8  ;;  %v8424_v43 = vpop.eup %8423  ;;  %15509 = vst [vmem:[#allocation13_spill] sm:$0xff] %v13286_v18 }
 0x9a3   :  { %4990 = vmatpush1.bf16.msra.mxu0 %v9170_v27  ;;  %v13276_v13 = vadd.f32 %v8418_v45, %v4527_v41  ;;  %15507 = vst [vmem:[#allocation15_spill] sm:$0xff] %v13279_v47  ;;  %v4513_v10 = vsub.f32 %v15510_v48, %v8424_v43  ;;  %v9177_v41 = vld [vmem:[%s15365_s3 + $0x224] ss:$16 sps:$4 sm:$0xff]   ;;  %v9192_v48 = vld [vmem:[%s15365_s3 + $0x340] ss:$16 sps:$4 sm:$0xff]  }
 0x9a4   :  { %v8426_v0 = vpop.eup %8425  ;;  %4991 = vmatprep.subr.bf16.mxu0 %v9171_v61  ;;  %v4528_v37 = vmul.f32 %v8420_v30, %v4512_v25  ;;  %v9174_v30 = vld [vmem:[%s15365_s3 + $0x260] ss:$16 sps:$4 sm:$0xff]   ;;  %v9181_v27 = vld [vmem:[%s15365_s3 + $0x3e4] ss:$16 sps:$4 sm:$0xff]  }
 0x9a5   :  { %v8428_v50 = vpop.eup %8427  ;;  %15505 = vst [vmem:[#allocation16_spill] sm:$0xff] %v13276_v13  ;;  %v4514_v20 = vsub.f32 %v15506_v46, %v8426_v0  ;;  %v13299_v44 = vpack.c.bf16 %v13276_v13, %v13286_v18  ;;  %v9178_v25 = vld [vmem:[%s15365_s3 + $0x220] ss:$16 sps:$4 sm:$0xff]   ;;  %v9187_v46 = vld [vmem:[%s15365_s3 + $0x384] ss:$16 sps:$4 sm:$0xff]  }
 0x9a6   :  { %v8430_v60 = vpop.eup %8429  ;;  %v13281_v14 = vadd.f32 %v8422_v8, %v4528_v37  ;;  %v9176_v8 = vld [vmem:[%s15365_s3 + $0x240] ss:$16 sps:$4 sm:$0xff]   ;;  %v9185_v37 = vld [vmem:[%s15365_s3 + $0x3a4] ss:$16 sps:$4 sm:$0xff]  }
 0x9a7   :  { %v8432_v15 = vpop.eup %8431  ;;  %4992 = vmatpush1.bf16.msra.mxu0 %v9172_v2  ;;  %v4515_v21 = vsub.f32 %v15511_v38, %v8430_v60  ;;  %v4530_v33 = vmul.f32 %v8428_v50, %v4514_v20  ;;  %v9184_v61 = vld [vmem:[%s15365_s3 + $0x3c0] ss:$16 sps:$4 sm:$0xff]   ;;  %v9191_v2 = vld [vmem:[%s15365_s3 + $0x344] ss:$16 sps:$4 sm:$0xff]  }
 0x9a8   :  { %15508 = vst [vmem:[#allocation14_spill] sm:$0xff] %v13281_v14  ;;  %v8434_v12 = vpop.eup %8433  ;;  %v13292_v9 = vpack.c.bf16 %v13281_v14, %v13279_v47  ;;  %4993 = vmatprep.subr.bf16.mxu0 %v9173_v56  ;;  %v9186_v50 = vld [vmem:[%s15365_s3 + $0x3a0] ss:$16 sps:$4 sm:$0xff]   ;;  %v9197_v56 = vld [vmem:[%s15365_s3 + $0x2ec] ss:$16 sps:$4 sm:$0xff]  }
 0x9a9   :  { %v8436_v3 = vpop.eup %8435  ;;  %v4516_v7 = vsub.f32 %v15512_v5, %v8434_v12  ;;  %v4531_v29 = vmul.f32 %v8432_v15, %v4515_v21  ;;  %v13310_v51 = vadd.f32 %v8426_v0, %v4530_v33  ;;  %v9183_v0 = vld [vmem:[%s15365_s3 + $0x3c4] ss:$16 sps:$4 sm:$0xff]   ;;  %v9188_v20 = vld [vmem:[%s15365_s3 + $0x380] ss:$16 sps:$4 sm:$0xff]   ;;  %v9199_v5 = vld [vmem:[%s15365_s3 + $0x2cc] ss:$16 sps:$4 sm:$0xff]  }
 0x9aa   :  { %v8438_v45 = vpop.eup %8437  ;;  %4802 = vmatprep.mubr.bf16.mxu0 %v13292_v9  ;;  %v4529_v11 = vmul.f32 %v8436_v3, %v4513_v10  ;;  %v9190_v15 = vld [vmem:[%s15365_s3 + $0x360] ss:$16 sps:$4 sm:$0xff]   ;;  %v9193_v10 = vld [vmem:[%s15365_s3 + $0x324] ss:$16 sps:$4 sm:$0xff]   ;;  %v9198_v3 = vld [vmem:[%s15365_s3 + $0x2e8] ss:$16 sps:$4 sm:$0xff]  }
 0x9ab   :  { %4803 = vmatmul.mubr.bf16.gmra.mxu0 %v13299_v44  ;;  %v4532_v55 = vmul.f32 %v8438_v45, %v4516_v7  ;;  %15513 = vst [vmem:[#allocation18_spill] sm:$0xff] %v13310_v51  ;;  %v13314_v28 = vadd.f32 %v8430_v60, %v4531_v29  ;;  %v9189_v60 = vld [vmem:[%s15365_s3 + $0x364] ss:$16 sps:$4 sm:$0xff]   ;;  %v9194_v38 = vld [vmem:[%s15365_s3 + $0x320] ss:$16 sps:$4 sm:$0xff]  }
 0x9ac   :  { %4994 = vmatpush1.bf16.msra.mxu0 %v9174_v30  ;;  %v13320_v57 = vadd.f32 %v8424_v43, %v4529_v11  ;;  %v9180_v43 = vld [vmem:[%s15365_s3 + $0x200] ss:$16 sps:$4 sm:$0xff]   ;;  %v9195_v21 = vld [vmem:[%s15365_s3 + $0x304] ss:$16 sps:$4 sm:$0xff]   ;;  %v9200_v7 = vld [vmem:[%s15365_s3 + $0x2c8] ss:$16 sps:$4 sm:$0xff]  }
 0x9ad   :  { %4995 = vmatprep.subr.bf16.mxu0 %v9175_v16  ;;  %v13312_v63 = vadd.f32 %v8434_v12, %v4532_v55  ;;  %15515 = vst [vmem:[#allocation17_spill] sm:$0xff] %v13314_v28  ;;  %v9196_v12 = vld [vmem:[%s15365_s3 + $0x300] ss:$16 sps:$4 sm:$0xff]   ;;  %v9201_v33 = vld [vmem:[%s15365_s3 + $0x2ac] ss:$16 sps:$4 sm:$0xff]  }
 0x9ae   :  { %15516 = vst [vmem:[#allocation20_spill] sm:$0xff] %v13320_v57  ;;  %v13331_v4 = vpack.c.bf16 %v13314_v28, %v13320_v57  ;;  %v9202_v29 = vld [vmem:[%s15365_s3 + $0x2a8] ss:$16 sps:$4 sm:$0xff]   ;;  %v9203_v45 = vld [vmem:[%s15365_s3 + $0x28c] ss:$16 sps:$4 sm:$0xff]  }
 0x9af   :  { %15514 = vst [vmem:[#allocation19_spill] sm:$0xff] %v13312_v63  ;;  %v13318_v58 = vpack.c.bf16 %v13312_v63, %v13310_v51  ;;  %v9204_v55 = vld [vmem:[%s15365_s3 + $0x288] ss:$16 sps:$4 sm:$0xff]   ;;  %v9205_v11 = vld [vmem:[%s15365_s3 + $0x26c] ss:$16 sps:$4 sm:$0xff]  }
 0x9b0   :  { %4996 = vmatpush1.bf16.msra.mxu0 %v9176_v8  ;;  %v9206_v30 = vld [vmem:[%s15365_s3 + $0x268] ss:$16 sps:$4 sm:$0xff]   ;;  %v9207_v16 = vld [vmem:[%s15365_s3 + $0x24c] ss:$16 sps:$4 sm:$0xff]  }
 0x9b1   :  { %4812 = vmatprep.mubr.bf16.mxu0 %v13318_v58  ;;  %4997 = vmatprep.subr.bf16.mxu0 %v9177_v41  ;;  %v9208_v8 = vld [vmem:[%s15365_s3 + $0x248] ss:$16 sps:$4 sm:$0xff]   ;;  %v9209_v41 = vld [vmem:[%s15365_s3 + $0x22c] ss:$16 sps:$4 sm:$0xff]  }
 0x9b3   :  { %4813 = vmatmul.mubr.bf16.gmra.mxu0 %v13331_v4 }
 0x9b4   :  { %4998 = vmatpush1.bf16.msra.mxu0 %v9178_v25  ;;  %5017 = vmatprep.mubr.bf16.mxu0 %v13224_v39  ;;  %v9210_v25 = vld [vmem:[%s15365_s3 + $0x228] ss:$16 sps:$4 sm:$0xff]  }
 0x9b5   :  { %4999 = vmatprep.subr.bf16.mxu0 %v9179_v49  ;;  %v9211_v49 = vld [vmem:[%s15365_s3 + $0x20c] ss:$16 sps:$4 sm:$0xff]  }
 0x9b8   :  { %5000 = vmatpush1.bf16.msra.mxu0 %v9180_v43  ;;  %v9212_v43 = vld [vmem:[%s15365_s3 + $0x208] ss:$16 sps:$4 sm:$0xff]  }
 0x9b9   :  { %5001 = vmatprep.subr.bf16.mxu0 %v9181_v27  ;;  %v9213_v27 = vld [vmem:[%s15365_s3 + $0x3ec] ss:$16 sps:$4 sm:$0xff]  }
 0x9bc   :  { %5002 = vmatpush2.bf16.msra.mxu0 %v9182_v52  ;;  %v9214_v52 = vld [vmem:[%s15365_s3 + $0x3e8] ss:$16 sps:$4 sm:$0xff]  }
 0x9bd   :  { %5003 = vmatprep.subr.bf16.mxu0 %v9183_v0  ;;  %v9215_v0 = vld [vmem:[%s15365_s3 + $0x3cc] ss:$16 sps:$4 sm:$0xff]  }
 0x9c0   :  { %5004 = vmatpush2.bf16.msra.mxu0 %v9184_v61  ;;  %v9216_v61 = vld [vmem:[%s15365_s3 + $0x3c8] ss:$16 sps:$4 sm:$0xff]  }
 0x9c1   :  { %5005 = vmatprep.subr.bf16.mxu0 %v9185_v37  ;;  %v9217_v37 = vld [vmem:[%s15365_s3 + $0x3ac] ss:$16 sps:$4 sm:$0xff]  }
 0x9c4   :  { %5006 = vmatpush2.bf16.msra.mxu0 %v9186_v50  ;;  %v9218_v50 = vld [vmem:[%s15365_s3 + $0x3a8] ss:$16 sps:$4 sm:$0xff]  }
 0x9c5   :  { %5007 = vmatprep.subr.bf16.mxu0 %v9187_v46  ;;  %v9219_v46 = vld [vmem:[%s15365_s3 + $0x38c] ss:$16 sps:$4 sm:$0xff]  }
 0x9c8   :  { %5008 = vmatpush2.bf16.msra.mxu0 %v9188_v20  ;;  %v9220_v20 = vld [vmem:[%s15365_s3 + $0x388] ss:$16 sps:$4 sm:$0xff]  }
 0x9c9   :  { %5009 = vmatprep.subr.bf16.mxu0 %v9189_v60  ;;  %v9221_v60 = vld [vmem:[%s15365_s3 + $0x36c] ss:$16 sps:$4 sm:$0xff]  }
 0x9cc   :  { %5010 = vmatpush2.bf16.msra.mxu0 %v9190_v15  ;;  %v9222_v15 = vld [vmem:[%s15365_s3 + $0x368] ss:$16 sps:$4 sm:$0xff]  }
 0x9cd   :  { %5011 = vmatprep.subr.bf16.mxu0 %v9191_v2  ;;  %v9223_v2 = vld [vmem:[%s15365_s3 + $0x34c] ss:$16 sps:$4 sm:$0xff]  }
 0x9d0   :  { %5012 = vmatpush2.bf16.msra.mxu0 %v9192_v48  ;;  %v9224_v48 = vld [vmem:[%s15365_s3 + $0x348] ss:$16 sps:$4 sm:$0xff]  }
 0x9d1   :  { %5013 = vmatprep.subr.bf16.mxu0 %v9193_v10  ;;  %v9225_v10 = vld [vmem:[%s15365_s3 + $0x32c] ss:$16 sps:$4 sm:$0xff]  }
 0x9d4   :  { %5014 = vmatpush2.bf16.msra.mxu0 %v9194_v38  ;;  %v9226_v38 = vld [vmem:[%s15365_s3 + $0x328] ss:$16 sps:$4 sm:$0xff]  }
 0x9d5   :  { %5015 = vmatprep.subr.bf16.mxu0 %v9195_v21  ;;  %v9227_v21 = vld [vmem:[%s15365_s3 + $0x30c] ss:$16 sps:$4 sm:$0xff]  }
 0x9d8   :  { %5016 = vmatpush2.bf16.msra.mxu0 %v9196_v12  ;;  %v9228_v12 = vld [vmem:[%s15365_s3 + $0x308] ss:$16 sps:$4 sm:$0xff]  }
 0x9d9   :  { %5131 = vmatprep.subr.bf16.mxu0 %v9197_v56  ;;  %v9229_v56 = vld [vmem:[%s15367_s5 + $0x74] ss:$8 sps:$4 sm:$0xff]  }
 0x9db   :  { %5018 = vmatmul.mubr.bf16.vlgmr.msra.gmra.mxu0 %v13228_v17 }
 0x9dc   :  { %5027 = vmatprep.mubr.bf16.mxu0 %v13256_v40  ;;  %5132 = vmatpush1.bf16.msra.mxu0 %v9198_v3  ;;  %v9230_v3 = vld [vmem:[%s15367_s5 + $0x70] ss:$8 sps:$4 sm:$0xff]  }
 0x9dd   :  { %5133 = vmatprep.subr.bf16.mxu0 %v9199_v5  ;;  %v9231_v5 = vld [vmem:[%s15367_s5 + $0x64] ss:$8 sps:$4 sm:$0xff]  }
 0x9e0   :  { %5134 = vmatpush1.bf16.msra.mxu0 %v9200_v7  ;;  %v9232_v7 = vld [vmem:[%s15367_s5 + $0x60] ss:$8 sps:$4 sm:$0xff]  }
 0x9e1   :  { %5135 = vmatprep.subr.bf16.mxu0 %v9201_v33  ;;  %v9233_v33 = vld [vmem:[%s15367_s5 + $0x54] ss:$8 sps:$4 sm:$0xff]  }
 0x9e3   :  { %5028 = vmatmul.mubr.bf16.gmra.mxu0 %v13265_v31 }
 0x9e4   :  { %5037 = vmatprep.mubr.bf16.mxu0 %v13292_v9  ;;  %5136 = vmatpush1.bf16.msra.mxu0 %v9202_v29  ;;  %v9234_v29 = vld [vmem:[%s15367_s5 + $0x50] ss:$8 sps:$4 sm:$0xff]  }
 0x9e5   :  { %5137 = vmatprep.subr.bf16.mxu0 %v9203_v45  ;;  %v9235_v45 = vld [vmem:[%s15367_s5 + $0x44] ss:$8 sps:$4 sm:$0xff]  }
 0x9e8   :  { %5138 = vmatpush1.bf16.msra.mxu0 %v9204_v55  ;;  %v9236_v55 = vld [vmem:[%s15367_s5 + $0x40] ss:$8 sps:$4 sm:$0xff]  }
 0x9e9   :  { %5139 = vmatprep.subr.bf16.mxu0 %v9205_v11  ;;  %v9237_v11 = vld [vmem:[%s15367_s5 + $0x34] ss:$8 sps:$4 sm:$0xff]  }
 0x9eb   :  { %5038 = vmatmul.mubr.bf16.gmra.mxu0 %v13299_v44 }
 0x9ec   :  { %5047 = vmatprep.mubr.bf16.mxu0 %v13318_v58  ;;  %5140 = vmatpush1.bf16.msra.mxu0 %v9206_v30  ;;  %v9238_v30 = vld [vmem:[%s15367_s5 + $0x30] ss:$8 sps:$4 sm:$0xff]  }
 0x9ed   :  { %5141 = vmatprep.subr.bf16.mxu0 %v9207_v16  ;;  %v9239_v16 = vld [vmem:[%s15367_s5 + $0x24] ss:$8 sps:$4 sm:$0xff]  }
 0x9f0   :  { %5142 = vmatpush1.bf16.msra.mxu0 %v9208_v8  ;;  %v9240_v8 = vld [vmem:[%s15367_s5 + $0x20] ss:$8 sps:$4 sm:$0xff]  }
 0x9f1   :  { %5143 = vmatprep.subr.bf16.mxu0 %v9209_v41  ;;  %v9241_v41 = vld [vmem:[%s15367_s5 + $0x14] ss:$8 sps:$4 sm:$0xff]  }
 0x9f3   :  { %5048 = vmatmul.mubr.bf16.gmra.mxu0 %v13331_v4 }
 0x9f4   :  { %5144 = vmatpush1.bf16.msra.mxu0 %v9210_v25  ;;  %5163 = vmatprep.mubr.bf16.mxu0 %v13224_v39  ;;  %v9242_v25 = vld [vmem:[%s15367_s5 + $0x10] ss:$8 sps:$4 sm:$0xff]  }
 0x9f5   :  { %5145 = vmatprep.subr.bf16.mxu0 %v9211_v49  ;;  %v9243_v49 = vld [vmem:[%s15367_s5 + $0x4] ss:$8 sps:$4 sm:$0xff]  }
 0x9f8   :  { %5146 = vmatpush1.bf16.msra.mxu0 %v9212_v43  ;;  %v9244_v43 = vld [vmem:[%s15367_s5] ss:$8 sps:$4 sm:$0xff]  }
 0x9f9   :  { %5147 = vmatprep.subr.bf16.mxu0 %v9213_v27  ;;  %v9245_v27 = vld [vmem:[%s15367_s5 + $0xf4] ss:$8 sps:$4 sm:$0xff]  }
 0x9fc   :  { %5148 = vmatpush2.bf16.msra.mxu0 %v9214_v52  ;;  %v9246_v52 = vld [vmem:[%s15367_s5 + $0xf0] ss:$8 sps:$4 sm:$0xff]  }
 0x9fd   :  { %5149 = vmatprep.subr.bf16.mxu0 %v9215_v0  ;;  %v9248_v0 = vld [vmem:[%s15367_s5 + $0xe0] ss:$8 sps:$4 sm:$0xff]  }
 0xa00   :  { %5150 = vmatpush2.bf16.msra.mxu0 %v9216_v61  ;;  %v9249_v61 = vld [vmem:[%s15367_s5 + $0xd4] ss:$8 sps:$4 sm:$0xff]  }
 0xa01   :  { %5151 = vmatprep.subr.bf16.mxu0 %v9217_v37  ;;  %v9250_v37 = vld [vmem:[%s15367_s5 + $0xd0] ss:$8 sps:$4 sm:$0xff]  }
 0xa04   :  { %5152 = vmatpush2.bf16.msra.mxu0 %v9218_v50  ;;  %v9251_v50 = vld [vmem:[%s15367_s5 + $0xc4] ss:$8 sps:$4 sm:$0xff]  }
 0xa05   :  { %5153 = vmatprep.subr.bf16.mxu0 %v9219_v46  ;;  %v9252_v46 = vld [vmem:[%s15367_s5 + $0xc0] ss:$8 sps:$4 sm:$0xff]  }
 0xa08   :  { %5154 = vmatpush2.bf16.msra.mxu0 %v9220_v20  ;;  %v9253_v20 = vld [vmem:[%s15367_s5 + $0xb4] ss:$8 sps:$4 sm:$0xff]  }
 0xa09   :  { %5155 = vmatprep.subr.bf16.mxu0 %v9221_v60  ;;  %v9254_v60 = vld [vmem:[%s15367_s5 + $0xb0] ss:$8 sps:$4 sm:$0xff]  }
 0xa0c   :  { %5156 = vmatpush2.bf16.msra.mxu0 %v9222_v15  ;;  %v9255_v15 = vld [vmem:[%s15367_s5 + $0xa4] ss:$8 sps:$4 sm:$0xff]  }
 0xa0d   :  { %5157 = vmatprep.subr.bf16.mxu0 %v9223_v2  ;;  %v9256_v2 = vld [vmem:[%s15367_s5 + $0xa0] ss:$8 sps:$4 sm:$0xff]  }
 0xa10   :  { %5158 = vmatpush2.bf16.msra.mxu0 %v9224_v48  ;;  %v9257_v48 = vld [vmem:[%s15367_s5 + $0x94] ss:$8 sps:$4 sm:$0xff]  }
 0xa11   :  { %5159 = vmatprep.subr.bf16.mxu0 %v9225_v10  ;;  %v9258_v10 = vld [vmem:[%s15367_s5 + $0x90] ss:$8 sps:$4 sm:$0xff]  }
 0xa14   :  { %5160 = vmatpush2.bf16.msra.mxu0 %v9226_v38  ;;  %v9259_v38 = vld [vmem:[%s15367_s5 + $0x84] ss:$8 sps:$4 sm:$0xff]  }
 0xa15   :  { %5161 = vmatprep.subr.bf16.mxu0 %v9227_v21  ;;  %v9260_v21 = vld [vmem:[%s15367_s5 + $0x80] ss:$8 sps:$4 sm:$0xff]  }
 0xa18   :  { %5162 = vmatpush2.bf16.msra.mxu0 %v9228_v12 }
 0xa19   :  { %5469 = vmatprep.subr.bf16.mxu0 %v9229_v56 }
 0xa1b   :  { %5164 = vmatmul.mubr.bf16.vlgmr.msra.gmra.mxu0 %v13228_v17 }
 0xa1c   :  { %5173 = vmatprep.mubr.bf16.mxu0 %v13256_v40  ;;  %5470 = vmatpush1.bf16.msra.mxu0 %v9230_v3 }
 0xa1d   :  { %5471 = vmatprep.subr.bf16.mxu0 %v9231_v5 }
 0xa20   :  { %5472 = vmatpush1.bf16.msra.mxu0 %v9232_v7 }
 0xa21   :  { %5473 = vmatprep.subr.bf16.mxu0 %v9233_v33 }
 0xa23   :  { %5174 = vmatmul.mubr.bf16.gmra.mxu0 %v13265_v31 }
 0xa24   :  { %5183 = vmatprep.mubr.bf16.mxu0 %v13292_v9  ;;  %5474 = vmatpush1.bf16.msra.mxu0 %v9234_v29 }
 0xa25   :  { %5475 = vmatprep.subr.bf16.mxu0 %v9235_v45 }
 0xa28   :  { %5476 = vmatpush1.bf16.msra.mxu0 %v9236_v55 }
 0xa29   :  { %5477 = vmatprep.subr.bf16.mxu0 %v9237_v11 }
 0xa2b   :  { %5184 = vmatmul.mubr.bf16.gmra.mxu0 %v13299_v44 }
 0xa2c   :  { %5193 = vmatprep.mubr.bf16.mxu0 %v13318_v58  ;;  %5478 = vmatpush1.bf16.msra.mxu0 %v9238_v30 }
 0xa2d   :  { %5479 = vmatprep.subr.bf16.mxu0 %v9239_v16  ;;  %v15517_v16 = vmov 0  }
 0xa30   :  { %5480 = vmatpush1.bf16.msra.mxu0 %v9240_v8 }
 0xa31   :  { %5481 = vmatprep.subr.bf16.mxu0 %v9241_v41 }
 0xa33   :  { %5194 = vmatmul.mubr.bf16.gmra.mxu0 %v13331_v4 }
 0xa34   :  { %5482 = vmatpush1.bf16.msra.mxu0 %v9242_v25  ;;  %5501 = vmatprep.mubr.bf16.mxu0 %v13224_v39  ;;  %v9247_v39 = vld [vmem:[%s15367_s5 + $0xe4] ss:$8 sps:$4 sm:$0xff]  }
 0xa35   :  { %5483 = vmatprep.subr.bf16.mxu0 %v9243_v49 }
 0xa38   :  { %5484 = vmatpush1.bf16.msra.mxu0 %v9244_v43 }
 0xa39   :  { %5485 = vmatprep.subr.bf16.mxu0 %v9245_v27 }
 0xa3c   :  { %5486 = vmatpush2.bf16.msra.mxu0 %v9246_v52  ;;  %v9261_v52 = vld [vmem:[%s15365_s3 + $0xe4] ss:$16 sps:$4 sm:$0xff]  }
 0xa3d   :  { %5487 = vmatprep.subr.bf16.mxu0 %v9247_v39  ;;  %v9262_v39 = vld [vmem:[%s15363_s1] sm:$0xff]  }
 0xa40   :  { %5488 = vmatpush2.bf16.msra.mxu0 %v9248_v0  ;;  %v9263_v0 = vld [vmem:[%s15365_s3 + $0xe0] ss:$16 sps:$4 sm:$0xff]  }
 0xa41   :  { %5489 = vmatprep.subr.bf16.mxu0 %v9249_v61  ;;  %v9264_v61 = vld [vmem:[%s15365_s3 + $0xc4] ss:$16 sps:$4 sm:$0xff]  }
 0xa44   :  { %5490 = vmatpush2.bf16.msra.mxu0 %v9250_v37  ;;  %v9265_v37 = vld [vmem:[%s15365_s3 + $0xc0] ss:$16 sps:$4 sm:$0xff]  }
 0xa45   :  { %5491 = vmatprep.subr.bf16.mxu0 %v9251_v50  ;;  %v9266_v50 = vld [vmem:[%s15365_s3 + $0xa4] ss:$16 sps:$4 sm:$0xff]  }
 0xa48   :  { %5492 = vmatpush2.bf16.msra.mxu0 %v9252_v46  ;;  %v9267_v46 = vld [vmem:[%s15363_s1 + $0x8] sm:$0xff]  }
 0xa49   :  { %5493 = vmatprep.subr.bf16.mxu0 %v9253_v20  ;;  %v9268_v20 = vld [vmem:[%s15365_s3 + $0xa0] ss:$16 sps:$4 sm:$0xff]  }
 0xa4c   :  { %5494 = vmatpush2.bf16.msra.mxu0 %v9254_v60  ;;  %v9269_v60 = vld [vmem:[%s15365_s3 + $0x84] ss:$16 sps:$4 sm:$0xff]  }
 0xa4d   :  { %5495 = vmatprep.subr.bf16.mxu0 %v9255_v15  ;;  %v9270_v15 = vld [vmem:[%s15365_s3 + $0x80] ss:$16 sps:$4 sm:$0xff]  }
 0xa50   :  { %5496 = vmatpush2.bf16.msra.mxu0 %v9256_v2  ;;  %v9271_v2 = vld [vmem:[%s15365_s3 + $0x64] ss:$16 sps:$4 sm:$0xff]  }
 0xa51   :  { %5497 = vmatprep.subr.bf16.mxu0 %v9257_v48  ;;  %v9272_v48 = vld [vmem:[%s15363_s1 + $0x10] sm:$0xff]  }
 0xa54   :  { %5498 = vmatpush2.bf16.msra.mxu0 %v9258_v10  ;;  %v9273_v10 = vld [vmem:[%s15365_s3 + $0x60] ss:$16 sps:$4 sm:$0xff]  }
 0xa55   :  { %5499 = vmatprep.subr.bf16.mxu0 %v9259_v38  ;;  %v9274_v38 = vld [vmem:[%s15365_s3 + $0x44] ss:$16 sps:$4 sm:$0xff]  }
 0xa58   :  { %5500 = vmatpush2.bf16.msra.mxu0 %v9260_v21  ;;  %v9275_v21 = vld [vmem:[%s15365_s3 + $0x40] ss:$16 sps:$4 sm:$0xff]  }
 0xa5a   :  { %v4784_v12 = vpop.f32.mrf.mxu0 }
 0xa5b   :  { %5502 = vmatmul.mubr.bf16.vlgmr.msra.gmra.mxu0 %v13228_v17 }
 0xa5c   :  { %5511 = vmatprep.mubr.bf16.mxu0 %v13256_v40  ;;  %v4786_v56 = vpop.f32.mrf.mxu0 }
 0xa5e   :  { %v4788_v3 = vpop.f32.mrf.mxu0 }
 0xa60   :  { %v4790_v5 = vpop.f32.mrf.mxu0 }
 0xa61   :  { %v4824_v27 = vpack.c.bf16 %v4790_v5, %v4786_v56  ;;  %v9277_v56 = vld [vmem:[%s15363_s1 + $0x18] sm:$0xff]   ;;  %v9279_v5 = vld [vmem:[%s15365_s3 + $0x4] ss:$16 sps:$4 sm:$0xff]  }
 0xa62   :  { %v4794_v7 = vpop.f32.mrf.mxu0 }
 0xa63   :  { %5512 = vmatmul.mubr.bf16.gmra.mxu0 %v13265_v31 }
 0xa64   :  { %5521 = vmatprep.mubr.bf16.mxu0 %v13292_v9  ;;  %v4796_v33 = vpop.f32.mrf.mxu0 }
 0xa66   :  { %v4798_v29 = vpop.f32.mrf.mxu0 }
 0xa68   :  { %v4800_v45 = vpop.f32.mrf.mxu0 }
 0xa69   :  { %v4826_v43 = vpack.c.bf16 %v4800_v45, %v4796_v33  ;;  %v9281_v33 = vld [vmem:[%s15365_s3 + $0x1e4] ss:$16 sps:$4 sm:$0xff]  }
 0xa6a   :  { %v9283_v45 = vld [vmem:[%s15365_s3 + $0x1c4] ss:$16 sps:$4 sm:$0xff]  }
 0xa6b   :  { %5522 = vmatmul.mubr.bf16.gmra.mxu0 %v13299_v44  ;;  %v4804_v55 = vpop.f32.mrf.mxu0 }
 0xa6c   :  { %5531 = vmatprep.mubr.bf16.mxu0 %v13318_v58  ;;  %v4825_v58 = vpack.c.bf16 %v4798_v29, %v4794_v7  ;;  %v9280_v7 = vld [vmem:[%s15365_s3] ss:$16 sps:$4 sm:$0xff]  }
 0xa6d   :  { %v4806_v11 = vpop.f32.mrf.mxu0  ;;  %v9282_v29 = vld [vmem:[%s15365_s3 + $0x1e0] ss:$16 sps:$4 sm:$0xff]  }
 0xa6f   :  { %v4808_v17 = vpop.f32.mrf.mxu0 }
 0xa70   :  { %v4827_v44 = vpack.c.bf16 %v4808_v17, %v4804_v55  ;;  %v9284_v55 = vld [vmem:[%s15365_s3 + $0x1c0] ss:$16 sps:$4 sm:$0xff]  }
 0xa71   :  { %v4810_v30 = vpop.f32.mrf.mxu0  ;;  %v9286_v17 = vld [vmem:[%s15365_s3 + $0x1a0] ss:$16 sps:$4 sm:$0xff]  }
 0xa72   :  { %v4828_v49 = vpack.c.bf16 %v4810_v30, %v4806_v11  ;;  %v9285_v11 = vld [vmem:[%s15365_s3 + $0x1a4] ss:$16 sps:$4 sm:$0xff]  }
 0xa73   :  { %5532 = vmatmul.mubr.bf16.gmra.mxu0 %v13331_v4  ;;  %v4814_v40 = vpop.f32.mrf.mxu0  ;;  %v4823_v4 = vpack.c.bf16 %v4788_v3, %v4784_v12  ;;  %v9276_v12 = vld [vmem:[%s15365_s3 + $0x24] ss:$16 sps:$4 sm:$0xff]   ;;  %v9278_v3 = vld [vmem:[%s15365_s3 + $0x20] ss:$16 sps:$4 sm:$0xff]  }
 0xa74   :  { %5952 = vmatprep.mubr.bf16.mxu0 %v15517_v16  ;;  %v9287_v30 = vld [vmem:[%s15365_s3 + $0x184] ss:$16 sps:$4 sm:$0xff]  }
 0xa75   :  { %v4816_v8 = vpop.f32.mrf.mxu0 }
 0xa77   :  { %v4818_v31 = vpop.f32.mrf.mxu0 }
 0xa78   :  { %v4829_v25 = vpack.c.bf16 %v4818_v31, %v4814_v40  ;;  %v9288_v40 = vld [vmem:[%s15365_s3 + $0x180] ss:$16 sps:$4 sm:$0xff]  }
 0xa79   :  { %v4820_v41 = vpop.f32.mrf.mxu0  ;;  %v9290_v31 = vld [vmem:[%s15365_s3 + $0x160] ss:$16 sps:$4 sm:$0xff]  }
 0xa7a   :  { %v4830_v9 = vpack.c.bf16 %v4820_v41, %v4816_v8  ;;  %v9289_v8 = vld [vmem:[%s15365_s3 + $0x164] ss:$16 sps:$4 sm:$0xff]  }
 0xa7b   :  { %v9291_v41 = vld [vmem:[%s15365_s3 + $0x144] ss:$16 sps:$4 sm:$0xff]  }
 0xa7c   :  { %4839 = vmatprep.subr.bf16.mxu1 %v4830_v9  ;;  %v9292_v9 = vld [vmem:[%s15365_s3 + $0x140] ss:$16 sps:$4 sm:$0xff]  }
 0xa7d   :  { %4840 = vmatpush1.bf16.msra.mxu1 %v4829_v25  ;;  %v9293_v25 = vld [vmem:[%s15365_s3 + $0x124] ss:$16 sps:$4 sm:$0xff]  }
 0xa7e   :  { %4841 = vmatprep.subr.bf16.mxu1 %v4828_v49  ;;  %v9294_v49 = vld [vmem:[%s15365_s3 + $0x120] ss:$16 sps:$4 sm:$0xff]  }
 0xa81   :  { %4842 = vmatpush1.bf16.msra.mxu1 %v4827_v44  ;;  %v9295_v44 = vld [vmem:[%s15365_s3 + $0x104] ss:$16 sps:$4 sm:$0xff]  }
 0xa82   :  { %4843 = vmatprep.subr.bf16.mxu1 %v4826_v43  ;;  %v9296_v43 = vld [vmem:[%s15365_s3 + $0x100] ss:$16 sps:$4 sm:$0xff]  }
 0xa85   :  { %4844 = vmatpush1.bf16.msra.mxu1 %v4825_v58  ;;  %v9297_v58 = vld [vmem:[%s15365_s3 + $0xec] ss:$16 sps:$4 sm:$0xff]  }
 0xa86   :  { %4845 = vmatprep.subr.bf16.mxu1 %v4824_v27 }
 0xa89   :  { %4846 = vmatpush1.bf16.msra.mxu1 %v4823_v4 }
 0xa8a   :  { %4912 = vmatprep.subr.bf16.mxu1 %v9261_v52 }
 0xa8c   :  { %7287 = vmatmul.mubr.msk.bf16.vlgmr.msra.gmra.mxu1 %vm353_vm0, %v9262_v39 }
 0xa8d   :  { %4873 = vmatprep.mubr.bf16.mxu1 %v15517_v16  ;;  %4913 = vmatpush1.bf16.msra.mxu1 %v9263_v0 }
 0xa8e   :  { %4914 = vmatprep.subr.bf16.mxu1 %v9264_v61 }
 0xa91   :  { %4915 = vmatpush1.bf16.msra.mxu1 %v9265_v37 }
 0xa92   :  { %4916 = vmatprep.subr.bf16.mxu1 %v9266_v50 }
 0xa94   :  { %7288 = vmatmul.mubr.msk.bf16.gmra.mxu1 %vm353_vm0, %v9267_v46  ;;  %v9298_v46 = vld [vmem:[%s15365_s3 + $0xe8] ss:$16 sps:$4 sm:$0xff]  }
 0xa95   :  { %4883 = vmatprep.mubr.bf16.mxu1 %v15517_v16  ;;  %4917 = vmatpush1.bf16.msra.mxu1 %v9268_v20 }
 0xa96   :  { %4918 = vmatprep.subr.bf16.mxu1 %v9269_v60  ;;  %v9299_v60 = vld [vmem:[%s15365_s3 + $0xcc] ss:$16 sps:$4 sm:$0xff]  }
 0xa99   :  { %4919 = vmatpush1.bf16.msra.mxu1 %v9270_v15 }
 0xa9a   :  { %4920 = vmatprep.subr.bf16.mxu1 %v9271_v2 }
 0xa9c   :  { %7289 = vmatmul.mubr.msk.bf16.gmra.mxu1 %vm353_vm0, %v9272_v48 }
 0xa9d   :  { %4893 = vmatprep.mubr.bf16.mxu1 %v15517_v16  ;;  %4921 = vmatpush1.bf16.msra.mxu1 %v9273_v10  ;;  %v9300_v10 = vld [vmem:[%s15365_s3 + $0xc8] ss:$16 sps:$4 sm:$0xff]  }
 0xa9e   :  { %4922 = vmatprep.subr.bf16.mxu1 %v9274_v38 }
 0xaa1   :  { %4923 = vmatpush1.bf16.msra.mxu1 %v9275_v21  ;;  %v9301_v21 = vld [vmem:[%s15365_s3 + $0xac] ss:$16 sps:$4 sm:$0xff]  }
 0xaa2   :  { %4924 = vmatprep.subr.bf16.mxu1 %v9276_v12 }
 0xaa4   :  { %7290 = vmatmul.mubr.msk.bf16.gmra.mxu1 %vm353_vm0, %v9277_v56  ;;  %v9302_v56 = vld [vmem:[%s15365_s3 + $0xa8] ss:$16 sps:$4 sm:$0xff]  }
 0xaa5   :  { %4925 = vmatpush1.bf16.msra.mxu1 %v9278_v3 }
 0xaa6   :  { %4926 = vmatprep.subr.bf16.mxu1 %v9279_v5  ;;  %v9303_v5 = vld [vmem:[%s15365_s3 + $0x8c] ss:$16 sps:$4 sm:$0xff]  }
 0xaa9   :  { %4927 = vmatpush1.bf16.msra.mxu1 %v9280_v7 }
 0xaaa   :  { %4928 = vmatprep.subr.bf16.mxu1 %v9281_v33 }
 0xaad   :  { %4929 = vmatpush2.bf16.msra.mxu1 %v9282_v29 }
 0xaae   :  { %4930 = vmatprep.subr.bf16.mxu1 %v9283_v45  ;;  %v9304_v45 = vld [vmem:[%s15365_s3 + $0x88] ss:$16 sps:$4 sm:$0xff]  }
 0xab1   :  { %4931 = vmatpush2.bf16.msra.mxu1 %v9284_v55 }
 0xab2   :  { %4932 = vmatprep.subr.bf16.mxu1 %v9285_v11  ;;  %v9305_v11 = vld [vmem:[%s15365_s3 + $0x6c] ss:$16 sps:$4 sm:$0xff]  }
 0xab5   :  { %4933 = vmatpush2.bf16.msra.mxu1 %v9286_v17 }
 0xab6   :  { %4934 = vmatprep.subr.bf16.mxu1 %v9287_v30  ;;  %v9306_v30 = vld [vmem:[%s15365_s3 + $0x68] ss:$16 sps:$4 sm:$0xff]  }
 0xab9   :  { %4935 = vmatpush2.bf16.msra.mxu1 %v9288_v40 }
 0xaba   :  { %4936 = vmatprep.subr.bf16.mxu1 %v9289_v8  ;;  %v9307_v8 = vld [vmem:[%s15365_s3 + $0x4c] ss:$16 sps:$4 sm:$0xff]  }
 0xabd   :  { %4937 = vmatpush2.bf16.msra.mxu1 %v9290_v31 }
 0xabe   :  { %4938 = vmatprep.subr.bf16.mxu1 %v9291_v41 }
 0xac1   :  { %4939 = vmatpush2.bf16.msra.mxu1 %v9292_v9 }
 0xac2   :  { %4940 = vmatprep.subr.bf16.mxu1 %v9293_v25  ;;  %v9308_v25 = vld [vmem:[%s15365_s3 + $0x48] ss:$16 sps:$4 sm:$0xff]  }
 0xac5   :  { %4941 = vmatpush2.bf16.msra.mxu1 %v9294_v49  ;;  %v9309_v49 = vld [vmem:[%s15365_s3 + $0x2c] ss:$16 sps:$4 sm:$0xff]  }
 0xac6   :  { %4942 = vmatprep.subr.bf16.mxu1 %v9295_v44  ;;  %v9310_v44 = vld [vmem:[%s15365_s3 + $0x28] ss:$16 sps:$4 sm:$0xff]  }
 0xac9   :  { %4943 = vmatpush2.bf16.msra.mxu1 %v9296_v43  ;;  %v9311_v43 = vld [vmem:[%s15365_s3 + $0xc] ss:$16 sps:$4 sm:$0xff]  }
 0xaca   :  { %5058 = vmatprep.subr.bf16.mxu1 %v9297_v58  ;;  %v9312_v58 = vld [vmem:[%s15365_s3 + $0x8] ss:$16 sps:$4 sm:$0xff]  }
 0xb4c   :  { %v4865_v27 = vpop.f32.mrf.mxu1 }
 0xb4e   :  { %v4867_v4 = vpop.f32.mrf.mxu1 }
 0xb50   :  { %v4869_v52 = vpop.f32.mrf.mxu1 }
 0xb51   :  { %v13728_v61 = vpack.c.bf16 %v4869_v52, %v4865_v27  ;;  %v9313_v27 = vld [vmem:[%s15365_s3 + $0x1ec] ss:$16 sps:$4 sm:$0xff]  }
 0xb52   :  { %v4871_v39 = vpop.f32.mrf.mxu1  ;;  %v9315_v52 = vld [vmem:[%s15365_s3 + $0x1cc] ss:$16 sps:$4 sm:$0xff]  }
 0xb53   :  { %v13726_v0 = vpack.c.bf16 %v4871_v39, %v4867_v4  ;;  %v9314_v4 = vld [vmem:[%s15365_s3 + $0x1e8] ss:$16 sps:$4 sm:$0xff]  }
 0xb54   :  { %v4875_v37 = vpop.f32.mrf.mxu1  ;;  %v9316_v39 = vld [vmem:[%s15365_s3 + $0x1c8] ss:$16 sps:$4 sm:$0xff]  }
 0xb55   :  { %4944 = vmatprep.mubr.bf16.mxu1 %v13726_v0 }
 0xb56   :  { %v4877_v50 = vpop.f32.mrf.mxu1  ;;  %4945 = vmatmul.mubr.bf16.vlgmr.msra.gmra.mxu1 %v13728_v61 }
 0xb57   :  { %5059 = vmatpush1.bf16.msra.mxu1 %v9298_v46  ;;  %v9319_v46 = vld [vmem:[%s15365_s3 + $0x18c] ss:$16 sps:$4 sm:$0xff]  }
 0xb58   :  { %v4879_v20 = vpop.f32.mrf.mxu1  ;;  %5060 = vmatprep.subr.bf16.mxu1 %v9299_v60  ;;  %v9321_v60 = vld [vmem:[%s15365_s3 + $0x16c] ss:$16 sps:$4 sm:$0xff]  }
 0xb59   :  { %v13738_v15 = vpack.c.bf16 %v4879_v20, %v4875_v37  ;;  %v9317_v37 = vld [vmem:[%s15365_s3 + $0x1ac] ss:$16 sps:$4 sm:$0xff]   ;;  %v9320_v20 = vld [vmem:[%s15365_s3 + $0x188] ss:$16 sps:$4 sm:$0xff]  }
 0xb5a   :  { %v4881_v2 = vpop.f32.mrf.mxu1 }
 0xb5b   :  { %v13740_v48 = vpack.c.bf16 %v4881_v2, %v4877_v50  ;;  %5061 = vmatpush1.bf16.msra.mxu1 %v9300_v10  ;;  %v9318_v50 = vld [vmem:[%s15365_s3 + $0x1a8] ss:$16 sps:$4 sm:$0xff]   ;;  %v9323_v10 = vld [vmem:[%s15365_s3 + $0x14c] ss:$16 sps:$4 sm:$0xff]  }
 0xb5c   :  { %v4885_v38 = vpop.f32.mrf.mxu1  ;;  %5062 = vmatprep.subr.bf16.mxu1 %v9301_v21  ;;  %v9322_v2 = vld [vmem:[%s15365_s3 + $0x168] ss:$16 sps:$4 sm:$0xff]   ;;  %v9325_v21 = vld [vmem:[%s15365_s3 + $0x12c] ss:$16 sps:$4 sm:$0xff]  }
 0xb5d   :  { %4954 = vmatprep.mubr.bf16.mxu1 %v13740_v48 }
 0xb5e   :  { %v4887_v12 = vpop.f32.mrf.mxu1  ;;  %4955 = vmatmul.mubr.bf16.gmra.mxu1 %v13738_v15 }
 0xb5f   :  { %5063 = vmatpush1.bf16.msra.mxu1 %v9302_v56  ;;  %v9327_v56 = vld [vmem:[%s15365_s3 + $0x10c] ss:$16 sps:$4 sm:$0xff]  }
 0xb60   :  { %v4889_v3 = vpop.f32.mrf.mxu1  ;;  %5064 = vmatprep.subr.bf16.mxu1 %v9303_v5  ;;  %v9329_v5 = vld [vmem:[%s15366_s4 + $0x74] ss:$8 sps:$4 sm:$0xff]  }
 0xb61   :  { %v13756_v7 = vpack.c.bf16 %v4889_v3, %v4885_v38  ;;  %v9324_v38 = vld [vmem:[%s15365_s3 + $0x148] ss:$16 sps:$4 sm:$0xff]  }
 0xb62   :  { %v4891_v33 = vpop.f32.mrf.mxu1  ;;  %v9328_v3 = vld [vmem:[%s15365_s3 + $0x108] ss:$16 sps:$4 sm:$0xff]  }
 0xb63   :  { %v13758_v29 = vpack.c.bf16 %v4891_v33, %v4887_v12  ;;  %5065 = vmatpush1.bf16.msra.mxu1 %v9304_v45  ;;  %v9326_v12 = vld [vmem:[%s15365_s3 + $0x128] ss:$16 sps:$4 sm:$0xff]   ;;  %v9331_v45 = vld [vmem:[%s15366_s4 + $0x64] ss:$8 sps:$4 sm:$0xff]  }
 0xb64   :  { %v4895_v55 = vpop.f32.mrf.mxu1  ;;  %5066 = vmatprep.subr.bf16.mxu1 %v9305_v11  ;;  %v9330_v33 = vld [vmem:[%s15366_s4 + $0x70] ss:$8 sps:$4 sm:$0xff]   ;;  %v9333_v11 = vld [vmem:[%s15366_s4 + $0x54] ss:$8 sps:$4 sm:$0xff]  }
 0xb65   :  { %4964 = vmatprep.mubr.bf16.mxu1 %v13758_v29 }
 0xb66   :  { %v4897_v17 = vpop.f32.mrf.mxu1  ;;  %4965 = vmatmul.mubr.bf16.gmra.mxu1 %v13756_v7 }
 0xb67   :  { %5067 = vmatpush1.bf16.msra.mxu1 %v9306_v30  ;;  %v9335_v30 = vld [vmem:[%s15366_s4 + $0x44] ss:$8 sps:$4 sm:$0xff]  }
 0xb68   :  { %v4899_v40 = vpop.f32.mrf.mxu1  ;;  %5068 = vmatprep.subr.bf16.mxu1 %v9307_v8  ;;  %v9337_v8 = vld [vmem:[%s15366_s4 + $0x34] ss:$8 sps:$4 sm:$0xff]  }
 0xb69   :  { %v13774_v31 = vpack.c.bf16 %v4899_v40, %v4895_v55  ;;  %v9332_v55 = vld [vmem:[%s15366_s4 + $0x60] ss:$8 sps:$4 sm:$0xff]  }
 0xb6a   :  { %v4901_v41 = vpop.f32.mrf.mxu1  ;;  %v9336_v40 = vld [vmem:[%s15366_s4 + $0x40] ss:$8 sps:$4 sm:$0xff]  }
 0xb6b   :  { %v13776_v9 = vpack.c.bf16 %v4901_v41, %v4897_v17  ;;  %5069 = vmatpush1.bf16.msra.mxu1 %v9308_v25  ;;  %v9334_v17 = vld [vmem:[%s15366_s4 + $0x50] ss:$8 sps:$4 sm:$0xff]   ;;  %v9339_v25 = vld [vmem:[%s15366_s4 + $0x24] ss:$8 sps:$4 sm:$0xff]  }
 0xb6c   :  { %5070 = vmatprep.subr.bf16.mxu1 %v9309_v49  ;;  %v9338_v41 = vld [vmem:[%s15366_s4 + $0x30] ss:$8 sps:$4 sm:$0xff]   ;;  %v9340_v49 = vld [vmem:[%s15366_s4 + $0x20] ss:$8 sps:$4 sm:$0xff]  }
 0xb6d   :  { %4974 = vmatprep.mubr.bf16.mxu1 %v13776_v9 }
 0xb6e   :  { %4975 = vmatmul.mubr.bf16.gmra.mxu1 %v13774_v31 }
 0xb6f   :  { %5071 = vmatpush1.bf16.msra.mxu1 %v9310_v44  ;;  %5090 = vmatprep.mubr.bf16.mxu1 %v13726_v0  ;;  %v9341_v44 = vld [vmem:[%s15366_s4 + $0x14] ss:$8 sps:$4 sm:$0xff]  }
 0xb70   :  { %5072 = vmatprep.subr.bf16.mxu1 %v9311_v43  ;;  %v9342_v43 = vld [vmem:[%s15366_s4 + $0x10] ss:$8 sps:$4 sm:$0xff]  }
 0xb73   :  { %5073 = vmatpush1.bf16.msra.mxu1 %v9312_v58  ;;  %v9343_v58 = vld [vmem:[%s15366_s4 + $0x4] ss:$8 sps:$4 sm:$0xff]  }
 0xb74   :  { %5074 = vmatprep.subr.bf16.mxu1 %v9313_v27  ;;  %v9344_v27 = vld [vmem:[%s15366_s4] ss:$8 sps:$4 sm:$0xff]  }
 0xb77   :  { %5075 = vmatpush2.bf16.msra.mxu1 %v9314_v4  ;;  %v9345_v4 = vld [vmem:[%s15366_s4 + $0xf4] ss:$8 sps:$4 sm:$0xff]  }
 0xb78   :  { %5076 = vmatprep.subr.bf16.mxu1 %v9315_v52  ;;  %v9346_v52 = vld [vmem:[%s15366_s4 + $0xf0] ss:$8 sps:$4 sm:$0xff]  }
 0xb7b   :  { %5077 = vmatpush2.bf16.msra.mxu1 %v9316_v39  ;;  %v9348_v39 = vld [vmem:[%s15366_s4 + $0xe0] ss:$8 sps:$4 sm:$0xff]  }
 0xb7c   :  { %5078 = vmatprep.subr.bf16.mxu1 %v9317_v37  ;;  %v9349_v37 = vld [vmem:[%s15366_s4 + $0xd4] ss:$8 sps:$4 sm:$0xff]  }
 0xb7f   :  { %5079 = vmatpush2.bf16.msra.mxu1 %v9318_v50  ;;  %v9350_v50 = vld [vmem:[%s15366_s4 + $0xd0] ss:$8 sps:$4 sm:$0xff]  }
 0xb80   :  { %5080 = vmatprep.subr.bf16.mxu1 %v9319_v46  ;;  %v9351_v46 = vld [vmem:[%s15366_s4 + $0xc4] ss:$8 sps:$4 sm:$0xff]  }
 0xb83   :  { %5081 = vmatpush2.bf16.msra.mxu1 %v9320_v20  ;;  %v9352_v20 = vld [vmem:[%s15366_s4 + $0xc0] ss:$8 sps:$4 sm:$0xff]  }
 0xb84   :  { %5082 = vmatprep.subr.bf16.mxu1 %v9321_v60  ;;  %v9353_v60 = vld [vmem:[%s15366_s4 + $0xb4] ss:$8 sps:$4 sm:$0xff]  }
 0xb87   :  { %5083 = vmatpush2.bf16.msra.mxu1 %v9322_v2  ;;  %v9354_v2 = vld [vmem:[%s15366_s4 + $0xb0] ss:$8 sps:$4 sm:$0xff]  }
 0xb88   :  { %5084 = vmatprep.subr.bf16.mxu1 %v9323_v10  ;;  %v9355_v10 = vld [vmem:[%s15366_s4 + $0xa4] ss:$8 sps:$4 sm:$0xff]  }
 0xb8b   :  { %5085 = vmatpush2.bf16.msra.mxu1 %v9324_v38  ;;  %v9356_v38 = vld [vmem:[%s15366_s4 + $0xa0] ss:$8 sps:$4 sm:$0xff]  }
 0xb8c   :  { %5086 = vmatprep.subr.bf16.mxu1 %v9325_v21  ;;  %v9357_v21 = vld [vmem:[%s15366_s4 + $0x94] ss:$8 sps:$4 sm:$0xff]  }
 0xb8f   :  { %5087 = vmatpush2.bf16.msra.mxu1 %v9326_v12  ;;  %v9358_v12 = vld [vmem:[%s15366_s4 + $0x90] ss:$8 sps:$4 sm:$0xff]  }
 0xb90   :  { %5088 = vmatprep.subr.bf16.mxu1 %v9327_v56  ;;  %v9359_v56 = vld [vmem:[%s15366_s4 + $0x84] ss:$8 sps:$4 sm:$0xff]  }
 0xb93   :  { %5089 = vmatpush2.bf16.msra.mxu1 %v9328_v3  ;;  %v9360_v3 = vld [vmem:[%s15366_s4 + $0x80] ss:$8 sps:$4 sm:$0xff]  }
 0xb94   :  { %5396 = vmatprep.subr.bf16.mxu1 %v9329_v5  ;;  %v13954_v5 = vpop.f32.mrf.mxu0 }
 0xb96   :  { %5091 = vmatmul.mubr.bf16.vlgmr.msra.gmra.mxu1 %v13728_v61 }
 0xb97   :  { %5100 = vmatprep.mubr.bf16.mxu1 %v13740_v48  ;;  %5397 = vmatpush1.bf16.msra.mxu1 %v9330_v33  ;;  %v13957_v33 = vpop.f32.mrf.mxu0 }
 0xb98   :  { %5398 = vmatprep.subr.bf16.mxu1 %v9331_v45 }
 0xb99   :  { %v13959_v45 = vpop.f32.mrf.mxu0 }
 0xb9b   :  { %5399 = vmatpush1.bf16.msra.mxu1 %v9332_v55  ;;  %v7917_v55 = vld [vmem:[%s15364_s2 + $0x450] ss:$8 sps:$4 sm:$0xff]  }
 0xb9c   :  { %5400 = vmatprep.subr.bf16.mxu1 %v9333_v11 }
 0xb9e   :  { %5101 = vmatmul.mubr.bf16.gmra.mxu1 %v13738_v15 }
 0xb9f   :  { %5110 = vmatprep.mubr.bf16.mxu1 %v13758_v29  ;;  %5401 = vmatpush1.bf16.msra.mxu1 %v9334_v17  ;;  %v7922_v17 = vld [vmem:[%s15364_s2 + $0x444] ss:$8 sps:$4 sm:$0xff]  }
 0xba0   :  { %5402 = vmatprep.subr.bf16.mxu1 %v9335_v30  ;;  %v7920_v30 = vld [vmem:[%s15364_s2 + $0x440] ss:$8 sps:$4 sm:$0xff]  }
 0xba3   :  { %5403 = vmatpush1.bf16.msra.mxu1 %v9336_v40 }
 0xba4   :  { %5404 = vmatprep.subr.bf16.mxu1 %v9337_v8  ;;  %v7925_v8 = vld [vmem:[%s15364_s2 + $0x434] ss:$8 sps:$4 sm:$0xff]  }
 0xba6   :  { %5111 = vmatmul.mubr.bf16.gmra.mxu1 %v13756_v7 }
 0xba7   :  { %5120 = vmatprep.mubr.bf16.mxu1 %v13776_v9  ;;  %5405 = vmatpush1.bf16.msra.mxu1 %v9338_v41  ;;  %v7923_v41 = vld [vmem:[%s15364_s2 + $0x430] ss:$8 sps:$4 sm:$0xff]  }
 0xba8   :  { %5406 = vmatprep.subr.bf16.mxu1 %v9339_v25 }
 0xbab   :  { %5407 = vmatpush1.bf16.msra.mxu1 %v9340_v49  ;;  %v7928_v49 = vld [vmem:[%s15364_s2 + $0x424] ss:$8 sps:$4 sm:$0xff]  }
 0xbac   :  { %5408 = vmatprep.subr.bf16.mxu1 %v9341_v44  ;;  %v7926_v44 = vld [vmem:[%s15364_s2 + $0x420] ss:$8 sps:$4 sm:$0xff]  }
 0xbae   :  { %5121 = vmatmul.mubr.bf16.gmra.mxu1 %v13774_v31 }
 0xbaf   :  { %5409 = vmatpush1.bf16.msra.mxu1 %v9342_v43  ;;  %5428 = vmatprep.mubr.bf16.mxu1 %v13726_v0  ;;  %v9347_v0 = vld [vmem:[%s15366_s4 + $0xe4] ss:$8 sps:$4 sm:$0xff]   ;;  %v7931_v43 = vld [vmem:[%s15364_s2 + $0x414] ss:$8 sps:$4 sm:$0xff]  }
 0xbb0   :  { %5410 = vmatprep.subr.bf16.mxu1 %v9343_v58 }
 0xbb3   :  { %5411 = vmatpush1.bf16.msra.mxu1 %v9344_v27  ;;  %v7929_v27 = vld [vmem:[%s15364_s2 + $0x410] ss:$8 sps:$4 sm:$0xff]  }
 0xbb4   :  { %5412 = vmatprep.subr.bf16.mxu1 %v9345_v4  ;;  %v7934_v4 = vld [vmem:[%s15364_s2 + $0x404] ss:$8 sps:$4 sm:$0xff]  }
 0xbb7   :  { %5413 = vmatpush2.bf16.msra.mxu1 %v9346_v52 }
 0xbb8   :  { %5414 = vmatprep.subr.bf16.mxu1 %v9347_v0  ;;  %v7932_v0 = vld [vmem:[%s15364_s2 + $0x400] ss:$8 sps:$4 sm:$0xff]  }
 0xbbb   :  { %5415 = vmatpush2.bf16.msra.mxu1 %v9348_v39 }
 0xbbc   :  { %5416 = vmatprep.subr.bf16.mxu1 %v9349_v37  ;;  %v7937_v37 = vld [vmem:[%s15364_s2 + $0x4f4] ss:$8 sps:$4 sm:$0xff]  }
 0xbbf   :  { %5417 = vmatpush2.bf16.msra.mxu1 %v9350_v50  ;;  %v7935_v50 = vld [vmem:[%s15364_s2 + $0x4f0] ss:$8 sps:$4 sm:$0xff]  }
 0xbc0   :  { %5418 = vmatprep.subr.bf16.mxu1 %v9351_v46 }
 0xbc3   :  { %5419 = vmatpush2.bf16.msra.mxu1 %v9352_v20 }
 0xbc4   :  { %5420 = vmatprep.subr.bf16.mxu1 %v9353_v60  ;;  %v7940_v60 = vld [vmem:[%s15364_s2 + $0x4e4] ss:$8 sps:$4 sm:$0xff]  }
 0xbc7   :  { %5421 = vmatpush2.bf16.msra.mxu1 %v9354_v2  ;;  %v7938_v2 = vld [vmem:[%s15364_s2 + $0x4e0] ss:$8 sps:$4 sm:$0xff]  }
 0xbc8   :  { %5422 = vmatprep.subr.bf16.mxu1 %v9355_v10 }
 0xbcb   :  { %5423 = vmatpush2.bf16.msra.mxu1 %v9356_v38 }
 0xbcc   :  { %5424 = vmatprep.subr.bf16.mxu1 %v9357_v21  ;;  %v7943_v21 = vld [vmem:[%s15364_s2 + $0x4d4] ss:$8 sps:$4 sm:$0xff]  }
 0xbcf   :  { %5425 = vmatpush2.bf16.msra.mxu1 %v9358_v12  ;;  %v7941_v12 = vld [vmem:[%s15364_s2 + $0x4d0] ss:$8 sps:$4 sm:$0xff]  }
 0xbd0   :  { %5426 = vmatprep.subr.bf16.mxu1 %v9359_v56 }
 0xbd3   :  { %5427 = vmatpush2.bf16.msra.mxu1 %v9360_v3 }
 0xbd6   :  { %5429 = vmatmul.mubr.bf16.vlgmr.msra.gmra.mxu1 %v13728_v61  ;;  %v7913_v61 = vld [vmem:[%s15364_s2 + $0x474] ss:$8 sps:$4 sm:$0xff]  }
 0xbd7   :  { %5438 = vmatprep.mubr.bf16.mxu1 %v13740_v48  ;;  %5839 = vmatprep.subr.bf16.mxu1 %v7913_v61  ;;  %v13967_v48 = vpop.f32.mrf.mxu0  ;;  %v7946_v61 = vld [vmem:[%s15364_s2 + $0x4c4] ss:$8 sps:$4 sm:$0xff]  }
 0xbde   :  { %5439 = vmatmul.mubr.bf16.gmra.mxu1 %v13738_v15  ;;  %v7911_v15 = vld [vmem:[%s15364_s2 + $0x470] ss:$8 sps:$4 sm:$0xff]  }
 0xbdf   :  { %5448 = vmatprep.mubr.bf16.mxu1 %v13758_v29  ;;  %5840 = vmatpush1.bf16.msra.mxu1 %v7911_v15  ;;  %v7914_v29 = vld [vmem:[%s15364_s2 + $0x460] ss:$8 sps:$4 sm:$0xff]  }
 0xbe0   :  { %v7944_v15 = vld [vmem:[%s15364_s2 + $0x4c0] ss:$8 sps:$4 sm:$0xff]  }
 0xbe6   :  { %5449 = vmatmul.mubr.bf16.gmra.mxu1 %v13756_v7  ;;  %v7916_v7 = vld [vmem:[%s15364_s2 + $0x464] ss:$8 sps:$4 sm:$0xff]  }
 0xbe7   :  { %5458 = vmatprep.mubr.bf16.mxu1 %v13776_v9  ;;  %5841 = vmatprep.subr.bf16.mxu1 %v7916_v7  ;;  %v7919_v9 = vld [vmem:[%s15364_s2 + $0x454] ss:$8 sps:$4 sm:$0xff]  }
 0xbe8   :  { %5842 = vmatpush1.bf16.msra.mxu1 %v7914_v29 }
 0xbe9   :  { %5843 = vmatprep.subr.bf16.mxu1 %v7919_v9  ;;  %v7949_v9 = vld [vmem:[%s15364_s2 + $0x4b4] ss:$8 sps:$4 sm:$0xff]  }
 0xbec   :  { %5844 = vmatpush1.bf16.msra.mxu1 %v7917_v55  ;;  %v7947_v55 = vld [vmem:[%s15364_s2 + $0x4b0] ss:$8 sps:$4 sm:$0xff]  }
 0xbed   :  { %5845 = vmatprep.subr.bf16.mxu1 %v7922_v17 }
 0xbee   :  { %5459 = vmatmul.mubr.bf16.gmra.mxu1 %v13774_v31  ;;  %v13975_v31 = vpop.f32.mrf.mxu0 }
 0xbf0   :  { %v13983_v11 = vpop.f32.mrf.mxu0  ;;  %5846 = vmatpush1.bf16.msra.mxu1 %v7920_v30 }
 0xbf1   :  { %5847 = vmatprep.subr.bf16.mxu1 %v7925_v8  ;;  %v7952_v8 = vld [vmem:[%s15364_s2 + $0x4a4] ss:$8 sps:$4 sm:$0xff]  }
 0xbf2   :  { %v13991_v40 = vpop.f32.mrf.mxu0 }
 0xbf4   :  { %v13999_v25 = vpop.f32.mrf.mxu0  ;;  %5848 = vmatpush1.bf16.msra.mxu1 %v7923_v41 }
 0xbf5   :  { %5849 = vmatprep.subr.bf16.mxu1 %v7928_v49  ;;  %v7950_v49 = vld [vmem:[%s15364_s2 + $0x4a0] ss:$8 sps:$4 sm:$0xff]  }
 0xbf6   :  { %v14010_v58 = vpop.f32.mrf.mxu0 }
 0xbf8   :  { %5850 = vmatpush1.bf16.msra.mxu1 %v7926_v44  ;;  %v14018_v52 = vpop.f32.mrf.mxu0 }
 0xbf9   :  { %5851 = vmatprep.subr.bf16.mxu1 %v7931_v43  ;;  %v7955_v43 = vld [vmem:[%s15364_s2 + $0x494] ss:$8 sps:$4 sm:$0xff]  }
 0xbfa   :  { %v14023_v39 = vpop.f32.mrf.mxu0 }
 0xbfc   :  { %5852 = vmatpush1.bf16.msra.mxu1 %v7929_v27  ;;  %v14031_v46 = vpop.f32.mrf.mxu0 }
 0xbfd   :  { %5853 = vmatprep.subr.bf16.mxu1 %v7934_v4  ;;  %v7953_v4 = vld [vmem:[%s15364_s2 + $0x490] ss:$8 sps:$4 sm:$0xff]  }
 0xbfe   :  { %v14039_v10 = vpop.f32.mrf.mxu0 }
 0xc00   :  { %5854 = vmatpush1.bf16.msra.mxu1 %v7932_v0  ;;  %v14047_v56 = vpop.f32.mrf.mxu0 }
 0xc01   :  { %5855 = vmatprep.subr.bf16.mxu1 %v7937_v37  ;;  %v7958_v37 = vld [vmem:[%s15364_s2 + $0x484] ss:$8 sps:$4 sm:$0xff]  }
 0xc02   :  { %v14055_v7 = vpop.f32.mrf.mxu0 }
 0xc04   :  { %5856 = vmatpush2.bf16.msra.mxu1 %v7935_v50  ;;  %v14063_v17 = vpop.f32.mrf.mxu0 }
 0xc05   :  { %5857 = vmatprep.subr.bf16.mxu1 %v7940_v60  ;;  %v7956_v60 = vld [vmem:[%s15364_s2 + $0x480] ss:$8 sps:$4 sm:$0xff]  }
 0xc06   :  { %v14068_v41 = vpop.f32.mrf.mxu0 }
 0xc08   :  { %5858 = vmatpush2.bf16.msra.mxu1 %v7938_v2  ;;  %v14076_v27 = vpop.f32.mrf.mxu0 }
 0xc09   :  { %5859 = vmatprep.subr.bf16.mxu1 %v7943_v21  ;;  %v9361_v21 = vld [vmem:[%s15365_s3 + $0x2e4] ss:$16 sps:$4 sm:$0xff]  }
 0xc0a   :  { %v14084_v50 = vpop.f32.mrf.mxu0 }
 0xc0c   :  { %5860 = vmatpush2.bf16.msra.mxu1 %v7941_v12  ;;  %v14092_v12 = vpop.f32.mrf.mxu0 }
 0xc0d   :  { %5861 = vmatprep.subr.bf16.mxu1 %v7946_v61 }
 0xc10   :  { %5862 = vmatpush2.bf16.msra.mxu1 %v7944_v15  ;;  %v14094_v15 = vpop.f32.mrf.mxu0 }
 0xc11   :  { %5863 = vmatprep.subr.bf16.mxu1 %v7949_v9 }
 0xc14   :  { %5864 = vmatpush2.bf16.msra.mxu1 %v7947_v55  ;;  %v14096_v55 = vpop.f32.mrf.mxu0 }
 0xc15   :  { %5865 = vmatprep.subr.bf16.mxu1 %v7952_v8 }
 0xc16   :  { %v4946_v20 = vpop.f32.mrf.mxu1 }
 0xc18   :  { %v4948_v38 = vpop.f32.mrf.mxu1  ;;  %5866 = vmatpush2.bf16.msra.mxu1 %v7950_v49  ;;  %v14098_v49 = vpop.f32.mrf.mxu0 }
 0xc19   :  { %5867 = vmatprep.subr.bf16.mxu1 %v7955_v43  ;;  %v4949_v14 = vadd.f32 %v4948_v38, %v10639_v32 }
 0xc1a   :  { %v4950_v3 = vpop.f32.mrf.mxu1 }
 0xc1b   :  { %v5022_v1 = vadd.f32 %v13957_v33, %v4949_v14  ;;  %v4951_v19 = vadd.f32 %v4950_v3, %v10629_v24 }
 0xc1c   :  { %v4952_v29 = vpop.f32.mrf.mxu1  ;;  %5868 = vmatpush2.bf16.msra.mxu1 %v7953_v4  ;;  %v14100_v4 = vpop.f32.mrf.mxu0 }
 0xc1d   :  { %5869 = vmatprep.subr.bf16.mxu1 %v7958_v37  ;;  %v4953_v36 = vadd.f32 %v4952_v29, %v10639_v32  ;;  %v5024_v38 = vadd.f32 %v13959_v45, %v4951_v19 }
 0xc1e   :  { %v4956_v30 = vpop.f32.mrf.mxu1 }
 0xc1f   :  { %v4957_v42 = vadd.f32 %v4956_v30, %v10629_v24  ;;  %v5026_v14 = vadd.f32 %v13967_v48, %v4953_v36  ;;  %v7293_v3 = vmul.f32 -1.442695, %v5024_v38 }
 0xc20   :  { %v4958_v44 = vpop.f32.mrf.mxu1  ;;  %5870 = vmatpush2.bf16.msra.mxu1 %v7956_v60  ;;  %v14102_v60 = vpop.f32.mrf.mxu0 }
 0xc21   :  { %6074 = vmatprep.subr.bf16.mxu1 %v9361_v21  ;;  %v4947_v21 = vadd.f32 %v4946_v20, %v10629_v24  ;;  %v5030_v29 = vadd.f32 %v13975_v31, %v4957_v42  ;;  %v7294_v34 = vmul.f32 -1.442695, %v5026_v14 }
 0xc22   :  { %v4960_v0 = vpop.f32.mrf.mxu1  ;;  %v14104_v63 = vpop.f32.mrf.mxu0 }
 0xc23   :  { %v5020_v51 = vadd.f32 %v13954_v5, %v4947_v21  ;;  %v7292_v5 = vmul.f32 -1.442695, %v5022_v1  ;;  %v4961_v1 = vadd.f32 %v4960_v0, %v10629_v24  ;;  %v7295_v36 = vmul.f32 -1.442695, %v5030_v29 }
 0xc24   :  { %v4962_v2 = vpop.f32.mrf.mxu1  ;;  %v14107_v57 = vpop.f32.mrf.mxu0 }
 0xc25   :  { %v7291_v62 = vmul.f32 -1.442695, %v5020_v51  ;;  %v4959_v51 = vadd.f32 %v4958_v44, %v10639_v32  ;;  %v4963_v45 = vadd.f32 %v4962_v2, %v10639_v32  ;;  %v5034_v48 = vadd.f32 %v13991_v40, %v4961_v1 }
 0xc26   :  { %v4966_v61 = vpop.f32.mrf.mxu1  ;;  %v14111_v18 = vpop.f32.mrf.mxu0 }
 0xc27   :  { %8439 = vpow2.f32 %v7291_v62  ;;  %v5032_v19 = vadd.f32 %v13983_v11, %v4959_v51  ;;  %v4967_v44 = vadd.f32 %v4966_v61, %v10629_v24  ;;  %v5036_v11 = vadd.f32 %v13999_v25, %v4963_v45 }
 0xc28   :  { %v4968_v9 = vpop.f32.mrf.mxu1  ;;  %v14116_v6 = vpop.f32.mrf.mxu0  ;;  %8441 = vpow2.f32 %v7292_v5  ;;  %v7297_v14 = vmul.f32 -1.442695, %v5034_v48 }
 0xc29   :  { %8443 = vpow2.f32 %v7293_v3  ;;  %v4969_v5 = vadd.f32 %v4968_v9, %v10639_v32  ;;  %v7296_v0 = vmul.f32 -1.442695, %v5032_v19  ;;  %v5040_v51 = vadd.f32 %v14010_v58, %v4967_v44 }
 0xc2a   :  { %v4970_v8 = vpop.f32.mrf.mxu1  ;;  %v14122_v21 = vpop.f32.mrf.mxu0  ;;  %8445 = vpow2.f32 %v7294_v34  ;;  %v7298_v34 = vmul.f32 -1.442695, %v5036_v11 }
 0xc2b   :  { %v4971_v2 = vadd.f32 %v4970_v8, %v10629_v24  ;;  %8447 = vpow2.f32 %v7295_v36  ;;  %v5042_v61 = vadd.f32 %v14018_v52, %v4969_v5 }
 0xc2c   :  { %v4972_v43 = vpop.f32.mrf.mxu1  ;;  %v14130_v33 = vpop.f32.mrf.mxu0  ;;  %8449 = vpow2.f32 %v7296_v0 }
 0xc2d   :  { %v4973_v40 = vadd.f32 %v4972_v43, %v10639_v32  ;;  %v5044_v25 = vadd.f32 %v14023_v39, %v4971_v2  ;;  %8451 = vpow2.f32 %v7297_v14  ;;  %v7299_v43 = vmul.f32 -1.442695, %v5040_v51 }
 0xc2e   :  { %v4976_v37 = vpop.f32.mrf.mxu1  ;;  %v14138_v30 = vpop.f32.mrf.mxu0  ;;  %v7300_v45 = vmul.f32 -1.442695, %v5042_v61  ;;  %8453 = vpow2.f32 %v7298_v34 }
 0xc2f   :  { %v4977_v9 = vadd.f32 %v4976_v37, %v10629_v24  ;;  %v5046_v52 = vadd.f32 %v14031_v46, %v4973_v40  ;;  %v7301_v39 = vmul.f32 -1.442695, %v5044_v25 }
 0xc30   :  { %v4978_v16 = vpop.f32.mrf.mxu1  ;;  %v14145_v31 = vpop.f32.mrf.mxu0 }
 0xc31   :  { %v4979_v8 = vadd.f32 %v4978_v16, %v10639_v32  ;;  %v5050_v37 = vadd.f32 %v14039_v10, %v4977_v9  ;;  %v7302_v0 = vmul.f32 -1.442695, %v5046_v52 }
 0xc32   :  { %v4980_v28 = vpop.f32.mrf.mxu1  ;;  %v14155_v29 = vpop.f32.mrf.mxu0 }
 0xc33   :  { %v4981_v19 = vadd.f32 %v4980_v28, %v10629_v24  ;;  %v5052_v16 = vadd.f32 %v14047_v56, %v4979_v8 }
 0xc34   :  { %v4982_v13 = vpop.f32.mrf.mxu1  ;;  %v8440_v38 = vpop.eup %8439 }
 0xc35   :  { %v5252_v1 = vadd.f32 1.0, %v8440_v38  ;;  %v8442_v58 = vpop.eup %8441  ;;  %v4983_v36 = vadd.f32 %v4982_v13, %v10639_v32  ;;  %v14165_v44 = vpop.f32.mrf.mxu0  ;;  %v5054_v5 = vadd.f32 %v14055_v7, %v4981_v19  ;;  %v7303_v13 = vmul.f32 -1.442695, %v5050_v37 }
 0xc36   :  { %v5253_v28 = vadd.f32 1.0, %v8442_v58  ;;  %v8444_v10 = vpop.eup %8443  ;;  %v7304_v14 = vmul.f32 -1.442695, %v5052_v16 }
 0xc37   :  { %8455 = vrcp.f32 %v5252_v1  ;;  %v5056_v11 = vadd.f32 %v14063_v17, %v4983_v36  ;;  %v14176_v56 = vpop.f32.mrf.mxu0  ;;  %v8446_v7 = vpop.eup %8445  ;;  %v7305_v51 = vmul.f32 -1.442695, %v5054_v5  ;;  %v5254_v61 = vadd.f32 1.0, %v8444_v10 }
 0xc38   :  { %8457 = vpow2.f32 %v7299_v43  ;;  %v8448_v17 = vpop.eup %8447  ;;  %v5255_v1 = vadd.f32 1.0, %v8446_v7 }
 0xc39   :  { %8459 = vpow2.f32 %v7300_v45  ;;  %v7306_v9 = vmul.f32 -1.442695, %v5056_v11  ;;  %v14184_v8 = vpop.f32.mrf.mxu0  ;;  %v8450_v19 = vpop.eup %8449  ;;  %v5256_v43 = vadd.f32 1.0, %v8448_v17 }
 0xc3a   :  { %8461 = vpow2.f32 %v7301_v39  ;;  %v8452_v52 = vpop.eup %8451  ;;  %v5257_v36 = vadd.f32 1.0, %v8450_v19 }
 0xc3b   :  { %8463 = vrcp.f32 %v5253_v28  ;;  %v14190_v37 = vpop.f32.mrf.mxu0  ;;  %v8454_v39 = vpop.eup %8453  ;;  %v5258_v5 = vadd.f32 1.0, %v8452_v52 }
 0xc3c   :  { %8465 = vpow2.f32 %v7302_v0  ;;  %v5259_v11 = vadd.f32 1.0, %v8454_v39 }
 0xc3d   :  { %8467 = vpow2.f32 %v7303_v13  ;;  %v14197_v13 = vpop.f32.mrf.mxu0 }
 0xc3e   :  { %8469 = vpow2.f32 %v7304_v14 }
 0xc3f   :  { %8471 = vpow2.f32 %v7305_v51 }
 0xc40   :  { %8473 = vrcp.f32 %v5254_v61 }
 0xc41   :  { %8475 = vpow2.f32 %v7306_v9  ;;  %v14204_v9 = vpop.f32.mrf.mxu0 }
 0xc42   :  { %8477 = vrcp.f32 %v5255_v1 }
 0xc44   :  { %v14195_v28 = vpop.eup %8455 }
 0xc56   :  { %v14113_v47 = vpop.f32.mrf.mxu1 }
 0xc57   :  { %v5093_v46 = vadd.f32 %v14113_v47, %v10695_v22 }
 0xc58   :  { %v14119_v20 = vpop.f32.mrf.mxu1 }
 0xc59   :  { %v5095_v2 = vadd.f32 %v14119_v20, %v10703_v26  ;;  %v5166_v47 = vadd.f32 %v14068_v41, %v5093_v46  ;;  %v8458_v46 = vpop.eup %8457 }
 0xc5a   :  { %v14126_v35 = vpop.f32.mrf.mxu1  ;;  %v8460_v10 = vpop.eup %8459 }
 0xc5b   :  { %v5097_v40 = vadd.f32 %v14126_v35, %v10695_v22  ;;  %v5168_v20 = vadd.f32 %v14076_v27, %v5095_v2  ;;  %v7307_v41 = vmul.f32 -1.442695, %v5166_v47  ;;  %v8462_v2 = vpop.eup %8461 }
 0xc5c   :  { %v14134_v62 = vpop.f32.mrf.mxu1  ;;  %v14200_v7 = vpop.eup %8463 }
 0xc5d   :  { %v5099_v34 = vadd.f32 %v14134_v62, %v10703_v26  ;;  %v5170_v35 = vadd.f32 %v14084_v50, %v5097_v40  ;;  %v7308_v27 = vmul.f32 -1.442695, %v5168_v20  ;;  %8479 = vpow2.f32 %v7307_v41  ;;  %v8466_v47 = vpop.eup %8465 }
 0xc5e   :  { %v14143_v42 = vpop.f32.mrf.mxu1  ;;  %8481 = vrcp.f32 %v5256_v43  ;;  %v5261_v40 = vadd.f32 1.0, %v8460_v10  ;;  %v8468_v17 = vpop.eup %8467  ;;  %v5262_v20 = vadd.f32 1.0, %v8462_v2  ;;  %v5263_v41 = vadd.f32 1.0, %v8466_v47 }
 0xc5f   :  { %v5103_v58 = vadd.f32 %v14143_v42, %v10695_v22  ;;  %v5172_v62 = vadd.f32 %v14092_v12, %v5099_v34  ;;  %v7309_v16 = vmul.f32 -1.442695, %v5170_v35  ;;  %8483 = vpow2.f32 %v7308_v27 }
 0xc60   :  { %v14153_v3 = vpop.f32.mrf.mxu1  ;;  %8485 = vrcp.f32 %v5257_v36  ;;  %v5264_v43 = vadd.f32 1.0, %v8468_v17 }
 0xc61   :  { %v5176_v50 = vadd.f32 %v14094_v15, %v5103_v58  ;;  %v5105_v42 = vadd.f32 %v14153_v3, %v10703_v26  ;;  %v7310_v12 = vmul.f32 -1.442695, %v5172_v62  ;;  %8487 = vpow2.f32 %v7309_v16  ;;  %v14212_v62 = vpop.f32.mrf.mxu0 }
 0xc62   :  { %v14163_v48 = vpop.f32.mrf.mxu1  ;;  %8489 = vrcp.f32 %v5258_v5  ;;  %v5260_v3 = vadd.f32 1.0, %v8458_v46 }
 0xc63   :  { %v7311_v14 = vmul.f32 -1.442695, %v5176_v50  ;;  %v5178_v15 = vadd.f32 %v14096_v55, %v5105_v42  ;;  %v5107_v51 = vadd.f32 %v14163_v48, %v10695_v22  ;;  %8491 = vpow2.f32 %v7310_v12  ;;  %v8470_v55 = vpop.eup %8469 }
 0xc64   :  { %v14174_v38 = vpop.f32.mrf.mxu1  ;;  %8493 = vrcp.f32 %v5259_v11  ;;  %v8472_v19 = vpop.eup %8471 }
 0xc65   :  { %v5109_v34 = vadd.f32 %v14174_v38, %v10703_v26  ;;  %8495 = vpow2.f32 %v7311_v14  ;;  %v7312_v1 = vmul.f32 -1.442695, %v5178_v15  ;;  %v5180_v48 = vadd.f32 %v14098_v49, %v5107_v51  ;;  %v14210_v58 = vpop.eup %8473 }
 0xc66   :  { %v5112_v25 = vpop.f32.mrf.mxu1  ;;  %8497 = vrcp.f32 %v5260_v3  ;;  %v8476_v27 = vpop.eup %8475  ;;  %v5265_v38 = vadd.f32 1.0, %v8470_v55  ;;  %v5266_v50 = vadd.f32 1.0, %v8472_v19 }
 0xc67   :  { %v5113_v35 = vadd.f32 %v5112_v25, %v10695_v22  ;;  %8499 = vrcp.f32 %v5261_v40  ;;  %v5182_v36 = vadd.f32 %v14100_v4, %v5109_v34  ;;  %v14216_v16 = vpop.eup %8477  ;;  %v7313_v25 = vmul.f32 -1.442695, %v5180_v48  ;;  %v14222_v4 = vpop.f32.mrf.mxu0 }
 0xc68   :  { %v5114_v45 = vpop.f32.mrf.mxu1  ;;  %8501 = vrcp.f32 %v5262_v20  ;;  %v5267_v12 = vadd.f32 1.0, %v8476_v27 }
 0xc69   :  { %v5115_v39 = vadd.f32 %v5114_v45, %v10703_v26  ;;  %8503 = vpow2.f32 %v7312_v1  ;;  %v5186_v42 = vadd.f32 %v14102_v60, %v5113_v35  ;;  %v7314_v45 = vmul.f32 -1.442695, %v5182_v36 }
 0xc6a   :  { %v5116_v0 = vpop.f32.mrf.mxu1  ;;  %v8480_v49 = vpop.eup %8479  ;;  %8505 = vrcp.f32 %v5263_v41 }
 0xc6b   :  { %v5117_v5 = vadd.f32 %v5116_v0, %v10695_v22  ;;  %v14220_v46 = vpop.eup %8481  ;;  %8507 = vrcp.f32 %v5264_v43  ;;  %v5188_v2 = vadd.f32 %v14104_v63, %v5115_v39  ;;  %v5348_v60 = vadd.f32 1.0, %v8480_v49  ;;  %v14232_v63 = vpop.f32.mrf.mxu0 }
 0xc6c   :  { %v5118_v61 = vpop.f32.mrf.mxu1  ;;  %v8484_v11 = vpop.eup %8483  ;;  %8509 = vrcp.f32 %v5265_v38  ;;  %v7315_v0 = vmul.f32 -1.442695, %v5186_v42 }
 0xc6d   :  { %v5119_v14 = vadd.f32 %v5118_v61, %v10703_v26  ;;  %v14226_v15 = vpop.eup %8485  ;;  %8511 = vrcp.f32 %v5266_v50  ;;  %v5190_v51 = vadd.f32 %v14107_v57, %v5117_v5  ;;  %v5349_v17 = vadd.f32 1.0, %v8484_v11  ;;  %v14245_v36 = vpop.f32.mrf.mxu0 }
 0xc6e   :  { %v5122_v52 = vpop.f32.mrf.mxu1  ;;  %v8488_v3 = vpop.eup %8487  ;;  %8513 = vpow2.f32 %v7313_v25  ;;  %v7316_v61 = vmul.f32 -1.442695, %v5188_v2 }
 0xc6f   :  { %v5123_v47 = vadd.f32 %v5122_v52, %v10695_v22  ;;  %v14230_v40 = vpop.eup %8489  ;;  %8515 = vrcp.f32 %v5267_v12  ;;  %v5192_v55 = vadd.f32 %v14111_v18, %v5119_v14  ;;  %v5350_v19 = vadd.f32 1.0, %v8488_v3  ;;  %v14263_v3 = vpop.f32.mrf.mxu0 }
 0xc70   :  { %v5124_v10 = vpop.f32.mrf.mxu1  ;;  %v8492_v34 = vpop.eup %8491  ;;  %8517 = vpow2.f32 %v7314_v45  ;;  %v7317_v57 = vmul.f32 -1.442695, %v5190_v51  ;;  %v5504_v18 = vadd.f32 %v14145_v31, %v10774_v23  ;;  %v5508_v45 = vadd.f32 %v14165_v44, %v10774_v23 }
 0xc71   :  { %v14235_v1 = vpop.eup %8493  ;;  %8519 = vrcp.f32 %v5348_v60  ;;  %v5196_v48 = vadd.f32 %v14116_v6, %v5123_v47  ;;  %v5351_v43 = vadd.f32 1.0, %v8492_v34  ;;  %v5125_v52 = vadd.f32 %v5124_v10, %v10703_v26 }
 0xc72   :  { %v5126_v20 = vpop.f32.mrf.mxu1  ;;  %v8496_v41 = vpop.eup %8495  ;;  %8521 = vpow2.f32 %v7315_v0  ;;  %v7318_v39 = vmul.f32 -1.442695, %v5192_v55  ;;  %v5506_v6 = vadd.f32 %v14155_v29, %v10784_v53  ;;  %v5542_v31 = vmul.f32 %v14195_v28, %v5504_v18 }
 0xc73   :  { %v14238_v35 = vpop.eup %8497  ;;  %8523 = vrcp.f32 %v5349_v17  ;;  %v5352_v49 = vadd.f32 1.0, %v8496_v41  ;;  %v5127_v25 = vadd.f32 %v5126_v20, %v10695_v22  ;;  %v7319_v12 = vmul.f32 -1.442695, %v5196_v48 }
 0xc74   :  { %v5128_v27 = vpop.f32.mrf.mxu1  ;;  %v14241_v38 = vpop.eup %8499  ;;  %8525 = vpow2.f32 %v7316_v61  ;;  %v5510_v29 = vadd.f32 %v14176_v56, %v10784_v53  ;;  %v5198_v2 = vadd.f32 %v14122_v21, %v5125_v52  ;;  %v5543_v51 = vmul.f32 %v14200_v7, %v5506_v6 }
 0xc75   :  { %v14247_v50 = vpop.eup %8501  ;;  %8527 = vrcp.f32 %v5350_v19  ;;  %v5200_v56 = vadd.f32 %v14130_v33, %v5127_v25  ;;  %v5129_v17 = vadd.f32 %v5128_v27, %v10703_v26  ;;  %v5544_v55 = vmul.f32 %v14210_v58, %v5508_v45 }
 0xc76   :  { %v8504_v5 = vpop.eup %8503  ;;  %8529 = vpow2.f32 %v7317_v57  ;;  %v5514_v7 = vadd.f32 %v14184_v8, %v10774_v23  ;;  %v5516_v41 = vadd.f32 %v14190_v37, %v10784_v53  ;;  %v7320_v57 = vmul.f32 -1.442695, %v5198_v2 }
 0xc77   :  { %v14254_v11 = vpop.eup %8505  ;;  %8531 = vrcp.f32 %v5351_v43  ;;  %v5353_v44 = vadd.f32 1.0, %v8504_v5  ;;  %v5535_v43 = vpop.f32.mrf.mxu0  ;;  %v5545_v18 = vmul.f32 %v14216_v16, %v5510_v29  ;;  %v5202_v8 = vadd.f32 %v14138_v30, %v5129_v17 }
 0xc78   :  { %v14261_v60 = vpop.eup %8507  ;;  %8533 = vpow2.f32 %v7318_v39  ;;  %v7321_v39 = vmul.f32 -1.442695, %v5200_v56  ;;  %v5546_v37 = vmul.f32 %v14220_v46, %v5514_v7  ;;  %v5520_v16 = vadd.f32 %v14204_v9, %v10784_v53 }
 0xc79   :  { %v14267_v47 = vpop.eup %8509  ;;  %8535 = vrcp.f32 %v5352_v49  ;;  %v5537_v45 = vpop.f32.mrf.mxu0  ;;  %v5547_v2 = vmul.f32 %v14226_v15, %v5516_v41  ;;  %v7322_v9 = vmul.f32 -1.442695, %v5202_v8  ;;  %v5528_v15 = vadd.f32 %v14232_v63, %v10774_v23 }
 0xc7a   :  { %v14271_v20 = vpop.eup %8511  ;;  %8537 = vpow2.f32 %v7319_v12  ;;  %v5549_v41 = vmul.f32 %v14235_v1, %v5520_v16  ;;  %v5536_v8 = vadd.f32 %v5535_v43, %v10784_v53  ;;  %v5538_v1 = vadd.f32 %v5537_v45, %v10774_v23 }
 0xc7b   :  { %v8514_v19 = vpop.eup %8513  ;;  %v5552_v16 = vmul.f32 %v14247_v50, %v5528_v15  ;;  %v15520_v50 = vld [vmem:[#allocation7_spill] sm:$0xff] }
 0xc7c   :  { %v14279_v48 = vpop.eup %8515  ;;  %v5354_v25 = vadd.f32 1.0, %v8514_v19 }
 0xc7d   :  { %v8518_v58 = vpop.eup %8517 }
 0xc7e   :  { %v14285_v49 = vpop.eup %8519 }
 0xc7f   :  { %v8522_v12 = vpop.eup %8521 }
 0xc80   :  { %v14292_v30 = vpop.eup %8523  ;;  %v5356_v63 = vadd.f32 1.0, %v8522_v12 }
 0xc96   :  { %v5430_v42 = vpop.f32.mrf.mxu1 }
 0xc97   :  { %v5431_v10 = vadd.f32 %v5430_v42, %v10795_v59 }
 0xc98   :  { %v5432_v14 = vpop.f32.mrf.mxu1 }
 0xc99   :  { %v5558_v0 = vadd.f32 %v5542_v31, %v5431_v10  ;;  %v5433_v28 = vadd.f32 %v5432_v14, %v10807_v54  ;;  %v5518_v10 = vadd.f32 %v14197_v13, %v10774_v23  ;;  %v8526_v14 = vpop.eup %8525  ;;  %v5526_v13 = vadd.f32 %v14222_v4, %v10784_v53 }
 0xc9a   :  { %v5434_v21 = vpop.f32.mrf.mxu1 }
 0xc9b   :  { %v5559_v34 = vadd.f32 %v5543_v51, %v5433_v28  ;;  %v5435_v61 = vadd.f32 %v5434_v21, %v10795_v59  ;;  %8539 = vtanh.f32 %v5558_v0  ;;  %v5524_v0 = vadd.f32 %v14212_v62, %v10774_v23  ;;  %v14300_v51 = vpop.eup %8527 }
 0xc9c   :  { %v5436_v33 = vpop.f32.mrf.mxu1  ;;  %v5548_v17 = vmul.f32 %v14230_v40, %v5518_v10  ;;  %v8530_v21 = vpop.eup %8529  ;;  %v5530_v62 = vadd.f32 %v14245_v36, %v10784_v53 }
 0xc9d   :  { %8541 = vtanh.f32 %v5559_v34  ;;  %v5560_v52 = vadd.f32 %v5544_v55, %v5435_v61  ;;  %v5437_v27 = vadd.f32 %v5436_v33, %v10807_v54  ;;  %v5355_v34 = vadd.f32 1.0, %v8518_v58  ;;  %v14308_v61 = vpop.eup %8531  ;;  %v5539_v55 = vpop.f32.mrf.mxu0 }
 0xc9e   :  { %8543 = vrcp.f32 %v5353_v44  ;;  %v5440_v6 = vpop.f32.mrf.mxu1  ;;  %v8534_v40 = vpop.eup %8533  ;;  %v5550_v36 = vmul.f32 %v14238_v35, %v5524_v0  ;;  %v5358_v12 = vadd.f32 1.0, %v8530_v21  ;;  %v5553_v43 = vmul.f32 %v14254_v11, %v5530_v62  ;;  %v15518_v0 = vld [vmem:[#allocation5_spill] sm:$0xff] }
 0xc9f   :  { %8545 = vtanh.f32 %v5560_v52  ;;  %v5561_v42 = vadd.f32 %v5545_v18, %v5437_v27  ;;  %v5441_v5 = vadd.f32 %v5440_v6, %v10795_v59  ;;  %v14315_v52 = vpop.eup %8535  ;;  %v5357_v27 = vadd.f32 1.0, %v8526_v14 }
 0xca0   :  { %8547 = vpow2.f32 %v7320_v57  ;;  %v5442_v31 = vpop.f32.mrf.mxu1  ;;  %v5534_v57 = vadd.f32 %v14263_v3, %v10774_v23  ;;  %v5540_v6 = vadd.f32 %v5539_v55, %v10784_v53  ;;  %v5359_v14 = vadd.f32 1.0, %v8534_v40 }
 0xca1   :  { %8549 = vtanh.f32 %v5561_v42  ;;  %v5562_v46 = vadd.f32 %v5546_v37, %v5441_v5  ;;  %v5443_v29 = vadd.f32 %v5442_v31, %v10807_v54  ;;  %v5551_v42 = vmul.f32 %v14241_v38, %v5526_v13 }
 0xca2   :  { %8551 = vpow2.f32 %v7321_v39  ;;  %v5444_v28 = vpop.f32.mrf.mxu1  ;;  %v8538_v39 = vpop.eup %8537  ;;  %v5556_v62 = vmul.f32 %v14271_v20, %v5538_v1 }
 0xca3   :  { %8553 = vrcp.f32 %v5354_v25  ;;  %v5563_v44 = vadd.f32 %v5547_v2, %v5443_v29  ;;  %v5445_v56 = vadd.f32 %v5444_v28, %v10795_v59  ;;  %v5554_v29 = vmul.f32 %v14261_v60, %v5534_v57 }
 0xca4   :  { %8555 = vtanh.f32 %v5562_v46  ;;  %v5446_v4 = vpop.f32.mrf.mxu1  ;;  %v5360_v20 = vadd.f32 1.0, %v8538_v39 }
 0xca5   :  { %8557 = vtanh.f32 %v5563_v44  ;;  %v5564_v19 = vadd.f32 %v5548_v17, %v5445_v56  ;;  %v5447_v7 = vadd.f32 %v5446_v4, %v10807_v54  ;;  %v5555_v17 = vmul.f32 %v14267_v47, %v5536_v8 }
 0xca6   :  { %8559 = vpow2.f32 %v7322_v9  ;;  %v5450_v33 = vpop.f32.mrf.mxu1  ;;  %v15519_v9 = vld [vmem:[#allocation6_spill] sm:$0xff] }
 0xca7   :  { %8561 = vtanh.f32 %v5564_v19  ;;  %v5565_v18 = vadd.f32 %v5549_v41, %v5447_v7  ;;  %v5451_v58 = vadd.f32 %v5450_v33, %v10795_v59  ;;  %v15521_v7 = vld [vmem:[#allocation8_spill] sm:$0xff]  ;;  %v5557_v33 = vmul.f32 %v14279_v48, %v5540_v6 }
 0xca8   :  { %8563 = vrcp.f32 %v5355_v34  ;;  %v5452_v3 = vpop.f32.mrf.mxu1  ;;  %v8540_v37 = vpop.eup %8539 }
 0xca9   :  { %8565 = vtanh.f32 %v5565_v18  ;;  %v5566_v25 = vadd.f32 %v5550_v36, %v5451_v58  ;;  %v5453_v35 = vadd.f32 %v5452_v3, %v10807_v54  ;;  %v5590_v38 = vsub.f32 %v15518_v0, %v8540_v37  ;;  %v15526_v0 = vld [vmem:[#allocation12_spill] sm:$0xff] }
 0xcaa   :  { %v8542_v5 = vpop.eup %8541  ;;  %8567 = vrcp.f32 %v5356_v63  ;;  %v5454_v10 = vpop.f32.mrf.mxu1 }
 0xcab   :  { %v14325_v31 = vpop.eup %8543  ;;  %8569 = vrcp.f32 %v5357_v27  ;;  %v5567_v45 = vadd.f32 %v5551_v42, %v5453_v35  ;;  %v5455_v46 = vadd.f32 %v5454_v10, %v10795_v59  ;;  %v5591_v28 = vsub.f32 %v15519_v9, %v8542_v5 }
 0xcac   :  { %v8546_v2 = vpop.eup %8545  ;;  %8571 = vtanh.f32 %v5566_v25  ;;  %v5456_v13 = vpop.f32.mrf.mxu1  ;;  %v5606_v47 = vmul.f32 %v14285_v49, %v5590_v38 }
 0xcad   :  { %v8548_v44 = vpop.eup %8547  ;;  %v5592_v56 = vsub.f32 %v15520_v50, %v8546_v2  ;;  %8573 = vtanh.f32 %v5567_v45  ;;  %v5568_v11 = vadd.f32 %v5552_v16, %v5455_v46  ;;  %v5457_v15 = vadd.f32 %v5456_v13, %v10807_v54  ;;  %v15525_v16 = vld [vmem:[#allocation9_spill] sm:$0xff] }
 0xcae   :  { %v8550_v21 = vpop.eup %8549  ;;  %8575 = vrcp.f32 %v5358_v12  ;;  %v5460_v60 = vpop.f32.mrf.mxu1  ;;  %v5607_v34 = vmul.f32 %v14292_v30, %v5591_v28  ;;  %v5361_v58 = vadd.f32 1.0, %v8548_v44  ;;  %v14350_v6 = vadd.f32 %v8540_v37, %v5606_v47  ;;  %v15524_v12 = vld [vmem:[#allocation11_spill] sm:$0xff]  ;;  %v15527_v28 = vld [vmem:[#allocation10_spill] sm:$0xff] }
 0xcaf   :  { %v8552_v4 = vpop.eup %8551  ;;  %v5608_v55 = vmul.f32 %v14300_v51, %v5592_v56  ;;  %8577 = vtanh.f32 %v5568_v11  ;;  %v5461_v19 = vadd.f32 %v5460_v60, %v10795_v59  ;;  %v5593_v41 = vsub.f32 %v15521_v7, %v8550_v21 }
 0xcb0   :  { %v8554_v40 = vpop.eup %8553  ;;  %8579 = vrcp.f32 %v5359_v14  ;;  %v5569_v57 = vadd.f32 %v5553_v43, %v5457_v15  ;;  %v5462_v63 = vpop.f32.mrf.mxu1  ;;  %v5362_v8 = vadd.f32 1.0, %v8552_v4  ;;  %v14346_v42 = vadd.f32 %v8542_v5, %v5607_v34  ;;  %v9362_v15 = vld [vmem:[%s15365_s3 + $0x2e0] ss:$16 sps:$4 sm:$0xff]  }
 0xcb1   :  { %v8556_v36 = vpop.eup %8555  ;;  %v5570_v27 = vadd.f32 %v5554_v29, %v5461_v19  ;;  %v5463_v30 = vadd.f32 %v5462_v63, %v10807_v54  ;;  %v5609_v51 = vmul.f32 %v14308_v61, %v5593_v41  ;;  %v14343_v1 = vadd.f32 %v8546_v2, %v5608_v55  ;;  %v15532_v41 = vld [vmem:[#allocation15_spill] sm:$0xff] }
 0xcb2   :  { %v8558_v18 = vpop.eup %8557  ;;  %8581 = vtanh.f32 %v5569_v57  ;;  %v5464_v3 = vpop.f32.mrf.mxu1  ;;  %v5594_v43 = vsub.f32 %v15525_v16, %v8556_v36  ;;  %v9364_v57 = vld [vmem:[%s15365_s3 + $0x2c0] ss:$16 sps:$4 sm:$0xff]  }
 0xcb3   :  { %15522 = vst [vmem:[#allocation5_spill] sm:$0xff] %v14343_v1  ;;  %v8560_v25 = vpop.eup %8559  ;;  %v5571_v49 = vadd.f32 %v5555_v17, %v5463_v30  ;;  %v5465_v35 = vadd.f32 %v5464_v3, %v10795_v59  ;;  %v14348_v48 = vadd.f32 %v8550_v21, %v5609_v51  ;;  %8583 = vtanh.f32 %v5570_v27  ;;  %v15534_v27 = vld [vmem:[#allocation16_spill] sm:$0xff] }
 0xcb4   :  { %v8562_v39 = vpop.eup %8561  ;;  %v5466_v61 = vpop.f32.mrf.mxu1  ;;  %v5595_v10 = vsub.f32 %v15524_v12, %v8558_v18  ;;  %v5363_v14 = vadd.f32 1.0, %v8560_v25  ;;  %v14361_v37 = vpack.c.bf16 %v14343_v1, %v14350_v6  ;;  %v5610_v11 = vmul.f32 %v14315_v52, %v5594_v43  ;;  %v9367_v12 = vld [vmem:[%s15365_s3 + $0x284] ss:$16 sps:$4 sm:$0xff]  }
 0xcb5   :  { %15523 = vst [vmem:[#allocation6_spill] sm:$0xff] %v14348_v48  ;;  %v8564_v45 = vpop.eup %8563  ;;  %8585 = vtanh.f32 %v5571_v49  ;;  %v5572_v46 = vadd.f32 %v5556_v62, %v5465_v35  ;;  %v5467_v29 = vadd.f32 %v5466_v61, %v10807_v54  ;;  %v14357_v5 = vpack.c.bf16 %v14348_v48, %v14346_v42  ;;  %v9366_v35 = vld [vmem:[%s15365_s3 + $0x2a0] ss:$16 sps:$4 sm:$0xff]  }
 0xcb6   :  { %v8566_v2 = vpop.eup %8565  ;;  %8587 = vrcp.f32 %v5361_v58  ;;  %v5596_v38 = vsub.f32 %v15526_v0, %v8562_v39  ;;  %v5611_v50 = vmul.f32 %v14325_v31, %v5595_v10  ;;  %v9363_v31 = vld [vmem:[%s15365_s3 + $0x2c4] ss:$16 sps:$4 sm:$0xff]   ;;  %v14381_v7 = vadd.f32 %v8556_v36, %v5610_v11 }
 0xcb7   :  { %v8568_v13 = vpop.eup %8567  ;;  %8589 = vtanh.f32 %v5572_v46  ;;  %v5573_v9 = vadd.f32 %v5557_v33, %v5467_v29  ;;  %5871 = vmatprep.mubr.bf16.mxu1 %v14357_v5  ;;  %v5597_v44 = vsub.f32 %v15527_v28, %v8566_v2  ;;  %v15533_v33 = vld [vmem:[#allocation13_spill] sm:$0xff] }
 0xcb8   :  { %v8570_v56 = vpop.eup %8569  ;;  %8591 = vrcp.f32 %v5362_v8  ;;  %5872 = vmatmul.mubr.bf16.vlgmr.msra.gmra.mxu1 %v14361_v37  ;;  %v5612_v17 = vmul.f32 %v8554_v40, %v5596_v38  ;;  %v14377_v52 = vadd.f32 %v8558_v18, %v5611_v50  ;;  %15531 = vst [vmem:[#allocation9_spill] sm:$0xff] %v14381_v7  ;;  %v9365_v36 = vld [vmem:[%s15365_s3 + $0x2a4] ss:$16 sps:$4 sm:$0xff]   ;;  %v15535_v8 = vld [vmem:[#allocation14_spill] sm:$0xff]  ;;  %v9368_v38 = vld [vmem:[%s15365_s3 + $0x280] ss:$16 sps:$4 sm:$0xff]  }
 0xcb9   :  { %v8572_v21 = vpop.eup %8571  ;;  %8593 = vtanh.f32 %v5573_v9  ;;  %6075 = vmatpush1.bf16.msra.mxu1 %v9362_v15  ;;  %v5613_v60 = vmul.f32 %v8564_v45, %v5597_v44  ;;  %v15537_v45 = vld [vmem:[#allocation18_spill] sm:$0xff]  ;;  %v15541_v9 = vld [vmem:[#allocation20_spill] sm:$0xff]  ;;  %v15542_v44 = vld [vmem:[#allocation17_spill] sm:$0xff] }
 0xcba   :  { %v8574_v62 = vpop.eup %8573  ;;  %8595 = vrcp.f32 %v5360_v20  ;;  %6076 = vmatprep.subr.bf16.mxu1 %v9363_v31  ;;  %v14375_v34 = vadd.f32 %v8562_v39, %v5612_v17  ;;  %15529 = vst [vmem:[#allocation8_spill] sm:$0xff] %v14377_v52  ;;  %v5598_v20 = vsub.f32 %v15533_v33, %v8572_v21  ;;  %v9369_v17 = vld [vmem:[%s15365_s3 + $0x264] ss:$16 sps:$4 sm:$0xff]  }
 0xcbb   :  { %v8576_v4 = vpop.eup %8575  ;;  %8597 = vrcp.f32 %v5363_v14  ;;  %v14379_v55 = vadd.f32 %v8566_v2, %v5613_v60  ;;  %v5599_v40 = vsub.f32 %v15532_v41, %v8574_v62 }
 0xcbc   :  { %15528 = vst [vmem:[#allocation7_spill] sm:$0xff] %v14375_v34  ;;  %v8578_v19 = vpop.eup %8577  ;;  %v14398_v51 = vpack.c.bf16 %v14375_v34, %v14381_v7  ;;  %v5614_v39 = vmul.f32 %v8568_v13, %v5598_v20 }
 0xcbd   :  { %15530 = vst [vmem:[#allocation11_spill] sm:$0xff] %v14379_v55  ;;  %v8580_v47 = vpop.eup %8579  ;;  %6077 = vmatpush1.bf16.msra.mxu1 %v9364_v57  ;;  %v14389_v63 = vpack.c.bf16 %v14379_v55, %v14377_v52  ;;  %v5600_v30 = vsub.f32 %v15534_v27, %v8578_v19  ;;  %v5615_v25 = vmul.f32 %v8570_v56, %v5599_v40  ;;  %v9371_v57 = vld [vmem:[%s15365_s3 + $0x244] ss:$16 sps:$4 sm:$0xff]  }
 0xcbe   :  { %6078 = vmatprep.subr.bf16.mxu1 %v9365_v36  ;;  %v14419_v13 = vadd.f32 %v8572_v21, %v5614_v39  ;;  %v15543_v21 = vld [vmem:[#allocation19_spill] sm:$0xff] }
 0xcbf   :  { %v8582_v18 = vpop.eup %8581  ;;  %5881 = vmatprep.mubr.bf16.mxu1 %v14389_v63  ;;  %v5616_v58 = vmul.f32 %v8576_v4, %v5600_v30  ;;  %v14412_v2 = vadd.f32 %v8574_v62, %v5615_v25  ;;  %v9375_v25 = vld [vmem:[%s15365_s3 + $0x204] ss:$16 sps:$4 sm:$0xff]   ;;  %v9378_v39 = vld [vmem:[%s15365_s3 + $0x3e0] ss:$16 sps:$4 sm:$0xff]  }
 0xcc0   :  { %5882 = vmatmul.mubr.bf16.gmra.mxu1 %v14398_v51  ;;  %v5601_v3 = vsub.f32 %v15535_v8, %v8582_v18  ;;  %v8584_v49 = vpop.eup %8583  ;;  %15540 = vst [vmem:[#allocation13_spill] sm:$0xff] %v14419_v13 }
 0xcc1   :  { %6079 = vmatpush1.bf16.msra.mxu1 %v9366_v35  ;;  %v14409_v43 = vadd.f32 %v8578_v19, %v5616_v58  ;;  %15538 = vst [vmem:[#allocation10_spill] sm:$0xff] %v14412_v2  ;;  %v5602_v28 = vsub.f32 %v15541_v9, %v8584_v49  ;;  %v9373_v58 = vld [vmem:[%s15365_s3 + $0x224] ss:$16 sps:$4 sm:$0xff]   ;;  %v9388_v9 = vld [vmem:[%s15365_s3 + $0x340] ss:$16 sps:$4 sm:$0xff]  }
 0xcc2   :  { %v8586_v61 = vpop.eup %8585  ;;  %6080 = vmatprep.subr.bf16.mxu1 %v9367_v12  ;;  %v5617_v10 = vmul.f32 %v8580_v47, %v5601_v3  ;;  %v9370_v47 = vld [vmem:[%s15365_s3 + $0x260] ss:$16 sps:$4 sm:$0xff]   ;;  %v9377_v35 = vld [vmem:[%s15365_s3 + $0x3e4] ss:$16 sps:$4 sm:$0xff]  }
 0xcc3   :  { %v8588_v16 = vpop.eup %8587  ;;  %15536 = vst [vmem:[#allocation12_spill] sm:$0xff] %v14409_v43  ;;  %v5603_v46 = vsub.f32 %v15537_v45, %v8586_v61  ;;  %v14432_v60 = vpack.c.bf16 %v14409_v43, %v14419_v13  ;;  %v9374_v3 = vld [vmem:[%s15365_s3 + $0x220] ss:$16 sps:$4 sm:$0xff]   ;;  %v9383_v45 = vld [vmem:[%s15365_s3 + $0x384] ss:$16 sps:$4 sm:$0xff]  }
 0xcc4   :  { %v8590_v29 = vpop.eup %8589  ;;  %v14414_v14 = vadd.f32 %v8582_v18, %v5617_v10  ;;  %v9372_v18 = vld [vmem:[%s15365_s3 + $0x240] ss:$16 sps:$4 sm:$0xff]   ;;  %v9381_v10 = vld [vmem:[%s15365_s3 + $0x3a4] ss:$16 sps:$4 sm:$0xff]  }
 0xcc5   :  { %v8592_v0 = vpop.eup %8591  ;;  %6081 = vmatpush1.bf16.msra.mxu1 %v9368_v38  ;;  %v5604_v50 = vsub.f32 %v15542_v44, %v8590_v29  ;;  %v5619_v31 = vmul.f32 %v8588_v16, %v5603_v46  ;;  %v9380_v12 = vld [vmem:[%s15365_s3 + $0x3c0] ss:$16 sps:$4 sm:$0xff]   ;;  %v9387_v38 = vld [vmem:[%s15365_s3 + $0x344] ss:$16 sps:$4 sm:$0xff]  }
 0xcc6   :  { %15539 = vst [vmem:[#allocation15_spill] sm:$0xff] %v14414_v14  ;;  %v8594_v56 = vpop.eup %8593  ;;  %v14425_v11 = vpack.c.bf16 %v14414_v14, %v14412_v2  ;;  %6082 = vmatprep.subr.bf16.mxu1 %v9369_v17  ;;  %v9382_v16 = vld [vmem:[%s15365_s3 + $0x3a0] ss:$16 sps:$4 sm:$0xff]   ;;  %v9393_v17 = vld [vmem:[%s15365_s3 + $0x2ec] ss:$16 sps:$4 sm:$0xff]  }
 0xcc7   :  { %v8596_v15 = vpop.eup %8595  ;;  %v5605_v62 = vsub.f32 %v15543_v21, %v8594_v56  ;;  %v5620_v4 = vmul.f32 %v8592_v0, %v5604_v50  ;;  %v14443_v33 = vadd.f32 %v8586_v61, %v5619_v31  ;;  %v9379_v61 = vld [vmem:[%s15365_s3 + $0x3c4] ss:$16 sps:$4 sm:$0xff]   ;;  %v9384_v46 = vld [vmem:[%s15365_s3 + $0x380] ss:$16 sps:$4 sm:$0xff]   ;;  %v9395_v21 = vld [vmem:[%s15365_s3 + $0x2cc] ss:$16 sps:$4 sm:$0xff]  }
 0xcc8   :  { %v8598_v19 = vpop.eup %8597  ;;  %5891 = vmatprep.mubr.bf16.mxu1 %v14425_v11  ;;  %v5618_v40 = vmul.f32 %v8596_v15, %v5602_v28  ;;  %v9386_v0 = vld [vmem:[%s15365_s3 + $0x360] ss:$16 sps:$4 sm:$0xff]   ;;  %v9389_v28 = vld [vmem:[%s15365_s3 + $0x324] ss:$16 sps:$4 sm:$0xff]   ;;  %v9394_v15 = vld [vmem:[%s15365_s3 + $0x2e8] ss:$16 sps:$4 sm:$0xff]  }
 0xcc9   :  { %5892 = vmatmul.mubr.bf16.gmra.mxu1 %v14432_v60  ;;  %v5621_v41 = vmul.f32 %v8598_v19, %v5605_v62  ;;  %15544 = vst [vmem:[#allocation16_spill] sm:$0xff] %v14443_v33  ;;  %v14447_v27 = vadd.f32 %v8590_v29, %v5620_v4  ;;  %v9385_v29 = vld [vmem:[%s15365_s3 + $0x364] ss:$16 sps:$4 sm:$0xff]   ;;  %v9390_v44 = vld [vmem:[%s15365_s3 + $0x320] ss:$16 sps:$4 sm:$0xff]  }
 0xcca   :  { %6083 = vmatpush1.bf16.msra.mxu1 %v9370_v47  ;;  %v14453_v36 = vadd.f32 %v8584_v49, %v5618_v40  ;;  %v9376_v49 = vld [vmem:[%s15365_s3 + $0x200] ss:$16 sps:$4 sm:$0xff]   ;;  %v9391_v50 = vld [vmem:[%s15365_s3 + $0x304] ss:$16 sps:$4 sm:$0xff]   ;;  %v9396_v62 = vld [vmem:[%s15365_s3 + $0x2c8] ss:$16 sps:$4 sm:$0xff]  }
 0xccb   :  { %6084 = vmatprep.subr.bf16.mxu1 %v9371_v57  ;;  %v14445_v20 = vadd.f32 %v8594_v56, %v5621_v41  ;;  %15546 = vst [vmem:[#allocation18_spill] sm:$0xff] %v14447_v27  ;;  %v9392_v56 = vld [vmem:[%s15365_s3 + $0x300] ss:$16 sps:$4 sm:$0xff]   ;;  %v9397_v31 = vld [vmem:[%s15365_s3 + $0x2ac] ss:$16 sps:$4 sm:$0xff]  }
 0xccc   :  { %15547 = vst [vmem:[#allocation20_spill] sm:$0xff] %v14453_v36  ;;  %v14464_v8 = vpack.c.bf16 %v14447_v27, %v14453_v36  ;;  %v9398_v4 = vld [vmem:[%s15365_s3 + $0x2a8] ss:$16 sps:$4 sm:$0xff]   ;;  %v9399_v19 = vld [vmem:[%s15365_s3 + $0x28c] ss:$16 sps:$4 sm:$0xff]  }
 0xccd   :  { %15545 = vst [vmem:[#allocation14_spill] sm:$0xff] %v14445_v20  ;;  %v14451_v30 = vpack.c.bf16 %v14445_v20, %v14443_v33  ;;  %v9400_v41 = vld [vmem:[%s15365_s3 + $0x288] ss:$16 sps:$4 sm:$0xff]   ;;  %v9401_v40 = vld [vmem:[%s15365_s3 + $0x26c] ss:$16 sps:$4 sm:$0xff]  }
 0xcce   :  { %6085 = vmatpush1.bf16.msra.mxu1 %v9372_v18  ;;  %v9402_v47 = vld [vmem:[%s15365_s3 + $0x268] ss:$16 sps:$4 sm:$0xff]   ;;  %v9403_v57 = vld [vmem:[%s15365_s3 + $0x24c] ss:$16 sps:$4 sm:$0xff]  }
 0xccf   :  { %5901 = vmatprep.mubr.bf16.mxu1 %v14451_v30  ;;  %6086 = vmatprep.subr.bf16.mxu1 %v9373_v58  ;;  %v9404_v18 = vld [vmem:[%s15365_s3 + $0x248] ss:$16 sps:$4 sm:$0xff]   ;;  %v9405_v58 = vld [vmem:[%s15365_s3 + $0x22c] ss:$16 sps:$4 sm:$0xff]  }
 0xcd1   :  { %5902 = vmatmul.mubr.bf16.gmra.mxu1 %v14464_v8 }
 0xcd2   :  { %6087 = vmatpush1.bf16.msra.mxu1 %v9374_v3  ;;  %6106 = vmatprep.mubr.bf16.mxu1 %v14357_v5  ;;  %v9406_v3 = vld [vmem:[%s15365_s3 + $0x228] ss:$16 sps:$4 sm:$0xff]  }
 0xcd3   :  { %6088 = vmatprep.subr.bf16.mxu1 %v9375_v25  ;;  %v9407_v25 = vld [vmem:[%s15365_s3 + $0x20c] ss:$16 sps:$4 sm:$0xff]  }
 0xcd6   :  { %6089 = vmatpush1.bf16.msra.mxu1 %v9376_v49  ;;  %v9408_v49 = vld [vmem:[%s15365_s3 + $0x208] ss:$16 sps:$4 sm:$0xff]  }
 0xcd7   :  { %6090 = vmatprep.subr.bf16.mxu1 %v9377_v35  ;;  %v9409_v35 = vld [vmem:[%s15365_s3 + $0x3ec] ss:$16 sps:$4 sm:$0xff]  }
 0xcda   :  { %6091 = vmatpush2.bf16.msra.mxu1 %v9378_v39  ;;  %v9410_v39 = vld [vmem:[%s15365_s3 + $0x3e8] ss:$16 sps:$4 sm:$0xff]  }
 0xcdb   :  { %6092 = vmatprep.subr.bf16.mxu1 %v9379_v61  ;;  %v9411_v61 = vld [vmem:[%s15365_s3 + $0x3cc] ss:$16 sps:$4 sm:$0xff]  }
 0xcde   :  { %6093 = vmatpush2.bf16.msra.mxu1 %v9380_v12  ;;  %v9412_v12 = vld [vmem:[%s15365_s3 + $0x3c8] ss:$16 sps:$4 sm:$0xff]  }
 0xcdf   :  { %6094 = vmatprep.subr.bf16.mxu1 %v9381_v10  ;;  %v9413_v10 = vld [vmem:[%s15365_s3 + $0x3ac] ss:$16 sps:$4 sm:$0xff]  }
 0xce2   :  { %6095 = vmatpush2.bf16.msra.mxu1 %v9382_v16  ;;  %v9414_v16 = vld [vmem:[%s15365_s3 + $0x3a8] ss:$16 sps:$4 sm:$0xff]  }
 0xce3   :  { %6096 = vmatprep.subr.bf16.mxu1 %v9383_v45  ;;  %v9415_v45 = vld [vmem:[%s15365_s3 + $0x38c] ss:$16 sps:$4 sm:$0xff]  }
 0xce6   :  { %6097 = vmatpush2.bf16.msra.mxu1 %v9384_v46  ;;  %v9416_v46 = vld [vmem:[%s15365_s3 + $0x388] ss:$16 sps:$4 sm:$0xff]  }
 0xce7   :  { %6098 = vmatprep.subr.bf16.mxu1 %v9385_v29  ;;  %v9417_v29 = vld [vmem:[%s15365_s3 + $0x36c] ss:$16 sps:$4 sm:$0xff]  }
 0xcea   :  { %6099 = vmatpush2.bf16.msra.mxu1 %v9386_v0  ;;  %v9418_v0 = vld [vmem:[%s15365_s3 + $0x368] ss:$16 sps:$4 sm:$0xff]  }
 0xceb   :  { %6100 = vmatprep.subr.bf16.mxu1 %v9387_v38  ;;  %v9419_v38 = vld [vmem:[%s15365_s3 + $0x34c] ss:$16 sps:$4 sm:$0xff]  }
 0xcee   :  { %6101 = vmatpush2.bf16.msra.mxu1 %v9388_v9  ;;  %v9420_v9 = vld [vmem:[%s15365_s3 + $0x348] ss:$16 sps:$4 sm:$0xff]  }
 0xcef   :  { %6102 = vmatprep.subr.bf16.mxu1 %v9389_v28  ;;  %v9421_v28 = vld [vmem:[%s15365_s3 + $0x32c] ss:$16 sps:$4 sm:$0xff]  }
 0xcf2   :  { %6103 = vmatpush2.bf16.msra.mxu1 %v9390_v44  ;;  %v9422_v44 = vld [vmem:[%s15365_s3 + $0x328] ss:$16 sps:$4 sm:$0xff]  }
 0xcf3   :  { %6104 = vmatprep.subr.bf16.mxu1 %v9391_v50  ;;  %v9423_v50 = vld [vmem:[%s15365_s3 + $0x30c] ss:$16 sps:$4 sm:$0xff]  }
 0xcf6   :  { %6105 = vmatpush2.bf16.msra.mxu1 %v9392_v56  ;;  %v9424_v56 = vld [vmem:[%s15365_s3 + $0x308] ss:$16 sps:$4 sm:$0xff]  }
 0xcf7   :  { %6220 = vmatprep.subr.bf16.mxu1 %v9393_v17  ;;  %v9425_v17 = vld [vmem:[%s15367_s5 + $0x74] ss:$8 sps:$4 sm:$0xff]  }
 0xcf9   :  { %6107 = vmatmul.mubr.bf16.vlgmr.msra.gmra.mxu1 %v14361_v37 }
 0xcfa   :  { %6116 = vmatprep.mubr.bf16.mxu1 %v14389_v63  ;;  %6221 = vmatpush1.bf16.msra.mxu1 %v9394_v15  ;;  %v9426_v15 = vld [vmem:[%s15367_s5 + $0x70] ss:$8 sps:$4 sm:$0xff]  }
 0xcfb   :  { %6222 = vmatprep.subr.bf16.mxu1 %v9395_v21  ;;  %v9427_v21 = vld [vmem:[%s15367_s5 + $0x64] ss:$8 sps:$4 sm:$0xff]  }
 0xcfe   :  { %6223 = vmatpush1.bf16.msra.mxu1 %v9396_v62  ;;  %v9428_v62 = vld [vmem:[%s15367_s5 + $0x60] ss:$8 sps:$4 sm:$0xff]  }
 0xcff   :  { %6224 = vmatprep.subr.bf16.mxu1 %v9397_v31  ;;  %v9429_v31 = vld [vmem:[%s15367_s5 + $0x54] ss:$8 sps:$4 sm:$0xff]  }
 0xd01   :  { %6117 = vmatmul.mubr.bf16.gmra.mxu1 %v14398_v51 }
 0xd02   :  { %6126 = vmatprep.mubr.bf16.mxu1 %v14425_v11  ;;  %6225 = vmatpush1.bf16.msra.mxu1 %v9398_v4  ;;  %v9430_v4 = vld [vmem:[%s15367_s5 + $0x50] ss:$8 sps:$4 sm:$0xff]  }
 0xd03   :  { %6226 = vmatprep.subr.bf16.mxu1 %v9399_v19  ;;  %v9431_v19 = vld [vmem:[%s15367_s5 + $0x44] ss:$8 sps:$4 sm:$0xff]  }
 0xd06   :  { %6227 = vmatpush1.bf16.msra.mxu1 %v9400_v41  ;;  %v9432_v41 = vld [vmem:[%s15367_s5 + $0x40] ss:$8 sps:$4 sm:$0xff]  }
 0xd07   :  { %6228 = vmatprep.subr.bf16.mxu1 %v9401_v40  ;;  %v9433_v40 = vld [vmem:[%s15367_s5 + $0x34] ss:$8 sps:$4 sm:$0xff]  }
 0xd09   :  { %6127 = vmatmul.mubr.bf16.gmra.mxu1 %v14432_v60 }
 0xd0a   :  { %6136 = vmatprep.mubr.bf16.mxu1 %v14451_v30  ;;  %6229 = vmatpush1.bf16.msra.mxu1 %v9402_v47  ;;  %v9434_v47 = vld [vmem:[%s15367_s5 + $0x30] ss:$8 sps:$4 sm:$0xff]  }
 0xd0b   :  { %6230 = vmatprep.subr.bf16.mxu1 %v9403_v57  ;;  %v9435_v57 = vld [vmem:[%s15367_s5 + $0x24] ss:$8 sps:$4 sm:$0xff]  }
 0xd0e   :  { %6231 = vmatpush1.bf16.msra.mxu1 %v9404_v18  ;;  %v9436_v18 = vld [vmem:[%s15367_s5 + $0x20] ss:$8 sps:$4 sm:$0xff]  }
 0xd0f   :  { %6232 = vmatprep.subr.bf16.mxu1 %v9405_v58  ;;  %v9437_v58 = vld [vmem:[%s15367_s5 + $0x14] ss:$8 sps:$4 sm:$0xff]  }
 0xd11   :  { %6137 = vmatmul.mubr.bf16.gmra.mxu1 %v14464_v8 }
 0xd12   :  { %6233 = vmatpush1.bf16.msra.mxu1 %v9406_v3  ;;  %6252 = vmatprep.mubr.bf16.mxu1 %v14357_v5  ;;  %v9438_v3 = vld [vmem:[%s15367_s5 + $0x10] ss:$8 sps:$4 sm:$0xff]  }
 0xd13   :  { %6234 = vmatprep.subr.bf16.mxu1 %v9407_v25  ;;  %v9439_v25 = vld [vmem:[%s15367_s5 + $0x4] ss:$8 sps:$4 sm:$0xff]  }
 0xd16   :  { %6235 = vmatpush1.bf16.msra.mxu1 %v9408_v49  ;;  %v9440_v49 = vld [vmem:[%s15367_s5] ss:$8 sps:$4 sm:$0xff]  }
 0xd17   :  { %6236 = vmatprep.subr.bf16.mxu1 %v9409_v35  ;;  %v9441_v35 = vld [vmem:[%s15367_s5 + $0xf4] ss:$8 sps:$4 sm:$0xff]  }
 0xd1a   :  { %6237 = vmatpush2.bf16.msra.mxu1 %v9410_v39  ;;  %v9442_v39 = vld [vmem:[%s15367_s5 + $0xf0] ss:$8 sps:$4 sm:$0xff]  }
 0xd1b   :  { %6238 = vmatprep.subr.bf16.mxu1 %v9411_v61  ;;  %v9444_v61 = vld [vmem:[%s15367_s5 + $0xe0] ss:$8 sps:$4 sm:$0xff]  }
 0xd1e   :  { %6239 = vmatpush2.bf16.msra.mxu1 %v9412_v12  ;;  %v9445_v12 = vld [vmem:[%s15367_s5 + $0xd4] ss:$8 sps:$4 sm:$0xff]  }
 0xd1f   :  { %6240 = vmatprep.subr.bf16.mxu1 %v9413_v10  ;;  %v9446_v10 = vld [vmem:[%s15367_s5 + $0xd0] ss:$8 sps:$4 sm:$0xff]  }
 0xd22   :  { %6241 = vmatpush2.bf16.msra.mxu1 %v9414_v16  ;;  %v9447_v16 = vld [vmem:[%s15367_s5 + $0xc4] ss:$8 sps:$4 sm:$0xff]  }
 0xd23   :  { %6242 = vmatprep.subr.bf16.mxu1 %v9415_v45  ;;  %v9448_v45 = vld [vmem:[%s15367_s5 + $0xc0] ss:$8 sps:$4 sm:$0xff]  }
 0xd26   :  { %6243 = vmatpush2.bf16.msra.mxu1 %v9416_v46  ;;  %v9449_v46 = vld [vmem:[%s15367_s5 + $0xb4] ss:$8 sps:$4 sm:$0xff]  }
 0xd27   :  { %6244 = vmatprep.subr.bf16.mxu1 %v9417_v29  ;;  %v9450_v29 = vld [vmem:[%s15367_s5 + $0xb0] ss:$8 sps:$4 sm:$0xff]  }
 0xd2a   :  { %6245 = vmatpush2.bf16.msra.mxu1 %v9418_v0  ;;  %v9451_v0 = vld [vmem:[%s15367_s5 + $0xa4] ss:$8 sps:$4 sm:$0xff]  }
 0xd2b   :  { %6246 = vmatprep.subr.bf16.mxu1 %v9419_v38  ;;  %v9452_v38 = vld [vmem:[%s15367_s5 + $0xa0] ss:$8 sps:$4 sm:$0xff]  }
 0xd2e   :  { %6247 = vmatpush2.bf16.msra.mxu1 %v9420_v9  ;;  %v9453_v9 = vld [vmem:[%s15367_s5 + $0x94] ss:$8 sps:$4 sm:$0xff]  }
 0xd2f   :  { %6248 = vmatprep.subr.bf16.mxu1 %v9421_v28  ;;  %v9454_v28 = vld [vmem:[%s15367_s5 + $0x90] ss:$8 sps:$4 sm:$0xff]  }
 0xd32   :  { %6249 = vmatpush2.bf16.msra.mxu1 %v9422_v44  ;;  %v9455_v44 = vld [vmem:[%s15367_s5 + $0x84] ss:$8 sps:$4 sm:$0xff]  }
 0xd33   :  { %6250 = vmatprep.subr.bf16.mxu1 %v9423_v50  ;;  %v9456_v50 = vld [vmem:[%s15367_s5 + $0x80] ss:$8 sps:$4 sm:$0xff]  }
 0xd36   :  { %6251 = vmatpush2.bf16.msra.mxu1 %v9424_v56 }
 0xd37   :  { %6558 = vmatprep.subr.bf16.mxu1 %v9425_v17 }
 0xd39   :  { %6253 = vmatmul.mubr.bf16.vlgmr.msra.gmra.mxu1 %v14361_v37 }
 0xd3a   :  { %6262 = vmatprep.mubr.bf16.mxu1 %v14389_v63  ;;  %6559 = vmatpush1.bf16.msra.mxu1 %v9426_v15 }
 0xd3b   :  { %6560 = vmatprep.subr.bf16.mxu1 %v9427_v21 }
 0xd3e   :  { %6561 = vmatpush1.bf16.msra.mxu1 %v9428_v62 }
 0xd3f   :  { %6562 = vmatprep.subr.bf16.mxu1 %v9429_v31 }
 0xd41   :  { %6263 = vmatmul.mubr.bf16.gmra.mxu1 %v14398_v51 }
 0xd42   :  { %6272 = vmatprep.mubr.bf16.mxu1 %v14425_v11  ;;  %6563 = vmatpush1.bf16.msra.mxu1 %v9430_v4 }
 0xd43   :  { %6564 = vmatprep.subr.bf16.mxu1 %v9431_v19 }
 0xd46   :  { %6565 = vmatpush1.bf16.msra.mxu1 %v9432_v41 }
 0xd47   :  { %6566 = vmatprep.subr.bf16.mxu1 %v9433_v40 }
 0xd49   :  { %6273 = vmatmul.mubr.bf16.gmra.mxu1 %v14432_v60 }
 0xd4a   :  { %6282 = vmatprep.mubr.bf16.mxu1 %v14451_v30  ;;  %6567 = vmatpush1.bf16.msra.mxu1 %v9434_v47 }
 0xd4b   :  { %6568 = vmatprep.subr.bf16.mxu1 %v9435_v57 }
 0xd4e   :  { %6569 = vmatpush1.bf16.msra.mxu1 %v9436_v18 }
 0xd4f   :  { %6570 = vmatprep.subr.bf16.mxu1 %v9437_v58 }
 0xd51   :  { %6283 = vmatmul.mubr.bf16.gmra.mxu1 %v14464_v8 }
 0xd52   :  { %6571 = vmatpush1.bf16.msra.mxu1 %v9438_v3  ;;  %6590 = vmatprep.mubr.bf16.mxu1 %v14357_v5  ;;  %v9443_v5 = vld [vmem:[%s15367_s5 + $0xe4] ss:$8 sps:$4 sm:$0xff]  }
 0xd53   :  { %6572 = vmatprep.subr.bf16.mxu1 %v9439_v25 }
 0xd56   :  { %6573 = vmatpush1.bf16.msra.mxu1 %v9440_v49 }
 0xd57   :  { %6574 = vmatprep.subr.bf16.mxu1 %v9441_v35 }
 0xd5a   :  { %6575 = vmatpush2.bf16.msra.mxu1 %v9442_v39  ;;  %v9458_v39 = vld [vmem:[%s15363_s1] sm:$0xff]  }
 0xd5b   :  { %6576 = vmatprep.subr.bf16.mxu1 %v9443_v5  ;;  %v15548_v5 = vmov 0  }
 0xd5e   :  { %6577 = vmatpush2.bf16.msra.mxu1 %v9444_v61  ;;  %v9459_v61 = vld [vmem:[%s15365_s3 + $0xe0] ss:$16 sps:$4 sm:$0xff]  }
 0xd5f   :  { %6578 = vmatprep.subr.bf16.mxu1 %v9445_v12  ;;  %v9460_v12 = vld [vmem:[%s15365_s3 + $0xc4] ss:$16 sps:$4 sm:$0xff]  }
 0xd62   :  { %6579 = vmatpush2.bf16.msra.mxu1 %v9446_v10  ;;  %v9461_v10 = vld [vmem:[%s15365_s3 + $0xc0] ss:$16 sps:$4 sm:$0xff]  }
 0xd63   :  { %6580 = vmatprep.subr.bf16.mxu1 %v9447_v16  ;;  %v9462_v16 = vld [vmem:[%s15365_s3 + $0xa4] ss:$16 sps:$4 sm:$0xff]  }
 0xd66   :  { %6581 = vmatpush2.bf16.msra.mxu1 %v9448_v45  ;;  %v9463_v45 = vld [vmem:[%s15363_s1 + $0x8] sm:$0xff]  }
 0xd67   :  { %6582 = vmatprep.subr.bf16.mxu1 %v9449_v46  ;;  %v9464_v46 = vld [vmem:[%s15365_s3 + $0xa0] ss:$16 sps:$4 sm:$0xff]  }
 0xd6a   :  { %6583 = vmatpush2.bf16.msra.mxu1 %v9450_v29  ;;  %v9465_v29 = vld [vmem:[%s15365_s3 + $0x84] ss:$16 sps:$4 sm:$0xff]  }
 0xd6b   :  { %6584 = vmatprep.subr.bf16.mxu1 %v9451_v0  ;;  %v9466_v0 = vld [vmem:[%s15365_s3 + $0x80] ss:$16 sps:$4 sm:$0xff]  }
 0xd6e   :  { %6585 = vmatpush2.bf16.msra.mxu1 %v9452_v38  ;;  %v9467_v38 = vld [vmem:[%s15365_s3 + $0x64] ss:$16 sps:$4 sm:$0xff]  }
 0xd6f   :  { %6586 = vmatprep.subr.bf16.mxu1 %v9453_v9  ;;  %v9468_v9 = vld [vmem:[%s15363_s1 + $0x10] sm:$0xff]  }
 0xd72   :  { %6587 = vmatpush2.bf16.msra.mxu1 %v9454_v28  ;;  %v9469_v28 = vld [vmem:[%s15365_s3 + $0x60] ss:$16 sps:$4 sm:$0xff]  }
 0xd73   :  { %6588 = vmatprep.subr.bf16.mxu1 %v9455_v44  ;;  %v9470_v44 = vld [vmem:[%s15365_s3 + $0x44] ss:$16 sps:$4 sm:$0xff]  }
 0xd76   :  { %6589 = vmatpush2.bf16.msra.mxu1 %v9456_v50  ;;  %v9471_v50 = vld [vmem:[%s15365_s3 + $0x40] ss:$16 sps:$4 sm:$0xff]  }
 0xd78   :  { %v5873_v56 = vpop.f32.mrf.mxu1 }
 0xd79   :  { %6591 = vmatmul.mubr.bf16.vlgmr.msra.gmra.mxu1 %v14361_v37 }
 0xd7a   :  { %6600 = vmatprep.mubr.bf16.mxu1 %v14389_v63  ;;  %v5875_v17 = vpop.f32.mrf.mxu1 }
 0xd7c   :  { %v5877_v15 = vpop.f32.mrf.mxu1 }
 0xd7d   :  { %v5912_v35 = vpack.c.bf16 %v5877_v15, %v5873_v56  ;;  %v9472_v56 = vld [vmem:[%s15365_s3 + $0x24] ss:$16 sps:$4 sm:$0xff]   ;;  %v9474_v15 = vld [vmem:[%s15365_s3 + $0x20] ss:$16 sps:$4 sm:$0xff]  }
 0xd7e   :  { %v5879_v21 = vpop.f32.mrf.mxu1 }
 0xd7f   :  { %v5913_v49 = vpack.c.bf16 %v5879_v21, %v5875_v17  ;;  %v9473_v17 = vld [vmem:[%s15363_s1 + $0x18] sm:$0xff]   ;;  %v9475_v21 = vld [vmem:[%s15365_s3 + $0x4] ss:$16 sps:$4 sm:$0xff]  }
 0xd80   :  { %v5883_v62 = vpop.f32.mrf.mxu1 }
 0xd81   :  { %6601 = vmatmul.mubr.bf16.gmra.mxu1 %v14398_v51 }
 0xd82   :  { %6610 = vmatprep.mubr.bf16.mxu1 %v14425_v11  ;;  %v5885_v31 = vpop.f32.mrf.mxu1 }
 0xd84   :  { %v5887_v4 = vpop.f32.mrf.mxu1 }
 0xd86   :  { %v5889_v19 = vpop.f32.mrf.mxu1 }
 0xd89   :  { %6611 = vmatmul.mubr.bf16.gmra.mxu1 %v14432_v60  ;;  %v5893_v41 = vpop.f32.mrf.mxu1  ;;  %v5915_v60 = vpack.c.bf16 %v5889_v19, %v5885_v31  ;;  %v9477_v31 = vld [vmem:[%s15365_s3 + $0x1e4] ss:$16 sps:$4 sm:$0xff]  }
 0xd8a   :  { %6620 = vmatprep.mubr.bf16.mxu1 %v14451_v30  ;;  %v5914_v30 = vpack.c.bf16 %v5887_v4, %v5883_v62  ;;  %v9476_v62 = vld [vmem:[%s15365_s3] ss:$16 sps:$4 sm:$0xff]   ;;  %v9479_v19 = vld [vmem:[%s15365_s3 + $0x1c4] ss:$16 sps:$4 sm:$0xff]  }
 0xd8b   :  { %v5895_v40 = vpop.f32.mrf.mxu1  ;;  %v9478_v4 = vld [vmem:[%s15365_s3 + $0x1e0] ss:$16 sps:$4 sm:$0xff]  }
 0xd8d   :  { %v5897_v37 = vpop.f32.mrf.mxu1 }
 0xd8e   :  { %v5916_v25 = vpack.c.bf16 %v5897_v37, %v5893_v41  ;;  %v9480_v41 = vld [vmem:[%s15365_s3 + $0x1c0] ss:$16 sps:$4 sm:$0xff]  }
 0xd8f   :  { %v5899_v47 = vpop.f32.mrf.mxu1  ;;  %v9482_v37 = vld [vmem:[%s15365_s3 + $0x1a0] ss:$16 sps:$4 sm:$0xff]  }
 0xd90   :  { %v5917_v11 = vpack.c.bf16 %v5899_v47, %v5895_v40  ;;  %v9481_v40 = vld [vmem:[%s15365_s3 + $0x1a4] ss:$16 sps:$4 sm:$0xff]  }
 0xd91   :  { %6621 = vmatmul.mubr.bf16.gmra.mxu1 %v14464_v8  ;;  %v5903_v63 = vpop.f32.mrf.mxu1  ;;  %v9457_v8 = vld [vmem:[%s15365_s3 + $0xe4] ss:$16 sps:$4 sm:$0xff]  }
 0xd92   :  { %v9483_v47 = vld [vmem:[%s15365_s3 + $0x184] ss:$16 sps:$4 sm:$0xff]  }
 0xd93   :  { %v5905_v57 = vpop.f32.mrf.mxu1 }
 0xd95   :  { %v5907_v18 = vpop.f32.mrf.mxu1 }
 0xd96   :  { %v5918_v3 = vpack.c.bf16 %v5907_v18, %v5903_v63  ;;  %v9484_v63 = vld [vmem:[%s15365_s3 + $0x180] ss:$16 sps:$4 sm:$0xff]  }
 0xd97   :  { %v5909_v58 = vpop.f32.mrf.mxu1  ;;  %v9486_v18 = vld [vmem:[%s15365_s3 + $0x160] ss:$16 sps:$4 sm:$0xff]  }
 0xd98   :  { %v5919_v51 = vpack.c.bf16 %v5909_v58, %v5905_v57  ;;  %v9485_v57 = vld [vmem:[%s15365_s3 + $0x164] ss:$16 sps:$4 sm:$0xff]  }
 0xd99   :  { %v9487_v58 = vld [vmem:[%s15365_s3 + $0x144] ss:$16 sps:$4 sm:$0xff]  }
 0xd9a   :  { %5928 = vmatprep.subr.bf16.mxu0 %v5919_v51  ;;  %v9488_v51 = vld [vmem:[%s15365_s3 + $0x140] ss:$16 sps:$4 sm:$0xff]  }
 0xd9b   :  { %5929 = vmatpush1.bf16.msra.mxu0 %v5918_v3  ;;  %v9489_v3 = vld [vmem:[%s15365_s3 + $0x124] ss:$16 sps:$4 sm:$0xff]  }
 0xd9c   :  { %5930 = vmatprep.subr.bf16.mxu0 %v5917_v11  ;;  %v9490_v11 = vld [vmem:[%s15365_s3 + $0x120] ss:$16 sps:$4 sm:$0xff]  }
 0xd9f   :  { %5931 = vmatpush1.bf16.msra.mxu0 %v5916_v25  ;;  %v9491_v25 = vld [vmem:[%s15365_s3 + $0x104] ss:$16 sps:$4 sm:$0xff]  }
 0xda0   :  { %5932 = vmatprep.subr.bf16.mxu0 %v5915_v60  ;;  %v9492_v60 = vld [vmem:[%s15365_s3 + $0x100] ss:$16 sps:$4 sm:$0xff]  }
 0xda3   :  { %5933 = vmatpush1.bf16.msra.mxu0 %v5914_v30  ;;  %v9493_v30 = vld [vmem:[%s15365_s3 + $0xec] ss:$16 sps:$4 sm:$0xff]  }
 0xda4   :  { %5934 = vmatprep.subr.bf16.mxu0 %v5913_v49 }
 0xda7   :  { %5935 = vmatpush1.bf16.msra.mxu0 %v5912_v35 }
 0xda8   :  { %6001 = vmatprep.subr.bf16.mxu0 %v9457_v8 }
 0xdaa   :  { %7387 = vmatmul.mubr.msk.bf16.vlgmr.msra.gmra.mxu0 %vm353_vm0, %v9458_v39 }
 0xdab   :  { %5962 = vmatprep.mubr.bf16.mxu0 %v15548_v5  ;;  %6002 = vmatpush1.bf16.msra.mxu0 %v9459_v61 }
 0xdac   :  { %6003 = vmatprep.subr.bf16.mxu0 %v9460_v12 }
 0xdaf   :  { %6004 = vmatpush1.bf16.msra.mxu0 %v9461_v10 }
 0xdb0   :  { %6005 = vmatprep.subr.bf16.mxu0 %v9462_v16  ;;  %v9494_v16 = vld [vmem:[%s15365_s3 + $0xe8] ss:$16 sps:$4 sm:$0xff]  }
 0xdb2   :  { %7388 = vmatmul.mubr.msk.bf16.gmra.mxu0 %vm353_vm0, %v9463_v45 }
 0xdb3   :  { %5972 = vmatprep.mubr.bf16.mxu0 %v15548_v5  ;;  %6006 = vmatpush1.bf16.msra.mxu0 %v9464_v46  ;;  %v9495_v46 = vld [vmem:[%s15365_s3 + $0xcc] ss:$16 sps:$4 sm:$0xff]  }
 0xdb4   :  { %6007 = vmatprep.subr.bf16.mxu0 %v9465_v29 }
 0xdb7   :  { %6008 = vmatpush1.bf16.msra.mxu0 %v9466_v0 }
 0xdb8   :  { %6009 = vmatprep.subr.bf16.mxu0 %v9467_v38 }
 0xdba   :  { %7389 = vmatmul.mubr.msk.bf16.gmra.mxu0 %vm353_vm0, %v9468_v9  ;;  %v9496_v9 = vld [vmem:[%s15365_s3 + $0xc8] ss:$16 sps:$4 sm:$0xff]  }
 0xdbb   :  { %5982 = vmatprep.mubr.bf16.mxu0 %v15548_v5  ;;  %6010 = vmatpush1.bf16.msra.mxu0 %v9469_v28 }
 0xdbc   :  { %6011 = vmatprep.subr.bf16.mxu0 %v9470_v44  ;;  %v9497_v44 = vld [vmem:[%s15365_s3 + $0xac] ss:$16 sps:$4 sm:$0xff]  }
 0xdbf   :  { %6012 = vmatpush1.bf16.msra.mxu0 %v9471_v50 }
 0xdc0   :  { %6013 = vmatprep.subr.bf16.mxu0 %v9472_v56  ;;  %v9498_v56 = vld [vmem:[%s15365_s3 + $0xa8] ss:$16 sps:$4 sm:$0xff]  }
 0xdc2   :  { %7390 = vmatmul.mubr.msk.bf16.gmra.mxu0 %vm353_vm0, %v9473_v17 }
 0xdc3   :  { %6014 = vmatpush1.bf16.msra.mxu0 %v9474_v15  ;;  %v9499_v15 = vld [vmem:[%s15365_s3 + $0x8c] ss:$16 sps:$4 sm:$0xff]  }
 0xdc4   :  { %6015 = vmatprep.subr.bf16.mxu0 %v9475_v21 }
 0xdc7   :  { %6016 = vmatpush1.bf16.msra.mxu0 %v9476_v62 }
 0xdc8   :  { %6017 = vmatprep.subr.bf16.mxu0 %v9477_v31 }
 0xdcb   :  { %6018 = vmatpush2.bf16.msra.mxu0 %v9478_v4  ;;  %v9500_v4 = vld [vmem:[%s15365_s3 + $0x88] ss:$16 sps:$4 sm:$0xff]  }
 0xdcc   :  { %6019 = vmatprep.subr.bf16.mxu0 %v9479_v19 }
 0xdcf   :  { %6020 = vmatpush2.bf16.msra.mxu0 %v9480_v41  ;;  %v9501_v41 = vld [vmem:[%s15365_s3 + $0x6c] ss:$16 sps:$4 sm:$0xff]  }
 0xdd0   :  { %6021 = vmatprep.subr.bf16.mxu0 %v9481_v40 }
 0xdd3   :  { %6022 = vmatpush2.bf16.msra.mxu0 %v9482_v37  ;;  %v9502_v37 = vld [vmem:[%s15365_s3 + $0x68] ss:$16 sps:$4 sm:$0xff]  }
 0xdd4   :  { %6023 = vmatprep.subr.bf16.mxu0 %v9483_v47 }
 0xdd7   :  { %6024 = vmatpush2.bf16.msra.mxu0 %v9484_v63  ;;  %v9503_v63 = vld [vmem:[%s15365_s3 + $0x4c] ss:$16 sps:$4 sm:$0xff]  }
 0xdd8   :  { %6025 = vmatprep.subr.bf16.mxu0 %v9485_v57 }
 0xddb   :  { %6026 = vmatpush2.bf16.msra.mxu0 %v9486_v18 }
 0xddc   :  { %6027 = vmatprep.subr.bf16.mxu0 %v9487_v58 }
 0xddf   :  { %6028 = vmatpush2.bf16.msra.mxu0 %v9488_v51  ;;  %v9504_v51 = vld [vmem:[%s15365_s3 + $0x48] ss:$16 sps:$4 sm:$0xff]  }
 0xde0   :  { %6029 = vmatprep.subr.bf16.mxu0 %v9489_v3  ;;  %v9505_v3 = vld [vmem:[%s15365_s3 + $0x2c] ss:$16 sps:$4 sm:$0xff]  }
 0xde3   :  { %6030 = vmatpush2.bf16.msra.mxu0 %v9490_v11  ;;  %v9506_v11 = vld [vmem:[%s15365_s3 + $0x28] ss:$16 sps:$4 sm:$0xff]  }
 0xde4   :  { %6031 = vmatprep.subr.bf16.mxu0 %v9491_v25  ;;  %v9507_v25 = vld [vmem:[%s15365_s3 + $0xc] ss:$16 sps:$4 sm:$0xff]  }
 0xde7   :  { %6032 = vmatpush2.bf16.msra.mxu0 %v9492_v60  ;;  %v9508_v60 = vld [vmem:[%s15365_s3 + $0x8] ss:$16 sps:$4 sm:$0xff]  }
 0xde8   :  { %6147 = vmatprep.subr.bf16.mxu0 %v9493_v30  ;;  %v9509_v30 = vld [vmem:[%s15365_s3 + $0x1ec] ss:$16 sps:$4 sm:$0xff]  }
 0xe6a   :  { %v5954_v49 = vpop.f32.mrf.mxu0 }
 0xe6c   :  { %v5956_v35 = vpop.f32.mrf.mxu0 }
 0xe6e   :  { %v5958_v8 = vpop.f32.mrf.mxu0 }
 0xe6f   :  { %v14860_v61 = vpack.c.bf16 %v5958_v8, %v5954_v49  ;;  %v9510_v49 = vld [vmem:[%s15365_s3 + $0x1e8] ss:$16 sps:$4 sm:$0xff]  }
 0xe70   :  { %v5960_v39 = vpop.f32.mrf.mxu0  ;;  %v9512_v8 = vld [vmem:[%s15365_s3 + $0x1c8] ss:$16 sps:$4 sm:$0xff]  }
 0xe71   :  { %v14858_v5 = vpack.c.bf16 %v5960_v39, %v5956_v35  ;;  %v9511_v35 = vld [vmem:[%s15365_s3 + $0x1cc] ss:$16 sps:$4 sm:$0xff]  }
 0xe72   :  { %v5964_v12 = vpop.f32.mrf.mxu0  ;;  %v9513_v39 = vld [vmem:[%s15365_s3 + $0x1ac] ss:$16 sps:$4 sm:$0xff]  }
 0xe73   :  { %6033 = vmatprep.mubr.bf16.mxu0 %v14858_v5 }
 0xe74   :  { %v5966_v10 = vpop.f32.mrf.mxu0  ;;  %6034 = vmatmul.mubr.bf16.vlgmr.msra.gmra.mxu0 %v14860_v61 }
 0xe75   :  { %6148 = vmatpush1.bf16.msra.mxu0 %v9494_v16  ;;  %v9516_v16 = vld [vmem:[%s15365_s3 + $0x188] ss:$16 sps:$4 sm:$0xff]  }
 0xe76   :  { %v5968_v45 = vpop.f32.mrf.mxu0  ;;  %6149 = vmatprep.subr.bf16.mxu0 %v9495_v46  ;;  %v9518_v46 = vld [vmem:[%s15365_s3 + $0x168] ss:$16 sps:$4 sm:$0xff]  }
 0xe77   :  { %v14870_v29 = vpack.c.bf16 %v5968_v45, %v5964_v12  ;;  %v9514_v12 = vld [vmem:[%s15365_s3 + $0x1a8] ss:$16 sps:$4 sm:$0xff]   ;;  %v9517_v45 = vld [vmem:[%s15365_s3 + $0x16c] ss:$16 sps:$4 sm:$0xff]  }
 0xe78   :  { %v5970_v0 = vpop.f32.mrf.mxu0 }
 0xe79   :  { %v14872_v38 = vpack.c.bf16 %v5970_v0, %v5966_v10  ;;  %6150 = vmatpush1.bf16.msra.mxu0 %v9496_v9  ;;  %v9515_v10 = vld [vmem:[%s15365_s3 + $0x18c] ss:$16 sps:$4 sm:$0xff]   ;;  %v9520_v9 = vld [vmem:[%s15365_s3 + $0x148] ss:$16 sps:$4 sm:$0xff]  }
 0xe7a   :  { %v5974_v28 = vpop.f32.mrf.mxu0  ;;  %6151 = vmatprep.subr.bf16.mxu0 %v9497_v44  ;;  %v9519_v0 = vld [vmem:[%s15365_s3 + $0x14c] ss:$16 sps:$4 sm:$0xff]   ;;  %v9522_v44 = vld [vmem:[%s15365_s3 + $0x128] ss:$16 sps:$4 sm:$0xff]  }
 0xe7b   :  { %6043 = vmatprep.mubr.bf16.mxu0 %v14872_v38 }
 0xe7c   :  { %v5976_v50 = vpop.f32.mrf.mxu0  ;;  %6044 = vmatmul.mubr.bf16.gmra.mxu0 %v14870_v29 }
 0xe7d   :  { %6152 = vmatpush1.bf16.msra.mxu0 %v9498_v56  ;;  %v9524_v56 = vld [vmem:[%s15365_s3 + $0x108] ss:$16 sps:$4 sm:$0xff]  }
 0xe7e   :  { %v5978_v17 = vpop.f32.mrf.mxu0  ;;  %6153 = vmatprep.subr.bf16.mxu0 %v9499_v15  ;;  %v9526_v15 = vld [vmem:[%s15366_s4 + $0x70] ss:$8 sps:$4 sm:$0xff]  }
 0xe7f   :  { %v14888_v21 = vpack.c.bf16 %v5978_v17, %v5974_v28  ;;  %v9521_v28 = vld [vmem:[%s15365_s3 + $0x12c] ss:$16 sps:$4 sm:$0xff]  }
 0xe80   :  { %v5980_v62 = vpop.f32.mrf.mxu0  ;;  %v9525_v17 = vld [vmem:[%s15366_s4 + $0x74] ss:$8 sps:$4 sm:$0xff]  }
 0xe81   :  { %v14890_v31 = vpack.c.bf16 %v5980_v62, %v5976_v50  ;;  %6154 = vmatpush1.bf16.msra.mxu0 %v9500_v4  ;;  %v9523_v50 = vld [vmem:[%s15365_s3 + $0x10c] ss:$16 sps:$4 sm:$0xff]   ;;  %v9528_v4 = vld [vmem:[%s15366_s4 + $0x60] ss:$8 sps:$4 sm:$0xff]  }
 0xe82   :  { %v5984_v19 = vpop.f32.mrf.mxu0  ;;  %6155 = vmatprep.subr.bf16.mxu0 %v9501_v41  ;;  %v9527_v62 = vld [vmem:[%s15366_s4 + $0x64] ss:$8 sps:$4 sm:$0xff]   ;;  %v9530_v41 = vld [vmem:[%s15366_s4 + $0x50] ss:$8 sps:$4 sm:$0xff]  }
 0xe83   :  { %6053 = vmatprep.mubr.bf16.mxu0 %v14890_v31 }
 0xe84   :  { %v5986_v40 = vpop.f32.mrf.mxu0  ;;  %6054 = vmatmul.mubr.bf16.gmra.mxu0 %v14888_v21 }
 0xe85   :  { %6156 = vmatpush1.bf16.msra.mxu0 %v9502_v37  ;;  %v9532_v37 = vld [vmem:[%s15366_s4 + $0x40] ss:$8 sps:$4 sm:$0xff]  }
 0xe86   :  { %v5988_v47 = vpop.f32.mrf.mxu0  ;;  %6157 = vmatprep.subr.bf16.mxu0 %v9503_v63  ;;  %v9534_v63 = vld [vmem:[%s15366_s4 + $0x30] ss:$8 sps:$4 sm:$0xff]  }
 0xe87   :  { %v14906_v57 = vpack.c.bf16 %v5988_v47, %v5984_v19  ;;  %v9529_v19 = vld [vmem:[%s15366_s4 + $0x54] ss:$8 sps:$4 sm:$0xff]  }
 0xe88   :  { %v5990_v18 = vpop.f32.mrf.mxu0  ;;  %v9533_v47 = vld [vmem:[%s15366_s4 + $0x34] ss:$8 sps:$4 sm:$0xff]  }
 0xe89   :  { %v14908_v58 = vpack.c.bf16 %v5990_v18, %v5986_v40  ;;  %6158 = vmatpush1.bf16.msra.mxu0 %v9504_v51  ;;  %v9531_v40 = vld [vmem:[%s15366_s4 + $0x44] ss:$8 sps:$4 sm:$0xff]   ;;  %v9536_v51 = vld [vmem:[%s15366_s4 + $0x20] ss:$8 sps:$4 sm:$0xff]  }
 0xe8a   :  { %6159 = vmatprep.subr.bf16.mxu0 %v9505_v3  ;;  %v9535_v18 = vld [vmem:[%s15366_s4 + $0x24] ss:$8 sps:$4 sm:$0xff]   ;;  %v9537_v3 = vld [vmem:[%s15366_s4 + $0x14] ss:$8 sps:$4 sm:$0xff]  }
 0xe8b   :  { %6063 = vmatprep.mubr.bf16.mxu0 %v14908_v58 }
 0xe8c   :  { %6064 = vmatmul.mubr.bf16.gmra.mxu0 %v14906_v57 }
 0xe8d   :  { %6160 = vmatpush1.bf16.msra.mxu0 %v9506_v11  ;;  %6179 = vmatprep.mubr.bf16.mxu0 %v14858_v5  ;;  %v9538_v11 = vld [vmem:[%s15366_s4 + $0x10] ss:$8 sps:$4 sm:$0xff]  }
 0xe8e   :  { %6161 = vmatprep.subr.bf16.mxu0 %v9507_v25  ;;  %v9539_v25 = vld [vmem:[%s15366_s4 + $0x4] ss:$8 sps:$4 sm:$0xff]  }
 0xe91   :  { %6162 = vmatpush1.bf16.msra.mxu0 %v9508_v60  ;;  %v9540_v60 = vld [vmem:[%s15366_s4] ss:$8 sps:$4 sm:$0xff]  }
 0xe92   :  { %6163 = vmatprep.subr.bf16.mxu0 %v9509_v30  ;;  %v9541_v30 = vld [vmem:[%s15366_s4 + $0xf4] ss:$8 sps:$4 sm:$0xff]  }
 0xe95   :  { %6164 = vmatpush2.bf16.msra.mxu0 %v9510_v49  ;;  %v9542_v49 = vld [vmem:[%s15366_s4 + $0xf0] ss:$8 sps:$4 sm:$0xff]  }
 0xe96   :  { %6165 = vmatprep.subr.bf16.mxu0 %v9511_v35  ;;  %v9544_v35 = vld [vmem:[%s15366_s4 + $0xe0] ss:$8 sps:$4 sm:$0xff]  }
 0xe99   :  { %6166 = vmatpush2.bf16.msra.mxu0 %v9512_v8  ;;  %v9545_v8 = vld [vmem:[%s15366_s4 + $0xd4] ss:$8 sps:$4 sm:$0xff]  }
 0xe9a   :  { %6167 = vmatprep.subr.bf16.mxu0 %v9513_v39  ;;  %v9546_v39 = vld [vmem:[%s15366_s4 + $0xd0] ss:$8 sps:$4 sm:$0xff]  }
 0xe9d   :  { %6168 = vmatpush2.bf16.msra.mxu0 %v9514_v12  ;;  %v9547_v12 = vld [vmem:[%s15366_s4 + $0xc4] ss:$8 sps:$4 sm:$0xff]  }
 0xe9e   :  { %6169 = vmatprep.subr.bf16.mxu0 %v9515_v10  ;;  %v9548_v10 = vld [vmem:[%s15366_s4 + $0xc0] ss:$8 sps:$4 sm:$0xff]  }
 0xea1   :  { %6170 = vmatpush2.bf16.msra.mxu0 %v9516_v16  ;;  %v9549_v16 = vld [vmem:[%s15366_s4 + $0xb4] ss:$8 sps:$4 sm:$0xff]  }
 0xea2   :  { %6171 = vmatprep.subr.bf16.mxu0 %v9517_v45  ;;  %v9550_v45 = vld [vmem:[%s15366_s4 + $0xb0] ss:$8 sps:$4 sm:$0xff]  }
 0xea5   :  { %6172 = vmatpush2.bf16.msra.mxu0 %v9518_v46  ;;  %v9551_v46 = vld [vmem:[%s15366_s4 + $0xa4] ss:$8 sps:$4 sm:$0xff]  }
 0xea6   :  { %6173 = vmatprep.subr.bf16.mxu0 %v9519_v0  ;;  %v9552_v0 = vld [vmem:[%s15366_s4 + $0xa0] ss:$8 sps:$4 sm:$0xff]  }
 0xea9   :  { %6174 = vmatpush2.bf16.msra.mxu0 %v9520_v9  ;;  %v9553_v9 = vld [vmem:[%s15366_s4 + $0x94] ss:$8 sps:$4 sm:$0xff]  }
 0xeaa   :  { %6175 = vmatprep.subr.bf16.mxu0 %v9521_v28  ;;  %v9554_v28 = vld [vmem:[%s15366_s4 + $0x90] ss:$8 sps:$4 sm:$0xff]  }
 0xead   :  { %6176 = vmatpush2.bf16.msra.mxu0 %v9522_v44  ;;  %v9555_v44 = vld [vmem:[%s15366_s4 + $0x84] ss:$8 sps:$4 sm:$0xff]  }
 0xeae   :  { %6177 = vmatprep.subr.bf16.mxu0 %v9523_v50  ;;  %v9556_v50 = vld [vmem:[%s15366_s4 + $0x80] ss:$8 sps:$4 sm:$0xff]  }
 0xeb1   :  { %6178 = vmatpush2.bf16.msra.mxu0 %v9524_v56  ;;  %v6108_v56 = vpop.f32.mrf.mxu1 }
 0xeb2   :  { %6485 = vmatprep.subr.bf16.mxu0 %v9525_v17 }
 0xeb3   :  { %v6110_v17 = vpop.f32.mrf.mxu1 }
 0xeb4   :  { %6180 = vmatmul.mubr.bf16.vlgmr.msra.gmra.mxu0 %v14860_v61 }
 0xeb5   :  { %6189 = vmatprep.mubr.bf16.mxu0 %v14872_v38  ;;  %6486 = vmatpush1.bf16.msra.mxu0 %v9526_v15  ;;  %v6112_v15 = vpop.f32.mrf.mxu1 }
 0xeb6   :  { %6487 = vmatprep.subr.bf16.mxu0 %v9527_v62 }
 0xeb7   :  { %v6114_v62 = vpop.f32.mrf.mxu1 }
 0xeb9   :  { %6488 = vmatpush1.bf16.msra.mxu0 %v9528_v4  ;;  %v6118_v4 = vpop.f32.mrf.mxu1 }
 0xeba   :  { %6489 = vmatprep.subr.bf16.mxu0 %v9529_v19 }
 0xebb   :  { %v6120_v19 = vpop.f32.mrf.mxu1 }
 0xebc   :  { %6190 = vmatmul.mubr.bf16.gmra.mxu0 %v14870_v29 }
 0xebd   :  { %6199 = vmatprep.mubr.bf16.mxu0 %v14890_v31  ;;  %6490 = vmatpush1.bf16.msra.mxu0 %v9530_v41  ;;  %v15087_v41 = vpop.f32.mrf.mxu1 }
 0xebe   :  { %6491 = vmatprep.subr.bf16.mxu0 %v9531_v40 }
 0xec1   :  { %6492 = vmatpush1.bf16.msra.mxu0 %v9532_v37 }
 0xec2   :  { %6493 = vmatprep.subr.bf16.mxu0 %v9533_v47 }
 0xec4   :  { %6200 = vmatmul.mubr.bf16.gmra.mxu0 %v14888_v21 }
 0xec5   :  { %6209 = vmatprep.mubr.bf16.mxu0 %v14908_v58  ;;  %6494 = vmatpush1.bf16.msra.mxu0 %v9534_v63 }
 0xec6   :  { %6495 = vmatprep.subr.bf16.mxu0 %v9535_v18 }
 0xec9   :  { %6496 = vmatpush1.bf16.msra.mxu0 %v9536_v51 }
 0xeca   :  { %6497 = vmatprep.subr.bf16.mxu0 %v9537_v3 }
 0xecc   :  { %6210 = vmatmul.mubr.bf16.gmra.mxu0 %v14906_v57 }
 0xecd   :  { %6498 = vmatpush1.bf16.msra.mxu0 %v9538_v11  ;;  %6517 = vmatprep.mubr.bf16.mxu0 %v14858_v5  ;;  %v9543_v5 = vld [vmem:[%s15366_s4 + $0xe4] ss:$8 sps:$4 sm:$0xff]   ;;  %s9580_s4 = smov [#allocation2]  }
 0xece   :  { %6499 = vmatprep.subr.bf16.mxu0 %v9539_v25  ;;  %s6748_s3 = sshll.u32 %s9580_s4, 4  ;;  %s6749_s3 = int_to_ptr.vmem [resolvable:$true] %s6748_s3 }
 0xecf   :  { %s9557_s14 = scalar_lea.vmem %s6749_s3, 2048  ;;  %p9562_p1 = scmp.lt.s32.totalorder %s6749_s3, %s6749_s3 }
 0xed0   :  { %p9558_p0 = scmp.ne.s32.totalorder %s6749_s3, %s9557_s14  ;;  %p9563_p2 = scmp.lt.s32.totalorder %s9557_s14, %s9557_s14 }
 0xed1   :  { %6500 = vmatpush1.bf16.msra.mxu0 %v9540_v60 }
 0xed2   :  { %6501 = vmatprep.subr.bf16.mxu0 %v9541_v30  ;;  %p9564_p3 = por %p9563_p2, %p9562_p1 }
 0xed4   :  { %p9565_p4 = pnand %p9564_p3, %p9558_p0 }
 0xed5   :  { %6502 = vmatpush2.bf16.msra.mxu0 %v9542_v49 }
 0xed6   :  { %6503 = vmatprep.subr.bf16.mxu0 %v9543_v5 }
 0xed9   :  { %6504 = vmatpush2.bf16.msra.mxu0 %v9544_v35 }
 0xeda   :  { %6505 = vmatprep.subr.bf16.mxu0 %v9545_v8 }
 0xedd   :  { %6506 = vmatpush2.bf16.msra.mxu0 %v9546_v39 }
 0xede   :  { %6507 = vmatprep.subr.bf16.mxu0 %v9547_v12 }
 0xee1   :  { %6508 = vmatpush2.bf16.msra.mxu0 %v9548_v10 }
 0xee2   :  { %6509 = vmatprep.subr.bf16.mxu0 %v9549_v16 }
 0xee5   :  { %6510 = vmatpush2.bf16.msra.mxu0 %v9550_v45 }
 0xee6   :  { %6511 = vmatprep.subr.bf16.mxu0 %v9551_v46 }
 0xee9   :  { %6512 = vmatpush2.bf16.msra.mxu0 %v9552_v0 }
 0xeea   :  { %6513 = vmatprep.subr.bf16.mxu0 %v9553_v9 }
 0xeed   :  { %6514 = vmatpush2.bf16.msra.mxu0 %v9554_v28 }
 0xeee   :  { %6515 = vmatprep.subr.bf16.mxu0 %v9555_v44 }
 0xef1   :  { %6516 = vmatpush2.bf16.msra.mxu0 %v9556_v50 }
 0xef4   :  { %6518 = vmatmul.mubr.bf16.vlgmr.msra.gmra.mxu0 %v14860_v61  ;;  %v15089_v61 = vpop.f32.mrf.mxu1 }
 0xef5   :  { %6527 = vmatprep.mubr.bf16.mxu0 %v14872_v38 }
 0xef6   :  { %v15091_v38 = vpop.f32.mrf.mxu1 }
 0xefc   :  { %6528 = vmatmul.mubr.bf16.gmra.mxu0 %v14870_v29  ;;  %v15093_v29 = vpop.f32.mrf.mxu1 }
 0xefd   :  { %6537 = vmatprep.mubr.bf16.mxu0 %v14890_v31 }
 0xf04   :  { %6538 = vmatmul.mubr.bf16.gmra.mxu0 %v14888_v21  ;;  %v15095_v21 = vpop.f32.mrf.mxu1 }
 0xf05   :  { %6547 = vmatprep.mubr.bf16.mxu0 %v14908_v58 }
 0xf06   :  { %v15097_v40 = vpop.f32.mrf.mxu1 }
 0xf08   :  { %v15099_v37 = vpop.f32.mrf.mxu1 }
 0xf0a   :  { %v15101_v63 = vpop.f32.mrf.mxu1 }
 0xf0c   :  { %6548 = vmatmul.mubr.bf16.gmra.mxu0 %v14906_v57  ;;  %v15103_v51 = vpop.f32.mrf.mxu1 }
 0xf0e   :  { %v15105_v11 = vpop.f32.mrf.mxu1 }
 0xf10   :  { %v15107_v25 = vpop.f32.mrf.mxu1 }
 0xf12   :  { %v15109_v30 = vpop.f32.mrf.mxu1 }
 0xf14   :  { %v15111_v5 = vpop.f32.mrf.mxu1 }
 0xf16   :  { %v15113_v8 = vpop.f32.mrf.mxu1 }
 0xf18   :  { %v15115_v12 = vpop.f32.mrf.mxu1 }
 0xf1a   :  { %v15117_v16 = vpop.f32.mrf.mxu1 }
 0xf1c   :  { %v15119_v46 = vpop.f32.mrf.mxu1 }
 0xf1e   :  { %v15121_v9 = vpop.f32.mrf.mxu1 }
 0xf20   :  { %v15124_v50 = vpop.f32.mrf.mxu1 }
 0xf22   :  { %v15127_v36 = vpop.f32.mrf.mxu1 }
 0xf24   :  { %v15130_v34 = vpop.f32.mrf.mxu1 }
 0xf34   :  { %v6035_v31 = vpop.f32.mrf.mxu0 }
 0xf35   :  { %v6036_v44 = vadd.f32 %v6035_v31, %v10629_v24 }
 0xf36   :  { %v6037_v58 = vpop.f32.mrf.mxu0 }
 0xf37   :  { %v6038_v20 = vadd.f32 %v6037_v58, %v10639_v32  ;;  %v6109_v33 = vadd.f32 %v6108_v56, %v6036_v44  ;;  %v15135_v58 = vpop.f32.mrf.mxu1 }
 0xf38   :  { %v6039_v57 = vpop.f32.mrf.mxu0 }
 0xf39   :  { %v6111_v14 = vadd.f32 %v6110_v17, %v6038_v20  ;;  %v6040_v43 = vadd.f32 %v6039_v57, %v10629_v24  ;;  %v7391_v13 = vmul.f32 -1.442695, %v6109_v33  ;;  %v15141_v44 = vpop.f32.mrf.mxu1 }
 0xf3a   :  { %v6041_v47 = vpop.f32.mrf.mxu0 }
 0xf3b   :  { %v7392_v52 = vmul.f32 -1.442695, %v6111_v14  ;;  %v6113_v7 = vadd.f32 %v6112_v15, %v6040_v43  ;;  %v6042_v31 = vadd.f32 %v6041_v47, %v10639_v32  ;;  %8599 = vpow2.f32 %v7391_v13 }
 0xf3c   :  { %v6045_v18 = vpop.f32.mrf.mxu0 }
 0xf3d   :  { %v6046_v56 = vadd.f32 %v6045_v18, %v10629_v24  ;;  %8601 = vpow2.f32 %v7392_v52  ;;  %v7393_v20 = vmul.f32 -1.442695, %v6113_v7  ;;  %v6115_v17 = vadd.f32 %v6114_v62, %v6042_v31  ;;  %v15147_v18 = vpop.f32.mrf.mxu1 }
 0xf3e   :  { %v6047_v3 = vpop.f32.mrf.mxu0 }
 0xf3f   :  { %v6048_v57 = vadd.f32 %v6047_v3, %v10639_v32  ;;  %v6119_v14 = vadd.f32 %v6118_v4, %v6046_v56  ;;  %8603 = vpow2.f32 %v7393_v20  ;;  %v7394_v13 = vmul.f32 -1.442695, %v6115_v17  ;;  %v15156_v56 = vpop.f32.mrf.mxu1 }
 0xf40   :  { %v6049_v60 = vpop.f32.mrf.mxu0 }
 0xf41   :  { %v6050_v43 = vadd.f32 %v6049_v60, %v10629_v24  ;;  %v6121_v15 = vadd.f32 %v6120_v19, %v6048_v57  ;;  %v7395_v52 = vmul.f32 -1.442695, %v6119_v14  ;;  %8605 = vpow2.f32 %v7394_v13 }
 0xf42   :  { %v6051_v49 = vpop.f32.mrf.mxu0 }
 0xf43   :  { %v6052_v47 = vadd.f32 %v6051_v49, %v10639_v32  ;;  %v6123_v7 = vadd.f32 %v15087_v41, %v6050_v43  ;;  %v7396_v3 = vmul.f32 -1.442695, %v6121_v15  ;;  %8607 = vpow2.f32 %v7395_v52  ;;  %v15164_v15 = vpop.f32.mrf.mxu1 }
 0xf44   :  { %v6055_v35 = vpop.f32.mrf.mxu0 }
 0xf45   :  { %v6056_v62 = vadd.f32 %v6055_v35, %v10629_v24  ;;  %v6125_v4 = vadd.f32 %v15089_v61, %v6052_v47  ;;  %v7397_v20 = vmul.f32 -1.442695, %v6123_v7  ;;  %8609 = vpow2.f32 %v7396_v3 }
 0xf46   :  { %v6057_v39 = vpop.f32.mrf.mxu0 }
 0xf47   :  { %v6058_v60 = vadd.f32 %v6057_v39, %v10639_v32  ;;  %v6129_v17 = vadd.f32 %v15091_v38, %v6056_v62  ;;  %v7398_v57 = vmul.f32 -1.442695, %v6125_v4  ;;  %8611 = vpow2.f32 %v7397_v20  ;;  %v15168_v62 = vpop.f32.mrf.mxu1 }
 0xf48   :  { %v6059_v10 = vpop.f32.mrf.mxu0  ;;  %v8600_v49 = vpop.eup %8599 }
 0xf49   :  { %v6060_v31 = vadd.f32 %v6059_v10, %v10629_v24  ;;  %v6131_v61 = vadd.f32 %v15093_v29, %v6058_v60  ;;  %v6341_v14 = vadd.f32 1.0, %v8600_v49  ;;  %v7399_v47 = vmul.f32 -1.442695, %v6129_v17 }
 0xf4a   :  { %v6061_v45 = vpop.f32.mrf.mxu0  ;;  %v8602_v35 = vpop.eup %8601  ;;  %8613 = vpow2.f32 %v7398_v57 }
 0xf4b   :  { %v6062_v41 = vadd.f32 %v6061_v45, %v10639_v32  ;;  %v6133_v10 = vadd.f32 %v15095_v21, %v6060_v31  ;;  %v6342_v52 = vadd.f32 1.0, %v8602_v35  ;;  %v7400_v29 = vmul.f32 -1.442695, %v6131_v61 }
 0xf4c   :  { %v6065_v0 = vpop.f32.mrf.mxu0  ;;  %v8604_v7 = vpop.eup %8603  ;;  %8615 = vrcp.f32 %v6341_v14 }
 0xf4d   :  { %v6066_v39 = vadd.f32 %v6065_v0, %v10629_v24  ;;  %v6135_v38 = vadd.f32 %v15097_v40, %v6062_v41  ;;  %8617 = vpow2.f32 %v7399_v47 }
 0xf4e   :  { %v6067_v28 = vpop.f32.mrf.mxu0  ;;  %8619 = vrcp.f32 %v6342_v52  ;;  %v8606_v49 = vpop.eup %8605 }
 0xf4f   :  { %v6068_v43 = vadd.f32 %v6067_v28, %v10639_v32  ;;  %v6139_v0 = vadd.f32 %v15099_v37, %v6066_v39  ;;  %v7401_v28 = vmul.f32 -1.442695, %v6133_v10  ;;  %v7402_v40 = vmul.f32 -1.442695, %v6135_v38  ;;  %v15177_v37 = vpop.f32.mrf.mxu1 }
 0xf50   :  { %v6069_v27 = vpop.f32.mrf.mxu0  ;;  %8621 = vpow2.f32 %v7400_v29  ;;  %v8608_v41 = vpop.eup %8607 }
 0xf51   :  { %v6070_v45 = vadd.f32 %v6069_v27, %v10629_v24  ;;  %v6141_v3 = vadd.f32 %v15101_v63, %v6068_v43  ;;  %v6343_v27 = vadd.f32 1.0, %v8604_v7  ;;  %8623 = vpow2.f32 %v7401_v28  ;;  %v15186_v61 = vpop.f32.mrf.mxu1 }
 0xf52   :  { %v6071_v2 = vpop.f32.mrf.mxu0  ;;  %8625 = vpow2.f32 %v7402_v40  ;;  %v8610_v39 = vpop.eup %8609  ;;  %v6345_v43 = vadd.f32 1.0, %v8608_v41 }
 0xf53   :  { %v6072_v21 = vadd.f32 %v6071_v2, %v10639_v32  ;;  %v6143_v24 = vadd.f32 %v15103_v51, %v6070_v45  ;;  %v7403_v32 = vmul.f32 -1.442695, %v6139_v0  ;;  %v7404_v63 = vmul.f32 -1.442695, %v6141_v3  ;;  %v15193_v45 = vpop.f32.mrf.mxu1 }
 0xf54   :  { %8627 = vrcp.f32 %v6343_v27  ;;  %v8612_v47 = vpop.eup %8611  ;;  %v6346_v52 = vadd.f32 1.0, %v8610_v39 }
 0xf55   :  { %v6145_v2 = vadd.f32 %v15105_v11, %v6072_v21  ;;  %v7405_v17 = vmul.f32 -1.442695, %v6143_v24  ;;  %8629 = vpow2.f32 %v7403_v32  ;;  %v6347_v21 = vadd.f32 1.0, %v8612_v47  ;;  %v15202_v40 = vpop.f32.mrf.mxu1 }
 0xf56   :  { %8631 = vpow2.f32 %v7404_v63 }
 0xf57   :  { %v7406_v11 = vmul.f32 -1.442695, %v6145_v2  ;;  %8633 = vpow2.f32 %v7405_v17  ;;  %v8614_v7 = vpop.eup %8613 }
 0xf58   :  { %v6348_v24 = vadd.f32 1.0, %v8614_v7 }
 0xf59   :  { %v15196_v0 = vpop.eup %8615 }
 0xf5a   :  { %v8618_v28 = vpop.eup %8617 }
 0xf5b   :  { %v6349_v32 = vadd.f32 1.0, %v8618_v28 }
 0xf74   :  { %v6181_v55 = vpop.f32.mrf.mxu0 }
 0xf75   :  { %v6182_v4 = vadd.f32 %v6181_v55, %v10695_v22 }
 0xf76   :  { %v15133_v48 = vpop.f32.mrf.mxu0 }
 0xf77   :  { %v6184_v31 = vadd.f32 %v15133_v48, %v10703_v26  ;;  %v6255_v55 = vadd.f32 %v15107_v25, %v6182_v4  ;;  %v6344_v48 = vadd.f32 1.0, %v8606_v49  ;;  %v15200_v4 = vpop.eup %8619 }
 0xf78   :  { %v15139_v33 = vpop.f32.mrf.mxu0  ;;  %v8622_v27 = vpop.eup %8621 }
 0xf79   :  { %v6186_v20 = vadd.f32 %v15139_v33, %v10695_v22  ;;  %v6257_v35 = vadd.f32 %v15109_v30, %v6184_v31  ;;  %v7407_v25 = vmul.f32 -1.442695, %v6255_v55  ;;  %8635 = vrcp.f32 %v6344_v48  ;;  %v8624_v49 = vpop.eup %8623 }
 0xf7a   :  { %v15145_v1 = vpop.f32.mrf.mxu0  ;;  %8637 = vpow2.f32 %v7406_v11  ;;  %v8626_v2 = vpop.eup %8625  ;;  %v6350_v17 = vadd.f32 1.0, %v8622_v27  ;;  %v6351_v48 = vadd.f32 1.0, %v8624_v49 }
 0xf7b   :  { %v6188_v57 = vadd.f32 %v15145_v1, %v10703_v26  ;;  %v6259_v33 = vadd.f32 %v15111_v5, %v6186_v20  ;;  %v7408_v30 = vmul.f32 -1.442695, %v6257_v35  ;;  %8639 = vpow2.f32 %v7407_v25  ;;  %v15206_v55 = vpop.eup %8627  ;;  %v15208_v20 = vpop.f32.mrf.mxu1 }
 0xf7c   :  { %v15154_v19 = vpop.f32.mrf.mxu0  ;;  %8641 = vrcp.f32 %v6345_v43  ;;  %v8630_v41 = vpop.eup %8629  ;;  %v6352_v11 = vadd.f32 1.0, %v8626_v2 }
 0xf7d   :  { %v6192_v14 = vadd.f32 %v15154_v19, %v10695_v22  ;;  %v6261_v1 = vadd.f32 %v15113_v8, %v6188_v57  ;;  %v7409_v5 = vmul.f32 -1.442695, %v6259_v33  ;;  %8643 = vpow2.f32 %v7408_v30  ;;  %v8632_v57 = vpop.eup %8631 }
 0xf7e   :  { %v6193_v13 = vpop.f32.mrf.mxu0  ;;  %8645 = vrcp.f32 %v6346_v52  ;;  %v8634_v25 = vpop.eup %8633  ;;  %v6353_v43 = vadd.f32 1.0, %v8630_v41 }
 0xf7f   :  { %v6194_v38 = vadd.f32 %v6193_v13, %v10703_v26  ;;  %v6265_v29 = vadd.f32 %v15115_v12, %v6192_v14  ;;  %v7410_v3 = vmul.f32 -1.442695, %v6261_v1  ;;  %8647 = vpow2.f32 %v7409_v5  ;;  %v15214_v14 = vpop.f32.mrf.mxu1 }
 0xf80   :  { %v6195_v60 = vpop.f32.mrf.mxu0  ;;  %8649 = vrcp.f32 %v6347_v21  ;;  %v6354_v1 = vadd.f32 1.0, %v8632_v57 }
 0xf81   :  { %v6267_v8 = vadd.f32 %v15117_v16, %v6194_v38  ;;  %v6196_v13 = vadd.f32 %v6195_v60, %v10695_v22  ;;  %v7411_v12 = vmul.f32 -1.442695, %v6265_v29  ;;  %8651 = vpow2.f32 %v7410_v3  ;;  %v15221_v28 = vpop.f32.mrf.mxu1 }
 0xf82   :  { %v6197_v51 = vpop.f32.mrf.mxu0  ;;  %8653 = vrcp.f32 %v6348_v24 }
 0xf83   :  { %v7412_v63 = vmul.f32 -1.442695, %v6267_v8  ;;  %v6269_v16 = vadd.f32 %v15119_v46, %v6196_v13  ;;  %v6198_v60 = vadd.f32 %v6197_v51, %v10703_v26  ;;  %8655 = vpow2.f32 %v7411_v12 }
 0xf84   :  { %v6201_v10 = vpop.f32.mrf.mxu0  ;;  %8657 = vrcp.f32 %v6349_v32 }
 0xf85   :  { %v6202_v39 = vadd.f32 %v6201_v10, %v10695_v22  ;;  %8659 = vpow2.f32 %v7412_v63  ;;  %v7413_v46 = vmul.f32 -1.442695, %v6269_v16  ;;  %v6271_v51 = vadd.f32 %v15121_v9, %v6198_v60 }
 0xf86   :  { %v6203_v19 = vpop.f32.mrf.mxu0  ;;  %v15212_v33 = vpop.eup %8635  ;;  %8661 = vrcp.f32 %v6350_v17  ;;  %v6355_v10 = vadd.f32 1.0, %v8634_v25 }
 0xf87   :  { %v6204_v47 = vadd.f32 %v6203_v19, %v10703_v26  ;;  %v8638_v30 = vpop.eup %8637  ;;  %8663 = vrcp.f32 %v6351_v48  ;;  %v6275_v7 = vadd.f32 %v15124_v50, %v6202_v39  ;;  %v7414_v29 = vmul.f32 -1.442695, %v6271_v51 }
 0xf88   :  { %v6205_v31 = vpop.f32.mrf.mxu0  ;;  %v8640_v52 = vpop.eup %8639  ;;  %8665 = vrcp.f32 %v6352_v11  ;;  %v6356_v19 = vadd.f32 1.0, %v8638_v30 }
 0xf89   :  { %v6206_v5 = vadd.f32 %v6205_v31, %v10695_v22  ;;  %v15219_v9 = vpop.eup %8641  ;;  %8667 = vpow2.f32 %v7413_v46  ;;  %v6277_v3 = vadd.f32 %v15127_v36, %v6204_v47  ;;  %v6437_v24 = vadd.f32 1.0, %v8640_v52  ;;  %v15231_v36 = vpop.f32.mrf.mxu1 }
 0xf8a   :  { %v6207_v35 = vpop.f32.mrf.mxu0  ;;  %v8644_v21 = vpop.eup %8643  ;;  %8669 = vrcp.f32 %v6353_v43  ;;  %v7415_v12 = vmul.f32 -1.442695, %v6275_v7 }
 0xf8b   :  { %v6208_v8 = vadd.f32 %v6207_v35, %v10703_v26  ;;  %v15225_v13 = vpop.eup %8645  ;;  %8671 = vrcp.f32 %v6354_v1  ;;  %v6279_v31 = vadd.f32 %v15130_v34, %v6206_v5  ;;  %v6438_v2 = vadd.f32 1.0, %v8644_v21  ;;  %v15240_v51 = vpop.f32.mrf.mxu1 }
 0xf8c   :  { %v6211_v38 = vpop.f32.mrf.mxu0  ;;  %v8648_v27 = vpop.eup %8647  ;;  %8673 = vrcp.f32 %v6355_v10  ;;  %v7416_v16 = vmul.f32 -1.442695, %v6277_v3  ;;  %v6595_v5 = vadd.f32 %v15177_v37, %v10784_v53 }
 0xf8d   :  { %v6212_v49 = vadd.f32 %v6211_v38, %v10695_v22  ;;  %v15229_v32 = vpop.eup %8649  ;;  %8675 = vpow2.f32 %v7414_v29  ;;  %v6281_v60 = vadd.f32 %v15135_v58, %v6208_v8  ;;  %v6439_v41 = vadd.f32 1.0, %v8648_v27 }
 0xf8e   :  { %v6213_v50 = vpop.f32.mrf.mxu0  ;;  %v8652_v63 = vpop.eup %8651  ;;  %8677 = vrcp.f32 %v6356_v19  ;;  %v7417_v57 = vmul.f32 -1.442695, %v6279_v31 }
 0xf8f   :  { %v15234_v17 = vpop.eup %8653  ;;  %8679 = vrcp.f32 %v6437_v24  ;;  %v6214_v48 = vadd.f32 %v6213_v50, %v10703_v26  ;;  %v6285_v11 = vadd.f32 %v15141_v44, %v6212_v49  ;;  %v6440_v25 = vadd.f32 1.0, %v8652_v63 }
 0xf90   :  { %v6215_v34 = vpop.f32.mrf.mxu0  ;;  %v8656_v35 = vpop.eup %8655  ;;  %8681 = vpow2.f32 %v7415_v12  ;;  %v7418_v58 = vmul.f32 -1.442695, %v6281_v60  ;;  %v6593_v44 = vadd.f32 %v15168_v62, %v10774_v23  ;;  %v6632_v49 = vmul.f32 %v15200_v4, %v6595_v5 }
 0xf91   :  { %v15238_v39 = vpop.eup %8657  ;;  %8683 = vrcp.f32 %v6438_v2  ;;  %v6441_v47 = vadd.f32 1.0, %v8656_v35  ;;  %v6287_v30 = vadd.f32 %v15147_v18, %v6214_v48  ;;  %v6216_v1 = vadd.f32 %v6215_v34, %v10695_v22  ;;  %v15256_v18 = vpop.f32.mrf.mxu1 }
 0xf92   :  { %v8660_v46 = vpop.eup %8659  ;;  %8685 = vpow2.f32 %v7416_v16  ;;  %v6217_v38 = vpop.f32.mrf.mxu0  ;;  %v7419_v10 = vmul.f32 -1.442695, %v6285_v11  ;;  %v6597_v22 = vadd.f32 %v15186_v61, %v10774_v23  ;;  %v6631_v62 = vmul.f32 %v15196_v0, %v6593_v44 }
 0xf93   :  { %v15242_v43 = vpop.eup %8661  ;;  %8687 = vrcp.f32 %v6439_v41  ;;  %v6442_v29 = vadd.f32 1.0, %v8660_v46  ;;  %v7420_v24 = vmul.f32 -1.442695, %v6287_v30  ;;  %v6289_v37 = vadd.f32 %v15156_v56, %v6216_v1  ;;  %v6618_v60 = vpop.f32.mrf.mxu1 }
 0xf94   :  { %v15246_v52 = vpop.eup %8663  ;;  %8689 = vpow2.f32 %v7417_v57  ;;  %v6218_v50 = vadd.f32 %v6217_v38, %v10703_v26  ;;  %v6599_v0 = vadd.f32 %v15193_v45, %v10784_v53  ;;  %v6633_v48 = vmul.f32 %v15206_v55, %v6597_v22 }
 0xf95   :  { %v15250_v7 = vpop.eup %8665  ;;  %8691 = vrcp.f32 %v6440_v25  ;;  %v6603_v4 = vadd.f32 %v15202_v40, %v10774_v23  ;;  %v7421_v35 = vmul.f32 -1.442695, %v6289_v37  ;;  %v6605_v55 = vadd.f32 %v15208_v20, %v10784_v53  ;;  %v6622_v38 = vpop.f32.mrf.mxu1 }
 0xf96   :  { %v8668_v19 = vpop.eup %8667  ;;  %8693 = vpow2.f32 %v7418_v58  ;;  %v6291_v45 = vadd.f32 %v15164_v15, %v6218_v50  ;;  %v6634_v58 = vmul.f32 %v15212_v33, %v6599_v0  ;;  %v6607_v33 = vadd.f32 %v15214_v14, %v10774_v23 }
 0xf97   :  { %v15260_v8 = vpop.eup %8669  ;;  %8695 = vrcp.f32 %v6441_v47  ;;  %v6443_v63 = vadd.f32 1.0, %v8668_v19  ;;  %v6624_v14 = vpop.f32.mrf.mxu1  ;;  %v6615_v0 = vadd.f32 %v15240_v51, %v10784_v53 }
 0xf98   :  { %v15264_v12 = vpop.eup %8671  ;;  %8697 = vpow2.f32 %v7419_v10  ;;  %v6635_v10 = vmul.f32 %v15219_v9, %v6603_v4 }
 0xf99   :  { %v15268_v2 = vpop.eup %8673  ;;  %8699 = vrcp.f32 %v6442_v29  ;;  %v7422_v29 = vmul.f32 -1.442695, %v6291_v45  ;;  %v6626_v45 = vpop.f32.mrf.mxu1 }
 0xf9a   :  { %v8676_v56 = vpop.eup %8675 }
 0xf9b   :  { %v15274_v34 = vpop.eup %8677  ;;  %v6444_v30 = vadd.f32 1.0, %v8676_v56 }
 0xf9c   :  { %v15279_v11 = vpop.eup %8679 }
 0xf9d   :  { %v8682_v47 = vpop.eup %8681 }
 0xf9e   :  { %v15285_v1 = vpop.eup %8683  ;;  %v6445_v9 = vadd.f32 1.0, %v8682_v47 }
 0xf9f   :  { %v8686_v5 = vpop.eup %8685 }
 0xfa0   :  { %v15291_v20 = vpop.eup %8687 }
 0xfb4   :  { %v6519_v21 = vpop.f32.mrf.mxu0 }
 0xfb5   :  { %v6520_v3 = vadd.f32 %v6519_v21, %v10795_v59 }
 0xfb6   :  { %v6521_v27 = vpop.f32.mrf.mxu0 }
 0xfb7   :  { %v6647_v61 = vadd.f32 %v6631_v62, %v6520_v3  ;;  %v6522_v31 = vadd.f32 %v6521_v27, %v10807_v54  ;;  %v6636_v3 = vmul.f32 %v15225_v13, %v6605_v55  ;;  %v8690_v62 = vpop.eup %8689  ;;  %v6613_v13 = vadd.f32 %v15231_v36, %v10774_v23 }
 0xfb8   :  { %v6523_v16 = vpop.f32.mrf.mxu0  ;;  %v15297_v50 = vpop.eup %8691  ;;  %v6619_v36 = vadd.f32 %v6618_v60, %v10784_v53  ;;  %v6447_v4 = vadd.f32 1.0, %v8690_v62  ;;  %v6640_v60 = vmul.f32 %v15242_v43, %v6615_v0  ;;  %v15550_v0 = vld [vmem:[#allocation6_spill] sm:$0xff] }
 0xfb9   :  { %8701 = vtanh.f32 %v6647_v61  ;;  %v6648_v26 = vadd.f32 %v6632_v49, %v6522_v31  ;;  %v6524_v41 = vadd.f32 %v6523_v16, %v10795_v59  ;;  %v6637_v31 = vmul.f32 %v15229_v32, %v6607_v33  ;;  %v8694_v49 = vpop.eup %8693 }
 0xfba   :  { %8703 = vpow2.f32 %v7420_v24  ;;  %v6525_v57 = vpop.f32.mrf.mxu0  ;;  %v6609_v24 = vadd.f32 %v15221_v28, %v10784_v53  ;;  %v6446_v28 = vadd.f32 1.0, %v8686_v5  ;;  %v15305_v16 = vpop.eup %8695  ;;  %v6617_v32 = vadd.f32 %v15256_v18, %v10774_v23 }
 0xfbb   :  { %8705 = vtanh.f32 %v6648_v26  ;;  %v6649_v25 = vadd.f32 %v6633_v48, %v6524_v41  ;;  %v6526_v46 = vadd.f32 %v6525_v57, %v10807_v54  ;;  %v8698_v48 = vpop.eup %8697  ;;  %v6448_v47 = vadd.f32 1.0, %v8694_v49 }
 0xfbc   :  { %8707 = vrcp.f32 %v6443_v63  ;;  %v6529_v40 = vpop.f32.mrf.mxu0  ;;  %v6638_v41 = vmul.f32 %v15234_v17, %v6609_v24  ;;  %v6623_v17 = vadd.f32 %v6622_v38, %v10774_v23  ;;  %v6449_v5 = vadd.f32 1.0, %v8698_v48  ;;  %v6628_v24 = vpop.f32.mrf.mxu1 }
 0xfbd   :  { %8709 = vtanh.f32 %v6649_v25  ;;  %v6650_v15 = vadd.f32 %v6634_v58, %v6526_v46  ;;  %v6530_v44 = vadd.f32 %v6529_v40, %v10795_v59  ;;  %v6639_v46 = vmul.f32 %v15238_v39, %v6613_v13 }
 0xfbe   :  { %8711 = vpow2.f32 %v7421_v35  ;;  %v6531_v21 = vpop.f32.mrf.mxu0  ;;  %v15312_v35 = vpop.eup %8699  ;;  %v6627_v39 = vadd.f32 %v6626_v45, %v10774_v23  ;;  %v6642_v23 = vmul.f32 %v15250_v7, %v6619_v36  ;;  %v6643_v49 = vmul.f32 %v15260_v8, %v6623_v17 }
 0xfbf   :  { %8713 = vtanh.f32 %v6650_v15  ;;  %v6651_v19 = vadd.f32 %v6635_v10, %v6530_v44  ;;  %v6532_v22 = vadd.f32 %v6531_v21, %v10807_v54  ;;  %v6625_v10 = vadd.f32 %v6624_v14, %v10784_v53  ;;  %v15549_v14 = vld [vmem:[#allocation5_spill] sm:$0xff] }
 0xfc0   :  { %8715 = vrcp.f32 %v6444_v30  ;;  %v6533_v37 = vpop.f32.mrf.mxu0 }
 0xfc1   :  { %8717 = vtanh.f32 %v6651_v19  ;;  %v6652_v27 = vadd.f32 %v6636_v3, %v6532_v22  ;;  %v6534_v61 = vadd.f32 %v6533_v37, %v10795_v59  ;;  %v6641_v22 = vmul.f32 %v15246_v52, %v6617_v32 }
 0xfc2   :  { %8719 = vpow2.f32 %v7422_v29  ;;  %v6535_v63 = vpop.f32.mrf.mxu0 }
 0xfc3   :  { %8721 = vtanh.f32 %v6652_v27  ;;  %v6653_v56 = vadd.f32 %v6637_v31, %v6534_v61  ;;  %v6536_v26 = vadd.f32 %v6535_v63, %v10807_v54 }
 0xfc4   :  { %8723 = vrcp.f32 %v6445_v9  ;;  %v6539_v51 = vpop.f32.mrf.mxu0 }
 0xfc5   :  { %8725 = vtanh.f32 %v6653_v56  ;;  %v6654_v57 = vadd.f32 %v6638_v41, %v6536_v26  ;;  %v6540_v25 = vadd.f32 %v6539_v51, %v10795_v59  ;;  %v6629_v56 = vadd.f32 %v6628_v24, %v10784_v53 }
 0xfc6   :  { %v8702_v58 = vpop.eup %8701  ;;  %8727 = vrcp.f32 %v6446_v28  ;;  %v6541_v18 = vpop.f32.mrf.mxu0  ;;  %v6645_v53 = vmul.f32 %v15268_v2, %v6627_v39 }
 0xfc7   :  { %v8704_v55 = vpop.eup %8703  ;;  %v6679_v30 = vsub.f32 %v14350_v6, %v8702_v58  ;;  %8729 = vtanh.f32 %v6654_v57  ;;  %v6655_v40 = vadd.f32 %v6639_v46, %v6540_v25  ;;  %v6542_v15 = vadd.f32 %v6541_v18, %v10807_v54  ;;  %v15552_v18 = vld [vmem:[#allocation8_spill] sm:$0xff] }
 0xfc8   :  { %v8706_v44 = vpop.eup %8705  ;;  %8731 = vrcp.f32 %v6447_v4  ;;  %v6543_v38 = vpop.f32.mrf.mxu0  ;;  %v6450_v26 = vadd.f32 1.0, %v8704_v55  ;;  %v15551_v4 = vld [vmem:[#allocation9_spill] sm:$0xff]  ;;  %v6644_v25 = vmul.f32 %v15264_v12, %v6625_v10  ;;  %v15553_v10 = vld [vmem:[#allocation7_spill] sm:$0xff] }
 0xfc9   :  { %v15322_v33 = vpop.eup %8707  ;;  %v6695_v29 = vmul.f32 %v15279_v11, %v6679_v30  ;;  %v6680_v43 = vsub.f32 %v14346_v42, %v8706_v44  ;;  %8733 = vtanh.f32 %v6655_v40  ;;  %v6656_v6 = vadd.f32 %v6640_v60, %v6542_v15 }
 0xfca   :  { %v8710_v21 = vpop.eup %8709  ;;  %8735 = vrcp.f32 %v6448_v47  ;;  %v6544_v19 = vadd.f32 %v6543_v38, %v10795_v59  ;;  %v6545_v3 = vpop.f32.mrf.mxu0  ;;  %v6646_v15 = vmul.f32 %v15274_v34, %v6629_v56  ;;  %v15554_v34 = vld [vmem:[#allocation11_spill] sm:$0xff] }
 0xfcb   :  { %v8712_v62 = vpop.eup %8711  ;;  %v6711_v9 = vadd.f32 %v8702_v58, %v6695_v29  ;;  %v6696_v37 = vmul.f32 %v15285_v1, %v6680_v43  ;;  %v6681_v11 = vsub.f32 %v15549_v14, %v8710_v21  ;;  %8737 = vtanh.f32 %v6656_v6 }
 0xfcc   :  { %v8714_v42 = vpop.eup %8713  ;;  %8739 = vrcp.f32 %v6449_v5  ;;  %v6657_v27 = vadd.f32 %v6641_v22, %v6544_v19  ;;  %v6546_v61 = vadd.f32 %v6545_v3, %v10807_v54  ;;  %v6549_v31 = vpop.f32.mrf.mxu0  ;;  %v6451_v38 = vadd.f32 1.0, %v8712_v62 }
 0xfcd   :  { %v8716_v52 = vpop.eup %8715  ;;  %6727 = vst [vmem:[#allocation2] sm:$0xff] %v6711_v9  ;;  %v6712_v13 = vadd.f32 %v8706_v44, %v6696_v37  ;;  %v6697_v7 = vmul.f32 %v15291_v20, %v6681_v11  ;;  %v6682_v28 = vsub.f32 %v15550_v0, %v8714_v42  ;;  %v6550_v1 = vadd.f32 %v6549_v31, %v10795_v59 }
 0xfce   :  { %v8718_v63 = vpop.eup %8717  ;;  %8741 = vtanh.f32 %v6657_v27  ;;  %v6658_v41 = vadd.f32 %v6642_v23, %v6546_v61  ;;  %v6551_v48 = vpop.f32.mrf.mxu0 }
 0xfcf   :  { %v8720_v32 = vpop.eup %8719  ;;  %6728 = vst [vmem:[#allocation2 + $0x8] sm:$0xff] %v6712_v13  ;;  %v6713_v36 = vadd.f32 %v8710_v21, %v6697_v7  ;;  %v6698_v8 = vmul.f32 %v15297_v50, %v6682_v28  ;;  %v6683_v51 = vsub.f32 %v15551_v4, %v8718_v63  ;;  %v6659_v45 = vadd.f32 %v6643_v49, %v6550_v1  ;;  %v15557_v49 = vld [vmem:[#allocation12_spill] sm:$0xff]  ;;  %v15558_v1 = vld [vmem:[#allocation15_spill] sm:$0xff] }
 0xfd0   :  { %v8722_v20 = vpop.eup %8721  ;;  %8743 = vtanh.f32 %v6658_v41  ;;  %v6552_v57 = vadd.f32 %v6551_v48, %v10807_v54  ;;  %v6553_v46 = vpop.f32.mrf.mxu0  ;;  %v6452_v29 = vadd.f32 1.0, %v8720_v32 }
 0xfd1   :  { %v8724_v58 = vpop.eup %8723  ;;  %6729 = vst [vmem:[#allocation2 + $0x10] sm:$0xff] %v6713_v36  ;;  %v6714_v17 = vadd.f32 %v8714_v42, %v6698_v8  ;;  %v6699_v47 = vmul.f32 %v15305_v16, %v6683_v51  ;;  %v6684_v60 = vsub.f32 %v15552_v18, %v8722_v20  ;;  %8745 = vtanh.f32 %v6659_v45  ;;  %v15560_v51 = vld [vmem:[#allocation16_spill] sm:$0xff] }
 0xfd2   :  { %v8726_v50 = vpop.eup %8725  ;;  %8747 = vrcp.f32 %v6450_v26  ;;  %v6660_v55 = vadd.f32 %v6644_v25, %v6552_v57  ;;  %v6554_v30 = vadd.f32 %v6553_v46, %v10795_v59  ;;  %v6555_v40 = vpop.f32.mrf.mxu0  ;;  %v15559_v26 = vld [vmem:[#allocation20_spill] sm:$0xff] }
 0xfd3   :  { %v8728_v12 = vpop.eup %8727  ;;  %6730 = vst [vmem:[#allocation2 + $0x18] sm:$0xff] %v6714_v17  ;;  %v6715_v44 = vadd.f32 %v8718_v63, %v6699_v47  ;;  %v6700_v2 = vmul.f32 %v15312_v35, %v6684_v60  ;;  %v6685_v39 = vsub.f32 %v15553_v10, %v8726_v50  ;;  %v6556_v16 = vadd.f32 %v6555_v40, %v10807_v54  ;;  %v15555_v54 = vld [vmem:[#allocation13_spill] sm:$0xff]  ;;  %v15562_v47 = vld [vmem:[#allocation14_spill] sm:$0xff] }
 0xfd4   :  { %v8730_v5 = vpop.eup %8729  ;;  %8749 = vtanh.f32 %v6660_v55  ;;  %v6661_v43 = vadd.f32 %v6645_v53, %v6554_v30  ;;  %v15561_v53 = vld [vmem:[#allocation18_spill] sm:$0xff] }
 0xfd5   :  { %v8732_v6 = vpop.eup %8731  ;;  %6731 = vst [vmem:[#allocation2 + $0x20] sm:$0xff] %v6715_v44  ;;  %v6716_v59 = vadd.f32 %v8722_v20, %v6700_v2  ;;  %v6701_v21 = vmul.f32 %v15322_v33, %v6685_v39  ;;  %v6686_v19 = vsub.f32 %v15554_v34, %v8730_v5  ;;  %v6662_v22 = vadd.f32 %v6646_v15, %v6556_v16  ;;  %v15556_v33 = vld [vmem:[#allocation10_spill] sm:$0xff] }
 0xfd6   :  { %v8734_v3 = vpop.eup %8733  ;;  %8751 = vtanh.f32 %v6661_v43 }
 0xfd7   :  { %v8736_v35 = vpop.eup %8735  ;;  %6732 = vst [vmem:[#allocation2 + $0x28] sm:$0xff] %v6716_v59  ;;  %v6717_v23 = vadd.f32 %v8726_v50, %v6701_v21  ;;  %v6702_v24 = vmul.f32 %v8716_v52, %v6686_v19  ;;  %v6687_v9 = vsub.f32 %v15555_v54, %v8734_v3  ;;  %8753 = vtanh.f32 %v6662_v22 }
 0xfd8   :  { %v8738_v62 = vpop.eup %8737  ;;  %8755 = vrcp.f32 %v6451_v38 }
 0xfd9   :  { %v8740_v37 = vpop.eup %8739  ;;  %8757 = vrcp.f32 %v6452_v29  ;;  %6733 = vst [vmem:[#allocation2 + $0x30] sm:$0xff] %v6717_v23  ;;  %v6718_v14 = vadd.f32 %v8730_v5, %v6702_v24  ;;  %v6703_v11 = vmul.f32 %v8724_v58, %v6687_v9  ;;  %v6688_v42 = vsub.f32 %v15556_v33, %v8738_v62 }
 0xfdb   :  { %v8742_v27 = vpop.eup %8741  ;;  %6734 = vst [vmem:[#allocation2 + $0x38] sm:$0xff] %v6718_v14  ;;  %v6719_v61 = vadd.f32 %v8734_v3, %v6703_v11  ;;  %v6704_v31 = vmul.f32 %v8728_v12, %v6688_v42 }
 0xfdc   :  { %v6689_v13 = vsub.f32 %v15557_v49, %v8742_v27 }
 0xfdd   :  { %v8744_v7 = vpop.eup %8743  ;;  %6735 = vst [vmem:[#allocation2 + $0x40] sm:$0xff] %v6719_v61  ;;  %v6720_v52 = vadd.f32 %v8738_v62, %v6704_v31 }
 0xfde   :  { %v8746_v0 = vpop.eup %8745  ;;  %v6705_v28 = vmul.f32 %v8732_v6, %v6689_v13  ;;  %v6690_v63 = vsub.f32 %v15558_v1, %v8744_v7 }
 0xfdf   :  { %v8748_v56 = vpop.eup %8747  ;;  %6736 = vst [vmem:[#allocation2 + $0x48] sm:$0xff] %v6720_v52  ;;  %v6691_v41 = vsub.f32 %v15559_v26, %v8746_v0 }
 0xfe0   :  { %v6721_v48 = vadd.f32 %v8742_v27, %v6705_v28  ;;  %v6706_v32 = vmul.f32 %v8736_v35, %v6690_v63 }
 0xfe1   :  { %v8750_v36 = vpop.eup %8749  ;;  %v6707_v8 = vmul.f32 %v8740_v37, %v6691_v41 }
 0xfe2   :  { %6737 = vst [vmem:[#allocation2 + $0x50] sm:$0xff] %v6721_v48  ;;  %v6722_v4 = vadd.f32 %v8744_v7, %v6706_v32  ;;  %v6692_v45 = vsub.f32 %v15560_v51, %v8750_v36 }
 0xfe3   :  { %v8752_v20 = vpop.eup %8751  ;;  %v6723_v57 = vadd.f32 %v8746_v0, %v6707_v8 }
 0xfe4   :  { %v8754_v25 = vpop.eup %8753  ;;  %6738 = vst [vmem:[#allocation2 + $0x58] sm:$0xff] %v6722_v4  ;;  %v6708_v46 = vmul.f32 %v8748_v56, %v6692_v45  ;;  %v6693_v58 = vsub.f32 %v15561_v53, %v8752_v20 }
 0xfe5   :  { %v8756_v17 = vpop.eup %8755  ;;  %6739 = vst [vmem:[#allocation2 + $0x60] sm:$0xff] %v6723_v57  ;;  %v6694_v18 = vsub.f32 %v15562_v47, %v8754_v25 }
 0xfe6   :  { %v8758_v60 = vpop.eup %8757  ;;  %v6724_v50 = vadd.f32 %v8750_v36, %v6708_v46  ;;  %v6709_v55 = vmul.f32 %v8756_v17, %v6693_v58 }
 0xfe7   :  { %v6710_v30 = vmul.f32 %v8758_v60, %v6694_v18 }
 0xfe8   :  { %6740 = vst [vmem:[#allocation2 + $0x68] sm:$0xff] %v6724_v50  ;;  %v6725_v40 = vadd.f32 %v8752_v20, %v6709_v55 }
 0xfe9   :  { %v6726_v15 = vadd.f32 %v8754_v25, %v6710_v30 }
 0xfea   :  { %6741 = vst [vmem:[#allocation2 + $0x70] sm:$0xff] %v6725_v40 }
 0xfeb   :  { %6742 = vst [vmem:[#allocation2 + $0x78] sm:$0xff] %v6726_v15 }
 0xfec   :  { %9568 = shalt.err (!%p9565_p4)
}
 0xfed   :  { %s9581_s15 = smov 256   ;;  %s9582_s16 = smov 16  }
 0xfee   :  { %6754 = dma.vmem_to_hbm [thread:$0]  %s6749_s3, 2048, %s15369_s7, [#allocation3], %s9581_s15, %s9581_s15, %s9582_s16  }
 0xfef   :  { %9577 = dma.done.wait [#allocation3], 2048  }
 0xff0   :  { %9578 = vsyncadd [#allocation3], 4294965248 }
 0xff1   :  { %6758 = vsyncpa [#allocation3], 1 }

</bundles_post_ra>
